<compile_context>
chip_gen: v6e
topology: v6e:2x2x1
jax: 0.10.0
libtpu: 0.0.40
codegen_flags: <defaults>
</compile_context>

<pallas_src>
import functools
import math

import jax
import jax.numpy as jnp
from jax import lax
from jax.experimental import pallas as pl
from jax.experimental.pallas import tpu as pltpu

VMEM = pl.BlockSpec(memory_space=pltpu.MemorySpace.VMEM)
EPS_LN = 1e-5    # nn.LayerNorm default
EPS_RMS = 1e-5   # RMSNormGated eps used by Mamba2


# ----------------------------- in-kernel helpers -----------------------------

def _softplus(x):
    return jnp.maximum(x, 0.0) + jnp.log(1.0 + jnp.exp(-jnp.abs(x)))


def _silu(x):
    return x * jax.nn.sigmoid(x)


def _erf(x):
    # Abramowitz & Stegun 7.1.26, |abs err| < 1.5e-7 (~f32 eps), VPU-friendly ops only.
    a1, a2, a3, a4, a5 = 0.254829592, -0.284496736, 1.421413741, -1.453152027, 1.061405429
    p = 0.3275911
    s = jnp.where(x >= 0.0, 1.0, -1.0)
    ax = jnp.abs(x)
    t = 1.0 / (1.0 + p * ax)
    poly = ((((a5 * t + a4) * t + a3) * t + a2) * t + a1) * t
    return s * (1.0 - poly * jnp.exp(-ax * ax))


def _gelu_exact(x):
    # TODO(synk): nn.GELU default is exact-erf GELU; erf approximated in-kernel (A&S, ~f32
    # exact). tanh-approx GELU would move the transcendental to the EUP if VALU ever binds.
    return 0.5 * x * (1.0 + _erf(x * (1.0 / math.sqrt(2.0))))


def _layernorm(x, g, b):
    mu = jnp.mean(x, axis=-1, keepdims=True)
    xc = x - mu
    var = jnp.mean(xc * xc, axis=-1, keepdims=True)
    return xc * lax.rsqrt(var + EPS_LN) * g + b


# ------------------------------- fused kernel --------------------------------

def _make_fused_kernel(B, L, D, E, N, H, P, K):
    """Whole-block fused kernel. Row layout is (batch*seq, channels), batch-major."""
    M = B * L
    CD = E + 2 * N            # conv channels: [x | B | C]
    f32 = jnp.float32

    def kernel(x_ref, ln1_g, ln1_b, w_in, conv_w, conv_b, a_log, d_par, dt_bias,
               rms_w, w_out, ln2_g, ln2_b, w1, b1, w2, b2, o_ref,
               zx_s, xc_s, da_s, dbx_s, dco_s, y_s):
        x = x_ref[...]                                         # (M, D), residual 1

        # ---- LayerNorm 1 ----
        xn = _layernorm(x, ln1_g[...], ln1_b[...])

        # ---- in_proj: single (M, D) x (D, 2E+2N+H) GEMM, bf16 operands, f32 accumulate ----
        w_in_v = w_in[...]
        zx_s[...] = jnp.dot(xn.astype(w_in_v.dtype), w_in_v,
                            preferred_element_type=f32)        # [z | xBC | dt]

        # ---- causal depthwise conv + SiLU over the sequence axis ----
        # The K-1 left zero-pad is folded into batch-blocked 0/1 shift matrices so the
        # shifted taps run on the MXU and never leak across the batch boundary at row L.
        xBC = zx_s[:, E:E + CD]                                # (M, CD)
        rr = lax.broadcasted_iota(jnp.int32, (M, M), 0)
        cc = lax.broadcasted_iota(jnp.int32, (M, M), 1)
        if (L & (L - 1)) == 0:
            t_in = jnp.bitwise_and(rr, L - 1)                  # time index within batch
        else:
            t_in = rr % L
        acc = xBC * conv_w[K - 1:K, :] + conv_b[...]           # zero-shift tap + bias
        for k in range(K - 1):
            shift = K - 1 - k
            S = jnp.where((cc == rr - shift) & (t_in >= shift), 1.0, 0.0)
            acc = acc + jnp.dot(S, xBC, preferred_element_type=f32) * conv_w[k:k + 1, :]
        xc_s[...] = _silu(acc)                                 # (M, CD) = [x | B | C]

        # ---- per-head SSM coefficients, broadcast head -> channels via lane-range stores ----
        for h in range(H):
            lanes = slice(h * P, (h + 1) * P)
            dt_col = _softplus(zx_s[:, E + CD + h:E + CD + h + 1] + dt_bias[:, h:h + 1])
            a_h = -jnp.exp(a_log[:, h:h + 1])                  # (1, 1)
            da_s[:, lanes] = jnp.broadcast_to(jnp.exp(dt_col * a_h), (M, P))
            dbx_s[:, lanes] = dt_col * xc_s[:, lanes]          # dt * x_conv
            dco_s[:, lanes] = jnp.broadcast_to(d_par[:, h:h + 1], (1, P))

        # ---- sequential selective scan ----
        # state_b[n, c] is a per-batch (d_state, d_inner) tile: channels fill the lanes and
        # the C-contraction is a sublane reduce; each timestep's output row goes straight
        # into y_s (no list + stack).  Both batches are processed in this one program.
        # TODO(synk): for long L switch to the chunked SSD (matmul) form / a fori_loop.
        eyeN = jnp.where(lax.broadcasted_iota(jnp.int32, (N, N), 0)
                         == lax.broadcasted_iota(jnp.int32, (N, N), 1), 1.0, 0.0)
        states = [jnp.zeros((N, E), f32) for _ in range(B)]
        for t in range(L):                                     # static unroll, L is small
            for b in range(B):
                row = b * L + t
                brow = xc_s[row:row + 1, E:E + N]              # (1, N)
                crow = xc_s[row:row + 1, E + N:E + 2 * N]      # (1, N)
                bcol = jnp.sum(brow * eyeN, axis=1, keepdims=True)   # (N, 1)
                ccol = jnp.sum(crow * eyeN, axis=1, keepdims=True)   # (N, 1)
                st = states[b] * da_s[row:row + 1, :] + bcol * dbx_s[row:row + 1, :]
                states[b] = st
                y_s[row:row + 1, :] = jnp.sum(st * ccol, axis=0, keepdims=True)

        y = y_s[...] + xc_s[:, :E] * dco_s[...]                # D skip connection

        # ---- gated RMSNorm (norm_before_gate=False) + out_proj + residual ----
        xg = y * _silu(zx_s[:, :E])
        ms = jnp.mean(xg * xg, axis=-1, keepdims=True)
        yn = xg * lax.rsqrt(ms + EPS_RMS) * rms_w[...]
        w_out_v = w_out[...]
        x1 = x + jnp.dot(yn.astype(w_out_v.dtype), w_out_v, preferred_element_type=f32)

        # ---- LayerNorm 2 + MLP (GELU) + residual ----
        xn2 = _layernorm(x1, ln2_g[...], ln2_b[...])
        w1_v = w1[...]
        hmid = jnp.dot(xn2.astype(w1_v.dtype), w1_v, preferred_element_type=f32) + b1[...]
        hmid = _gelu_exact(hmid)
        w2_v = w2[...]
        o_ref[...] = x1 + jnp.dot(hmid.astype(w2_v.dtype), w2_v,
                                  preferred_element_type=f32) + b2[...]

    return kernel


# ------------------------------ parameter init --------------------------------

def init_params(key, d_model, expand, d_state, d_conv, headdim):
    E = expand * d_model
    H = E // headdim
    conv_dim = E + 2 * d_state
    d_in_proj = 2 * E + 2 * d_state + H
    ks = jax.random.split(key, 6)

    def nrm(k, shape, scale=0.02, dtype=jnp.float32):
        return (scale * jax.random.normal(k, shape)).astype(dtype)

    return dict(
        ln1_g=jnp.ones((1, d_model), jnp.float32),
        ln1_b=jnp.zeros((1, d_model), jnp.float32),
        # bf16 projection weights (MXU-native on v6e/v7x); accumulation stays f32.
        w_in=nrm(ks[0], (d_model, d_in_proj), dtype=jnp.bfloat16),      # in_proj (bias=False)
        conv_w=nrm(ks[1], (d_conv, conv_dim), scale=0.5),               # depthwise conv (K, C)
        conv_b=nrm(ks[2], (1, conv_dim), scale=0.1),
        dt_bias=jnp.log(jnp.expm1(jnp.linspace(0.001, 0.1, H)))[None, :].astype(jnp.float32),
        A_log=jnp.log(jnp.linspace(1.0, 16.0, H))[None, :].astype(jnp.float32),
        D=jnp.ones((1, H), jnp.float32),
        rms_w=jnp.ones((1, E), jnp.float32),
        w_out=nrm(ks[3], (E, d_model), dtype=jnp.bfloat16),             # out_proj (bias=False)
        ln2_g=jnp.ones((1, d_model), jnp.float32),
        ln2_b=jnp.zeros((1, d_model), jnp.float32),
        w1=nrm(ks[4], (d_model, 4 * d_model), dtype=jnp.bfloat16),
        b1=jnp.zeros((1, 4 * d_model), jnp.float32),
        w2=nrm(ks[5], (4 * d_model, d_model), dtype=jnp.bfloat16),
        b2=jnp.zeros((1, d_model), jnp.float32),
    )


# --------------------------------- forward ------------------------------------

def mamba_block_forward(x, p, *, d_state, d_conv, headdim, expand):
    B, L, D = x.shape
    E = expand * D
    N = d_state
    K = d_conv
    P = headdim
    H = E // P
    M = B * L
    CD = E + 2 * N
    DIN = 2 * E + 2 * N + H

    kernel = _make_fused_kernel(B, L, D, E, N, H, P, K)
    args = (x.reshape(M, D),
            p['ln1_g'], p['ln1_b'], p['w_in'], p['conv_w'], p['conv_b'],
            p['A_log'], p['D'], p['dt_bias'], p['rms_w'], p['w_out'],
            p['ln2_g'], p['ln2_b'], p['w1'], p['b1'], p['w2'], p['b2'])
    out = pl.pallas_call(
        kernel,
        out_shape=jax.ShapeDtypeStruct((M, D), jnp.float32),
        in_specs=[VMEM] * len(args),
        out_specs=VMEM,
        scratch_shapes=[
            pltpu.VMEM((M, DIN), jnp.float32),   # zx_s : in_proj output [z | xBC | dt]
            pltpu.VMEM((M, CD), jnp.float32),    # xc_s : conv+SiLU output [x | B | C]
            pltpu.VMEM((M, E), jnp.float32),     # da_s : exp(dt * A) per channel
            pltpu.VMEM((M, E), jnp.float32),     # dbx_s: dt * x per channel
            pltpu.VMEM((1, E), jnp.float32),     # dco_s: D per channel
            pltpu.VMEM((M, E), jnp.float32),     # y_s  : scan output rows
        ],
    )(*args)
    return out.reshape(B, L, D)


# ----------------------------------- main --------------------------------------

if __name__ == "__main__":
    d_model, expand, d_state, d_conv, headdim = 32, 2, 16, 4, 16
    B, L = 2, 16

    key = jax.random.PRNGKey(0)
    kx, kp = jax.random.split(key)
    x = jax.random.normal(kx, (B, L, d_model), dtype=jnp.float32)
    params = init_params(kp, d_model, expand, d_state, d_conv, headdim)

    fwd = jax.jit(functools.partial(mamba_block_forward,
                                    d_state=d_state, d_conv=d_conv,
                                    headdim=headdim, expand=expand))
    out = jax.block_until_ready(fwd(x, params))

    assert out.shape == (B, L, d_model)
    assert bool(jnp.all(jnp.isfinite(out)))
    print("KERNEL_OK")
</pallas_src>

<mosaic_0001>
module attributes {stable_mosaic.version = 11 : i64} {
  func.func @kernel(%arg0: memref<32x32xf32, #tpu.memory_space<vmem>>, %arg1: memref<1x32xf32, #tpu.memory_space<vmem>>, %arg2: memref<1x32xf32, #tpu.memory_space<vmem>>, %arg3: memref<32x164xbf16, #tpu.memory_space<vmem>>, %arg4: memref<4x96xf32, #tpu.memory_space<vmem>>, %arg5: memref<1x96xf32, #tpu.memory_space<vmem>>, %arg6: memref<1x4xf32, #tpu.memory_space<vmem>>, %arg7: memref<1x4xf32, #tpu.memory_space<vmem>>, %arg8: memref<1x4xf32, #tpu.memory_space<vmem>>, %arg9: memref<1x64xf32, #tpu.memory_space<vmem>>, %arg10: memref<64x32xbf16, #tpu.memory_space<vmem>>, %arg11: memref<1x32xf32, #tpu.memory_space<vmem>>, %arg12: memref<1x32xf32, #tpu.memory_space<vmem>>, %arg13: memref<32x128xbf16, #tpu.memory_space<vmem>>, %arg14: memref<1x128xf32, #tpu.memory_space<vmem>>, %arg15: memref<128x32xbf16, #tpu.memory_space<vmem>>, %arg16: memref<1x32xf32, #tpu.memory_space<vmem>>, %arg17: memref<32x32xf32, #tpu.memory_space<vmem>>, %arg18: memref<32x164xf32, #tpu.memory_space<vmem>>, %arg19: memref<32x96xf32, #tpu.memory_space<vmem>>, %arg20: memref<32x64xf32, #tpu.memory_space<vmem>>, %arg21: memref<32x64xf32, #tpu.memory_space<vmem>>, %arg22: memref<1x64xf32, #tpu.memory_space<vmem>>, %arg23: memref<32x64xf32, #tpu.memory_space<vmem>>) attributes {dimension_semantics = [], scalar_prefetch = 0 : i64, scratch_operands = 6 : i64, tpu.core_type = #tpu.core_type<tc>} {
    %c0 = arith.constant 0 : index
    %c0_0 = arith.constant 0 : index
    %0 = vector.load %arg0[%c0, %c0_0] : memref<32x32xf32, #tpu.memory_space<vmem>>, vector<32x32xf32>
    %c0_1 = arith.constant 0 : index
    %c0_2 = arith.constant 0 : index
    %1 = vector.load %arg1[%c0_1, %c0_2] : memref<1x32xf32, #tpu.memory_space<vmem>>, vector<1x32xf32>
    %c0_3 = arith.constant 0 : index
    %c0_4 = arith.constant 0 : index
    %2 = vector.load %arg2[%c0_3, %c0_4] : memref<1x32xf32, #tpu.memory_space<vmem>>, vector<1x32xf32>
    %cst = arith.constant dense<0.000000e+00> : vector<32xf32>
    %3 = vector.multi_reduction <add>, %0, %cst [1] : vector<32x32xf32> to vector<32xf32>
    %4 = vector.shape_cast %3 : vector<32xf32> to vector<32x1xf32>
    %cst_5 = arith.constant 3.200000e+01 : f32
    %5 = vector.broadcast %cst_5 : f32 to vector<32x1xf32>
    %6 = arith.divf %4, %5 : vector<32x1xf32>
    %7 = vector.broadcast %6 : vector<32x1xf32> to vector<32x32xf32>
    %8 = arith.subf %0, %7 : vector<32x32xf32>
    %9 = arith.mulf %8, %8 : vector<32x32xf32>
    %cst_6 = arith.constant dense<0.000000e+00> : vector<32xf32>
    %10 = vector.multi_reduction <add>, %9, %cst_6 [1] : vector<32x32xf32> to vector<32xf32>
    %11 = vector.shape_cast %10 : vector<32xf32> to vector<32x1xf32>
    %cst_7 = arith.constant 3.200000e+01 : f32
    %12 = vector.broadcast %cst_7 : f32 to vector<32x1xf32>
    %13 = arith.divf %11, %12 : vector<32x1xf32>
    %cst_8 = arith.constant 9.99999974E-6 : f32
    %14 = vector.broadcast %cst_8 : f32 to vector<32x1xf32>
    %15 = arith.addf %13, %14 : vector<32x1xf32>
    %16 = math.rsqrt %15 : vector<32x1xf32>
    %17 = vector.broadcast %16 : vector<32x1xf32> to vector<32x32xf32>
    %18 = arith.mulf %8, %17 : vector<32x32xf32>
    %19 = vector.broadcast %1 : vector<1x32xf32> to vector<32x32xf32>
    %20 = arith.mulf %18, %19 : vector<32x32xf32>
    %21 = vector.broadcast %2 : vector<1x32xf32> to vector<32x32xf32>
    %22 = arith.addf %20, %21 : vector<32x32xf32>
    %c0_9 = arith.constant 0 : index
    %c0_10 = arith.constant 0 : index
    %23 = vector.load %arg3[%c0_9, %c0_10] : memref<32x164xbf16, #tpu.memory_space<vmem>>, vector<32x164xbf16>
    %24 = arith.truncf %22 : vector<32x32xf32> to vector<32x32xbf16>
    %cst_11 = arith.constant dense<0.000000e+00> : vector<32x164xf32>
    %25 = tpu.matmul %24, %23, %cst_11 {dimension_numbers = #tpu.dot_dimension_numbers<[1], [0], [0], [1], [0, 0, 1, 1], [], []>} : vector<32x32xbf16>, vector<32x164xbf16>, vector<32x164xf32> -> vector<32x164xf32>
    %c0_12 = arith.constant 0 : index
    %c0_13 = arith.constant 0 : index
    %26 = vector.load %arg18[%c0_12, %c0_13] : memref<32x164xf32, #tpu.memory_space<vmem>>, vector<32x164xf32>
    tpu.vector_store %arg18[%c0_12, %c0_13], %25 {strides = array<i32>} : memref<32x164xf32, #tpu.memory_space<vmem>>, vector<32x164xf32>,
    %c0_14 = arith.constant 0 : index
    %c64 = arith.constant 64 : index
    %27 = vector.load %arg18[%c0_14, %c64] : memref<32x164xf32, #tpu.memory_space<vmem>>, vector<32x96xf32>
    %28 = tpu.iota {dimensions = array<i32: 0>} : vector<32x32xi32>
    %29 = tpu.iota {dimensions = array<i32: 1>} : vector<32x32xi32>
    %c15_i32 = arith.constant 15 : i32
    %30 = vector.broadcast %c15_i32 : i32 to vector<32x32xi32>
    %31 = arith.andi %28, %30 : vector<32x32xi32>
    %c3 = arith.constant 3 : index
    %c0_15 = arith.constant 0 : index
    %32 = vector.load %arg4[%c3, %c0_15] : memref<4x96xf32, #tpu.memory_space<vmem>>, vector<1x96xf32>
    %33 = vector.broadcast %32 : vector<1x96xf32> to vector<32x96xf32>
    %34 = arith.mulf %27, %33 : vector<32x96xf32>
    %c0_16 = arith.constant 0 : index
    %c0_17 = arith.constant 0 : index
    %35 = vector.load %arg5[%c0_16, %c0_17] : memref<1x96xf32, #tpu.memory_space<vmem>>, vector<1x96xf32>
    %36 = vector.broadcast %35 : vector<1x96xf32> to vector<32x96xf32>
    %37 = arith.addf %34, %36 : vector<32x96xf32>
    %c3_i32 = arith.constant 3 : i32
    %38 = vector.broadcast %c3_i32 : i32 to vector<32x32xi32>
    %39 = arith.subi %28, %38 : vector<32x32xi32>
    %40 = arith.cmpi eq, %29, %39 : vector<32x32xi32>
    %c3_i32_18 = arith.constant 3 : i32
    %41 = vector.broadcast %c3_i32_18 : i32 to vector<32x32xi32>
    %42 = arith.cmpi sge, %31, %41 : vector<32x32xi32>
    %43 = arith.andi %40, %42 : vector<32x32xi1>
    %cst_19 = arith.constant 1.000000e+00 : f32
    %cst_20 = arith.constant 0.000000e+00 : f32
    %44 = vector.broadcast %cst_19 : f32 to vector<32x32xf32>
    %45 = vector.broadcast %cst_20 : f32 to vector<32x32xf32>
    %46 = arith.select %43, %44, %45 : vector<32x32xi1>, vector<32x32xf32>
    %cst_21 = arith.constant dense<0.000000e+00> : vector<32x96xf32>
    %47 = tpu.matmul %46, %27, %cst_21 {dimension_numbers = #tpu.dot_dimension_numbers<[1], [0], [0], [1], [0, 0, 1, 1], [], []>} : vector<32x32xf32>, vector<32x96xf32>, vector<32x96xf32> -> vector<32x96xf32>
    %c0_22 = arith.constant 0 : index
    %c0_23 = arith.constant 0 : index
    %48 = vector.load %arg4[%c0_22, %c0_23] : memref<4x96xf32, #tpu.memory_space<vmem>>, vector<1x96xf32>
    %49 = vector.broadcast %48 : vector<1x96xf32> to vector<32x96xf32>
    %50 = arith.mulf %47, %49 : vector<32x96xf32>
    %51 = arith.addf %37, %50 : vector<32x96xf32>
    %c2_i32 = arith.constant 2 : i32
    %52 = vector.broadcast %c2_i32 : i32 to vector<32x32xi32>
    %53 = arith.subi %28, %52 : vector<32x32xi32>
    %54 = arith.cmpi eq, %29, %53 : vector<32x32xi32>
    %c2_i32_24 = arith.constant 2 : i32
    %55 = vector.broadcast %c2_i32_24 : i32 to vector<32x32xi32>
    %56 = arith.cmpi sge, %31, %55 : vector<32x32xi32>
    %57 = arith.andi %54, %56 : vector<32x32xi1>
    %cst_25 = arith.constant 1.000000e+00 : f32
    %cst_26 = arith.constant 0.000000e+00 : f32
    %58 = vector.broadcast %cst_25 : f32 to vector<32x32xf32>
    %59 = vector.broadcast %cst_26 : f32 to vector<32x32xf32>
    %60 = arith.select %57, %58, %59 : vector<32x32xi1>, vector<32x32xf32>
    %cst_27 = arith.constant dense<0.000000e+00> : vector<32x96xf32>
    %61 = tpu.matmul %60, %27, %cst_27 {dimension_numbers = #tpu.dot_dimension_numbers<[1], [0], [0], [1], [0, 0, 1, 1], [], []>} : vector<32x32xf32>, vector<32x96xf32>, vector<32x96xf32> -> vector<32x96xf32>
    %c1 = arith.constant 1 : index
    %c0_28 = arith.constant 0 : index
    %62 = vector.load %arg4[%c1, %c0_28] : memref<4x96xf32, #tpu.memory_space<vmem>>, vector<1x96xf32>
    %63 = vector.broadcast %62 : vector<1x96xf32> to vector<32x96xf32>
    %64 = arith.mulf %61, %63 : vector<32x96xf32>
    %65 = arith.addf %51, %64 : vector<32x96xf32>
    %c1_i32 = arith.constant 1 : i32
    %66 = vector.broadcast %c1_i32 : i32 to vector<32x32xi32>
    %67 = arith.subi %28, %66 : vector<32x32xi32>
    %68 = arith.cmpi eq, %29, %67 : vector<32x32xi32>
    %c1_i32_29 = arith.constant 1 : i32
    %69 = vector.broadcast %c1_i32_29 : i32 to vector<32x32xi32>
    %70 = arith.cmpi sge, %31, %69 : vector<32x32xi32>
    %71 = arith.andi %68, %70 : vector<32x32xi1>
    %cst_30 = arith.constant 1.000000e+00 : f32
    %cst_31 = arith.constant 0.000000e+00 : f32
    %72 = vector.broadcast %cst_30 : f32 to vector<32x32xf32>
    %73 = vector.broadcast %cst_31 : f32 to vector<32x32xf32>
    %74 = arith.select %71, %72, %73 : vector<32x32xi1>, vector<32x32xf32>
    %cst_32 = arith.constant dense<0.000000e+00> : vector<32x96xf32>
    %75 = tpu.matmul %74, %27, %cst_32 {dimension_numbers = #tpu.dot_dimension_numbers<[1], [0], [0], [1], [0, 0, 1, 1], [], []>} : vector<32x32xf32>, vector<32x96xf32>, vector<32x96xf32> -> vector<32x96xf32>
    %c2 = arith.constant 2 : index
    %c0_33 = arith.constant 0 : index
    %76 = vector.load %arg4[%c2, %c0_33] : memref<4x96xf32, #tpu.memory_space<vmem>>, vector<1x96xf32>
    %77 = vector.broadcast %76 : vector<1x96xf32> to vector<32x96xf32>
    %78 = arith.mulf %75, %77 : vector<32x96xf32>
    %79 = arith.addf %65, %78 : vector<32x96xf32>
    %80 = arith.negf %79 : vector<32x96xf32>
    %81 = math.exp %80 : vector<32x96xf32>
    %cst_34 = arith.constant 1.000000e+00 : f32
    %82 = vector.broadcast %cst_34 : f32 to vector<32x96xf32>
    %83 = arith.addf %82, %81 : vector<32x96xf32>
    %84 = arith.divf %82, %83 : vector<32x96xf32>
    %85 = arith.mulf %79, %84 : vector<32x96xf32>
    %c0_35 = arith.constant 0 : index
    %c0_36 = arith.constant 0 : index
    %86 = vector.load %arg19[%c0_35, %c0_36] : memref<32x96xf32, #tpu.memory_space<vmem>>, vector<32x96xf32>
    tpu.vector_store %arg19[%c0_35, %c0_36], %85 {strides = array<i32>} : memref<32x96xf32, #tpu.memory_space<vmem>>, vector<32x96xf32>,
    %c0_37 = arith.constant 0 : index
    %c160 = arith.constant 160 : index
    %87 = vector.load %arg18[%c0_37, %c160] : memref<32x164xf32, #tpu.memory_space<vmem>>, vector<32x1xf32>
    %c0_38 = arith.constant 0 : index
    %c0_39 = arith.constant 0 : index
    %88 = vector.load %arg8[%c0_38, %c0_39] : memref<1x4xf32, #tpu.memory_space<vmem>>, vector<1x1xf32>
    %89 = vector.broadcast %88 : vector<1x1xf32> to vector<32x1xf32>
    %90 = arith.addf %87, %89 : vector<32x1xf32>
    %cst_40 = arith.constant 0.000000e+00 : f32
    %91 = vector.broadcast %cst_40 : f32 to vector<32x1xf32>
    %92 = arith.maximumf %90, %91 : vector<32x1xf32>
    %93 = math.absf %90 : vector<32x1xf32>
    %cst_41 = arith.constant 0.000000e+00 : f32
    %94 = vector.broadcast %cst_41 : f32 to vector<32x1xf32>
    %95 = arith.subf %94, %93 : vector<32x1xf32>
    %96 = math.exp %95 : vector<32x1xf32>
    %cst_42 = arith.constant 1.000000e+00 : f32
    %97 = vector.broadcast %cst_42 : f32 to vector<32x1xf32>
    %98 = arith.addf %97, %96 : vector<32x1xf32>
    %99 = math.log %98 : vector<32x1xf32>
    %100 = arith.addf %92, %99 : vector<32x1xf32>
    %c0_43 = arith.constant 0 : index
    %c0_44 = arith.constant 0 : index
    %101 = vector.load %arg6[%c0_43, %c0_44] : memref<1x4xf32, #tpu.memory_space<vmem>>, vector<1x1xf32>
    %102 = math.exp %101 : vector<1x1xf32>
    %cst_45 = arith.constant 0.000000e+00 : f32
    %103 = vector.broadcast %cst_45 : f32 to vector<1x1xf32>
    %104 = arith.subf %103, %102 : vector<1x1xf32>
    %105 = vector.broadcast %104 : vector<1x1xf32> to vector<32x1xf32>
    %106 = arith.mulf %100, %105 : vector<32x1xf32>
    %107 = math.exp %106 : vector<32x1xf32>
    %108 = vector.shape_cast %107 : vector<32x1xf32> to vector<32x1xf32>
    %109 = vector.broadcast %108 : vector<32x1xf32> to vector<32x16xf32>
    %c0_46 = arith.constant 0 : index
    %c0_47 = arith.constant 0 : index
    %110 = vector.load %arg20[%c0_46, %c0_47] : memref<32x64xf32, #tpu.memory_space<vmem>>, vector<32x16xf32>
    tpu.vector_store %arg20[%c0_46, %c0_47], %109 {strides = array<i32>} : memref<32x64xf32, #tpu.memory_space<vmem>>, vector<32x16xf32>,
    %c0_48 = arith.constant 0 : index
    %c0_49 = arith.constant 0 : index
    %111 = vector.load %arg19[%c0_48, %c0_49] : memref<32x96xf32, #tpu.memory_space<vmem>>, vector<32x16xf32>
    %112 = vector.broadcast %100 : vector<32x1xf32> to vector<32x16xf32>
    %113 = arith.mulf %112, %111 : vector<32x16xf32>
    %c0_50 = arith.constant 0 : index
    %c0_51 = arith.constant 0 : index
    %114 = vector.load %arg21[%c0_50, %c0_51] : memref<32x64xf32, #tpu.memory_space<vmem>>, vector<32x16xf32>
    tpu.vector_store %arg21[%c0_50, %c0_51], %113 {strides = array<i32>} : memref<32x64xf32, #tpu.memory_space<vmem>>, vector<32x16xf32>,
    %c0_52 = arith.constant 0 : index
    %c0_53 = arith.constant 0 : index
    %115 = vector.load %arg7[%c0_52, %c0_53] : memref<1x4xf32, #tpu.memory_space<vmem>>, vector<1x1xf32>
    %116 = vector.shape_cast %115 : vector<1x1xf32> to vector<1x1xf32>
    %117 = vector.broadcast %116 : vector<1x1xf32> to vector<1x16xf32>
    %c0_54 = arith.constant 0 : index
    %c0_55 = arith.constant 0 : index
    %118 = vector.load %arg22[%c0_54, %c0_55] : memref<1x64xf32, #tpu.memory_space<vmem>>, vector<1x16xf32>
    tpu.vector_store %arg22[%c0_54, %c0_55], %117 {strides = array<i32>} : memref<1x64xf32, #tpu.memory_space<vmem>>, vector<1x16xf32>,
    %c0_56 = arith.constant 0 : index
    %c161 = arith.constant 161 : index
    %119 = vector.load %arg18[%c0_56, %c161] : memref<32x164xf32, #tpu.memory_space<vmem>>, vector<32x1xf32>
    %c0_57 = arith.constant 0 : index
    %c1_58 = arith.constant 1 : index
    %120 = vector.load %arg8[%c0_57, %c1_58] : memref<1x4xf32, #tpu.memory_space<vmem>>, vector<1x1xf32>
    %121 = vector.broadcast %120 : vector<1x1xf32> to vector<32x1xf32>
    %122 = arith.addf %119, %121 : vector<32x1xf32>
    %cst_59 = arith.constant 0.000000e+00 : f32
    %123 = vector.broadcast %cst_59 : f32 to vector<32x1xf32>
    %124 = arith.maximumf %122, %123 : vector<32x1xf32>
    %125 = math.absf %122 : vector<32x1xf32>
    %cst_60 = arith.constant 0.000000e+00 : f32
    %126 = vector.broadcast %cst_60 : f32 to vector<32x1xf32>
    %127 = arith.subf %126, %125 : vector<32x1xf32>
    %128 = math.exp %127 : vector<32x1xf32>
    %cst_61 = arith.constant 1.000000e+00 : f32
    %129 = vector.broadcast %cst_61 : f32 to vector<32x1xf32>
    %130 = arith.addf %129, %128 : vector<32x1xf32>
    %131 = math.log %130 : vector<32x1xf32>
    %132 = arith.addf %124, %131 : vector<32x1xf32>
    %c0_62 = arith.constant 0 : index
    %c1_63 = arith.constant 1 : index
    %133 = vector.load %arg6[%c0_62, %c1_63] : memref<1x4xf32, #tpu.memory_space<vmem>>, vector<1x1xf32>
    %134 = math.exp %133 : vector<1x1xf32>
    %cst_64 = arith.constant 0.000000e+00 : f32
    %135 = vector.broadcast %cst_64 : f32 to vector<1x1xf32>
    %136 = arith.subf %135, %134 : vector<1x1xf32>
    %137 = vector.broadcast %136 : vector<1x1xf32> to vector<32x1xf32>
    %138 = arith.mulf %132, %137 : vector<32x1xf32>
    %139 = math.exp %138 : vector<32x1xf32>
    %140 = vector.shape_cast %139 : vector<32x1xf32> to vector<32x1xf32>
    %141 = vector.broadcast %140 : vector<32x1xf32> to vector<32x16xf32>
    %c0_65 = arith.constant 0 : index
    %c16 = arith.constant 16 : index
    %142 = vector.load %arg20[%c0_65, %c16] : memref<32x64xf32, #tpu.memory_space<vmem>>, vector<32x16xf32>
    tpu.vector_store %arg20[%c0_65, %c16], %141 {strides = array<i32>} : memref<32x64xf32, #tpu.memory_space<vmem>>, vector<32x16xf32>,
    %c0_66 = arith.constant 0 : index
    %c16_67 = arith.constant 16 : index
    %143 = vector.load %arg19[%c0_66, %c16_67] : memref<32x96xf32, #tpu.memory_space<vmem>>, vector<32x16xf32>
    %144 = vector.broadcast %132 : vector<32x1xf32> to vector<32x16xf32>
    %145 = arith.mulf %144, %143 : vector<32x16xf32>
    %c0_68 = arith.constant 0 : index
    %c16_69 = arith.constant 16 : index
    %146 = vector.load %arg21[%c0_68, %c16_69] : memref<32x64xf32, #tpu.memory_space<vmem>>, vector<32x16xf32>
    tpu.vector_store %arg21[%c0_68, %c16_69], %145 {strides = array<i32>} : memref<32x64xf32, #tpu.memory_space<vmem>>, vector<32x16xf32>,
    %c0_70 = arith.constant 0 : index
    %c1_71 = arith.constant 1 : index
    %147 = vector.load %arg7[%c0_70, %c1_71] : memref<1x4xf32, #tpu.memory_space<vmem>>, vector<1x1xf32>
    %148 = vector.shape_cast %147 : vector<1x1xf32> to vector<1x1xf32>
    %149 = vector.broadcast %148 : vector<1x1xf32> to vector<1x16xf32>
    %c0_72 = arith.constant 0 : index
    %c16_73 = arith.constant 16 : index
    %150 = vector.load %arg22[%c0_72, %c16_73] : memref<1x64xf32, #tpu.memory_space<vmem>>, vector<1x16xf32>
    tpu.vector_store %arg22[%c0_72, %c16_73], %149 {strides = array<i32>} : memref<1x64xf32, #tpu.memory_space<vmem>>, vector<1x16xf32>,
    %c0_74 = arith.constant 0 : index
    %c162 = arith.constant 162 : index
    %151 = vector.load %arg18[%c0_74, %c162] : memref<32x164xf32, #tpu.memory_space<vmem>>, vector<32x1xf32>
    %c0_75 = arith.constant 0 : index
    %c2_76 = arith.constant 2 : index
    %152 = vector.load %arg8[%c0_75, %c2_76] : memref<1x4xf32, #tpu.memory_space<vmem>>, vector<1x1xf32>
    %153 = vector.broadcast %152 : vector<1x1xf32> to vector<32x1xf32>
    %154 = arith.addf %151, %153 : vector<32x1xf32>
    %cst_77 = arith.constant 0.000000e+00 : f32
    %155 = vector.broadcast %cst_77 : f32 to vector<32x1xf32>
    %156 = arith.maximumf %154, %155 : vector<32x1xf32>
    %157 = math.absf %154 : vector<32x1xf32>
    %cst_78 = arith.constant 0.000000e+00 : f32
    %158 = vector.broadcast %cst_78 : f32 to vector<32x1xf32>
    %159 = arith.subf %158, %157 : vector<32x1xf32>
    %160 = math.exp %159 : vector<32x1xf32>
    %cst_79 = arith.constant 1.000000e+00 : f32
    %161 = vector.broadcast %cst_79 : f32 to vector<32x1xf32>
    %162 = arith.addf %161, %160 : vector<32x1xf32>
    %163 = math.log %162 : vector<32x1xf32>
    %164 = arith.addf %156, %163 : vector<32x1xf32>
    %c0_80 = arith.constant 0 : index
    %c2_81 = arith.constant 2 : index
    %165 = vector.load %arg6[%c0_80, %c2_81] : memref<1x4xf32, #tpu.memory_space<vmem>>, vector<1x1xf32>
    %166 = math.exp %165 : vector<1x1xf32>
    %cst_82 = arith.constant 0.000000e+00 : f32
    %167 = vector.broadcast %cst_82 : f32 to vector<1x1xf32>
    %168 = arith.subf %167, %166 : vector<1x1xf32>
    %169 = vector.broadcast %168 : vector<1x1xf32> to vector<32x1xf32>
    %170 = arith.mulf %164, %169 : vector<32x1xf32>
    %171 = math.exp %170 : vector<32x1xf32>
    %172 = vector.shape_cast %171 : vector<32x1xf32> to vector<32x1xf32>
    %173 = vector.broadcast %172 : vector<32x1xf32> to vector<32x16xf32>
    %c0_83 = arith.constant 0 : index
    %c32 = arith.constant 32 : index
    %174 = vector.load %arg20[%c0_83, %c32] : memref<32x64xf32, #tpu.memory_space<vmem>>, vector<32x16xf32>
    tpu.vector_store %arg20[%c0_83, %c32], %173 {strides = array<i32>} : memref<32x64xf32, #tpu.memory_space<vmem>>, vector<32x16xf32>,
    %c0_84 = arith.constant 0 : index
    %c32_85 = arith.constant 32 : index
    %175 = vector.load %arg19[%c0_84, %c32_85] : memref<32x96xf32, #tpu.memory_space<vmem>>, vector<32x16xf32>
    %176 = vector.broadcast %164 : vector<32x1xf32> to vector<32x16xf32>
    %177 = arith.mulf %176, %175 : vector<32x16xf32>
    %c0_86 = arith.constant 0 : index
    %c32_87 = arith.constant 32 : index
    %178 = vector.load %arg21[%c0_86, %c32_87] : memref<32x64xf32, #tpu.memory_space<vmem>>, vector<32x16xf32>
    tpu.vector_store %arg21[%c0_86, %c32_87], %177 {strides = array<i32>} : memref<32x64xf32, #tpu.memory_space<vmem>>, vector<32x16xf32>,
    %c0_88 = arith.constant 0 : index
    %c2_89 = arith.constant 2 : index
    %179 = vector.load %arg7[%c0_88, %c2_89] : memref<1x4xf32, #tpu.memory_space<vmem>>, vector<1x1xf32>
    %180 = vector.shape_cast %179 : vector<1x1xf32> to vector<1x1xf32>
    %181 = vector.broadcast %180 : vector<1x1xf32> to vector<1x16xf32>
    %c0_90 = arith.constant 0 : index
    %c32_91 = arith.constant 32 : index
    %182 = vector.load %arg22[%c0_90, %c32_91] : memref<1x64xf32, #tpu.memory_space<vmem>>, vector<1x16xf32>
    tpu.vector_store %arg22[%c0_90, %c32_91], %181 {strides = array<i32>} : memref<1x64xf32, #tpu.memory_space<vmem>>, vector<1x16xf32>,
    %c0_92 = arith.constant 0 : index
    %c163 = arith.constant 163 : index
    %183 = vector.load %arg18[%c0_92, %c163] : memref<32x164xf32, #tpu.memory_space<vmem>>, vector<32x1xf32>
    %c0_93 = arith.constant 0 : index
    %c3_94 = arith.constant 3 : index
    %184 = vector.load %arg8[%c0_93, %c3_94] : memref<1x4xf32, #tpu.memory_space<vmem>>, vector<1x1xf32>
    %185 = vector.broadcast %184 : vector<1x1xf32> to vector<32x1xf32>
    %186 = arith.addf %183, %185 : vector<32x1xf32>
    %cst_95 = arith.constant 0.000000e+00 : f32
    %187 = vector.broadcast %cst_95 : f32 to vector<32x1xf32>
    %188 = arith.maximumf %186, %187 : vector<32x1xf32>
    %189 = math.absf %186 : vector<32x1xf32>
    %cst_96 = arith.constant 0.000000e+00 : f32
    %190 = vector.broadcast %cst_96 : f32 to vector<32x1xf32>
    %191 = arith.subf %190, %189 : vector<32x1xf32>
    %192 = math.exp %191 : vector<32x1xf32>
    %cst_97 = arith.constant 1.000000e+00 : f32
    %193 = vector.broadcast %cst_97 : f32 to vector<32x1xf32>
    %194 = arith.addf %193, %192 : vector<32x1xf32>
    %195 = math.log %194 : vector<32x1xf32>
    %196 = arith.addf %188, %195 : vector<32x1xf32>
    %c0_98 = arith.constant 0 : index
    %c3_99 = arith.constant 3 : index
    %197 = vector.load %arg6[%c0_98, %c3_99] : memref<1x4xf32, #tpu.memory_space<vmem>>, vector<1x1xf32>
    %198 = math.exp %197 : vector<1x1xf32>
    %cst_100 = arith.constant 0.000000e+00 : f32
    %199 = vector.broadcast %cst_100 : f32 to vector<1x1xf32>
    %200 = arith.subf %199, %198 : vector<1x1xf32>
    %201 = vector.broadcast %200 : vector<1x1xf32> to vector<32x1xf32>
    %202 = arith.mulf %196, %201 : vector<32x1xf32>
    %203 = math.exp %202 : vector<32x1xf32>
    %204 = vector.shape_cast %203 : vector<32x1xf32> to vector<32x1xf32>
    %205 = vector.broadcast %204 : vector<32x1xf32> to vector<32x16xf32>
    %c0_101 = arith.constant 0 : index
    %c48 = arith.constant 48 : index
    %206 = vector.load %arg20[%c0_101, %c48] : memref<32x64xf32, #tpu.memory_space<vmem>>, vector<32x16xf32>
    tpu.vector_store %arg20[%c0_101, %c48], %205 {strides = array<i32>} : memref<32x64xf32, #tpu.memory_space<vmem>>, vector<32x16xf32>,
    %c0_102 = arith.constant 0 : index
    %c48_103 = arith.constant 48 : index
    %207 = vector.load %arg19[%c0_102, %c48_103] : memref<32x96xf32, #tpu.memory_space<vmem>>, vector<32x16xf32>
    %208 = vector.broadcast %196 : vector<32x1xf32> to vector<32x16xf32>
    %209 = arith.mulf %208, %207 : vector<32x16xf32>
    %c0_104 = arith.constant 0 : index
    %c48_105 = arith.constant 48 : index
    %210 = vector.load %arg21[%c0_104, %c48_105] : memref<32x64xf32, #tpu.memory_space<vmem>>, vector<32x16xf32>
    tpu.vector_store %arg21[%c0_104, %c48_105], %209 {strides = array<i32>} : memref<32x64xf32, #tpu.memory_space<vmem>>, vector<32x16xf32>,
    %c0_106 = arith.constant 0 : index
    %c3_107 = arith.constant 3 : index
    %211 = vector.load %arg7[%c0_106, %c3_107] : memref<1x4xf32, #tpu.memory_space<vmem>>, vector<1x1xf32>
    %212 = vector.shape_cast %211 : vector<1x1xf32> to vector<1x1xf32>
    %213 = vector.broadcast %212 : vector<1x1xf32> to vector<1x16xf32>
    %c0_108 = arith.constant 0 : index
    %c48_109 = arith.constant 48 : index
    %214 = vector.load %arg22[%c0_108, %c48_109] : memref<1x64xf32, #tpu.memory_space<vmem>>, vector<1x16xf32>
    tpu.vector_store %arg22[%c0_108, %c48_109], %213 {strides = array<i32>} : memref<1x64xf32, #tpu.memory_space<vmem>>, vector<1x16xf32>,
    %215 = tpu.iota {dimensions = array<i32: 0>} : vector<16x16xi32>
    %216 = tpu.iota {dimensions = array<i32: 1>} : vector<16x16xi32>
    %217 = arith.cmpi eq, %215, %216 : vector<16x16xi32>
    %cst_110 = arith.constant 1.000000e+00 : f32
    %cst_111 = arith.constant 0.000000e+00 : f32
    %218 = vector.broadcast %cst_110 : f32 to vector<16x16xf32>
    %219 = vector.broadcast %cst_111 : f32 to vector<16x16xf32>
    %220 = arith.select %217, %218, %219 : vector<16x16xi1>, vector<16x16xf32>
    %cst_112 = arith.constant 0.000000e+00 : f32
    %221 = vector.broadcast %cst_112 : f32 to vector<16x64xf32>
    %cst_113 = arith.constant 0.000000e+00 : f32
    %222 = vector.broadcast %cst_113 : f32 to vector<16x64xf32>
    %c0_114 = arith.constant 0 : index
    %c64_115 = arith.constant 64 : index
    %223 = vector.load %arg19[%c0_114, %c64_115] : memref<32x96xf32, #tpu.memory_space<vmem>>, vector<1x16xf32>
    %c0_116 = arith.constant 0 : index
    %c80 = arith.constant 80 : index
    %224 = vector.load %arg19[%c0_116, %c80] : memref<32x96xf32, #tpu.memory_space<vmem>>, vector<1x16xf32>
    %225 = vector.broadcast %223 : vector<1x16xf32> to vector<16x16xf32>
    %226 = arith.mulf %225, %220 : vector<16x16xf32>
    %cst_117 = arith.constant dense<0.000000e+00> : vector<16xf32>
    %227 = vector.multi_reduction <add>, %226, %cst_117 [1] : vector<16x16xf32> to vector<16xf32>
    %228 = vector.shape_cast %227 : vector<16xf32> to vector<16x1xf32>
    %229 = vector.broadcast %224 : vector<1x16xf32> to vector<16x16xf32>
    %230 = arith.mulf %229, %220 : vector<16x16xf32>
    %cst_118 = arith.constant dense<0.000000e+00> : vector<16xf32>
    %231 = vector.multi_reduction <add>, %230, %cst_118 [1] : vector<16x16xf32> to vector<16xf32>
    %232 = vector.shape_cast %231 : vector<16xf32> to vector<16x1xf32>
    %c0_119 = arith.constant 0 : index
    %c0_120 = arith.constant 0 : index
    %233 = vector.load %arg20[%c0_119, %c0_120] : memref<32x64xf32, #tpu.memory_space<vmem>>, vector<1x64xf32>
    %234 = vector.broadcast %233 : vector<1x64xf32> to vector<16x64xf32>
    %235 = arith.mulf %221, %234 : vector<16x64xf32>
    %c0_121 = arith.constant 0 : index
    %c0_122 = arith.constant 0 : index
    %236 = vector.load %arg21[%c0_121, %c0_122] : memref<32x64xf32, #tpu.memory_space<vmem>>, vector<1x64xf32>
    %237 = vector.broadcast %228 : vector<16x1xf32> to vector<16x64xf32>
    %238 = vector.broadcast %236 : vector<1x64xf32> to vector<16x64xf32>
    %239 = arith.mulf %237, %238 : vector<16x64xf32>
    %240 = arith.addf %235, %239 : vector<16x64xf32>
    %241 = vector.broadcast %232 : vector<16x1xf32> to vector<16x64xf32>
    %242 = arith.mulf %240, %241 : vector<16x64xf32>
    %cst_123 = arith.constant dense<0.000000e+00> : vector<64xf32>
    %243 = vector.multi_reduction <add>, %242, %cst_123 [0] : vector<16x64xf32> to vector<64xf32>
    %244 = vector.shape_cast %243 : vector<64xf32> to vector<1x64xf32>
    %c0_124 = arith.constant 0 : index
    %c0_125 = arith.constant 0 : index
    %245 = vector.load %arg23[%c0_124, %c0_125] : memref<32x64xf32, #tpu.memory_space<vmem>>, vector<1x64xf32>
    tpu.vector_store %arg23[%c0_124, %c0_125], %244 {strides = array<i32>} : memref<32x64xf32, #tpu.memory_space<vmem>>, vector<1x64xf32>,
    %c16_126 = arith.constant 16 : index
    %c64_127 = arith.constant 64 : index
    %246 = vector.load %arg19[%c16_126, %c64_127] : memref<32x96xf32, #tpu.memory_space<vmem>>, vector<1x16xf32>
    %c16_128 = arith.constant 16 : index
    %c80_129 = arith.constant 80 : index
    %247 = vector.load %arg19[%c16_128, %c80_129] : memref<32x96xf32, #tpu.memory_space<vmem>>, vector<1x16xf32>
    %248 = vector.broadcast %246 : vector<1x16xf32> to vector<16x16xf32>
    %249 = arith.mulf %248, %220 : vector<16x16xf32>
    %cst_130 = arith.constant dense<0.000000e+00> : vector<16xf32>
    %250 = vector.multi_reduction <add>, %249, %cst_130 [1] : vector<16x16xf32> to vector<16xf32>
    %251 = vector.shape_cast %250 : vector<16xf32> to vector<16x1xf32>
    %252 = vector.broadcast %247 : vector<1x16xf32> to vector<16x16xf32>
    %253 = arith.mulf %252, %220 : vector<16x16xf32>
    %cst_131 = arith.constant dense<0.000000e+00> : vector<16xf32>
    %254 = vector.multi_reduction <add>, %253, %cst_131 [1] : vector<16x16xf32> to vector<16xf32>
    %255 = vector.shape_cast %254 : vector<16xf32> to vector<16x1xf32>
    %c16_132 = arith.constant 16 : index
    %c0_133 = arith.constant 0 : index
    %256 = vector.load %arg20[%c16_132, %c0_133] : memref<32x64xf32, #tpu.memory_space<vmem>>, vector<1x64xf32>
    %257 = vector.broadcast %256 : vector<1x64xf32> to vector<16x64xf32>
    %258 = arith.mulf %222, %257 : vector<16x64xf32>
    %c16_134 = arith.constant 16 : index
    %c0_135 = arith.constant 0 : index
    %259 = vector.load %arg21[%c16_134, %c0_135] : memref<32x64xf32, #tpu.memory_space<vmem>>, vector<1x64xf32>
    %260 = vector.broadcast %251 : vector<16x1xf32> to vector<16x64xf32>
    %261 = vector.broadcast %259 : vector<1x64xf32> to vector<16x64xf32>
    %262 = arith.mulf %260, %261 : vector<16x64xf32>
    %263 = arith.addf %258, %262 : vector<16x64xf32>
    %264 = vector.broadcast %255 : vector<16x1xf32> to vector<16x64xf32>
    %265 = arith.mulf %263, %264 : vector<16x64xf32>
    %cst_136 = arith.constant dense<0.000000e+00> : vector<64xf32>
    %266 = vector.multi_reduction <add>, %265, %cst_136 [0] : vector<16x64xf32> to vector<64xf32>
    %267 = vector.shape_cast %266 : vector<64xf32> to vector<1x64xf32>
    %c16_137 = arith.constant 16 : index
    %c0_138 = arith.constant 0 : index
    %268 = vector.load %arg23[%c16_137, %c0_138] : memref<32x64xf32, #tpu.memory_space<vmem>>, vector<1x64xf32>
    tpu.vector_store %arg23[%c16_137, %c0_138], %267 {strides = array<i32>} : memref<32x64xf32, #tpu.memory_space<vmem>>, vector<1x64xf32>,
    %c1_139 = arith.constant 1 : index
    %c64_140 = arith.constant 64 : index
    %269 = vector.load %arg19[%c1_139, %c64_140] : memref<32x96xf32, #tpu.memory_space<vmem>>, vector<1x16xf32>
    %c1_141 = arith.constant 1 : index
    %c80_142 = arith.constant 80 : index
    %270 = vector.load %arg19[%c1_141, %c80_142] : memref<32x96xf32, #tpu.memory_space<vmem>>, vector<1x16xf32>
    %271 = vector.broadcast %269 : vector<1x16xf32> to vector<16x16xf32>
    %272 = arith.mulf %271, %220 : vector<16x16xf32>
    %cst_143 = arith.constant dense<0.000000e+00> : vector<16xf32>
    %273 = vector.multi_reduction <add>, %272, %cst_143 [1] : vector<16x16xf32> to vector<16xf32>
    %274 = vector.shape_cast %273 : vector<16xf32> to vector<16x1xf32>
    %275 = vector.broadcast %270 : vector<1x16xf32> to vector<16x16xf32>
    %276 = arith.mulf %275, %220 : vector<16x16xf32>
    %cst_144 = arith.constant dense<0.000000e+00> : vector<16xf32>
    %277 = vector.multi_reduction <add>, %276, %cst_144 [1] : vector<16x16xf32> to vector<16xf32>
    %278 = vector.shape_cast %277 : vector<16xf32> to vector<16x1xf32>
    %c1_145 = arith.constant 1 : index
    %c0_146 = arith.constant 0 : index
    %279 = vector.load %arg20[%c1_145, %c0_146] : memref<32x64xf32, #tpu.memory_space<vmem>>, vector<1x64xf32>
    %280 = vector.broadcast %279 : vector<1x64xf32> to vector<16x64xf32>
    %281 = arith.mulf %240, %280 : vector<16x64xf32>
    %c1_147 = arith.constant 1 : index
    %c0_148 = arith.constant 0 : index
    %282 = vector.load %arg21[%c1_147, %c0_148] : memref<32x64xf32, #tpu.memory_space<vmem>>, vector<1x64xf32>
    %283 = vector.broadcast %274 : vector<16x1xf32> to vector<16x64xf32>
    %284 = vector.broadcast %282 : vector<1x64xf32> to vector<16x64xf32>
    %285 = arith.mulf %283, %284 : vector<16x64xf32>
    %286 = arith.addf %281, %285 : vector<16x64xf32>
    %287 = vector.broadcast %278 : vector<16x1xf32> to vector<16x64xf32>
    %288 = arith.mulf %286, %287 : vector<16x64xf32>
    %cst_149 = arith.constant dense<0.000000e+00> : vector<64xf32>
    %289 = vector.multi_reduction <add>, %288, %cst_149 [0] : vector<16x64xf32> to vector<64xf32>
    %290 = vector.shape_cast %289 : vector<64xf32> to vector<1x64xf32>
    %c1_150 = arith.constant 1 : index
    %c0_151 = arith.constant 0 : index
    %291 = vector.load %arg23[%c1_150, %c0_151] : memref<32x64xf32, #tpu.memory_space<vmem>>, vector<1x64xf32>
    tpu.vector_store %arg23[%c1_150, %c0_151], %290 {strides = array<i32>} : memref<32x64xf32, #tpu.memory_space<vmem>>, vector<1x64xf32>,
    %c17 = arith.constant 17 : index
    %c64_152 = arith.constant 64 : index
    %292 = vector.load %arg19[%c17, %c64_152] : memref<32x96xf32, #tpu.memory_space<vmem>>, vector<1x16xf32>
    %c17_153 = arith.constant 17 : index
    %c80_154 = arith.constant 80 : index
    %293 = vector.load %arg19[%c17_153, %c80_154] : memref<32x96xf32, #tpu.memory_space<vmem>>, vector<1x16xf32>
    %294 = vector.broadcast %292 : vector<1x16xf32> to vector<16x16xf32>
    %295 = arith.mulf %294, %220 : vector<16x16xf32>
    %cst_155 = arith.constant dense<0.000000e+00> : vector<16xf32>
    %296 = vector.multi_reduction <add>, %295, %cst_155 [1] : vector<16x16xf32> to vector<16xf32>
    %297 = vector.shape_cast %296 : vector<16xf32> to vector<16x1xf32>
    %298 = vector.broadcast %293 : vector<1x16xf32> to vector<16x16xf32>
    %299 = arith.mulf %298, %220 : vector<16x16xf32>
    %cst_156 = arith.constant dense<0.000000e+00> : vector<16xf32>
    %300 = vector.multi_reduction <add>, %299, %cst_156 [1] : vector<16x16xf32> to vector<16xf32>
    %301 = vector.shape_cast %300 : vector<16xf32> to vector<16x1xf32>
    %c17_157 = arith.constant 17 : index
    %c0_158 = arith.constant 0 : index
    %302 = vector.load %arg20[%c17_157, %c0_158] : memref<32x64xf32, #tpu.memory_space<vmem>>, vector<1x64xf32>
    %303 = vector.broadcast %302 : vector<1x64xf32> to vector<16x64xf32>
    %304 = arith.mulf %263, %303 : vector<16x64xf32>
    %c17_159 = arith.constant 17 : index
    %c0_160 = arith.constant 0 : index
    %305 = vector.load %arg21[%c17_159, %c0_160] : memref<32x64xf32, #tpu.memory_space<vmem>>, vector<1x64xf32>
    %306 = vector.broadcast %297 : vector<16x1xf32> to vector<16x64xf32>
    %307 = vector.broadcast %305 : vector<1x64xf32> to vector<16x64xf32>
    %308 = arith.mulf %306, %307 : vector<16x64xf32>
    %309 = arith.addf %304, %308 : vector<16x64xf32>
    %310 = vector.broadcast %301 : vector<16x1xf32> to vector<16x64xf32>
    %311 = arith.mulf %309, %310 : vector<16x64xf32>
    %cst_161 = arith.constant dense<0.000000e+00> : vector<64xf32>
    %312 = vector.multi_reduction <add>, %311, %cst_161 [0] : vector<16x64xf32> to vector<64xf32>
    %313 = vector.shape_cast %312 : vector<64xf32> to vector<1x64xf32>
    %c17_162 = arith.constant 17 : index
    %c0_163 = arith.constant 0 : index
    %314 = vector.load %arg23[%c17_162, %c0_163] : memref<32x64xf32, #tpu.memory_space<vmem>>, vector<1x64xf32>
    tpu.vector_store %arg23[%c17_162, %c0_163], %313 {strides = array<i32>} : memref<32x64xf32, #tpu.memory_space<vmem>>, vector<1x64xf32>,
    %c2_164 = arith.constant 2 : index
    %c64_165 = arith.constant 64 : index
    %315 = vector.load %arg19[%c2_164, %c64_165] : memref<32x96xf32, #tpu.memory_space<vmem>>, vector<1x16xf32>
    %c2_166 = arith.constant 2 : index
    %c80_167 = arith.constant 80 : index
    %316 = vector.load %arg19[%c2_166, %c80_167] : memref<32x96xf32, #tpu.memory_space<vmem>>, vector<1x16xf32>
    %317 = vector.broadcast %315 : vector<1x16xf32> to vector<16x16xf32>
    %318 = arith.mulf %317, %220 : vector<16x16xf32>
    %cst_168 = arith.constant dense<0.000000e+00> : vector<16xf32>
    %319 = vector.multi_reduction <add>, %318, %cst_168 [1] : vector<16x16xf32> to vector<16xf32>
    %320 = vector.shape_cast %319 : vector<16xf32> to vector<16x1xf32>
    %321 = vector.broadcast %316 : vector<1x16xf32> to vector<16x16xf32>
    %322 = arith.mulf %321, %220 : vector<16x16xf32>
    %cst_169 = arith.constant dense<0.000000e+00> : vector<16xf32>
    %323 = vector.multi_reduction <add>, %322, %cst_169 [1] : vector<16x16xf32> to vector<16xf32>
    %324 = vector.shape_cast %323 : vector<16xf32> to vector<16x1xf32>
    %c2_170 = arith.constant 2 : index
    %c0_171 = arith.constant 0 : index
    %325 = vector.load %arg20[%c2_170, %c0_171] : memref<32x64xf32, #tpu.memory_space<vmem>>, vector<1x64xf32>
    %326 = vector.broadcast %325 : vector<1x64xf32> to vector<16x64xf32>
    %327 = arith.mulf %286, %326 : vector<16x64xf32>
    %c2_172 = arith.constant 2 : index
    %c0_173 = arith.constant 0 : index
    %328 = vector.load %arg21[%c2_172, %c0_173] : memref<32x64xf32, #tpu.memory_space<vmem>>, vector<1x64xf32>
    %329 = vector.broadcast %320 : vector<16x1xf32> to vector<16x64xf32>
    %330 = vector.broadcast %328 : vector<1x64xf32> to vector<16x64xf32>
    %331 = arith.mulf %329, %330 : vector<16x64xf32>
    %332 = arith.addf %327, %331 : vector<16x64xf32>
    %333 = vector.broadcast %324 : vector<16x1xf32> to vector<16x64xf32>
    %334 = arith.mulf %332, %333 : vector<16x64xf32>
    %cst_174 = arith.constant dense<0.000000e+00> : vector<64xf32>
    %335 = vector.multi_reduction <add>, %334, %cst_174 [0] : vector<16x64xf32> to vector<64xf32>
    %336 = vector.shape_cast %335 : vector<64xf32> to vector<1x64xf32>
    %c2_175 = arith.constant 2 : index
    %c0_176 = arith.constant 0 : index
    %337 = vector.load %arg23[%c2_175, %c0_176] : memref<32x64xf32, #tpu.memory_space<vmem>>, vector<1x64xf32>
    tpu.vector_store %arg23[%c2_175, %c0_176], %336 {strides = array<i32>} : memref<32x64xf32, #tpu.memory_space<vmem>>, vector<1x64xf32>,
    %c18 = arith.constant 18 : index
    %c64_177 = arith.constant 64 : index
    %338 = vector.load %arg19[%c18, %c64_177] : memref<32x96xf32, #tpu.memory_space<vmem>>, vector<1x16xf32>
    %c18_178 = arith.constant 18 : index
    %c80_179 = arith.constant 80 : index
    %339 = vector.load %arg19[%c18_178, %c80_179] : memref<32x96xf32, #tpu.memory_space<vmem>>, vector<1x16xf32>
    %340 = vector.broadcast %338 : vector<1x16xf32> to vector<16x16xf32>
    %341 = arith.mulf %340, %220 : vector<16x16xf32>
    %cst_180 = arith.constant dense<0.000000e+00> : vector<16xf32>
    %342 = vector.multi_reduction <add>, %341, %cst_180 [1] : vector<16x16xf32> to vector<16xf32>
    %343 = vector.shape_cast %342 : vector<16xf32> to vector<16x1xf32>
    %344 = vector.broadcast %339 : vector<1x16xf32> to vector<16x16xf32>
    %345 = arith.mulf %344, %220 : vector<16x16xf32>
    %cst_181 = arith.constant dense<0.000000e+00> : vector<16xf32>
    %346 = vector.multi_reduction <add>, %345, %cst_181 [1] : vector<16x16xf32> to vector<16xf32>
    %347 = vector.shape_cast %346 : vector<16xf32> to vector<16x1xf32>
    %c18_182 = arith.constant 18 : index
    %c0_183 = arith.constant 0 : index
    %348 = vector.load %arg20[%c18_182, %c0_183] : memref<32x64xf32, #tpu.memory_space<vmem>>, vector<1x64xf32>
    %349 = vector.broadcast %348 : vector<1x64xf32> to vector<16x64xf32>
    %350 = arith.mulf %309, %349 : vector<16x64xf32>
    %c18_184 = arith.constant 18 : index
    %c0_185 = arith.constant 0 : index
    %351 = vector.load %arg21[%c18_184, %c0_185] : memref<32x64xf32, #tpu.memory_space<vmem>>, vector<1x64xf32>
    %352 = vector.broadcast %343 : vector<16x1xf32> to vector<16x64xf32>
    %353 = vector.broadcast %351 : vector<1x64xf32> to vector<16x64xf32>
    %354 = arith.mulf %352, %353 : vector<16x64xf32>
    %355 = arith.addf %350, %354 : vector<16x64xf32>
    %356 = vector.broadcast %347 : vector<16x1xf32> to vector<16x64xf32>
    %357 = arith.mulf %355, %356 : vector<16x64xf32>
    %cst_186 = arith.constant dense<0.000000e+00> : vector<64xf32>
    %358 = vector.multi_reduction <add>, %357, %cst_186 [0] : vector<16x64xf32> to vector<64xf32>
    %359 = vector.shape_cast %358 : vector<64xf32> to vector<1x64xf32>
    %c18_187 = arith.constant 18 : index
    %c0_188 = arith.constant 0 : index
    %360 = vector.load %arg23[%c18_187, %c0_188] : memref<32x64xf32, #tpu.memory_space<vmem>>, vector<1x64xf32>
    tpu.vector_store %arg23[%c18_187, %c0_188], %359 {strides = array<i32>} : memref<32x64xf32, #tpu.memory_space<vmem>>, vector<1x64xf32>,
    %c3_189 = arith.constant 3 : index
    %c64_190 = arith.constant 64 : index
    %361 = vector.load %arg19[%c3_189, %c64_190] : memref<32x96xf32, #tpu.memory_space<vmem>>, vector<1x16xf32>
    %c3_191 = arith.constant 3 : index
    %c80_192 = arith.constant 80 : index
    %362 = vector.load %arg19[%c3_191, %c80_192] : memref<32x96xf32, #tpu.memory_space<vmem>>, vector<1x16xf32>
    %363 = vector.broadcast %361 : vector<1x16xf32> to vector<16x16xf32>
    %364 = arith.mulf %363, %220 : vector<16x16xf32>
    %cst_193 = arith.constant dense<0.000000e+00> : vector<16xf32>
    %365 = vector.multi_reduction <add>, %364, %cst_193 [1] : vector<16x16xf32> to vector<16xf32>
    %366 = vector.shape_cast %365 : vector<16xf32> to vector<16x1xf32>
    %367 = vector.broadcast %362 : vector<1x16xf32> to vector<16x16xf32>
    %368 = arith.mulf %367, %220 : vector<16x16xf32>
    %cst_194 = arith.constant dense<0.000000e+00> : vector<16xf32>
    %369 = vector.multi_reduction <add>, %368, %cst_194 [1] : vector<16x16xf32> to vector<16xf32>
    %370 = vector.shape_cast %369 : vector<16xf32> to vector<16x1xf32>
    %c3_195 = arith.constant 3 : index
    %c0_196 = arith.constant 0 : index
    %371 = vector.load %arg20[%c3_195, %c0_196] : memref<32x64xf32, #tpu.memory_space<vmem>>, vector<1x64xf32>
    %372 = vector.broadcast %371 : vector<1x64xf32> to vector<16x64xf32>
    %373 = arith.mulf %332, %372 : vector<16x64xf32>
    %c3_197 = arith.constant 3 : index
    %c0_198 = arith.constant 0 : index
    %374 = vector.load %arg21[%c3_197, %c0_198] : memref<32x64xf32, #tpu.memory_space<vmem>>, vector<1x64xf32>
    %375 = vector.broadcast %366 : vector<16x1xf32> to vector<16x64xf32>
    %376 = vector.broadcast %374 : vector<1x64xf32> to vector<16x64xf32>
    %377 = arith.mulf %375, %376 : vector<16x64xf32>
    %378 = arith.addf %373, %377 : vector<16x64xf32>
    %379 = vector.broadcast %370 : vector<16x1xf32> to vector<16x64xf32>
    %380 = arith.mulf %378, %379 : vector<16x64xf32>
    %cst_199 = arith.constant dense<0.000000e+00> : vector<64xf32>
    %381 = vector.multi_reduction <add>, %380, %cst_199 [0] : vector<16x64xf32> to vector<64xf32>
    %382 = vector.shape_cast %381 : vector<64xf32> to vector<1x64xf32>
    %c3_200 = arith.constant 3 : index
    %c0_201 = arith.constant 0 : index
    %383 = vector.load %arg23[%c3_200, %c0_201] : memref<32x64xf32, #tpu.memory_space<vmem>>, vector<1x64xf32>
    tpu.vector_store %arg23[%c3_200, %c0_201], %382 {strides = array<i32>} : memref<32x64xf32, #tpu.memory_space<vmem>>, vector<1x64xf32>,
    %c19 = arith.constant 19 : index
    %c64_202 = arith.constant 64 : index
    %384 = vector.load %arg19[%c19, %c64_202] : memref<32x96xf32, #tpu.memory_space<vmem>>, vector<1x16xf32>
    %c19_203 = arith.constant 19 : index
    %c80_204 = arith.constant 80 : index
    %385 = vector.load %arg19[%c19_203, %c80_204] : memref<32x96xf32, #tpu.memory_space<vmem>>, vector<1x16xf32>
    %386 = vector.broadcast %384 : vector<1x16xf32> to vector<16x16xf32>
    %387 = arith.mulf %386, %220 : vector<16x16xf32>
    %cst_205 = arith.constant dense<0.000000e+00> : vector<16xf32>
    %388 = vector.multi_reduction <add>, %387, %cst_205 [1] : vector<16x16xf32> to vector<16xf32>
    %389 = vector.shape_cast %388 : vector<16xf32> to vector<16x1xf32>
    %390 = vector.broadcast %385 : vector<1x16xf32> to vector<16x16xf32>
    %391 = arith.mulf %390, %220 : vector<16x16xf32>
    %cst_206 = arith.constant dense<0.000000e+00> : vector<16xf32>
    %392 = vector.multi_reduction <add>, %391, %cst_206 [1] : vector<16x16xf32> to vector<16xf32>
    %393 = vector.shape_cast %392 : vector<16xf32> to vector<16x1xf32>
    %c19_207 = arith.constant 19 : index
    %c0_208 = arith.constant 0 : index
    %394 = vector.load %arg20[%c19_207, %c0_208] : memref<32x64xf32, #tpu.memory_space<vmem>>, vector<1x64xf32>
    %395 = vector.broadcast %394 : vector<1x64xf32> to vector<16x64xf32>
    %396 = arith.mulf %355, %395 : vector<16x64xf32>
    %c19_209 = arith.constant 19 : index
    %c0_210 = arith.constant 0 : index
    %397 = vector.load %arg21[%c19_209, %c0_210] : memref<32x64xf32, #tpu.memory_space<vmem>>, vector<1x64xf32>
    %398 = vector.broadcast %389 : vector<16x1xf32> to vector<16x64xf32>
    %399 = vector.broadcast %397 : vector<1x64xf32> to vector<16x64xf32>
    %400 = arith.mulf %398, %399 : vector<16x64xf32>
    %401 = arith.addf %396, %400 : vector<16x64xf32>
    %402 = vector.broadcast %393 : vector<16x1xf32> to vector<16x64xf32>
    %403 = arith.mulf %401, %402 : vector<16x64xf32>
    %cst_211 = arith.constant dense<0.000000e+00> : vector<64xf32>
    %404 = vector.multi_reduction <add>, %403, %cst_211 [0] : vector<16x64xf32> to vector<64xf32>
    %405 = vector.shape_cast %404 : vector<64xf32> to vector<1x64xf32>
    %c19_212 = arith.constant 19 : index
    %c0_213 = arith.constant 0 : index
    %406 = vector.load %arg23[%c19_212, %c0_213] : memref<32x64xf32, #tpu.memory_space<vmem>>, vector<1x64xf32>
    tpu.vector_store %arg23[%c19_212, %c0_213], %405 {strides = array<i32>} : memref<32x64xf32, #tpu.memory_space<vmem>>, vector<1x64xf32>,
    %c4 = arith.constant 4 : index
    %c64_214 = arith.constant 64 : index
    %407 = vector.load %arg19[%c4, %c64_214] : memref<32x96xf32, #tpu.memory_space<vmem>>, vector<1x16xf32>
    %c4_215 = arith.constant 4 : index
    %c80_216 = arith.constant 80 : index
    %408 = vector.load %arg19[%c4_215, %c80_216] : memref<32x96xf32, #tpu.memory_space<vmem>>, vector<1x16xf32>
    %409 = vector.broadcast %407 : vector<1x16xf32> to vector<16x16xf32>
    %410 = arith.mulf %409, %220 : vector<16x16xf32>
    %cst_217 = arith.constant dense<0.000000e+00> : vector<16xf32>
    %411 = vector.multi_reduction <add>, %410, %cst_217 [1] : vector<16x16xf32> to vector<16xf32>
    %412 = vector.shape_cast %411 : vector<16xf32> to vector<16x1xf32>
    %413 = vector.broadcast %408 : vector<1x16xf32> to vector<16x16xf32>
    %414 = arith.mulf %413, %220 : vector<16x16xf32>
    %cst_218 = arith.constant dense<0.000000e+00> : vector<16xf32>
    %415 = vector.multi_reduction <add>, %414, %cst_218 [1] : vector<16x16xf32> to vector<16xf32>
    %416 = vector.shape_cast %415 : vector<16xf32> to vector<16x1xf32>
    %c4_219 = arith.constant 4 : index
    %c0_220 = arith.constant 0 : index
    %417 = vector.load %arg20[%c4_219, %c0_220] : memref<32x64xf32, #tpu.memory_space<vmem>>, vector<1x64xf32>
    %418 = vector.broadcast %417 : vector<1x64xf32> to vector<16x64xf32>
    %419 = arith.mulf %378, %418 : vector<16x64xf32>
    %c4_221 = arith.constant 4 : index
    %c0_222 = arith.constant 0 : index
    %420 = vector.load %arg21[%c4_221, %c0_222] : memref<32x64xf32, #tpu.memory_space<vmem>>, vector<1x64xf32>
    %421 = vector.broadcast %412 : vector<16x1xf32> to vector<16x64xf32>
    %422 = vector.broadcast %420 : vector<1x64xf32> to vector<16x64xf32>
    %423 = arith.mulf %421, %422 : vector<16x64xf32>
    %424 = arith.addf %419, %423 : vector<16x64xf32>
    %425 = vector.broadcast %416 : vector<16x1xf32> to vector<16x64xf32>
    %426 = arith.mulf %424, %425 : vector<16x64xf32>
    %cst_223 = arith.constant dense<0.000000e+00> : vector<64xf32>
    %427 = vector.multi_reduction <add>, %426, %cst_223 [0] : vector<16x64xf32> to vector<64xf32>
    %428 = vector.shape_cast %427 : vector<64xf32> to vector<1x64xf32>
    %c4_224 = arith.constant 4 : index
    %c0_225 = arith.constant 0 : index
    %429 = vector.load %arg23[%c4_224, %c0_225] : memref<32x64xf32, #tpu.memory_space<vmem>>, vector<1x64xf32>
    tpu.vector_store %arg23[%c4_224, %c0_225], %428 {strides = array<i32>} : memref<32x64xf32, #tpu.memory_space<vmem>>, vector<1x64xf32>,
    %c20 = arith.constant 20 : index
    %c64_226 = arith.constant 64 : index
    %430 = vector.load %arg19[%c20, %c64_226] : memref<32x96xf32, #tpu.memory_space<vmem>>, vector<1x16xf32>
    %c20_227 = arith.constant 20 : index
    %c80_228 = arith.constant 80 : index
    %431 = vector.load %arg19[%c20_227, %c80_228] : memref<32x96xf32, #tpu.memory_space<vmem>>, vector<1x16xf32>
    %432 = vector.broadcast %430 : vector<1x16xf32> to vector<16x16xf32>
    %433 = arith.mulf %432, %220 : vector<16x16xf32>
    %cst_229 = arith.constant dense<0.000000e+00> : vector<16xf32>
    %434 = vector.multi_reduction <add>, %433, %cst_229 [1] : vector<16x16xf32> to vector<16xf32>
    %435 = vector.shape_cast %434 : vector<16xf32> to vector<16x1xf32>
    %436 = vector.broadcast %431 : vector<1x16xf32> to vector<16x16xf32>
    %437 = arith.mulf %436, %220 : vector<16x16xf32>
    %cst_230 = arith.constant dense<0.000000e+00> : vector<16xf32>
    %438 = vector.multi_reduction <add>, %437, %cst_230 [1] : vector<16x16xf32> to vector<16xf32>
    %439 = vector.shape_cast %438 : vector<16xf32> to vector<16x1xf32>
    %c20_231 = arith.constant 20 : index
    %c0_232 = arith.constant 0 : index
    %440 = vector.load %arg20[%c20_231, %c0_232] : memref<32x64xf32, #tpu.memory_space<vmem>>, vector<1x64xf32>
    %441 = vector.broadcast %440 : vector<1x64xf32> to vector<16x64xf32>
    %442 = arith.mulf %401, %441 : vector<16x64xf32>
    %c20_233 = arith.constant 20 : index
    %c0_234 = arith.constant 0 : index
    %443 = vector.load %arg21[%c20_233, %c0_234] : memref<32x64xf32, #tpu.memory_space<vmem>>, vector<1x64xf32>
    %444 = vector.broadcast %435 : vector<16x1xf32> to vector<16x64xf32>
    %445 = vector.broadcast %443 : vector<1x64xf32> to vector<16x64xf32>
    %446 = arith.mulf %444, %445 : vector<16x64xf32>
    %447 = arith.addf %442, %446 : vector<16x64xf32>
    %448 = vector.broadcast %439 : vector<16x1xf32> to vector<16x64xf32>
    %449 = arith.mulf %447, %448 : vector<16x64xf32>
    %cst_235 = arith.constant dense<0.000000e+00> : vector<64xf32>
    %450 = vector.multi_reduction <add>, %449, %cst_235 [0] : vector<16x64xf32> to vector<64xf32>
    %451 = vector.shape_cast %450 : vector<64xf32> to vector<1x64xf32>
    %c20_236 = arith.constant 20 : index
    %c0_237 = arith.constant 0 : index
    %452 = vector.load %arg23[%c20_236, %c0_237] : memref<32x64xf32, #tpu.memory_space<vmem>>, vector<1x64xf32>
    tpu.vector_store %arg23[%c20_236, %c0_237], %451 {strides = array<i32>} : memref<32x64xf32, #tpu.memory_space<vmem>>, vector<1x64xf32>,
    %c5 = arith.constant 5 : index
    %c64_238 = arith.constant 64 : index
    %453 = vector.load %arg19[%c5, %c64_238] : memref<32x96xf32, #tpu.memory_space<vmem>>, vector<1x16xf32>
    %c5_239 = arith.constant 5 : index
    %c80_240 = arith.constant 80 : index
    %454 = vector.load %arg19[%c5_239, %c80_240] : memref<32x96xf32, #tpu.memory_space<vmem>>, vector<1x16xf32>
    %455 = vector.broadcast %453 : vector<1x16xf32> to vector<16x16xf32>
    %456 = arith.mulf %455, %220 : vector<16x16xf32>
    %cst_241 = arith.constant dense<0.000000e+00> : vector<16xf32>
    %457 = vector.multi_reduction <add>, %456, %cst_241 [1] : vector<16x16xf32> to vector<16xf32>
    %458 = vector.shape_cast %457 : vector<16xf32> to vector<16x1xf32>
    %459 = vector.broadcast %454 : vector<1x16xf32> to vector<16x16xf32>
    %460 = arith.mulf %459, %220 : vector<16x16xf32>
    %cst_242 = arith.constant dense<0.000000e+00> : vector<16xf32>
    %461 = vector.multi_reduction <add>, %460, %cst_242 [1] : vector<16x16xf32> to vector<16xf32>
    %462 = vector.shape_cast %461 : vector<16xf32> to vector<16x1xf32>
    %c5_243 = arith.constant 5 : index
    %c0_244 = arith.constant 0 : index
    %463 = vector.load %arg20[%c5_243, %c0_244] : memref<32x64xf32, #tpu.memory_space<vmem>>, vector<1x64xf32>
    %464 = vector.broadcast %463 : vector<1x64xf32> to vector<16x64xf32>
    %465 = arith.mulf %424, %464 : vector<16x64xf32>
    %c5_245 = arith.constant 5 : index
    %c0_246 = arith.constant 0 : index
    %466 = vector.load %arg21[%c5_245, %c0_246] : memref<32x64xf32, #tpu.memory_space<vmem>>, vector<1x64xf32>
    %467 = vector.broadcast %458 : vector<16x1xf32> to vector<16x64xf32>
    %468 = vector.broadcast %466 : vector<1x64xf32> to vector<16x64xf32>
    %469 = arith.mulf %467, %468 : vector<16x64xf32>
    %470 = arith.addf %465, %469 : vector<16x64xf32>
    %471 = vector.broadcast %462 : vector<16x1xf32> to vector<16x64xf32>
    %472 = arith.mulf %470, %471 : vector<16x64xf32>
    %cst_247 = arith.constant dense<0.000000e+00> : vector<64xf32>
    %473 = vector.multi_reduction <add>, %472, %cst_247 [0] : vector<16x64xf32> to vector<64xf32>
    %474 = vector.shape_cast %473 : vector<64xf32> to vector<1x64xf32>
    %c5_248 = arith.constant 5 : index
    %c0_249 = arith.constant 0 : index
    %475 = vector.load %arg23[%c5_248, %c0_249] : memref<32x64xf32, #tpu.memory_space<vmem>>, vector<1x64xf32>
    tpu.vector_store %arg23[%c5_248, %c0_249], %474 {strides = array<i32>} : memref<32x64xf32, #tpu.memory_space<vmem>>, vector<1x64xf32>,
    %c21 = arith.constant 21 : index
    %c64_250 = arith.constant 64 : index
    %476 = vector.load %arg19[%c21, %c64_250] : memref<32x96xf32, #tpu.memory_space<vmem>>, vector<1x16xf32>
    %c21_251 = arith.constant 21 : index
    %c80_252 = arith.constant 80 : index
    %477 = vector.load %arg19[%c21_251, %c80_252] : memref<32x96xf32, #tpu.memory_space<vmem>>, vector<1x16xf32>
    %478 = vector.broadcast %476 : vector<1x16xf32> to vector<16x16xf32>
    %479 = arith.mulf %478, %220 : vector<16x16xf32>
    %cst_253 = arith.constant dense<0.000000e+00> : vector<16xf32>
    %480 = vector.multi_reduction <add>, %479, %cst_253 [1] : vector<16x16xf32> to vector<16xf32>
    %481 = vector.shape_cast %480 : vector<16xf32> to vector<16x1xf32>
    %482 = vector.broadcast %477 : vector<1x16xf32> to vector<16x16xf32>
    %483 = arith.mulf %482, %220 : vector<16x16xf32>
    %cst_254 = arith.constant dense<0.000000e+00> : vector<16xf32>
    %484 = vector.multi_reduction <add>, %483, %cst_254 [1] : vector<16x16xf32> to vector<16xf32>
    %485 = vector.shape_cast %484 : vector<16xf32> to vector<16x1xf32>
    %c21_255 = arith.constant 21 : index
    %c0_256 = arith.constant 0 : index
    %486 = vector.load %arg20[%c21_255, %c0_256] : memref<32x64xf32, #tpu.memory_space<vmem>>, vector<1x64xf32>
    %487 = vector.broadcast %486 : vector<1x64xf32> to vector<16x64xf32>
    %488 = arith.mulf %447, %487 : vector<16x64xf32>
    %c21_257 = arith.constant 21 : index
    %c0_258 = arith.constant 0 : index
    %489 = vector.load %arg21[%c21_257, %c0_258] : memref<32x64xf32, #tpu.memory_space<vmem>>, vector<1x64xf32>
    %490 = vector.broadcast %481 : vector<16x1xf32> to vector<16x64xf32>
    %491 = vector.broadcast %489 : vector<1x64xf32> to vector<16x64xf32>
    %492 = arith.mulf %490, %491 : vector<16x64xf32>
    %493 = arith.addf %488, %492 : vector<16x64xf32>
    %494 = vector.broadcast %485 : vector<16x1xf32> to vector<16x64xf32>
    %495 = arith.mulf %493, %494 : vector<16x64xf32>
    %cst_259 = arith.constant dense<0.000000e+00> : vector<64xf32>
    %496 = vector.multi_reduction <add>, %495, %cst_259 [0] : vector<16x64xf32> to vector<64xf32>
    %497 = vector.shape_cast %496 : vector<64xf32> to vector<1x64xf32>
    %c21_260 = arith.constant 21 : index
    %c0_261 = arith.constant 0 : index
    %498 = vector.load %arg23[%c21_260, %c0_261] : memref<32x64xf32, #tpu.memory_space<vmem>>, vector<1x64xf32>
    tpu.vector_store %arg23[%c21_260, %c0_261], %497 {strides = array<i32>} : memref<32x64xf32, #tpu.memory_space<vmem>>, vector<1x64xf32>,
    %c6 = arith.constant 6 : index
    %c64_262 = arith.constant 64 : index
    %499 = vector.load %arg19[%c6, %c64_262] : memref<32x96xf32, #tpu.memory_space<vmem>>, vector<1x16xf32>
    %c6_263 = arith.constant 6 : index
    %c80_264 = arith.constant 80 : index
    %500 = vector.load %arg19[%c6_263, %c80_264] : memref<32x96xf32, #tpu.memory_space<vmem>>, vector<1x16xf32>
    %501 = vector.broadcast %499 : vector<1x16xf32> to vector<16x16xf32>
    %502 = arith.mulf %501, %220 : vector<16x16xf32>
    %cst_265 = arith.constant dense<0.000000e+00> : vector<16xf32>
    %503 = vector.multi_reduction <add>, %502, %cst_265 [1] : vector<16x16xf32> to vector<16xf32>
    %504 = vector.shape_cast %503 : vector<16xf32> to vector<16x1xf32>
    %505 = vector.broadcast %500 : vector<1x16xf32> to vector<16x16xf32>
    %506 = arith.mulf %505, %220 : vector<16x16xf32>
    %cst_266 = arith.constant dense<0.000000e+00> : vector<16xf32>
    %507 = vector.multi_reduction <add>, %506, %cst_266 [1] : vector<16x16xf32> to vector<16xf32>
    %508 = vector.shape_cast %507 : vector<16xf32> to vector<16x1xf32>
    %c6_267 = arith.constant 6 : index
    %c0_268 = arith.constant 0 : index
    %509 = vector.load %arg20[%c6_267, %c0_268] : memref<32x64xf32, #tpu.memory_space<vmem>>, vector<1x64xf32>
    %510 = vector.broadcast %509 : vector<1x64xf32> to vector<16x64xf32>
    %511 = arith.mulf %470, %510 : vector<16x64xf32>
    %c6_269 = arith.constant 6 : index
    %c0_270 = arith.constant 0 : index
    %512 = vector.load %arg21[%c6_269, %c0_270] : memref<32x64xf32, #tpu.memory_space<vmem>>, vector<1x64xf32>
    %513 = vector.broadcast %504 : vector<16x1xf32> to vector<16x64xf32>
    %514 = vector.broadcast %512 : vector<1x64xf32> to vector<16x64xf32>
    %515 = arith.mulf %513, %514 : vector<16x64xf32>
    %516 = arith.addf %511, %515 : vector<16x64xf32>
    %517 = vector.broadcast %508 : vector<16x1xf32> to vector<16x64xf32>
    %518 = arith.mulf %516, %517 : vector<16x64xf32>
    %cst_271 = arith.constant dense<0.000000e+00> : vector<64xf32>
    %519 = vector.multi_reduction <add>, %518, %cst_271 [0] : vector<16x64xf32> to vector<64xf32>
    %520 = vector.shape_cast %519 : vector<64xf32> to vector<1x64xf32>
    %c6_272 = arith.constant 6 : index
    %c0_273 = arith.constant 0 : index
    %521 = vector.load %arg23[%c6_272, %c0_273] : memref<32x64xf32, #tpu.memory_space<vmem>>, vector<1x64xf32>
    tpu.vector_store %arg23[%c6_272, %c0_273], %520 {strides = array<i32>} : memref<32x64xf32, #tpu.memory_space<vmem>>, vector<1x64xf32>,
    %c22 = arith.constant 22 : index
    %c64_274 = arith.constant 64 : index
    %522 = vector.load %arg19[%c22, %c64_274] : memref<32x96xf32, #tpu.memory_space<vmem>>, vector<1x16xf32>
    %c22_275 = arith.constant 22 : index
    %c80_276 = arith.constant 80 : index
    %523 = vector.load %arg19[%c22_275, %c80_276] : memref<32x96xf32, #tpu.memory_space<vmem>>, vector<1x16xf32>
    %524 = vector.broadcast %522 : vector<1x16xf32> to vector<16x16xf32>
    %525 = arith.mulf %524, %220 : vector<16x16xf32>
    %cst_277 = arith.constant dense<0.000000e+00> : vector<16xf32>
    %526 = vector.multi_reduction <add>, %525, %cst_277 [1] : vector<16x16xf32> to vector<16xf32>
    %527 = vector.shape_cast %526 : vector<16xf32> to vector<16x1xf32>
    %528 = vector.broadcast %523 : vector<1x16xf32> to vector<16x16xf32>
    %529 = arith.mulf %528, %220 : vector<16x16xf32>
    %cst_278 = arith.constant dense<0.000000e+00> : vector<16xf32>
    %530 = vector.multi_reduction <add>, %529, %cst_278 [1] : vector<16x16xf32> to vector<16xf32>
    %531 = vector.shape_cast %530 : vector<16xf32> to vector<16x1xf32>
    %c22_279 = arith.constant 22 : index
    %c0_280 = arith.constant 0 : index
    %532 = vector.load %arg20[%c22_279, %c0_280] : memref<32x64xf32, #tpu.memory_space<vmem>>, vector<1x64xf32>
    %533 = vector.broadcast %532 : vector<1x64xf32> to vector<16x64xf32>
    %534 = arith.mulf %493, %533 : vector<16x64xf32>
    %c22_281 = arith.constant 22 : index
    %c0_282 = arith.constant 0 : index
    %535 = vector.load %arg21[%c22_281, %c0_282] : memref<32x64xf32, #tpu.memory_space<vmem>>, vector<1x64xf32>
    %536 = vector.broadcast %527 : vector<16x1xf32> to vector<16x64xf32>
    %537 = vector.broadcast %535 : vector<1x64xf32> to vector<16x64xf32>
    %538 = arith.mulf %536, %537 : vector<16x64xf32>
    %539 = arith.addf %534, %538 : vector<16x64xf32>
    %540 = vector.broadcast %531 : vector<16x1xf32> to vector<16x64xf32>
    %541 = arith.mulf %539, %540 : vector<16x64xf32>
    %cst_283 = arith.constant dense<0.000000e+00> : vector<64xf32>
    %542 = vector.multi_reduction <add>, %541, %cst_283 [0] : vector<16x64xf32> to vector<64xf32>
    %543 = vector.shape_cast %542 : vector<64xf32> to vector<1x64xf32>
    %c22_284 = arith.constant 22 : index
    %c0_285 = arith.constant 0 : index
    %544 = vector.load %arg23[%c22_284, %c0_285] : memref<32x64xf32, #tpu.memory_space<vmem>>, vector<1x64xf32>
    tpu.vector_store %arg23[%c22_284, %c0_285], %543 {strides = array<i32>} : memref<32x64xf32, #tpu.memory_space<vmem>>, vector<1x64xf32>,
    %c7 = arith.constant 7 : index
    %c64_286 = arith.constant 64 : index
    %545 = vector.load %arg19[%c7, %c64_286] : memref<32x96xf32, #tpu.memory_space<vmem>>, vector<1x16xf32>
    %c7_287 = arith.constant 7 : index
    %c80_288 = arith.constant 80 : index
    %546 = vector.load %arg19[%c7_287, %c80_288] : memref<32x96xf32, #tpu.memory_space<vmem>>, vector<1x16xf32>
    %547 = vector.broadcast %545 : vector<1x16xf32> to vector<16x16xf32>
    %548 = arith.mulf %547, %220 : vector<16x16xf32>
    %cst_289 = arith.constant dense<0.000000e+00> : vector<16xf32>
    %549 = vector.multi_reduction <add>, %548, %cst_289 [1] : vector<16x16xf32> to vector<16xf32>
    %550 = vector.shape_cast %549 : vector<16xf32> to vector<16x1xf32>
    %551 = vector.broadcast %546 : vector<1x16xf32> to vector<16x16xf32>
    %552 = arith.mulf %551, %220 : vector<16x16xf32>
    %cst_290 = arith.constant dense<0.000000e+00> : vector<16xf32>
    %553 = vector.multi_reduction <add>, %552, %cst_290 [1] : vector<16x16xf32> to vector<16xf32>
    %554 = vector.shape_cast %553 : vector<16xf32> to vector<16x1xf32>
    %c7_291 = arith.constant 7 : index
    %c0_292 = arith.constant 0 : index
    %555 = vector.load %arg20[%c7_291, %c0_292] : memref<32x64xf32, #tpu.memory_space<vmem>>, vector<1x64xf32>
    %556 = vector.broadcast %555 : vector<1x64xf32> to vector<16x64xf32>
    %557 = arith.mulf %516, %556 : vector<16x64xf32>
    %c7_293 = arith.constant 7 : index
    %c0_294 = arith.constant 0 : index
    %558 = vector.load %arg21[%c7_293, %c0_294] : memref<32x64xf32, #tpu.memory_space<vmem>>, vector<1x64xf32>
    %559 = vector.broadcast %550 : vector<16x1xf32> to vector<16x64xf32>
    %560 = vector.broadcast %558 : vector<1x64xf32> to vector<16x64xf32>
    %561 = arith.mulf %559, %560 : vector<16x64xf32>
    %562 = arith.addf %557, %561 : vector<16x64xf32>
    %563 = vector.broadcast %554 : vector<16x1xf32> to vector<16x64xf32>
    %564 = arith.mulf %562, %563 : vector<16x64xf32>
    %cst_295 = arith.constant dense<0.000000e+00> : vector<64xf32>
    %565 = vector.multi_reduction <add>, %564, %cst_295 [0] : vector<16x64xf32> to vector<64xf32>
    %566 = vector.shape_cast %565 : vector<64xf32> to vector<1x64xf32>
    %c7_296 = arith.constant 7 : index
    %c0_297 = arith.constant 0 : index
    %567 = vector.load %arg23[%c7_296, %c0_297] : memref<32x64xf32, #tpu.memory_space<vmem>>, vector<1x64xf32>
    tpu.vector_store %arg23[%c7_296, %c0_297], %566 {strides = array<i32>} : memref<32x64xf32, #tpu.memory_space<vmem>>, vector<1x64xf32>,
    %c23 = arith.constant 23 : index
    %c64_298 = arith.constant 64 : index
    %568 = vector.load %arg19[%c23, %c64_298] : memref<32x96xf32, #tpu.memory_space<vmem>>, vector<1x16xf32>
    %c23_299 = arith.constant 23 : index
    %c80_300 = arith.constant 80 : index
    %569 = vector.load %arg19[%c23_299, %c80_300] : memref<32x96xf32, #tpu.memory_space<vmem>>, vector<1x16xf32>
    %570 = vector.broadcast %568 : vector<1x16xf32> to vector<16x16xf32>
    %571 = arith.mulf %570, %220 : vector<16x16xf32>
    %cst_301 = arith.constant dense<0.000000e+00> : vector<16xf32>
    %572 = vector.multi_reduction <add>, %571, %cst_301 [1] : vector<16x16xf32> to vector<16xf32>
    %573 = vector.shape_cast %572 : vector<16xf32> to vector<16x1xf32>
    %574 = vector.broadcast %569 : vector<1x16xf32> to vector<16x16xf32>
    %575 = arith.mulf %574, %220 : vector<16x16xf32>
    %cst_302 = arith.constant dense<0.000000e+00> : vector<16xf32>
    %576 = vector.multi_reduction <add>, %575, %cst_302 [1] : vector<16x16xf32> to vector<16xf32>
    %577 = vector.shape_cast %576 : vector<16xf32> to vector<16x1xf32>
    %c23_303 = arith.constant 23 : index
    %c0_304 = arith.constant 0 : index
    %578 = vector.load %arg20[%c23_303, %c0_304] : memref<32x64xf32, #tpu.memory_space<vmem>>, vector<1x64xf32>
    %579 = vector.broadcast %578 : vector<1x64xf32> to vector<16x64xf32>
    %580 = arith.mulf %539, %579 : vector<16x64xf32>
    %c23_305 = arith.constant 23 : index
    %c0_306 = arith.constant 0 : index
    %581 = vector.load %arg21[%c23_305, %c0_306] : memref<32x64xf32, #tpu.memory_space<vmem>>, vector<1x64xf32>
    %582 = vector.broadcast %573 : vector<16x1xf32> to vector<16x64xf32>
    %583 = vector.broadcast %581 : vector<1x64xf32> to vector<16x64xf32>
    %584 = arith.mulf %582, %583 : vector<16x64xf32>
    %585 = arith.addf %580, %584 : vector<16x64xf32>
    %586 = vector.broadcast %577 : vector<16x1xf32> to vector<16x64xf32>
    %587 = arith.mulf %585, %586 : vector<16x64xf32>
    %cst_307 = arith.constant dense<0.000000e+00> : vector<64xf32>
    %588 = vector.multi_reduction <add>, %587, %cst_307 [0] : vector<16x64xf32> to vector<64xf32>
    %589 = vector.shape_cast %588 : vector<64xf32> to vector<1x64xf32>
    %c23_308 = arith.constant 23 : index
    %c0_309 = arith.constant 0 : index
    %590 = vector.load %arg23[%c23_308, %c0_309] : memref<32x64xf32, #tpu.memory_space<vmem>>, vector<1x64xf32>
    tpu.vector_store %arg23[%c23_308, %c0_309], %589 {strides = array<i32>} : memref<32x64xf32, #tpu.memory_space<vmem>>, vector<1x64xf32>,
    %c8 = arith.constant 8 : index
    %c64_310 = arith.constant 64 : index
    %591 = vector.load %arg19[%c8, %c64_310] : memref<32x96xf32, #tpu.memory_space<vmem>>, vector<1x16xf32>
    %c8_311 = arith.constant 8 : index
    %c80_312 = arith.constant 80 : index
    %592 = vector.load %arg19[%c8_311, %c80_312] : memref<32x96xf32, #tpu.memory_space<vmem>>, vector<1x16xf32>
    %593 = vector.broadcast %591 : vector<1x16xf32> to vector<16x16xf32>
    %594 = arith.mulf %593, %220 : vector<16x16xf32>
    %cst_313 = arith.constant dense<0.000000e+00> : vector<16xf32>
    %595 = vector.multi_reduction <add>, %594, %cst_313 [1] : vector<16x16xf32> to vector<16xf32>
    %596 = vector.shape_cast %595 : vector<16xf32> to vector<16x1xf32>
    %597 = vector.broadcast %592 : vector<1x16xf32> to vector<16x16xf32>
    %598 = arith.mulf %597, %220 : vector<16x16xf32>
    %cst_314 = arith.constant dense<0.000000e+00> : vector<16xf32>
    %599 = vector.multi_reduction <add>, %598, %cst_314 [1] : vector<16x16xf32> to vector<16xf32>
    %600 = vector.shape_cast %599 : vector<16xf32> to vector<16x1xf32>
    %c8_315 = arith.constant 8 : index
    %c0_316 = arith.constant 0 : index
    %601 = vector.load %arg20[%c8_315, %c0_316] : memref<32x64xf32, #tpu.memory_space<vmem>>, vector<1x64xf32>
    %602 = vector.broadcast %601 : vector<1x64xf32> to vector<16x64xf32>
    %603 = arith.mulf %562, %602 : vector<16x64xf32>
    %c8_317 = arith.constant 8 : index
    %c0_318 = arith.constant 0 : index
    %604 = vector.load %arg21[%c8_317, %c0_318] : memref<32x64xf32, #tpu.memory_space<vmem>>, vector<1x64xf32>
    %605 = vector.broadcast %596 : vector<16x1xf32> to vector<16x64xf32>
    %606 = vector.broadcast %604 : vector<1x64xf32> to vector<16x64xf32>
    %607 = arith.mulf %605, %606 : vector<16x64xf32>
    %608 = arith.addf %603, %607 : vector<16x64xf32>
    %609 = vector.broadcast %600 : vector<16x1xf32> to vector<16x64xf32>
    %610 = arith.mulf %608, %609 : vector<16x64xf32>
    %cst_319 = arith.constant dense<0.000000e+00> : vector<64xf32>
    %611 = vector.multi_reduction <add>, %610, %cst_319 [0] : vector<16x64xf32> to vector<64xf32>
    %612 = vector.shape_cast %611 : vector<64xf32> to vector<1x64xf32>
    %c8_320 = arith.constant 8 : index
    %c0_321 = arith.constant 0 : index
    %613 = vector.load %arg23[%c8_320, %c0_321] : memref<32x64xf32, #tpu.memory_space<vmem>>, vector<1x64xf32>
    tpu.vector_store %arg23[%c8_320, %c0_321], %612 {strides = array<i32>} : memref<32x64xf32, #tpu.memory_space<vmem>>, vector<1x64xf32>,
    %c24 = arith.constant 24 : index
    %c64_322 = arith.constant 64 : index
    %614 = vector.load %arg19[%c24, %c64_322] : memref<32x96xf32, #tpu.memory_space<vmem>>, vector<1x16xf32>
    %c24_323 = arith.constant 24 : index
    %c80_324 = arith.constant 80 : index
    %615 = vector.load %arg19[%c24_323, %c80_324] : memref<32x96xf32, #tpu.memory_space<vmem>>, vector<1x16xf32>
    %616 = vector.broadcast %614 : vector<1x16xf32> to vector<16x16xf32>
    %617 = arith.mulf %616, %220 : vector<16x16xf32>
    %cst_325 = arith.constant dense<0.000000e+00> : vector<16xf32>
    %618 = vector.multi_reduction <add>, %617, %cst_325 [1] : vector<16x16xf32> to vector<16xf32>
    %619 = vector.shape_cast %618 : vector<16xf32> to vector<16x1xf32>
    %620 = vector.broadcast %615 : vector<1x16xf32> to vector<16x16xf32>
    %621 = arith.mulf %620, %220 : vector<16x16xf32>
    %cst_326 = arith.constant dense<0.000000e+00> : vector<16xf32>
    %622 = vector.multi_reduction <add>, %621, %cst_326 [1] : vector<16x16xf32> to vector<16xf32>
    %623 = vector.shape_cast %622 : vector<16xf32> to vector<16x1xf32>
    %c24_327 = arith.constant 24 : index
    %c0_328 = arith.constant 0 : index
    %624 = vector.load %arg20[%c24_327, %c0_328] : memref<32x64xf32, #tpu.memory_space<vmem>>, vector<1x64xf32>
    %625 = vector.broadcast %624 : vector<1x64xf32> to vector<16x64xf32>
    %626 = arith.mulf %585, %625 : vector<16x64xf32>
    %c24_329 = arith.constant 24 : index
    %c0_330 = arith.constant 0 : index
    %627 = vector.load %arg21[%c24_329, %c0_330] : memref<32x64xf32, #tpu.memory_space<vmem>>, vector<1x64xf32>
    %628 = vector.broadcast %619 : vector<16x1xf32> to vector<16x64xf32>
    %629 = vector.broadcast %627 : vector<1x64xf32> to vector<16x64xf32>
    %630 = arith.mulf %628, %629 : vector<16x64xf32>
    %631 = arith.addf %626, %630 : vector<16x64xf32>
    %632 = vector.broadcast %623 : vector<16x1xf32> to vector<16x64xf32>
    %633 = arith.mulf %631, %632 : vector<16x64xf32>
    %cst_331 = arith.constant dense<0.000000e+00> : vector<64xf32>
    %634 = vector.multi_reduction <add>, %633, %cst_331 [0] : vector<16x64xf32> to vector<64xf32>
    %635 = vector.shape_cast %634 : vector<64xf32> to vector<1x64xf32>
    %c24_332 = arith.constant 24 : index
    %c0_333 = arith.constant 0 : index
    %636 = vector.load %arg23[%c24_332, %c0_333] : memref<32x64xf32, #tpu.memory_space<vmem>>, vector<1x64xf32>
    tpu.vector_store %arg23[%c24_332, %c0_333], %635 {strides = array<i32>} : memref<32x64xf32, #tpu.memory_space<vmem>>, vector<1x64xf32>,
    %c9 = arith.constant 9 : index
    %c64_334 = arith.constant 64 : index
    %637 = vector.load %arg19[%c9, %c64_334] : memref<32x96xf32, #tpu.memory_space<vmem>>, vector<1x16xf32>
    %c9_335 = arith.constant 9 : index
    %c80_336 = arith.constant 80 : index
    %638 = vector.load %arg19[%c9_335, %c80_336] : memref<32x96xf32, #tpu.memory_space<vmem>>, vector<1x16xf32>
    %639 = vector.broadcast %637 : vector<1x16xf32> to vector<16x16xf32>
    %640 = arith.mulf %639, %220 : vector<16x16xf32>
    %cst_337 = arith.constant dense<0.000000e+00> : vector<16xf32>
    %641 = vector.multi_reduction <add>, %640, %cst_337 [1] : vector<16x16xf32> to vector<16xf32>
    %642 = vector.shape_cast %641 : vector<16xf32> to vector<16x1xf32>
    %643 = vector.broadcast %638 : vector<1x16xf32> to vector<16x16xf32>
    %644 = arith.mulf %643, %220 : vector<16x16xf32>
    %cst_338 = arith.constant dense<0.000000e+00> : vector<16xf32>
    %645 = vector.multi_reduction <add>, %644, %cst_338 [1] : vector<16x16xf32> to vector<16xf32>
    %646 = vector.shape_cast %645 : vector<16xf32> to vector<16x1xf32>
    %c9_339 = arith.constant 9 : index
    %c0_340 = arith.constant 0 : index
    %647 = vector.load %arg20[%c9_339, %c0_340] : memref<32x64xf32, #tpu.memory_space<vmem>>, vector<1x64xf32>
    %648 = vector.broadcast %647 : vector<1x64xf32> to vector<16x64xf32>
    %649 = arith.mulf %608, %648 : vector<16x64xf32>
    %c9_341 = arith.constant 9 : index
    %c0_342 = arith.constant 0 : index
    %650 = vector.load %arg21[%c9_341, %c0_342] : memref<32x64xf32, #tpu.memory_space<vmem>>, vector<1x64xf32>
    %651 = vector.broadcast %642 : vector<16x1xf32> to vector<16x64xf32>
    %652 = vector.broadcast %650 : vector<1x64xf32> to vector<16x64xf32>
    %653 = arith.mulf %651, %652 : vector<16x64xf32>
    %654 = arith.addf %649, %653 : vector<16x64xf32>
    %655 = vector.broadcast %646 : vector<16x1xf32> to vector<16x64xf32>
    %656 = arith.mulf %654, %655 : vector<16x64xf32>
    %cst_343 = arith.constant dense<0.000000e+00> : vector<64xf32>
    %657 = vector.multi_reduction <add>, %656, %cst_343 [0] : vector<16x64xf32> to vector<64xf32>
    %658 = vector.shape_cast %657 : vector<64xf32> to vector<1x64xf32>
    %c9_344 = arith.constant 9 : index
    %c0_345 = arith.constant 0 : index
    %659 = vector.load %arg23[%c9_344, %c0_345] : memref<32x64xf32, #tpu.memory_space<vmem>>, vector<1x64xf32>
    tpu.vector_store %arg23[%c9_344, %c0_345], %658 {strides = array<i32>} : memref<32x64xf32, #tpu.memory_space<vmem>>, vector<1x64xf32>,
    %c25 = arith.constant 25 : index
    %c64_346 = arith.constant 64 : index
    %660 = vector.load %arg19[%c25, %c64_346] : memref<32x96xf32, #tpu.memory_space<vmem>>, vector<1x16xf32>
    %c25_347 = arith.constant 25 : index
    %c80_348 = arith.constant 80 : index
    %661 = vector.load %arg19[%c25_347, %c80_348] : memref<32x96xf32, #tpu.memory_space<vmem>>, vector<1x16xf32>
    %662 = vector.broadcast %660 : vector<1x16xf32> to vector<16x16xf32>
    %663 = arith.mulf %662, %220 : vector<16x16xf32>
    %cst_349 = arith.constant dense<0.000000e+00> : vector<16xf32>
    %664 = vector.multi_reduction <add>, %663, %cst_349 [1] : vector<16x16xf32> to vector<16xf32>
    %665 = vector.shape_cast %664 : vector<16xf32> to vector<16x1xf32>
    %666 = vector.broadcast %661 : vector<1x16xf32> to vector<16x16xf32>
    %667 = arith.mulf %666, %220 : vector<16x16xf32>
    %cst_350 = arith.constant dense<0.000000e+00> : vector<16xf32>
    %668 = vector.multi_reduction <add>, %667, %cst_350 [1] : vector<16x16xf32> to vector<16xf32>
    %669 = vector.shape_cast %668 : vector<16xf32> to vector<16x1xf32>
    %c25_351 = arith.constant 25 : index
    %c0_352 = arith.constant 0 : index
    %670 = vector.load %arg20[%c25_351, %c0_352] : memref<32x64xf32, #tpu.memory_space<vmem>>, vector<1x64xf32>
    %671 = vector.broadcast %670 : vector<1x64xf32> to vector<16x64xf32>
    %672 = arith.mulf %631, %671 : vector<16x64xf32>
    %c25_353 = arith.constant 25 : index
    %c0_354 = arith.constant 0 : index
    %673 = vector.load %arg21[%c25_353, %c0_354] : memref<32x64xf32, #tpu.memory_space<vmem>>, vector<1x64xf32>
    %674 = vector.broadcast %665 : vector<16x1xf32> to vector<16x64xf32>
    %675 = vector.broadcast %673 : vector<1x64xf32> to vector<16x64xf32>
    %676 = arith.mulf %674, %675 : vector<16x64xf32>
    %677 = arith.addf %672, %676 : vector<16x64xf32>
    %678 = vector.broadcast %669 : vector<16x1xf32> to vector<16x64xf32>
    %679 = arith.mulf %677, %678 : vector<16x64xf32>
    %cst_355 = arith.constant dense<0.000000e+00> : vector<64xf32>
    %680 = vector.multi_reduction <add>, %679, %cst_355 [0] : vector<16x64xf32> to vector<64xf32>
    %681 = vector.shape_cast %680 : vector<64xf32> to vector<1x64xf32>
    %c25_356 = arith.constant 25 : index
    %c0_357 = arith.constant 0 : index
    %682 = vector.load %arg23[%c25_356, %c0_357] : memref<32x64xf32, #tpu.memory_space<vmem>>, vector<1x64xf32>
    tpu.vector_store %arg23[%c25_356, %c0_357], %681 {strides = array<i32>} : memref<32x64xf32, #tpu.memory_space<vmem>>, vector<1x64xf32>,
    %c10 = arith.constant 10 : index
    %c64_358 = arith.constant 64 : index
    %683 = vector.load %arg19[%c10, %c64_358] : memref<32x96xf32, #tpu.memory_space<vmem>>, vector<1x16xf32>
    %c10_359 = arith.constant 10 : index
    %c80_360 = arith.constant 80 : index
    %684 = vector.load %arg19[%c10_359, %c80_360] : memref<32x96xf32, #tpu.memory_space<vmem>>, vector<1x16xf32>
    %685 = vector.broadcast %683 : vector<1x16xf32> to vector<16x16xf32>
    %686 = arith.mulf %685, %220 : vector<16x16xf32>
    %cst_361 = arith.constant dense<0.000000e+00> : vector<16xf32>
    %687 = vector.multi_reduction <add>, %686, %cst_361 [1] : vector<16x16xf32> to vector<16xf32>
    %688 = vector.shape_cast %687 : vector<16xf32> to vector<16x1xf32>
    %689 = vector.broadcast %684 : vector<1x16xf32> to vector<16x16xf32>
    %690 = arith.mulf %689, %220 : vector<16x16xf32>
    %cst_362 = arith.constant dense<0.000000e+00> : vector<16xf32>
    %691 = vector.multi_reduction <add>, %690, %cst_362 [1] : vector<16x16xf32> to vector<16xf32>
    %692 = vector.shape_cast %691 : vector<16xf32> to vector<16x1xf32>
    %c10_363 = arith.constant 10 : index
    %c0_364 = arith.constant 0 : index
    %693 = vector.load %arg20[%c10_363, %c0_364] : memref<32x64xf32, #tpu.memory_space<vmem>>, vector<1x64xf32>
    %694 = vector.broadcast %693 : vector<1x64xf32> to vector<16x64xf32>
    %695 = arith.mulf %654, %694 : vector<16x64xf32>
    %c10_365 = arith.constant 10 : index
    %c0_366 = arith.constant 0 : index
    %696 = vector.load %arg21[%c10_365, %c0_366] : memref<32x64xf32, #tpu.memory_space<vmem>>, vector<1x64xf32>
    %697 = vector.broadcast %688 : vector<16x1xf32> to vector<16x64xf32>
    %698 = vector.broadcast %696 : vector<1x64xf32> to vector<16x64xf32>
    %699 = arith.mulf %697, %698 : vector<16x64xf32>
    %700 = arith.addf %695, %699 : vector<16x64xf32>
    %701 = vector.broadcast %692 : vector<16x1xf32> to vector<16x64xf32>
    %702 = arith.mulf %700, %701 : vector<16x64xf32>
    %cst_367 = arith.constant dense<0.000000e+00> : vector<64xf32>
    %703 = vector.multi_reduction <add>, %702, %cst_367 [0] : vector<16x64xf32> to vector<64xf32>
    %704 = vector.shape_cast %703 : vector<64xf32> to vector<1x64xf32>
    %c10_368 = arith.constant 10 : index
    %c0_369 = arith.constant 0 : index
    %705 = vector.load %arg23[%c10_368, %c0_369] : memref<32x64xf32, #tpu.memory_space<vmem>>, vector<1x64xf32>
    tpu.vector_store %arg23[%c10_368, %c0_369], %704 {strides = array<i32>} : memref<32x64xf32, #tpu.memory_space<vmem>>, vector<1x64xf32>,
    %c26 = arith.constant 26 : index
    %c64_370 = arith.constant 64 : index
    %706 = vector.load %arg19[%c26, %c64_370] : memref<32x96xf32, #tpu.memory_space<vmem>>, vector<1x16xf32>
    %c26_371 = arith.constant 26 : index
    %c80_372 = arith.constant 80 : index
    %707 = vector.load %arg19[%c26_371, %c80_372] : memref<32x96xf32, #tpu.memory_space<vmem>>, vector<1x16xf32>
    %708 = vector.broadcast %706 : vector<1x16xf32> to vector<16x16xf32>
    %709 = arith.mulf %708, %220 : vector<16x16xf32>
    %cst_373 = arith.constant dense<0.000000e+00> : vector<16xf32>
    %710 = vector.multi_reduction <add>, %709, %cst_373 [1] : vector<16x16xf32> to vector<16xf32>
    %711 = vector.shape_cast %710 : vector<16xf32> to vector<16x1xf32>
    %712 = vector.broadcast %707 : vector<1x16xf32> to vector<16x16xf32>
    %713 = arith.mulf %712, %220 : vector<16x16xf32>
    %cst_374 = arith.constant dense<0.000000e+00> : vector<16xf32>
    %714 = vector.multi_reduction <add>, %713, %cst_374 [1] : vector<16x16xf32> to vector<16xf32>
    %715 = vector.shape_cast %714 : vector<16xf32> to vector<16x1xf32>
    %c26_375 = arith.constant 26 : index
    %c0_376 = arith.constant 0 : index
    %716 = vector.load %arg20[%c26_375, %c0_376] : memref<32x64xf32, #tpu.memory_space<vmem>>, vector<1x64xf32>
    %717 = vector.broadcast %716 : vector<1x64xf32> to vector<16x64xf32>
    %718 = arith.mulf %677, %717 : vector<16x64xf32>
    %c26_377 = arith.constant 26 : index
    %c0_378 = arith.constant 0 : index
    %719 = vector.load %arg21[%c26_377, %c0_378] : memref<32x64xf32, #tpu.memory_space<vmem>>, vector<1x64xf32>
    %720 = vector.broadcast %711 : vector<16x1xf32> to vector<16x64xf32>
    %721 = vector.broadcast %719 : vector<1x64xf32> to vector<16x64xf32>
    %722 = arith.mulf %720, %721 : vector<16x64xf32>
    %723 = arith.addf %718, %722 : vector<16x64xf32>
    %724 = vector.broadcast %715 : vector<16x1xf32> to vector<16x64xf32>
    %725 = arith.mulf %723, %724 : vector<16x64xf32>
    %cst_379 = arith.constant dense<0.000000e+00> : vector<64xf32>
    %726 = vector.multi_reduction <add>, %725, %cst_379 [0] : vector<16x64xf32> to vector<64xf32>
    %727 = vector.shape_cast %726 : vector<64xf32> to vector<1x64xf32>
    %c26_380 = arith.constant 26 : index
    %c0_381 = arith.constant 0 : index
    %728 = vector.load %arg23[%c26_380, %c0_381] : memref<32x64xf32, #tpu.memory_space<vmem>>, vector<1x64xf32>
    tpu.vector_store %arg23[%c26_380, %c0_381], %727 {strides = array<i32>} : memref<32x64xf32, #tpu.memory_space<vmem>>, vector<1x64xf32>,
    %c11 = arith.constant 11 : index
    %c64_382 = arith.constant 64 : index
    %729 = vector.load %arg19[%c11, %c64_382] : memref<32x96xf32, #tpu.memory_space<vmem>>, vector<1x16xf32>
    %c11_383 = arith.constant 11 : index
    %c80_384 = arith.constant 80 : index
    %730 = vector.load %arg19[%c11_383, %c80_384] : memref<32x96xf32, #tpu.memory_space<vmem>>, vector<1x16xf32>
    %731 = vector.broadcast %729 : vector<1x16xf32> to vector<16x16xf32>
    %732 = arith.mulf %731, %220 : vector<16x16xf32>
    %cst_385 = arith.constant dense<0.000000e+00> : vector<16xf32>
    %733 = vector.multi_reduction <add>, %732, %cst_385 [1] : vector<16x16xf32> to vector<16xf32>
    %734 = vector.shape_cast %733 : vector<16xf32> to vector<16x1xf32>
    %735 = vector.broadcast %730 : vector<1x16xf32> to vector<16x16xf32>
    %736 = arith.mulf %735, %220 : vector<16x16xf32>
    %cst_386 = arith.constant dense<0.000000e+00> : vector<16xf32>
    %737 = vector.multi_reduction <add>, %736, %cst_386 [1] : vector<16x16xf32> to vector<16xf32>
    %738 = vector.shape_cast %737 : vector<16xf32> to vector<16x1xf32>
    %c11_387 = arith.constant 11 : index
    %c0_388 = arith.constant 0 : index
    %739 = vector.load %arg20[%c11_387, %c0_388] : memref<32x64xf32, #tpu.memory_space<vmem>>, vector<1x64xf32>
    %740 = vector.broadcast %739 : vector<1x64xf32> to vector<16x64xf32>
    %741 = arith.mulf %700, %740 : vector<16x64xf32>
    %c11_389 = arith.constant 11 : index
    %c0_390 = arith.constant 0 : index
    %742 = vector.load %arg21[%c11_389, %c0_390] : memref<32x64xf32, #tpu.memory_space<vmem>>, vector<1x64xf32>
    %743 = vector.broadcast %734 : vector<16x1xf32> to vector<16x64xf32>
    %744 = vector.broadcast %742 : vector<1x64xf32> to vector<16x64xf32>
    %745 = arith.mulf %743, %744 : vector<16x64xf32>
    %746 = arith.addf %741, %745 : vector<16x64xf32>
    %747 = vector.broadcast %738 : vector<16x1xf32> to vector<16x64xf32>
    %748 = arith.mulf %746, %747 : vector<16x64xf32>
    %cst_391 = arith.constant dense<0.000000e+00> : vector<64xf32>
    %749 = vector.multi_reduction <add>, %748, %cst_391 [0] : vector<16x64xf32> to vector<64xf32>
    %750 = vector.shape_cast %749 : vector<64xf32> to vector<1x64xf32>
    %c11_392 = arith.constant 11 : index
    %c0_393 = arith.constant 0 : index
    %751 = vector.load %arg23[%c11_392, %c0_393] : memref<32x64xf32, #tpu.memory_space<vmem>>, vector<1x64xf32>
    tpu.vector_store %arg23[%c11_392, %c0_393], %750 {strides = array<i32>} : memref<32x64xf32, #tpu.memory_space<vmem>>, vector<1x64xf32>,
    %c27 = arith.constant 27 : index
    %c64_394 = arith.constant 64 : index
    %752 = vector.load %arg19[%c27, %c64_394] : memref<32x96xf32, #tpu.memory_space<vmem>>, vector<1x16xf32>
    %c27_395 = arith.constant 27 : index
    %c80_396 = arith.constant 80 : index
    %753 = vector.load %arg19[%c27_395, %c80_396] : memref<32x96xf32, #tpu.memory_space<vmem>>, vector<1x16xf32>
    %754 = vector.broadcast %752 : vector<1x16xf32> to vector<16x16xf32>
    %755 = arith.mulf %754, %220 : vector<16x16xf32>
    %cst_397 = arith.constant dense<0.000000e+00> : vector<16xf32>
    %756 = vector.multi_reduction <add>, %755, %cst_397 [1] : vector<16x16xf32> to vector<16xf32>
    %757 = vector.shape_cast %756 : vector<16xf32> to vector<16x1xf32>
    %758 = vector.broadcast %753 : vector<1x16xf32> to vector<16x16xf32>
    %759 = arith.mulf %758, %220 : vector<16x16xf32>
    %cst_398 = arith.constant dense<0.000000e+00> : vector<16xf32>
    %760 = vector.multi_reduction <add>, %759, %cst_398 [1] : vector<16x16xf32> to vector<16xf32>
    %761 = vector.shape_cast %760 : vector<16xf32> to vector<16x1xf32>
    %c27_399 = arith.constant 27 : index
    %c0_400 = arith.constant 0 : index
    %762 = vector.load %arg20[%c27_399, %c0_400] : memref<32x64xf32, #tpu.memory_space<vmem>>, vector<1x64xf32>
    %763 = vector.broadcast %762 : vector<1x64xf32> to vector<16x64xf32>
    %764 = arith.mulf %723, %763 : vector<16x64xf32>
    %c27_401 = arith.constant 27 : index
    %c0_402 = arith.constant 0 : index
    %765 = vector.load %arg21[%c27_401, %c0_402] : memref<32x64xf32, #tpu.memory_space<vmem>>, vector<1x64xf32>
    %766 = vector.broadcast %757 : vector<16x1xf32> to vector<16x64xf32>
    %767 = vector.broadcast %765 : vector<1x64xf32> to vector<16x64xf32>
    %768 = arith.mulf %766, %767 : vector<16x64xf32>
    %769 = arith.addf %764, %768 : vector<16x64xf32>
    %770 = vector.broadcast %761 : vector<16x1xf32> to vector<16x64xf32>
    %771 = arith.mulf %769, %770 : vector<16x64xf32>
    %cst_403 = arith.constant dense<0.000000e+00> : vector<64xf32>
    %772 = vector.multi_reduction <add>, %771, %cst_403 [0] : vector<16x64xf32> to vector<64xf32>
    %773 = vector.shape_cast %772 : vector<64xf32> to vector<1x64xf32>
    %c27_404 = arith.constant 27 : index
    %c0_405 = arith.constant 0 : index
    %774 = vector.load %arg23[%c27_404, %c0_405] : memref<32x64xf32, #tpu.memory_space<vmem>>, vector<1x64xf32>
    tpu.vector_store %arg23[%c27_404, %c0_405], %773 {strides = array<i32>} : memref<32x64xf32, #tpu.memory_space<vmem>>, vector<1x64xf32>,
    %c12 = arith.constant 12 : index
    %c64_406 = arith.constant 64 : index
    %775 = vector.load %arg19[%c12, %c64_406] : memref<32x96xf32, #tpu.memory_space<vmem>>, vector<1x16xf32>
    %c12_407 = arith.constant 12 : index
    %c80_408 = arith.constant 80 : index
    %776 = vector.load %arg19[%c12_407, %c80_408] : memref<32x96xf32, #tpu.memory_space<vmem>>, vector<1x16xf32>
    %777 = vector.broadcast %775 : vector<1x16xf32> to vector<16x16xf32>
    %778 = arith.mulf %777, %220 : vector<16x16xf32>
    %cst_409 = arith.constant dense<0.000000e+00> : vector<16xf32>
    %779 = vector.multi_reduction <add>, %778, %cst_409 [1] : vector<16x16xf32> to vector<16xf32>
    %780 = vector.shape_cast %779 : vector<16xf32> to vector<16x1xf32>
    %781 = vector.broadcast %776 : vector<1x16xf32> to vector<16x16xf32>
    %782 = arith.mulf %781, %220 : vector<16x16xf32>
    %cst_410 = arith.constant dense<0.000000e+00> : vector<16xf32>
    %783 = vector.multi_reduction <add>, %782, %cst_410 [1] : vector<16x16xf32> to vector<16xf32>
    %784 = vector.shape_cast %783 : vector<16xf32> to vector<16x1xf32>
    %c12_411 = arith.constant 12 : index
    %c0_412 = arith.constant 0 : index
    %785 = vector.load %arg20[%c12_411, %c0_412] : memref<32x64xf32, #tpu.memory_space<vmem>>, vector<1x64xf32>
    %786 = vector.broadcast %785 : vector<1x64xf32> to vector<16x64xf32>
    %787 = arith.mulf %746, %786 : vector<16x64xf32>
    %c12_413 = arith.constant 12 : index
    %c0_414 = arith.constant 0 : index
    %788 = vector.load %arg21[%c12_413, %c0_414] : memref<32x64xf32, #tpu.memory_space<vmem>>, vector<1x64xf32>
    %789 = vector.broadcast %780 : vector<16x1xf32> to vector<16x64xf32>
    %790 = vector.broadcast %788 : vector<1x64xf32> to vector<16x64xf32>
    %791 = arith.mulf %789, %790 : vector<16x64xf32>
    %792 = arith.addf %787, %791 : vector<16x64xf32>
    %793 = vector.broadcast %784 : vector<16x1xf32> to vector<16x64xf32>
    %794 = arith.mulf %792, %793 : vector<16x64xf32>
    %cst_415 = arith.constant dense<0.000000e+00> : vector<64xf32>
    %795 = vector.multi_reduction <add>, %794, %cst_415 [0] : vector<16x64xf32> to vector<64xf32>
    %796 = vector.shape_cast %795 : vector<64xf32> to vector<1x64xf32>
    %c12_416 = arith.constant 12 : index
    %c0_417 = arith.constant 0 : index
    %797 = vector.load %arg23[%c12_416, %c0_417] : memref<32x64xf32, #tpu.memory_space<vmem>>, vector<1x64xf32>
    tpu.vector_store %arg23[%c12_416, %c0_417], %796 {strides = array<i32>} : memref<32x64xf32, #tpu.memory_space<vmem>>, vector<1x64xf32>,
    %c28 = arith.constant 28 : index
    %c64_418 = arith.constant 64 : index
    %798 = vector.load %arg19[%c28, %c64_418] : memref<32x96xf32, #tpu.memory_space<vmem>>, vector<1x16xf32>
    %c28_419 = arith.constant 28 : index
    %c80_420 = arith.constant 80 : index
    %799 = vector.load %arg19[%c28_419, %c80_420] : memref<32x96xf32, #tpu.memory_space<vmem>>, vector<1x16xf32>
    %800 = vector.broadcast %798 : vector<1x16xf32> to vector<16x16xf32>
    %801 = arith.mulf %800, %220 : vector<16x16xf32>
    %cst_421 = arith.constant dense<0.000000e+00> : vector<16xf32>
    %802 = vector.multi_reduction <add>, %801, %cst_421 [1] : vector<16x16xf32> to vector<16xf32>
    %803 = vector.shape_cast %802 : vector<16xf32> to vector<16x1xf32>
    %804 = vector.broadcast %799 : vector<1x16xf32> to vector<16x16xf32>
    %805 = arith.mulf %804, %220 : vector<16x16xf32>
    %cst_422 = arith.constant dense<0.000000e+00> : vector<16xf32>
    %806 = vector.multi_reduction <add>, %805, %cst_422 [1] : vector<16x16xf32> to vector<16xf32>
    %807 = vector.shape_cast %806 : vector<16xf32> to vector<16x1xf32>
    %c28_423 = arith.constant 28 : index
    %c0_424 = arith.constant 0 : index
    %808 = vector.load %arg20[%c28_423, %c0_424] : memref<32x64xf32, #tpu.memory_space<vmem>>, vector<1x64xf32>
    %809 = vector.broadcast %808 : vector<1x64xf32> to vector<16x64xf32>
    %810 = arith.mulf %769, %809 : vector<16x64xf32>
    %c28_425 = arith.constant 28 : index
    %c0_426 = arith.constant 0 : index
    %811 = vector.load %arg21[%c28_425, %c0_426] : memref<32x64xf32, #tpu.memory_space<vmem>>, vector<1x64xf32>
    %812 = vector.broadcast %803 : vector<16x1xf32> to vector<16x64xf32>
    %813 = vector.broadcast %811 : vector<1x64xf32> to vector<16x64xf32>
    %814 = arith.mulf %812, %813 : vector<16x64xf32>
    %815 = arith.addf %810, %814 : vector<16x64xf32>
    %816 = vector.broadcast %807 : vector<16x1xf32> to vector<16x64xf32>
    %817 = arith.mulf %815, %816 : vector<16x64xf32>
    %cst_427 = arith.constant dense<0.000000e+00> : vector<64xf32>
    %818 = vector.multi_reduction <add>, %817, %cst_427 [0] : vector<16x64xf32> to vector<64xf32>
    %819 = vector.shape_cast %818 : vector<64xf32> to vector<1x64xf32>
    %c28_428 = arith.constant 28 : index
    %c0_429 = arith.constant 0 : index
    %820 = vector.load %arg23[%c28_428, %c0_429] : memref<32x64xf32, #tpu.memory_space<vmem>>, vector<1x64xf32>
    tpu.vector_store %arg23[%c28_428, %c0_429], %819 {strides = array<i32>} : memref<32x64xf32, #tpu.memory_space<vmem>>, vector<1x64xf32>,
    %c13 = arith.constant 13 : index
    %c64_430 = arith.constant 64 : index
    %821 = vector.load %arg19[%c13, %c64_430] : memref<32x96xf32, #tpu.memory_space<vmem>>, vector<1x16xf32>
    %c13_431 = arith.constant 13 : index
    %c80_432 = arith.constant 80 : index
    %822 = vector.load %arg19[%c13_431, %c80_432] : memref<32x96xf32, #tpu.memory_space<vmem>>, vector<1x16xf32>
    %823 = vector.broadcast %821 : vector<1x16xf32> to vector<16x16xf32>
    %824 = arith.mulf %823, %220 : vector<16x16xf32>
    %cst_433 = arith.constant dense<0.000000e+00> : vector<16xf32>
    %825 = vector.multi_reduction <add>, %824, %cst_433 [1] : vector<16x16xf32> to vector<16xf32>
    %826 = vector.shape_cast %825 : vector<16xf32> to vector<16x1xf32>
    %827 = vector.broadcast %822 : vector<1x16xf32> to vector<16x16xf32>
    %828 = arith.mulf %827, %220 : vector<16x16xf32>
    %cst_434 = arith.constant dense<0.000000e+00> : vector<16xf32>
    %829 = vector.multi_reduction <add>, %828, %cst_434 [1] : vector<16x16xf32> to vector<16xf32>
    %830 = vector.shape_cast %829 : vector<16xf32> to vector<16x1xf32>
    %c13_435 = arith.constant 13 : index
    %c0_436 = arith.constant 0 : index
    %831 = vector.load %arg20[%c13_435, %c0_436] : memref<32x64xf32, #tpu.memory_space<vmem>>, vector<1x64xf32>
    %832 = vector.broadcast %831 : vector<1x64xf32> to vector<16x64xf32>
    %833 = arith.mulf %792, %832 : vector<16x64xf32>
    %c13_437 = arith.constant 13 : index
    %c0_438 = arith.constant 0 : index
    %834 = vector.load %arg21[%c13_437, %c0_438] : memref<32x64xf32, #tpu.memory_space<vmem>>, vector<1x64xf32>
    %835 = vector.broadcast %826 : vector<16x1xf32> to vector<16x64xf32>
    %836 = vector.broadcast %834 : vector<1x64xf32> to vector<16x64xf32>
    %837 = arith.mulf %835, %836 : vector<16x64xf32>
    %838 = arith.addf %833, %837 : vector<16x64xf32>
    %839 = vector.broadcast %830 : vector<16x1xf32> to vector<16x64xf32>
    %840 = arith.mulf %838, %839 : vector<16x64xf32>
    %cst_439 = arith.constant dense<0.000000e+00> : vector<64xf32>
    %841 = vector.multi_reduction <add>, %840, %cst_439 [0] : vector<16x64xf32> to vector<64xf32>
    %842 = vector.shape_cast %841 : vector<64xf32> to vector<1x64xf32>
    %c13_440 = arith.constant 13 : index
    %c0_441 = arith.constant 0 : index
    %843 = vector.load %arg23[%c13_440, %c0_441] : memref<32x64xf32, #tpu.memory_space<vmem>>, vector<1x64xf32>
    tpu.vector_store %arg23[%c13_440, %c0_441], %842 {strides = array<i32>} : memref<32x64xf32, #tpu.memory_space<vmem>>, vector<1x64xf32>,
    %c29 = arith.constant 29 : index
    %c64_442 = arith.constant 64 : index
    %844 = vector.load %arg19[%c29, %c64_442] : memref<32x96xf32, #tpu.memory_space<vmem>>, vector<1x16xf32>
    %c29_443 = arith.constant 29 : index
    %c80_444 = arith.constant 80 : index
    %845 = vector.load %arg19[%c29_443, %c80_444] : memref<32x96xf32, #tpu.memory_space<vmem>>, vector<1x16xf32>
    %846 = vector.broadcast %844 : vector<1x16xf32> to vector<16x16xf32>
    %847 = arith.mulf %846, %220 : vector<16x16xf32>
    %cst_445 = arith.constant dense<0.000000e+00> : vector<16xf32>
    %848 = vector.multi_reduction <add>, %847, %cst_445 [1] : vector<16x16xf32> to vector<16xf32>
    %849 = vector.shape_cast %848 : vector<16xf32> to vector<16x1xf32>
    %850 = vector.broadcast %845 : vector<1x16xf32> to vector<16x16xf32>
    %851 = arith.mulf %850, %220 : vector<16x16xf32>
    %cst_446 = arith.constant dense<0.000000e+00> : vector<16xf32>
    %852 = vector.multi_reduction <add>, %851, %cst_446 [1] : vector<16x16xf32> to vector<16xf32>
    %853 = vector.shape_cast %852 : vector<16xf32> to vector<16x1xf32>
    %c29_447 = arith.constant 29 : index
    %c0_448 = arith.constant 0 : index
    %854 = vector.load %arg20[%c29_447, %c0_448] : memref<32x64xf32, #tpu.memory_space<vmem>>, vector<1x64xf32>
    %855 = vector.broadcast %854 : vector<1x64xf32> to vector<16x64xf32>
    %856 = arith.mulf %815, %855 : vector<16x64xf32>
    %c29_449 = arith.constant 29 : index
    %c0_450 = arith.constant 0 : index
    %857 = vector.load %arg21[%c29_449, %c0_450] : memref<32x64xf32, #tpu.memory_space<vmem>>, vector<1x64xf32>
    %858 = vector.broadcast %849 : vector<16x1xf32> to vector<16x64xf32>
    %859 = vector.broadcast %857 : vector<1x64xf32> to vector<16x64xf32>
    %860 = arith.mulf %858, %859 : vector<16x64xf32>
    %861 = arith.addf %856, %860 : vector<16x64xf32>
    %862 = vector.broadcast %853 : vector<16x1xf32> to vector<16x64xf32>
    %863 = arith.mulf %861, %862 : vector<16x64xf32>
    %cst_451 = arith.constant dense<0.000000e+00> : vector<64xf32>
    %864 = vector.multi_reduction <add>, %863, %cst_451 [0] : vector<16x64xf32> to vector<64xf32>
    %865 = vector.shape_cast %864 : vector<64xf32> to vector<1x64xf32>
    %c29_452 = arith.constant 29 : index
    %c0_453 = arith.constant 0 : index
    %866 = vector.load %arg23[%c29_452, %c0_453] : memref<32x64xf32, #tpu.memory_space<vmem>>, vector<1x64xf32>
    tpu.vector_store %arg23[%c29_452, %c0_453], %865 {strides = array<i32>} : memref<32x64xf32, #tpu.memory_space<vmem>>, vector<1x64xf32>,
    %c14 = arith.constant 14 : index
    %c64_454 = arith.constant 64 : index
    %867 = vector.load %arg19[%c14, %c64_454] : memref<32x96xf32, #tpu.memory_space<vmem>>, vector<1x16xf32>
    %c14_455 = arith.constant 14 : index
    %c80_456 = arith.constant 80 : index
    %868 = vector.load %arg19[%c14_455, %c80_456] : memref<32x96xf32, #tpu.memory_space<vmem>>, vector<1x16xf32>
    %869 = vector.broadcast %867 : vector<1x16xf32> to vector<16x16xf32>
    %870 = arith.mulf %869, %220 : vector<16x16xf32>
    %cst_457 = arith.constant dense<0.000000e+00> : vector<16xf32>
    %871 = vector.multi_reduction <add>, %870, %cst_457 [1] : vector<16x16xf32> to vector<16xf32>
    %872 = vector.shape_cast %871 : vector<16xf32> to vector<16x1xf32>
    %873 = vector.broadcast %868 : vector<1x16xf32> to vector<16x16xf32>
    %874 = arith.mulf %873, %220 : vector<16x16xf32>
    %cst_458 = arith.constant dense<0.000000e+00> : vector<16xf32>
    %875 = vector.multi_reduction <add>, %874, %cst_458 [1] : vector<16x16xf32> to vector<16xf32>
    %876 = vector.shape_cast %875 : vector<16xf32> to vector<16x1xf32>
    %c14_459 = arith.constant 14 : index
    %c0_460 = arith.constant 0 : index
    %877 = vector.load %arg20[%c14_459, %c0_460] : memref<32x64xf32, #tpu.memory_space<vmem>>, vector<1x64xf32>
    %878 = vector.broadcast %877 : vector<1x64xf32> to vector<16x64xf32>
    %879 = arith.mulf %838, %878 : vector<16x64xf32>
    %c14_461 = arith.constant 14 : index
    %c0_462 = arith.constant 0 : index
    %880 = vector.load %arg21[%c14_461, %c0_462] : memref<32x64xf32, #tpu.memory_space<vmem>>, vector<1x64xf32>
    %881 = vector.broadcast %872 : vector<16x1xf32> to vector<16x64xf32>
    %882 = vector.broadcast %880 : vector<1x64xf32> to vector<16x64xf32>
    %883 = arith.mulf %881, %882 : vector<16x64xf32>
    %884 = arith.addf %879, %883 : vector<16x64xf32>
    %885 = vector.broadcast %876 : vector<16x1xf32> to vector<16x64xf32>
    %886 = arith.mulf %884, %885 : vector<16x64xf32>
    %cst_463 = arith.constant dense<0.000000e+00> : vector<64xf32>
    %887 = vector.multi_reduction <add>, %886, %cst_463 [0] : vector<16x64xf32> to vector<64xf32>
    %888 = vector.shape_cast %887 : vector<64xf32> to vector<1x64xf32>
    %c14_464 = arith.constant 14 : index
    %c0_465 = arith.constant 0 : index
    %889 = vector.load %arg23[%c14_464, %c0_465] : memref<32x64xf32, #tpu.memory_space<vmem>>, vector<1x64xf32>
    tpu.vector_store %arg23[%c14_464, %c0_465], %888 {strides = array<i32>} : memref<32x64xf32, #tpu.memory_space<vmem>>, vector<1x64xf32>,
    %c30 = arith.constant 30 : index
    %c64_466 = arith.constant 64 : index
    %890 = vector.load %arg19[%c30, %c64_466] : memref<32x96xf32, #tpu.memory_space<vmem>>, vector<1x16xf32>
    %c30_467 = arith.constant 30 : index
    %c80_468 = arith.constant 80 : index
    %891 = vector.load %arg19[%c30_467, %c80_468] : memref<32x96xf32, #tpu.memory_space<vmem>>, vector<1x16xf32>
    %892 = vector.broadcast %890 : vector<1x16xf32> to vector<16x16xf32>
    %893 = arith.mulf %892, %220 : vector<16x16xf32>
    %cst_469 = arith.constant dense<0.000000e+00> : vector<16xf32>
    %894 = vector.multi_reduction <add>, %893, %cst_469 [1] : vector<16x16xf32> to vector<16xf32>
    %895 = vector.shape_cast %894 : vector<16xf32> to vector<16x1xf32>
    %896 = vector.broadcast %891 : vector<1x16xf32> to vector<16x16xf32>
    %897 = arith.mulf %896, %220 : vector<16x16xf32>
    %cst_470 = arith.constant dense<0.000000e+00> : vector<16xf32>
    %898 = vector.multi_reduction <add>, %897, %cst_470 [1] : vector<16x16xf32> to vector<16xf32>
    %899 = vector.shape_cast %898 : vector<16xf32> to vector<16x1xf32>
    %c30_471 = arith.constant 30 : index
    %c0_472 = arith.constant 0 : index
    %900 = vector.load %arg20[%c30_471, %c0_472] : memref<32x64xf32, #tpu.memory_space<vmem>>, vector<1x64xf32>
    %901 = vector.broadcast %900 : vector<1x64xf32> to vector<16x64xf32>
    %902 = arith.mulf %861, %901 : vector<16x64xf32>
    %c30_473 = arith.constant 30 : index
    %c0_474 = arith.constant 0 : index
    %903 = vector.load %arg21[%c30_473, %c0_474] : memref<32x64xf32, #tpu.memory_space<vmem>>, vector<1x64xf32>
    %904 = vector.broadcast %895 : vector<16x1xf32> to vector<16x64xf32>
    %905 = vector.broadcast %903 : vector<1x64xf32> to vector<16x64xf32>
    %906 = arith.mulf %904, %905 : vector<16x64xf32>
    %907 = arith.addf %902, %906 : vector<16x64xf32>
    %908 = vector.broadcast %899 : vector<16x1xf32> to vector<16x64xf32>
    %909 = arith.mulf %907, %908 : vector<16x64xf32>
    %cst_475 = arith.constant dense<0.000000e+00> : vector<64xf32>
    %910 = vector.multi_reduction <add>, %909, %cst_475 [0] : vector<16x64xf32> to vector<64xf32>
    %911 = vector.shape_cast %910 : vector<64xf32> to vector<1x64xf32>
    %c30_476 = arith.constant 30 : index
    %c0_477 = arith.constant 0 : index
    %912 = vector.load %arg23[%c30_476, %c0_477] : memref<32x64xf32, #tpu.memory_space<vmem>>, vector<1x64xf32>
    tpu.vector_store %arg23[%c30_476, %c0_477], %911 {strides = array<i32>} : memref<32x64xf32, #tpu.memory_space<vmem>>, vector<1x64xf32>,
    %c15 = arith.constant 15 : index
    %c64_478 = arith.constant 64 : index
    %913 = vector.load %arg19[%c15, %c64_478] : memref<32x96xf32, #tpu.memory_space<vmem>>, vector<1x16xf32>
    %c15_479 = arith.constant 15 : index
    %c80_480 = arith.constant 80 : index
    %914 = vector.load %arg19[%c15_479, %c80_480] : memref<32x96xf32, #tpu.memory_space<vmem>>, vector<1x16xf32>
    %915 = vector.broadcast %913 : vector<1x16xf32> to vector<16x16xf32>
    %916 = arith.mulf %915, %220 : vector<16x16xf32>
    %cst_481 = arith.constant dense<0.000000e+00> : vector<16xf32>
    %917 = vector.multi_reduction <add>, %916, %cst_481 [1] : vector<16x16xf32> to vector<16xf32>
    %918 = vector.shape_cast %917 : vector<16xf32> to vector<16x1xf32>
    %919 = vector.broadcast %914 : vector<1x16xf32> to vector<16x16xf32>
    %920 = arith.mulf %919, %220 : vector<16x16xf32>
    %cst_482 = arith.constant dense<0.000000e+00> : vector<16xf32>
    %921 = vector.multi_reduction <add>, %920, %cst_482 [1] : vector<16x16xf32> to vector<16xf32>
    %922 = vector.shape_cast %921 : vector<16xf32> to vector<16x1xf32>
    %c15_483 = arith.constant 15 : index
    %c0_484 = arith.constant 0 : index
    %923 = vector.load %arg20[%c15_483, %c0_484] : memref<32x64xf32, #tpu.memory_space<vmem>>, vector<1x64xf32>
    %924 = vector.broadcast %923 : vector<1x64xf32> to vector<16x64xf32>
    %925 = arith.mulf %884, %924 : vector<16x64xf32>
    %c15_485 = arith.constant 15 : index
    %c0_486 = arith.constant 0 : index
    %926 = vector.load %arg21[%c15_485, %c0_486] : memref<32x64xf32, #tpu.memory_space<vmem>>, vector<1x64xf32>
    %927 = vector.broadcast %918 : vector<16x1xf32> to vector<16x64xf32>
    %928 = vector.broadcast %926 : vector<1x64xf32> to vector<16x64xf32>
    %929 = arith.mulf %927, %928 : vector<16x64xf32>
    %930 = arith.addf %925, %929 : vector<16x64xf32>
    %931 = vector.broadcast %922 : vector<16x1xf32> to vector<16x64xf32>
    %932 = arith.mulf %930, %931 : vector<16x64xf32>
    %cst_487 = arith.constant dense<0.000000e+00> : vector<64xf32>
    %933 = vector.multi_reduction <add>, %932, %cst_487 [0] : vector<16x64xf32> to vector<64xf32>
    %934 = vector.shape_cast %933 : vector<64xf32> to vector<1x64xf32>
    %c15_488 = arith.constant 15 : index
    %c0_489 = arith.constant 0 : index
    %935 = vector.load %arg23[%c15_488, %c0_489] : memref<32x64xf32, #tpu.memory_space<vmem>>, vector<1x64xf32>
    tpu.vector_store %arg23[%c15_488, %c0_489], %934 {strides = array<i32>} : memref<32x64xf32, #tpu.memory_space<vmem>>, vector<1x64xf32>,
    %c31 = arith.constant 31 : index
    %c64_490 = arith.constant 64 : index
    %936 = vector.load %arg19[%c31, %c64_490] : memref<32x96xf32, #tpu.memory_space<vmem>>, vector<1x16xf32>
    %c31_491 = arith.constant 31 : index
    %c80_492 = arith.constant 80 : index
    %937 = vector.load %arg19[%c31_491, %c80_492] : memref<32x96xf32, #tpu.memory_space<vmem>>, vector<1x16xf32>
    %938 = vector.broadcast %936 : vector<1x16xf32> to vector<16x16xf32>
    %939 = arith.mulf %938, %220 : vector<16x16xf32>
    %cst_493 = arith.constant dense<0.000000e+00> : vector<16xf32>
    %940 = vector.multi_reduction <add>, %939, %cst_493 [1] : vector<16x16xf32> to vector<16xf32>
    %941 = vector.shape_cast %940 : vector<16xf32> to vector<16x1xf32>
    %942 = vector.broadcast %937 : vector<1x16xf32> to vector<16x16xf32>
    %943 = arith.mulf %942, %220 : vector<16x16xf32>
    %cst_494 = arith.constant dense<0.000000e+00> : vector<16xf32>
    %944 = vector.multi_reduction <add>, %943, %cst_494 [1] : vector<16x16xf32> to vector<16xf32>
    %945 = vector.shape_cast %944 : vector<16xf32> to vector<16x1xf32>
    %c31_495 = arith.constant 31 : index
    %c0_496 = arith.constant 0 : index
    %946 = vector.load %arg20[%c31_495, %c0_496] : memref<32x64xf32, #tpu.memory_space<vmem>>, vector<1x64xf32>
    %947 = vector.broadcast %946 : vector<1x64xf32> to vector<16x64xf32>
    %948 = arith.mulf %907, %947 : vector<16x64xf32>
    %c31_497 = arith.constant 31 : index
    %c0_498 = arith.constant 0 : index
    %949 = vector.load %arg21[%c31_497, %c0_498] : memref<32x64xf32, #tpu.memory_space<vmem>>, vector<1x64xf32>
    %950 = vector.broadcast %941 : vector<16x1xf32> to vector<16x64xf32>
    %951 = vector.broadcast %949 : vector<1x64xf32> to vector<16x64xf32>
    %952 = arith.mulf %950, %951 : vector<16x64xf32>
    %953 = arith.addf %948, %952 : vector<16x64xf32>
    %954 = vector.broadcast %945 : vector<16x1xf32> to vector<16x64xf32>
    %955 = arith.mulf %953, %954 : vector<16x64xf32>
    %cst_499 = arith.constant dense<0.000000e+00> : vector<64xf32>
    %956 = vector.multi_reduction <add>, %955, %cst_499 [0] : vector<16x64xf32> to vector<64xf32>
    %957 = vector.shape_cast %956 : vector<64xf32> to vector<1x64xf32>
    %c31_500 = arith.constant 31 : index
    %c0_501 = arith.constant 0 : index
    %958 = vector.load %arg23[%c31_500, %c0_501] : memref<32x64xf32, #tpu.memory_space<vmem>>, vector<1x64xf32>
    tpu.vector_store %arg23[%c31_500, %c0_501], %957 {strides = array<i32>} : memref<32x64xf32, #tpu.memory_space<vmem>>, vector<1x64xf32>,
    %c0_502 = arith.constant 0 : index
    %c0_503 = arith.constant 0 : index
    %959 = vector.load %arg23[%c0_502, %c0_503] : memref<32x64xf32, #tpu.memory_space<vmem>>, vector<32x64xf32>
    %c0_504 = arith.constant 0 : index
    %c0_505 = arith.constant 0 : index
    %960 = vector.load %arg19[%c0_504, %c0_505] : memref<32x96xf32, #tpu.memory_space<vmem>>, vector<32x64xf32>
    %c0_506 = arith.constant 0 : index
    %c0_507 = arith.constant 0 : index
    %961 = vector.load %arg22[%c0_506, %c0_507] : memref<1x64xf32, #tpu.memory_space<vmem>>, vector<1x64xf32>
    %962 = vector.broadcast %961 : vector<1x64xf32> to vector<32x64xf32>
    %963 = arith.mulf %960, %962 : vector<32x64xf32>
    %964 = arith.addf %959, %963 : vector<32x64xf32>
    %c0_508 = arith.constant 0 : index
    %c0_509 = arith.constant 0 : index
    %965 = vector.load %arg18[%c0_508, %c0_509] : memref<32x164xf32, #tpu.memory_space<vmem>>, vector<32x64xf32>
    %966 = arith.negf %965 : vector<32x64xf32>
    %967 = math.exp %966 : vector<32x64xf32>
    %cst_510 = arith.constant 1.000000e+00 : f32
    %968 = vector.broadcast %cst_510 : f32 to vector<32x64xf32>
    %969 = arith.addf %968, %967 : vector<32x64xf32>
    %970 = arith.divf %968, %969 : vector<32x64xf32>
    %971 = arith.mulf %965, %970 : vector<32x64xf32>
    %972 = arith.mulf %964, %971 : vector<32x64xf32>
    %973 = arith.mulf %972, %972 : vector<32x64xf32>
    %cst_511 = arith.constant dense<0.000000e+00> : vector<32xf32>
    %974 = vector.multi_reduction <add>, %973, %cst_511 [1] : vector<32x64xf32> to vector<32xf32>
    %975 = vector.shape_cast %974 : vector<32xf32> to vector<32x1xf32>
    %cst_512 = arith.constant 6.400000e+01 : f32
    %976 = vector.broadcast %cst_512 : f32 to vector<32x1xf32>
    %977 = arith.divf %975, %976 : vector<32x1xf32>
    %cst_513 = arith.constant 9.99999974E-6 : f32
    %978 = vector.broadcast %cst_513 : f32 to vector<32x1xf32>
    %979 = arith.addf %977, %978 : vector<32x1xf32>
    %980 = math.rsqrt %979 : vector<32x1xf32>
    %981 = vector.broadcast %980 : vector<32x1xf32> to vector<32x64xf32>
    %982 = arith.mulf %972, %981 : vector<32x64xf32>
    %c0_514 = arith.constant 0 : index
    %c0_515 = arith.constant 0 : index
    %983 = vector.load %arg9[%c0_514, %c0_515] : memref<1x64xf32, #tpu.memory_space<vmem>>, vector<1x64xf32>
    %984 = vector.broadcast %983 : vector<1x64xf32> to vector<32x64xf32>
    %985 = arith.mulf %982, %984 : vector<32x64xf32>
    %c0_516 = arith.constant 0 : index
    %c0_517 = arith.constant 0 : index
    %986 = vector.load %arg10[%c0_516, %c0_517] : memref<64x32xbf16, #tpu.memory_space<vmem>>, vector<64x32xbf16>
    %987 = arith.truncf %985 : vector<32x64xf32> to vector<32x64xbf16>
    %cst_518 = arith.constant dense<0.000000e+00> : vector<32x32xf32>
    %988 = tpu.matmul %987, %986, %cst_518 {dimension_numbers = #tpu.dot_dimension_numbers<[1], [0], [0], [1], [0, 0, 1, 1], [], []>} : vector<32x64xbf16>, vector<64x32xbf16>, vector<32x32xf32> -> vector<32x32xf32>
    %989 = arith.addf %0, %988 : vector<32x32xf32>
    %c0_519 = arith.constant 0 : index
    %c0_520 = arith.constant 0 : index
    %990 = vector.load %arg11[%c0_519, %c0_520] : memref<1x32xf32, #tpu.memory_space<vmem>>, vector<1x32xf32>
    %c0_521 = arith.constant 0 : index
    %c0_522 = arith.constant 0 : index
    %991 = vector.load %arg12[%c0_521, %c0_522] : memref<1x32xf32, #tpu.memory_space<vmem>>, vector<1x32xf32>
    %cst_523 = arith.constant dense<0.000000e+00> : vector<32xf32>
    %992 = vector.multi_reduction <add>, %989, %cst_523 [1] : vector<32x32xf32> to vector<32xf32>
    %993 = vector.shape_cast %992 : vector<32xf32> to vector<32x1xf32>
    %cst_524 = arith.constant 3.200000e+01 : f32
    %994 = vector.broadcast %cst_524 : f32 to vector<32x1xf32>
    %995 = arith.divf %993, %994 : vector<32x1xf32>
    %996 = vector.broadcast %995 : vector<32x1xf32> to vector<32x32xf32>
    %997 = arith.subf %989, %996 : vector<32x32xf32>
    %998 = arith.mulf %997, %997 : vector<32x32xf32>
    %cst_525 = arith.constant dense<0.000000e+00> : vector<32xf32>
    %999 = vector.multi_reduction <add>, %998, %cst_525 [1] : vector<32x32xf32> to vector<32xf32>
    %1000 = vector.shape_cast %999 : vector<32xf32> to vector<32x1xf32>
    %cst_526 = arith.constant 3.200000e+01 : f32
    %1001 = vector.broadcast %cst_526 : f32 to vector<32x1xf32>
    %1002 = arith.divf %1000, %1001 : vector<32x1xf32>
    %cst_527 = arith.constant 9.99999974E-6 : f32
    %1003 = vector.broadcast %cst_527 : f32 to vector<32x1xf32>
    %1004 = arith.addf %1002, %1003 : vector<32x1xf32>
    %1005 = math.rsqrt %1004 : vector<32x1xf32>
    %1006 = vector.broadcast %1005 : vector<32x1xf32> to vector<32x32xf32>
    %1007 = arith.mulf %997, %1006 : vector<32x32xf32>
    %1008 = vector.broadcast %990 : vector<1x32xf32> to vector<32x32xf32>
    %1009 = arith.mulf %1007, %1008 : vector<32x32xf32>
    %1010 = vector.broadcast %991 : vector<1x32xf32> to vector<32x32xf32>
    %1011 = arith.addf %1009, %1010 : vector<32x32xf32>
    %c0_528 = arith.constant 0 : index
    %c0_529 = arith.constant 0 : index
    %1012 = vector.load %arg13[%c0_528, %c0_529] : memref<32x128xbf16, #tpu.memory_space<vmem>>, vector<32x128xbf16>
    %1013 = arith.truncf %1011 : vector<32x32xf32> to vector<32x32xbf16>
    %cst_530 = arith.constant dense<0.000000e+00> : vector<32x128xf32>
    %1014 = tpu.matmul %1013, %1012, %cst_530 {dimension_numbers = #tpu.dot_dimension_numbers<[1], [0], [0], [1], [0, 0, 1, 1], [], []>} : vector<32x32xbf16>, vector<32x128xbf16>, vector<32x128xf32> -> vector<32x128xf32>
    %c0_531 = arith.constant 0 : index
    %c0_532 = arith.constant 0 : index
    %1015 = vector.load %arg14[%c0_531, %c0_532] : memref<1x128xf32, #tpu.memory_space<vmem>>, vector<1x128xf32>
    %1016 = vector.broadcast %1015 : vector<1x128xf32> to vector<32x128xf32>
    %1017 = arith.addf %1014, %1016 : vector<32x128xf32>
    %cst_533 = arith.constant 5.000000e-01 : f32
    %1018 = vector.broadcast %cst_533 : f32 to vector<32x128xf32>
    %1019 = arith.mulf %1018, %1017 : vector<32x128xf32>
    %cst_534 = arith.constant 0.707106769 : f32
    %1020 = vector.broadcast %cst_534 : f32 to vector<32x128xf32>
    %1021 = arith.mulf %1017, %1020 : vector<32x128xf32>
    %cst_535 = arith.constant 0.000000e+00 : f32
    %1022 = vector.broadcast %cst_535 : f32 to vector<32x128xf32>
    %1023 = arith.cmpf oge, %1021, %1022 : vector<32x128xf32>
    %cst_536 = arith.constant 1.000000e+00 : f32
    %cst_537 = arith.constant -1.000000e+00 : f32
    %1024 = vector.broadcast %cst_536 : f32 to vector<32x128xf32>
    %1025 = vector.broadcast %cst_537 : f32 to vector<32x128xf32>
    %1026 = arith.select %1023, %1024, %1025 : vector<32x128xi1>, vector<32x128xf32>
    %1027 = math.absf %1021 : vector<32x128xf32>
    %cst_538 = arith.constant 0.327591091 : f32
    %1028 = vector.broadcast %cst_538 : f32 to vector<32x128xf32>
    %1029 = arith.mulf %1028, %1027 : vector<32x128xf32>
    %cst_539 = arith.constant 1.000000e+00 : f32
    %1030 = vector.broadcast %cst_539 : f32 to vector<32x128xf32>
    %1031 = arith.addf %1030, %1029 : vector<32x128xf32>
    %cst_540 = arith.constant 1.000000e+00 : f32
    %1032 = vector.broadcast %cst_540 : f32 to vector<32x128xf32>
    %1033 = arith.divf %1032, %1031 : vector<32x128xf32>
    %cst_541 = arith.constant 1.06140542 : f32
    %1034 = vector.broadcast %cst_541 : f32 to vector<32x128xf32>
    %1035 = arith.mulf %1034, %1033 : vector<32x128xf32>
    %cst_542 = arith.constant -1.45315206 : f32
    %1036 = vector.broadcast %cst_542 : f32 to vector<32x128xf32>
    %1037 = arith.addf %1035, %1036 : vector<32x128xf32>
    %1038 = arith.mulf %1037, %1033 : vector<32x128xf32>
    %cst_543 = arith.constant 1.42141378 : f32
    %1039 = vector.broadcast %cst_543 : f32 to vector<32x128xf32>
    %1040 = arith.addf %1038, %1039 : vector<32x128xf32>
    %1041 = arith.mulf %1040, %1033 : vector<32x128xf32>
    %cst_544 = arith.constant -0.284496725 : f32
    %1042 = vector.broadcast %cst_544 : f32 to vector<32x128xf32>
    %1043 = arith.addf %1041, %1042 : vector<32x128xf32>
    %1044 = arith.mulf %1043, %1033 : vector<32x128xf32>
    %cst_545 = arith.constant 0.254829586 : f32
    %1045 = vector.broadcast %cst_545 : f32 to vector<32x128xf32>
    %1046 = arith.addf %1044, %1045 : vector<32x128xf32>
    %1047 = arith.mulf %1046, %1033 : vector<32x128xf32>
    %cst_546 = arith.constant 0.000000e+00 : f32
    %1048 = vector.broadcast %cst_546 : f32 to vector<32x128xf32>
    %1049 = arith.subf %1048, %1027 : vector<32x128xf32>
    %1050 = arith.mulf %1049, %1027 : vector<32x128xf32>
    %1051 = math.exp %1050 : vector<32x128xf32>
    %1052 = arith.mulf %1047, %1051 : vector<32x128xf32>
    %cst_547 = arith.constant 1.000000e+00 : f32
    %1053 = vector.broadcast %cst_547 : f32 to vector<32x128xf32>
    %1054 = arith.subf %1053, %1052 : vector<32x128xf32>
    %1055 = arith.mulf %1026, %1054 : vector<32x128xf32>
    %cst_548 = arith.constant 1.000000e+00 : f32
    %1056 = vector.broadcast %cst_548 : f32 to vector<32x128xf32>
    %1057 = arith.addf %1056, %1055 : vector<32x128xf32>
    %1058 = arith.mulf %1019, %1057 : vector<32x128xf32>
    %c0_549 = arith.constant 0 : index
    %c0_550 = arith.constant 0 : index
    %1059 = vector.load %arg15[%c0_549, %c0_550] : memref<128x32xbf16, #tpu.memory_space<vmem>>, vector<128x32xbf16>
    %1060 = arith.truncf %1058 : vector<32x128xf32> to vector<32x128xbf16>
    %cst_551 = arith.constant dense<0.000000e+00> : vector<32x32xf32>
    %1061 = tpu.matmul %1060, %1059, %cst_551 {dimension_numbers = #tpu.dot_dimension_numbers<[1], [0], [0], [1], [0, 0, 1, 1], [], []>} : vector<32x128xbf16>, vector<128x32xbf16>, vector<32x32xf32> -> vector<32x32xf32>
    %1062 = arith.addf %989, %1061 : vector<32x32xf32>
    %c0_552 = arith.constant 0 : index
    %c0_553 = arith.constant 0 : index
    %1063 = vector.load %arg16[%c0_552, %c0_553] : memref<1x32xf32, #tpu.memory_space<vmem>>, vector<1x32xf32>
    %1064 = vector.broadcast %1063 : vector<1x32xf32> to vector<32x32xf32>
    %1065 = arith.addf %1062, %1064 : vector<32x32xf32>
    %c0_554 = arith.constant 0 : index
    %c0_555 = arith.constant 0 : index
    %1066 = vector.load %arg17[%c0_554, %c0_555] : memref<32x32xf32, #tpu.memory_space<vmem>>, vector<32x32xf32>
    tpu.vector_store %arg17[%c0_554, %c0_555], %1065 {strides = array<i32>} : memref<32x32xf32, #tpu.memory_space<vmem>>, vector<32x32xf32>,
    return
  }
}

</mosaic_0001>

<bundles_post_ra>
// kernel: mamba_block_forward.1
= control target key start
LH: loop header
LB: loop body
LE: loop exit
PB: predicated region body
PF: predicated region fallthrough
CT: control target
= control target key end

     0   :  { %s6565_s0 = inlined_call_operand.vmem [shape: f32[32,32], index: 0, kind: input, shape index: {}]   ;;  %s6566_s1 = inlined_call_operand.vmem [shape: f32[1,32], index: 1, kind: input, shape index: {}]   ;;  %s6567_s2 = inlined_call_operand.vmem [shape: f32[1,32], index: 2, kind: input, shape index: {}]   ;;  %s6568_s3 = inlined_call_operand.vmem [shape: bf16[32,164], index: 3, kind: input, shape index: {}]   ;;  %s6569_s4 = inlined_call_operand.vmem [shape: f32[4,96], index: 4, kind: input, shape index: {}]   ;;  %s6570_s5 = inlined_call_operand.vmem [shape: f32[1,96], index: 5, kind: input, shape index: {}]   ;;  %s6571_s6 = inlined_call_operand.vmem [shape: f32[1,4], index: 6, kind: input, shape index: {}]   ;;  %s6572_s7 = inlined_call_operand.vmem [shape: f32[1,4], index: 7, kind: input, shape index: {}]   ;;  %s6573_s8 = inlined_call_operand.vmem [shape: f32[1,4], index: 8, kind: input, shape index: {}]   ;;  %s6574_s9 = inlined_call_operand.vmem [shape: f32[1,64], index: 9, kind: input, shape index: {}]   ;;  %s6575_s10 = inlined_call_operand.vmem [shape: bf16[64,32], index: 10, kind: input, shape index: {}]   ;;  %s6576_s11 = inlined_call_operand.vmem [shape: f32[1,32], index: 11, kind: input, shape index: {}]   ;;  %s6577_s12 = inlined_call_operand.vmem [shape: f32[1,32], index: 12, kind: input, shape index: {}]   ;;  %s6578_s13 = inlined_call_operand.vmem [shape: bf16[32,128], index: 13, kind: input, shape index: {}]   ;;  %s6579_s14 = inlined_call_operand.vmem [shape: f32[1,128], index: 14, kind: input, shape index: {}]   ;;  %s6580_s15 = inlined_call_operand.vmem [shape: bf16[128,32], index: 15, kind: input, shape index: {}]   ;;  %s6581_s16 = inlined_call_operand.vmem [shape: f32[1,32], index: 16, kind: input, shape index: {}]   ;;  %s6582_s17 = inlined_call_operand.hbm [shape: f32[32,32], index: 17, kind: output, shape index: {}]  }
   0x1   :  { %6584 = sst [smem:[#allocation29_spill]] %s6565_s0 }
   0x2   :  { %6585 = sst [smem:[#allocation30_spill]] %s6566_s1 }
   0x3   :  { %s6586_s26 = sld [smem:[#allocation29_spill]]  ;;  %vm64_vm0 = vcmask 261120   ;;  %v914_v6 = vld [vmem:[%s6571_s6] sm:$0x1]  ;;  %v4779_v10 = vmov 0   ;;  %v240_v11 = vlaneseq }
   0x4   :  { %v915_v9 = vmul.f32 1.442695, %v914_v6  ;;  %4466 = vset.pattern.permute.xlu1 %v4779_v10  ;;  %202 = vmatprep.mubr.bf16.mxu1 %v4779_v10  ;;  %v1060_v12 = vld [vmem:[%s6571_s6] sm:$0x1] }
   0x5   :  { %v1206_v13 = vld [vmem:[%s6571_s6] sm:$0x1]  ;;  %v1061_v14 = vmul.f32 1.442695, %v1060_v12  ;;  %v4925_v15 = vshrl.u32 %v240_v11, 7 }
   0x6   :  { %4533 = vpow2.f32 %v915_v9  ;;  %v1207_v16 = vmul.f32 1.442695, %v1206_v13 }
   0x7   :  { %4535 = vpow2.f32 %v1061_v14  ;;  %v4928_v19 = vsub.s32 0, %v4925_v15 }
   0x8   :  { %4537 = vpow2.f32 %v1207_v16 }
   0x9   :  { %v4889_v0 = vld [vmem:[%s6586_s26] sm:$0xff]  ;;  %v4894_v1 = vld [vmem:[%s6586_s26 + $0x10] sm:$0xff]  ;;  %v4899_v2 = vld [vmem:[%s6586_s26 + $0x8] sm:$0xff] }
   0xa   :  { %v65_v3 = vsel %vm64_vm0, %v4889_v0, 0.0  ;;  %v71_v4 = vsel %vm64_vm0, %v4894_v1, 0.0  ;;  %v4908_v5 = vld [vmem:[%s6586_s26 + $0x18] sm:$0xff]  ;;  %v68_v7 = vsel %vm64_vm0, %v4899_v2, 0.0 }
   0xb   :  { %66 = vadd.xlane.f32.xlu0 %v65_v3  ;;  %72 = vadd.xlane.f32.xlu1 %v71_v4  ;;  %v74_v8 = vsel %vm64_vm0, %v4908_v5, 0.0 }
   0xf   :  { %69 = vadd.xlane.f32.xlu0 %v68_v7  ;;  %75 = vadd.xlane.f32.xlu1 %v74_v8 }
  0x13   :  { %v4534_v17 = vpop.eup %4533 }
  0x14   :  { %v917_v18 = vsub.f32 0.0, %v4534_v17 }
  0x15   :  { %22 = vsyncpa [#allocation9], 0  ;;  %v4159_v20 = vld [vmem:[%s6570_s5] ss:$0 sm:$0xff]  ;;  %s4780_s29 = smov 64   ;;  %v4536_v24 = vpop.eup %4535  ;;  %s4781_s18 = smov 32  }
  0x16   :  { %v1352_v21 = vld [vmem:[%s6571_s6] sm:$0x1]  ;;  %v922_v22 = vrot.slane %v917_v18, %v4928_v19  ;;  %v4158_v25 = vld [vmem:[%s6569_s4 + $0x3] ss:$0 sm:$0xff]  ;;  %v1063_v26 = vsub.f32 0.0, %v4536_v24  ;;  %v4538_v30 = vpop.eup %4537  ;;  %v4951_v31 = vand.u32 127, %v240_v11 }
  0x17   :  { %v1353_v23 = vmul.f32 1.442695, %v1352_v21  ;;  %v995_v27 = vld [vmem:[%s6572_s7] sm:$0x1]  ;;  %v4954_v32 = vadd.s32 8, %v4925_v15  ;;  %v1209_v33 = vsub.f32 0.0, %v4538_v30 }
  0x18   :  { %v4195_v28 = vld [vmem:[%s6573_s8] ss:$0 sm:$0xff]  ;;  %v1068_v29 = vrot.slane %v1063_v26, %v4928_v19  ;;  %v4782_v34 = vmov 1   ;;  %vm1445_vm1 = vcmp.eq.s32.totalorder %v4925_v15, %v4951_v31  ;;  %v4783_v38 = vmov 0.0   ;;  %s4786_s25 = smov 80   ;;  %s6587_s1 = sld [smem:[#allocation30_spill]] }
  0x19   :  { %4539 = vpow2.f32 %v1353_v23  ;;  %v1141_v35 = vld [vmem:[%s6572_s7] sm:$0x1]  ;;  %vm1446_vm2 = vcmp.eq.s32.totalorder %v4954_v32, %v4951_v31  ;;  %v1214_v36 = vrot.slane %v1209_v33, %v4928_v19  ;;  %v1447_v39 = vsel %vm1445_vm1, 1.0, %v4783_v38  ;;  %v4513_v13 = vld [vmem:[%s6568_s3 + $0x14] ss:$8 sps:$4 sm:$0xff]   ;;  %s4793_s8 = smov [#allocation8]  }
  0x1a   :  { %v1448_v40 = vsel %vm1446_vm2, 1.0, %v4783_v38  ;;  %v4784_v42 = vmov 2   ;;  %v1287_v43 = vld [vmem:[%s6572_s7] sm:$0x1]  ;;  %v4785_v46 = vmov 3   ;;  %vm1005_vm3 = vcmask 122880   ;;  %182 = vmatprep.subr.bf16.mxu1 %v4513_v13 }
  0x1b   :  { %v4470_v44 = vpack.i.bf16 %v1448_v40, %v1447_v39  ;;  %v1433_v47 = vld [vmem:[%s6572_s7] sm:$0x1]  ;;  %vm1151_vm4 = vcmask 254080   ;;  %v4515_v14 = vld [vmem:[%s6568_s3 + $0x10] ss:$8 sps:$4 sm:$0xff]   ;;  %vm1297_vm5 = vcmask 385280  }
  0x1c   :  { %v4516_v16 = vld [vmem:[%s6568_s3 + $0x4] ss:$8 sps:$4 sm:$0xff]   ;;  %183 = vmatpush1.bf16.msra.mxu1 %v4515_v14  ;;  %vm1443_vm6 = vcmask 516480   ;;  %vm224_vm7 = vcmask 293888   ;;  %vm329_vm14 = vcmask 523264  }
  0x1d   :  { %184 = vmatprep.subr.bf16.mxu1 %v4516_v16 }
  0x20   :  { %274 = vrot.lane.b32.xlu1 %v4159_v20, %s4780_s29  ;;  %v4518_v20 = vld [vmem:[%s6568_s3] ss:$8 sps:$4 sm:$0xff]  }
  0x21   :  { %185 = vmatpush1.bf16.msra.mxu1 %v4518_v20 }
  0x24   :  { %923 = vrot.lane.b32.xlu1 %v922_v22, %s4781_s18 }
  0x25   :  { %257 = vrot.lane.b32.xlu0 %v4158_v25, %s4780_s29 }
  0x26   :  { %v4540_v37 = vpop.eup %4539 }
  0x27   :  { %v1355_v41 = vsub.f32 0.0, %v4540_v37 }
  0x28   :  { %998 = vperm.xlu1 %4466, %v995_v27  }
  0x29   :  { %871 = vrot.lane.b32.xlu0 %v4195_v28, %s4781_s18  ;;  %v1360_v45 = vrot.slane %v1355_v41, %v4928_v19 }
  0x2c   :  { %1069 = vrot.lane.b32.xlu1 %v1068_v29, %s4781_s18 }
  0x2d   :  { %4467 = vset.pattern.permute.xlu1 %v4782_v34  ;;  %1017 = vrot.lane.b32.xlu0 %v4195_v28, %s4781_s18 }
  0x30   :  { %1144 = vperm.xlu1 %4467, %v1141_v35  }
  0x31   :  { %1163 = vrot.lane.b32.xlu0 %v4195_v28, %s4781_s18 }
  0x34   :  { %1215 = vrot.lane.b32.xlu1 %v1214_v36, %s4781_s18 }
  0x35   :  { %4468 = vset.pattern.permute.xlu1 %v4784_v42  ;;  %1309 = vrot.lane.b32.xlu0 %v4195_v28, %s4781_s18 }
  0x38   :  { %1290 = vperm.xlu1 %4468, %v1287_v43  }
  0x39   :  { %4471 = vrot.lane.b32.xlu0 %v4470_v44, %s4780_s29 }
  0x3c   :  { %1361 = vrot.lane.b32.xlu1 %v1360_v45, %s4781_s18 }
  0x3d   :  { %4469 = vset.pattern.permute.xlu1 %v4785_v46  ;;  %4476 = vrot.lane.b32.xlu0 %v4470_v44, %s4786_s25 }
  0x40   :  { %1436 = vperm.xlu1 %4469, %v1433_v47  }
  0x94   :  { %v67_v48 = vpop.xlane.xlu0 %66  ;;  %v73_v49 = vpop.xlane.xlu1 %72 }
  0x95   :  { %v78_v50 = vmul.f32 0.03125, %v67_v48  ;;  %v80_v51 = vmul.f32 0.03125, %v73_v49  ;;  %v4150_v48 = vld [vmem:[%s6587_s1] ss:$0 sm:$0xff] }
  0x97   :  { %v4982_v52 = vsub.f32 %v4889_v0, %v78_v50  ;;  %v4985_v53 = vsub.f32 %v4894_v1, %v80_v51 }
  0x98   :  { %v70_v54 = vpop.xlane.xlu0 %69  ;;  %v76_v55 = vpop.xlane.xlu1 %75 }
  0x99   :  { %v79_v56 = vmul.f32 0.03125, %v70_v54  ;;  %v81_v57 = vmul.f32 0.03125, %v76_v55  ;;  %v86_v58 = vmul.f32 %v4982_v52, %v4982_v52  ;;  %v88_v59 = vmul.f32 %v4985_v53, %v4985_v53  ;;  %v4151_v55 = vld [vmem:[%s6567_s2] ss:$0 sm:$0xff] }
  0x9b   :  { %v4992_v60 = vsub.f32 %v4899_v2, %v79_v56  ;;  %v4995_v61 = vsub.f32 %v4908_v5, %v81_v57  ;;  %v90_v62 = vsel %vm64_vm0, %v86_v58, 0.0  ;;  %v96_v0 = vsel %vm64_vm0, %v88_v59, 0.0 }
  0x9c   :  { %91 = vadd.xlane.f32.xlu0 %v90_v62  ;;  %v4998_v63 = vpop.permute.xlu1 %274  ;;  %v5031_v24 = vpop.permute.xlu0 %257 }
  0x9d   :  { %v87_v1 = vmul.f32 %v4992_v60, %v4992_v60  ;;  %v89_v3 = vmul.f32 %v4995_v61, %v4995_v61 }
  0x9f   :  { %v93_v4 = vsel %vm64_vm0, %v87_v1, 0.0  ;;  %v99_v5 = vsel %vm64_vm0, %v89_v3, 0.0 }
  0xa0   :  { %97 = vadd.xlane.f32.xlu0 %v96_v0  ;;  %94 = vadd.xlane.f32.xlu1 %v93_v4  ;;  %v5006_v2 = vpop.permute.xlu1 %923  ;;  %v5033_v25 = vpop.permute.xlu0 %871 }
  0xa4   :  { %100 = vadd.xlane.f32.xlu1 %v99_v5  ;;  %v999_v6 = vpop.permute.xlu1 %998  ;;  %v5035_v26 = vpop.permute.xlu0 %1017 }
  0xa5   :  { %v1004_v7 = vrot.slane %v999_v6, %v4928_v19  ;;  %v4787_v6 = vmov 32  }
  0xa6   :  { %4480 = vset.pattern.permute.xlu1 %v4787_v6  ;;  %4484 = vset.pattern.permute.xlu0 %v4787_v6 }
  0xa7   :  { %1006 = vst.msk [vmem:[#allocation6] sm:$0x1] %vm1005_vm3, %v1004_v7 }
  0xa8   :  { %v5010_v8 = vpop.permute.xlu1 %1069  ;;  %v5037_v27 = vpop.permute.xlu0 %1163 }
  0xac   :  { %v1145_v9 = vpop.permute.xlu1 %1144  ;;  %v5039_v28 = vpop.permute.xlu0 %1309 }
  0xad   :  { %v1150_v11 = vrot.slane %v1145_v9, %v4928_v19 }
  0xaf   :  { %1152 = vst.msk [vmem:[#allocation6] sm:$0x1] %vm1151_vm4, %v1150_v11 }
  0xb0   :  { %v5013_v12 = vpop.permute.xlu1 %1215  ;;  %v5041_v29 = vpop.permute.xlu0 %4471 }
  0xb4   :  { %v1291_v17 = vpop.permute.xlu1 %1290  ;;  %v5043_v30 = vpop.permute.xlu0 %4476 }
  0xb5   :  { %v1296_v18 = vrot.slane %v1291_v17, %v4928_v19 }
  0xb7   :  { %1298 = vst.msk [vmem:[#allocation6] sm:$0x1] %vm1297_vm5, %v1296_v18 }
  0xb8   :  { %v5028_v21 = vpop.permute.xlu1 %1361 }
  0xbc   :  { %v1437_v22 = vpop.permute.xlu1 %1436 }
  0xbd   :  { %v1442_v23 = vrot.slane %v1437_v22, %v4928_v19 }
  0xbf   :  { %1444 = vst.msk [vmem:[#allocation6] sm:$0x1] %vm1443_vm6, %v1442_v23 }
 0x125   :  { %v92_v33 = vpop.xlane.xlu0 %91 }
 0x126   :  { %v102_v34 = vmul.f32 0.03125, %v92_v33 }
 0x128   :  { %v106_v35 = vadd.f32 1e-05, %v102_v34 }
 0x129   :  { %v95_v36 = vpop.xlane.xlu1 %94  ;;  %v98_v19 = vpop.xlane.xlu0 %97 }
 0x12a   :  { %4541 = vrsqrt.f32 %v106_v35  ;;  %v103_v37 = vmul.f32 0.03125, %v95_v36  ;;  %v104_v39 = vmul.f32 0.03125, %v98_v19 }
 0x12c   :  { %v107_v40 = vadd.f32 1e-05, %v103_v37  ;;  %v108_v41 = vadd.f32 1e-05, %v104_v39 }
 0x12d   :  { %v101_v42 = vpop.xlane.xlu1 %100 }
 0x12e   :  { %4543 = vrsqrt.f32 %v107_v40  ;;  %v105_v43 = vmul.f32 0.03125, %v101_v42 }
 0x12f   :  { %4545 = vrsqrt.f32 %v108_v41 }
 0x130   :  { %v109_v44 = vadd.f32 1e-05, %v105_v43 }
 0x132   :  { %4547 = vrsqrt.f32 %v109_v44 }
 0x137   :  { %v4542_v45 = vpop.eup %4541 }
 0x138   :  { %v114_v47 = vmul.f32 %v4542_v45, %v4982_v52 }
 0x13a   :  { %v124_v51 = vmul.f32 %v4150_v48, %v114_v47 }
 0x13b   :  { %v4544_v49 = vpop.eup %4543 }
 0x13c   :  { %v115_v50 = vmul.f32 %v4544_v49, %v4992_v60  ;;  %v4546_v54 = vpop.eup %4545  ;;  %v134_v58 = vadd.f32 %v4151_v55, %v124_v51 }
 0x13d   :  { %v116_v62 = vmul.f32 %v4546_v54, %v4985_v53 }
 0x13e   :  { %v125_v56 = vmul.f32 %v4150_v48, %v115_v50 }
 0x13f   :  { %v4548_v57 = vpop.eup %4547  ;;  %v126_v3 = vmul.f32 %v4150_v48, %v116_v62 }
 0x140   :  { %v135_v59 = vadd.f32 %v4151_v55, %v125_v56  ;;  %v117_v52 = vmul.f32 %v4548_v57, %v4995_v61 }
 0x141   :  { %v136_v4 = vadd.f32 %v4151_v55, %v126_v3 }
 0x142   :  { %v142_v0 = vpack.c.bf16 %v135_v59, %v134_v58  ;;  %v127_v1 = vmul.f32 %v4150_v48, %v117_v52 }
 0x144   :  { %4156 = vmatmul.mubr.msk.bf16.vlgmr.msra.gmra.mxu1 %vm64_vm0, %v142_v0  ;;  %v137_v60 = vadd.f32 %v4151_v55, %v127_v1 }
 0x145   :  { %212 = vmatprep.mubr.bf16.mxu1 %v4779_v10 }
 0x146   :  { %v143_v5 = vpack.c.bf16 %v137_v60, %v136_v4 }
 0x14c   :  { %4157 = vmatmul.mubr.msk.bf16.gmra.mxu1 %vm64_vm0, %v143_v5 }
 0x204   :  { %v204_v53 = vpop.f32.mrf.mxu1 }
 0x205   :  { %223 = vst [vmem:[#allocation2] sm:$0xff] %v204_v53  ;;  %313 = vrot.lane.b32.xlu1 %v204_v53, %s4780_s29 }
 0x206   :  { %v206_v61 = vpop.f32.mrf.mxu1 }
 0x207   :  { %225 = vst.msk [vmem:[#allocation2 + $0x8] sm:$0xff] %vm224_vm7, %v206_v61 }
 0x208   :  { %v208_v7 = vpop.f32.mrf.mxu1 }
 0x209   :  { %226 = vst [vmem:[#allocation2 + $0x10] sm:$0xff] %v208_v7  ;;  %317 = vrot.lane.b32.xlu0 %v208_v7, %s4780_s29 }
 0x20a   :  { %v210_v10 = vpop.f32.mrf.mxu1 }
 0x20b   :  { %227 = vst.msk [vmem:[#allocation2 + $0x18] sm:$0xff] %vm224_vm7, %v210_v10 }
 0x20c   :  { %v214_v9 = vpop.f32.mrf.mxu1 }
 0x20d   :  { %228 = vst [vmem:[#allocation2 + $0x20] sm:$0xff] %v214_v9  ;;  %321 = vrot.lane.b32.xlu0 %v214_v9, %s4780_s29 }
 0x20e   :  { %v216_v11 = vpop.f32.mrf.mxu1  ;;  %v233_v13 = vld [vmem:[#allocation2 + $0x8] sm:$0xff] }
 0x20f   :  { %229 = vst.msk [vmem:[#allocation2 + $0x28] sm:$0xff] %vm224_vm7, %v216_v11  ;;  %315 = vrot.lane.b32.xlu1 %v233_v13, %s4780_s29  ;;  %v5068_v14 = vadd.f32 %v5033_v25, %v233_v13  ;;  %v5071_v16 = vadd.f32 %v5035_v26, %v233_v13  ;;  %v5074_v18 = vadd.f32 %v5037_v27, %v233_v13 }
 0x210   :  { %v218_v17 = vpop.f32.mrf.mxu1  ;;  %v5093_v42 = vadd.f32 %v5039_v28, %v233_v13 }
 0x211   :  { %230 = vst [vmem:[#allocation2 + $0x30] sm:$0xff] %v218_v17  ;;  %325 = vrot.lane.b32.xlu0 %v218_v17, %s4780_s29  ;;  %v882_v20 = vand.u32 2147483647, %v5068_v14  ;;  %v1028_v33 = vand.u32 2147483647, %v5071_v16 }
 0x212   :  { %v220_v22 = vpop.f32.mrf.mxu1  ;;  %v235_v23 = vld [vmem:[#allocation2 + $0x18] sm:$0xff]  ;;  %v1174_v37 = vand.u32 2147483647, %v5074_v18  ;;  %v1320_v56 = vand.u32 2147483647, %v5093_v42 }
 0x213   :  { %231 = vst.msk [vmem:[#allocation2 + $0x38] sm:$0xff] %vm224_vm7, %v220_v22  ;;  %319 = vrot.lane.b32.xlu1 %v235_v23, %s4780_s29  ;;  %v886_v34 = vsub.f32 0.0, %v882_v20  ;;  %v5082_v35 = vadd.f32 %v5033_v25, %v235_v23  ;;  %v1032_v36 = vsub.f32 0.0, %v1028_v33  ;;  %v5085_v19 = vadd.f32 %v5035_v26, %v235_v23 }
 0x214   :  { %v5089_v39 = vadd.f32 %v5037_v27, %v235_v23  ;;  %v1178_v48 = vsub.f32 0.0, %v1174_v37  ;;  %v5098_v49 = vadd.f32 %v5039_v28, %v235_v23  ;;  %v1324_v52 = vsub.f32 0.0, %v1320_v56 }
 0x215   :  { %v890_v40 = vmul.f32 1.442695, %v886_v34  ;;  %v883_v41 = vand.u32 2147483647, %v5082_v35  ;;  %v1036_v44 = vmul.f32 1.442695, %v1032_v36 }
 0x216   :  { %v237_v43 = vld [vmem:[#allocation2 + $0x28] sm:$0xff]  ;;  %v1029_v45 = vand.u32 2147483647, %v5085_v19  ;;  %v1175_v51 = vand.u32 2147483647, %v5089_v39 }
 0x217   :  { %323 = vrot.lane.b32.xlu1 %v237_v43, %s4780_s29  ;;  %4549 = vpow2.f32 %v890_v40  ;;  %v887_v47 = vsub.f32 0.0, %v883_v41  ;;  %v1182_v55 = vmul.f32 1.442695, %v1178_v48  ;;  %v5105_v62 = vadd.f32 %v5033_v25, %v237_v43 }
 0x218   :  { %4551 = vpow2.f32 %v1036_v44  ;;  %v1033_v50 = vsub.f32 0.0, %v1029_v45  ;;  %v1179_v59 = vsub.f32 0.0, %v1175_v51  ;;  %v1321_v0 = vand.u32 2147483647, %v5098_v49 }
 0x219   :  { %v892_v54 = vmul.f32 1.442695, %v887_v47  ;;  %v884_v3 = vand.u32 2147483647, %v5105_v62  ;;  %v1328_v60 = vmul.f32 1.442695, %v1324_v52  ;;  %v5116_v61 = vadd.f32 %v5035_v26, %v237_v43 }
 0x21a   :  { %v5102_v57 = vld [vmem:[#allocation2 + $0x38] sm:$0xff]  ;;  %v1038_v58 = vmul.f32 1.442695, %v1033_v50  ;;  %v1184_v1 = vmul.f32 1.442695, %v1179_v59  ;;  %v1325_v4 = vsub.f32 0.0, %v1321_v0  ;;  %v5124_v13 = vadd.f32 %v5037_v27, %v237_v43 }
 0x21b   :  { %327 = vrot.lane.b32.xlu1 %v5102_v57, %s4780_s29  ;;  %4553 = vpow2.f32 %v892_v54  ;;  %v888_v5 = vsub.f32 0.0, %v884_v3  ;;  %v5113_v53 = vadd.f32 %v5033_v25, %v5102_v57  ;;  %v5120_v10 = vadd.f32 %v5035_v26, %v5102_v57 }
 0x21c   :  { %4555 = vpow2.f32 %v1038_v58  ;;  %v1330_v7 = vmul.f32 1.442695, %v1325_v4  ;;  %v1030_v17 = vand.u32 2147483647, %v5116_v61  ;;  %v5130_v33 = vadd.f32 %v5037_v27, %v5102_v57 }
 0x21d   :  { %4557 = vpow2.f32 %v1182_v55  ;;  %v894_v9 = vmul.f32 1.442695, %v888_v5  ;;  %v885_v11 = vand.u32 2147483647, %v5113_v53  ;;  %v1031_v25 = vand.u32 2147483647, %v5120_v10 }
 0x21e   :  { %4559 = vpow2.f32 %v1184_v1  ;;  %v1034_v22 = vsub.f32 0.0, %v1030_v17  ;;  %v1176_v36 = vand.u32 2147483647, %v5124_v13  ;;  %v5134_v37 = vadd.f32 %v5039_v28, %v237_v43 }
 0x21f   :  { %4561 = vpow2.f32 %v1328_v60  ;;  %v889_v20 = vsub.f32 0.0, %v885_v11  ;;  %v1035_v23 = vsub.f32 0.0, %v1031_v25  ;;  %v5137_v45 = vand.u32 15, %v4925_v15 }
 0x220   :  { %4563 = vpow2.f32 %v1330_v7  ;;  %v1040_v44 = vmul.f32 1.442695, %v1034_v22  ;;  %v5141_v27 = vadd.f32 %v5039_v28, %v5102_v57  ;;  %v1177_v50 = vand.u32 2147483647, %v5130_v33 }
 0x221   :  { %4565 = vpow2.f32 %v894_v9  ;;  %v896_v34 = vmul.f32 1.442695, %v889_v20  ;;  %v1042_v48 = vmul.f32 1.442695, %v1035_v23  ;;  %v1180_v43 = vsub.f32 0.0, %v1176_v36 }
 0x222   :  { %v1322_v54 = vand.u32 2147483647, %v5134_v37  ;;  %v4160_v55 = vadd.s32 4294967293, %v4925_v15  ;;  %vm293_vm8 = vcmp.ge.s32.totalorder %v5137_v45, 3  ;;  %v1323_v28 = vand.u32 2147483647, %v5141_v27 }
 0x223   :  { %4567 = vpow2.f32 %v896_v34  ;;  %v1181_v3 = vsub.f32 0.0, %v1177_v50  ;;  %v1186_v4 = vmul.f32 1.442695, %v1180_v43  ;;  %v4178_v11 = vadd.s32 4294967295, %v4925_v15 }
 0x224   :  { %v4550_v26 = vpop.eup %4549  ;;  %vm289_vm9 = vcmp.eq.s32.totalorder %v4951_v31, %v4160_v55  ;;  %v1326_v5 = vsub.f32 0.0, %v1322_v54  ;;  %v1327_v20 = vsub.f32 0.0, %v1323_v28  ;;  %vm626_vm11 = vcmp.ge.s32.totalorder %v5137_v45, 1 }
 0x225   :  { %v4552_v40 = vpop.eup %4551  ;;  %v898_v41 = vadd.f32 1.0, %v4550_v26  ;;  %vm297_vm10 = vmand %vm289_vm9, %vm293_vm8  ;;  %v1188_v22 = vmul.f32 1.442695, %v1181_v3  ;;  %vm622_vm12 = vcmp.eq.s32.totalorder %v4951_v31, %v4178_v11  ;;  %v878_v50 = vmax.f32 %v5068_v14, 0.0 }
 0x226   :  { %v1044_v47 = vadd.f32 1.0, %v4552_v40  ;;  %v301_v9 = vsel %vm297_vm10, 1.0, %v4783_v38  ;;  %vm630_vm13 = vmand %vm622_vm12, %vm626_vm11  ;;  %v1332_v34 = vmul.f32 1.442695, %v1326_v5  ;;  %v1334_v40 = vmul.f32 1.442695, %v1327_v20 }
 0x227   :  { %4569 = vlog2.f32 %v898_v41  ;;  %4375 = vmatprep.mubr.msk.f32.mxu1 %vm64_vm0, %v301_v9  ;;  %v634_v36 = vsel %vm630_vm13, 1.0, %v4783_v38  ;;  %v1024_v14 = vmax.f32 %v5071_v16, 0.0  ;;  %v4788_v11 = vmov 33  }
 0x228   :  { %v4554_v51 = vpop.eup %4553  ;;  %4571 = vlog2.f32 %v1044_v47  ;;  %4403 = vmatprep.mubr.msk.f32.mxu0 %vm64_vm0, %v634_v36  ;;  %vm476_vm9 = vcmp.ge.s32.totalorder %v5137_v45, 2 }
 0x229   :  { %v4556_v56 = vpop.eup %4555  ;;  %v899_v58 = vadd.f32 1.0, %v4554_v51  ;;  %4573 = vpow2.f32 %v1040_v44 }
 0x22a   :  { %v4558_v59 = vpop.eup %4557  ;;  %v1045_v52 = vadd.f32 1.0, %v4556_v56  ;;  %4575 = vpow2.f32 %v1042_v48 }
 0x22b   :  { %v4560_v0 = vpop.eup %4559  ;;  %4577 = vlog2.f32 %v899_v58  ;;  %v1190_v1 = vadd.f32 1.0, %v4558_v59 }
 0x22c   :  { %v4562_v60 = vpop.eup %4561  ;;  %4579 = vlog2.f32 %v1045_v52  ;;  %v1191_v7 = vadd.f32 1.0, %v4560_v0  ;;  %v879_v0 = vmax.f32 %v5082_v35, 0.0  ;;  %v1025_v35 = vmax.f32 %v5085_v19, 0.0 }
 0x22d   :  { %4581 = vlog2.f32 %v1190_v1  ;;  %v4564_v17 = vpop.eup %4563  ;;  %v1336_v25 = vadd.f32 1.0, %v4562_v60 }
 0x22e   :  { %v4566_v23 = vpop.eup %4565  ;;  %v1337_v26 = vadd.f32 1.0, %v4564_v17  ;;  %4583 = vpow2.f32 %v1186_v4 }
 0x22f   :  { %4585 = vlog2.f32 %v1191_v7  ;;  %v900_v44 = vadd.f32 1.0, %v4566_v23 }
 0x230   :  { %4587 = vlog2.f32 %v1336_v25  ;;  %v4568_v41 = vpop.eup %4567 }
 0x231   :  { %4589 = vpow2.f32 %v1188_v22  ;;  %v901_v56 = vadd.f32 1.0, %v4568_v41  ;;  %v1170_v22 = vmax.f32 %v5074_v18, 0.0  ;;  %v1171_v18 = vmax.f32 %v5089_v39, 0.0 }
 0x232   :  { %4591 = vlog2.f32 %v1337_v26  ;;  %v1317_v39 = vmax.f32 %v5098_v49, 0.0  ;;  %v881_v49 = vmax.f32 %v5113_v53, 0.0  ;;  %v1027_v53 = vmax.f32 %v5120_v10, 0.0 }
 0x233   :  { %4593 = vpow2.f32 %v1332_v34 }
 0x234   :  { %v4570_v47 = vpop.eup %4569  ;;  %4595 = vpow2.f32 %v1334_v40 }
 0x235   :  { %v4572_v48 = vpop.eup %4571  ;;  %v903_v51 = vmul.f32 0.6931472, %v4570_v47  ;;  %4597 = vlog2.f32 %v900_v44  ;;  %v4789_v44 = vmov 34  }
 0x236   :  { %v4574_v43 = vpop.eup %4573  ;;  %v1049_v59 = vmul.f32 0.6931472, %v4572_v48  ;;  %4599 = vlog2.f32 %v901_v56 }
 0x237   :  { %v4576_v54 = vpop.eup %4575  ;;  %v5157_v55 = vadd.f32 %v903_v51, %v878_v50  ;;  %v1046_v52 = vadd.f32 1.0, %v4574_v43  ;;  %v1316_v51 = vmax.f32 %v5093_v42, 0.0 }
 0x238   :  { %v4578_v58 = vpop.eup %4577  ;;  %v5162_v4 = vadd.f32 %v1049_v59, %v1024_v14  ;;  %v1047_v7 = vadd.f32 1.0, %v4576_v54 }
 0x239   :  { %v4580_v28 = vpop.eup %4579  ;;  %969 = vperm.xlu1 %4480, %v5157_v55   ;;  %v905_v1 = vmul.f32 0.6931472, %v4578_v58  ;;  %4601 = vlog2.f32 %v1046_v52  ;;  %v4790_v52 = vmov 35  }
 0x23a   :  { %v4582_v3 = vpop.eup %4581  ;;  %v1051_v5 = vmul.f32 0.6931472, %v4580_v28  ;;  %4603 = vlog2.f32 %v1047_v7 }
 0x23b   :  { %v911_v60 = vadd.f32 %v905_v1, %v879_v0  ;;  %v4584_v9 = vpop.eup %4583  ;;  %v1195_v17 = vmul.f32 0.6931472, %v4582_v3  ;;  %v880_v1 = vmax.f32 %v5105_v62, 0.0  ;;  %v1026_v62 = vmax.f32 %v5116_v61, 0.0 }
 0x23c   :  { %v4586_v25 = vpop.eup %4585  ;;  %v1192_v20 = vadd.f32 1.0, %v4584_v9  ;;  %v1057_v26 = vadd.f32 %v1051_v5, %v1025_v35  ;;  %v926_v35 = vmul.f32 %v5006_v2, %v5157_v55  ;;  %v1172_v55 = vmax.f32 %v5124_v13, 0.0 }
 0x23d   :  { %974 = vperm.xlu0 %4484, %v911_v60   ;;  %4481 = vset.pattern.permute.xlu1 %v4788_v11  ;;  %v4588_v16 = vpop.eup %4587  ;;  %v5169_v36 = vadd.f32 %v1195_v17, %v1170_v22  ;;  %v1197_v40 = vmul.f32 0.6931472, %v4586_v25  ;;  %v927_v14 = vmul.f32 %v5006_v2, %v911_v60  ;;  %v1173_v13 = vmax.f32 %v5130_v33, 0.0 }
 0x23e   :  { %1115 = vperm.xlu1 %4481, %v5162_v4   ;;  %v4590_v23 = vpop.eup %4589  ;;  %4605 = vlog2.f32 %v1192_v20  ;;  %v1341_v19 = vmul.f32 0.6931472, %v4588_v16  ;;  %v1073_v16 = vmul.f32 %v5010_v8, %v1057_v26  ;;  %v930_v61 = vmul.f32 1.442695, %v926_v35 }
 0x23f   :  { %v4592_v34 = vpop.eup %4591  ;;  %v1193_v47 = vadd.f32 1.0, %v4590_v23  ;;  %v1203_v43 = vadd.f32 %v1197_v40, %v1171_v18  ;;  %v932_v20 = vmul.f32 1.442695, %v927_v14  ;;  %v1319_v33 = vmax.f32 %v5141_v27, 0.0 }
 0x240   :  { %v4594_v41 = vpop.eup %4593  ;;  %v5176_v56 = vadd.f32 %v1341_v19, %v1316_v51  ;;  %v1343_v58 = vmul.f32 0.6931472, %v4592_v34 }
 0x241   :  { %4485 = vset.pattern.permute.xlu0 %v4788_v11  ;;  %v4596_v48 = vpop.eup %4595  ;;  %v1338_v54 = vadd.f32 1.0, %v4594_v41  ;;  %4607 = vlog2.f32 %v1193_v47  ;;  %v1072_v41 = vmul.f32 %v5010_v8, %v5162_v4  ;;  %v1219_v47 = vmul.f32 %v5013_v12, %v1203_v43 }
 0x242   :  { %1120 = vperm.xlu0 %4485, %v1057_v26   ;;  %4482 = vset.pattern.permute.xlu1 %v4789_v44  ;;  %v4598_v50 = vpop.eup %4597  ;;  %v1339_v59 = vadd.f32 1.0, %v4596_v48  ;;  %v1349_v3 = vadd.f32 %v1343_v58, %v1317_v39  ;;  %v1078_v26 = vmul.f32 1.442695, %v1073_v16  ;;  %v1318_v4 = vmax.f32 %v5134_v37, 0.0 }
 0x243   :  { %1261 = vperm.xlu1 %4482, %v5169_v36   ;;  %v907_v28 = vmul.f32 0.6931472, %v4598_v50  ;;  %v4600_v0 = vpop.eup %4599  ;;  %4609 = vlog2.f32 %v1338_v54  ;;  %v1076_v54 = vmul.f32 1.442695, %v1072_v41  ;;  %v1224_v58 = vmul.f32 1.442695, %v1219_v47 }
 0x244   :  { %4611 = vlog2.f32 %v1339_v59  ;;  %v909_v7 = vmul.f32 0.6931472, %v4600_v0  ;;  %v1364_v37 = vmul.f32 %v5028_v21, %v5176_v56 }
 0x245   :  { %v912_v5 = vadd.f32 %v907_v28, %v880_v1  ;;  %4613 = vpow2.f32 %v932_v20  ;;  %v1365_v28 = vmul.f32 %v5028_v21, %v1349_v3 }
 0x246   :  { %4486 = vset.pattern.permute.xlu0 %v4789_v44  ;;  %v4602_v42 = vpop.eup %4601  ;;  %v913_v60 = vadd.f32 %v909_v7, %v881_v49  ;;  %4615 = vpow2.f32 %v930_v61  ;;  %v1368_v7 = vmul.f32 1.442695, %v1364_v37 }
 0x247   :  { %1266 = vperm.xlu0 %4486, %v1203_v43   ;;  %4483 = vset.pattern.permute.xlu1 %v4790_v52  ;;  %v1053_v9 = vmul.f32 0.6931472, %v4602_v42  ;;  %v4604_v17 = vpop.eup %4603  ;;  %4617 = vpow2.f32 %v1078_v26  ;;  %v1218_v43 = vmul.f32 %v5013_v12, %v5169_v36  ;;  %v1370_v36 = vmul.f32 1.442695, %v1365_v28 }
 0x248   :  { %1407 = vperm.xlu1 %4483, %v5176_v56   ;;  %v1055_v23 = vmul.f32 0.6931472, %v4604_v17  ;;  %4619 = vpow2.f32 %v1076_v54  ;;  %v243_v54 = vadd.s32 16, %v4925_v15  ;;  %v4161_v28 = vadd.s32 4294967293, %v4954_v32 }
 0x249   :  { %v1058_v22 = vadd.f32 %v1053_v9, %v1026_v62  ;;  %v1222_v42 = vmul.f32 1.442695, %v1218_v43  ;;  %4621 = vpow2.f32 %v1224_v58  ;;  %v929_v9 = vmul.f32 %v5006_v2, %v913_v60 }
 0x24a   :  { %v1059_v19 = vadd.f32 %v1055_v23, %v1027_v53  ;;  %v5235_v43 = vand.u32 15, %v243_v54  ;;  %v4162_v58 = vadd.s32 4294967293, %v243_v54  ;;  %vm290_vm2 = vcmp.eq.s32.totalorder %v4951_v31, %v4161_v28  ;;  %v4186_v28 = vld [vmem:[%s6569_s4 + $0x2] ss:$0 sm:$0xff] }
 0x24b   :  { %4487 = vset.pattern.permute.xlu0 %v4790_v52  ;;  %v4606_v25 = vpop.eup %4605  ;;  %4623 = vpow2.f32 %v1222_v42  ;;  %v1074_v56 = vmul.f32 %v5010_v8, %v1058_v22 }
 0x24c   :  { %1412 = vperm.xlu0 %4487, %v1349_v3   ;;  %4488 = vset.pattern.permute.xlu1 %v4787_v6  ;;  %v1199_v34 = vmul.f32 0.6931472, %v4606_v25  ;;  %v928_v3 = vmul.f32 %v5006_v2, %v912_v5  ;;  %4625 = vpow2.f32 %v1370_v36  ;;  %v1075_v62 = vmul.f32 %v5010_v8, %v1059_v19 }
 0x24d   :  { %979 = vperm.xlu1 %4488, %v912_v5   ;;  %4627 = vpow2.f32 %v1368_v7  ;;  %v936_v5 = vmul.f32 1.442695, %v929_v9  ;;  %v1080_v25 = vmul.f32 1.442695, %v1074_v56  ;;  %vm291_vm15 = vcmp.eq.s32.totalorder %v4951_v31, %v4162_v58 }
 0x24e   :  { %v4608_v40 = vpop.eup %4607  ;;  %v1204_v48 = vadd.f32 %v1199_v34, %v1172_v55  ;;  %v934_v27 = vmul.f32 1.442695, %v928_v3  ;;  %vm295_vm1 = vcmp.ge.s32.totalorder %v5235_v43, 3  ;;  %vm628_vm4 = vcmp.ge.s32.totalorder %v5235_v43, 1 }
 0x24f   :  { %v1201_v18 = vmul.f32 0.6931472, %v4608_v40  ;;  %vm5255_vm6 = vmand %vm291_vm15, %vm295_vm1  ;;  %v4171_v3 = vadd.s32 4294967294, %v243_v54  ;;  %v302_v7 = vsel %vm290_vm2, 1.0, %v4783_v38  ;;  %v4170_v9 = vadd.s32 4294967294, %v4954_v32 }
 0x250   :  { %4492 = vset.pattern.permute.xlu0 %v4787_v6  ;;  %v4610_v50 = vpop.eup %4609  ;;  %4629 = vpow2.f32 %v934_v27  ;;  %v1220_v20 = vmul.f32 %v5013_v12, %v1204_v48  ;;  %vm478_vm15 = vcmp.ge.s32.totalorder %v5235_v43, 2 }
 0x251   :  { %984 = vperm.xlu0 %4492, %v913_v60   ;;  %4489 = vset.pattern.permute.xlu1 %v4788_v11  ;;  %v4612_v10 = vpop.eup %4611  ;;  %v1345_v51 = vmul.f32 0.6931472, %v4610_v50  ;;  %v1205_v59 = vadd.f32 %v1201_v18, %v1173_v13  ;;  %4631 = vpow2.f32 %v936_v5  ;;  %v1082_v60 = vmul.f32 1.442695, %v1075_v62 }
 0x252   :  { %1125 = vperm.xlu1 %4489, %v1058_v22   ;;  %v1347_v39 = vmul.f32 0.6931472, %v4612_v10  ;;  %v4614_v14 = vpop.eup %4613  ;;  %4633 = vpow2.f32 %v1080_v25  ;;  %v1226_v16 = vmul.f32 1.442695, %v1220_v20  ;;  %vm474_vm13 = vcmp.eq.s32.totalorder %v4951_v31, %v4171_v3 }
 0x253   :  { %v1350_v0 = vadd.f32 %v1345_v51, %v1318_v4  ;;  %v4616_v17 = vpop.eup %4615  ;;  %v1221_v22 = vmul.f32 %v5013_v12, %v1205_v59  ;;  %4635 = vpow2.f32 %v1082_v60  ;;  %vm473_vm1 = vcmp.eq.s32.totalorder %v4951_v31, %v4170_v9  ;;  %vm482_vm2 = vmand %vm474_vm13, %vm478_vm15 }
 0x254   :  { %v1351_v1 = vadd.f32 %v1347_v39, %v1319_v33  ;;  %v4618_v49 = vpop.eup %4617  ;;  %4637 = vpow2.f32 %v1226_v16  ;;  %v4180_v39 = vadd.s32 4294967295, %v243_v54  ;;  %v4179_v33 = vadd.s32 4294967295, %v4954_v32 }
 0x255   :  { %4493 = vset.pattern.permute.xlu0 %v4788_v11  ;;  %v4620_v35 = vpop.eup %4619  ;;  %v1366_v34 = vmul.f32 %v5028_v21, %v1350_v0  ;;  %v1228_v53 = vmul.f32 1.442695, %v1221_v22  ;;  %v485_v25 = vsel %vm473_vm1, 1.0, %v4783_v38  ;;  %v486_v62 = vsel %vm482_vm2, 1.0, %v4783_v38 }
 0x256   :  { %1130 = vperm.xlu0 %4493, %v1059_v19   ;;  %4490 = vset.pattern.permute.xlu1 %v4789_v44  ;;  %v4622_v2 = vpop.eup %4621  ;;  %v1367_v61 = vmul.f32 %v5028_v21, %v1351_v1  ;;  %vm624_vm3 = vcmp.eq.s32.totalorder %v4951_v31, %v4180_v39  ;;  %vm623_vm5 = vcmp.eq.s32.totalorder %v4951_v31, %v4179_v33 }
 0x257   :  { %1271 = vperm.xlu1 %4490, %v1204_v48   ;;  %v1372_v40 = vmul.f32 1.442695, %v1366_v34  ;;  %4639 = vpow2.f32 %v1228_v53  ;;  %vm632_vm7 = vmand %vm624_vm3, %vm628_vm4  ;;  %v635_v27 = vsel %vm623_vm5, 1.0, %v4783_v38  ;;  %vm958_vm4 = vcmask 130048  }
 0x258   :  { %v4624_v23 = vpop.eup %4623  ;;  %v1374_v41 = vmul.f32 1.442695, %v1367_v61  ;;  %v636_v45 = vsel %vm632_vm7, 1.0, %v4783_v38  ;;  %vm1104_vm5 = vcmask 261248   ;;  %vm1396_vm7 = vcmask 523648  }
 0x259   :  { %v4626_v8 = vpop.eup %4625  ;;  %4641 = vpow2.f32 %v1372_v40 }
 0x25a   :  { %4494 = vset.pattern.permute.xlu0 %v4789_v44  ;;  %v4628_v55 = vpop.eup %4627  ;;  %4643 = vpow2.f32 %v1374_v41 }
 0x25b   :  { %1276 = vperm.xlu0 %4494, %v1205_v59   ;;  %4491 = vset.pattern.permute.xlu1 %v4790_v52 }
 0x25c   :  { %1417 = vperm.xlu1 %4491, %v1350_v0   ;;  %v244_v0 = vadd.s32 24, %v4925_v15 }
 0x25d   :  { %v4630_v12 = vpop.eup %4629 }
 0x25e   :  { %v4632_v26 = vpop.eup %4631  ;;  %v4163_v37 = vadd.s32 4294967293, %v244_v0 }
 0x25f   :  { %4495 = vset.pattern.permute.xlu0 %v4790_v52  ;;  %v4634_v19 = vpop.eup %4633 }
 0x260   :  { %1422 = vperm.xlu0 %4495, %v1351_v1   ;;  %4500 = vset.pattern.permute.xlu1 %v4787_v6  ;;  %v4636_v21 = vpop.eup %4635  ;;  %v4181_v1 = vadd.s32 4294967295, %v244_v0  ;;  %vm292_vm10 = vcmp.eq.s32.totalorder %v4951_v31, %v4163_v37 }
 0x261   :  { %945 = vperm.xlu1 %4500, %v4614_v14   ;;  %v4638_v48 = vpop.eup %4637  ;;  %v304_v32 = vsel %vm292_vm10, 1.0, %v4783_v38 }
 0x262   :  { %vm625_vm11 = vcmp.eq.s32.totalorder %v4951_v31, %v4181_v1 }
 0x263   :  { %v637_v56 = vsel %vm625_vm11, 1.0, %v4783_v38 }
 0x264   :  { %4496 = vset.pattern.permute.xlu0 %v4787_v6  ;;  %v4640_v10 = vpop.eup %4639 }
 0x265   :  { %940 = vperm.xlu0 %4496, %v4616_v17   ;;  %4501 = vset.pattern.permute.xlu1 %v4788_v11  ;;  %v303_v17 = vsel %vm5255_vm6, 1.0, %v4783_v38  ;;  %vm1250_vm6 = vcmask 392448  }
 0x266   :  { %1091 = vperm.xlu1 %4501, %v4618_v49   ;;  %v4172_v49 = vadd.s32 4294967294, %v244_v0 }
 0x268   :  { %vm475_vm3 = vcmp.eq.s32.totalorder %v4951_v31, %v4172_v49 }
 0x269   :  { %4497 = vset.pattern.permute.xlu0 %v4788_v11 }
 0x26a   :  { %1086 = vperm.xlu0 %4497, %v4620_v35   ;;  %4502 = vset.pattern.permute.xlu1 %v4789_v44  ;;  %v487_v35 = vsel %vm475_vm3, 1.0, %v4783_v38 }
 0x26b   :  { %1237 = vperm.xlu1 %4502, %v4622_v2  }
 0x26e   :  { %4498 = vset.pattern.permute.xlu0 %v4789_v44 }
 0x26f   :  { %1232 = vperm.xlu0 %4498, %v4624_v23   ;;  %4503 = vset.pattern.permute.xlu1 %v4790_v52 }
 0x270   :  { %1383 = vperm.xlu1 %4503, %v4626_v8  }
 0x273   :  { %4499 = vset.pattern.permute.xlu0 %v4790_v52 }
 0x274   :  { %1378 = vperm.xlu0 %4499, %v4628_v55   ;;  %4504 = vset.pattern.permute.xlu1 %v4787_v6 }
 0x275   :  { %950 = vperm.xlu1 %4504, %v4630_v12  }
 0x277   :  { %v314_v47 = vpop.permute.xlu1 %313 }
 0x278   :  { %4508 = vset.pattern.permute.xlu0 %v4787_v6  ;;  %v4642_v6 = vpop.eup %4641 }
 0x279   :  { %955 = vperm.xlu0 %4508, %v4632_v26   ;;  %4505 = vset.pattern.permute.xlu1 %v4788_v11  ;;  %v4644_v51 = vpop.eup %4643 }
 0x27a   :  { %1096 = vperm.xlu1 %4505, %v4634_v19  }
 0x27b   :  { %v318_v50 = vpop.permute.xlu0 %317 }
 0x27d   :  { %4509 = vset.pattern.permute.xlu0 %v4788_v11 }
 0x27e   :  { %1101 = vperm.xlu0 %4509, %v4636_v21   ;;  %4506 = vset.pattern.permute.xlu1 %v4789_v44 }
 0x27f   :  { %1242 = vperm.xlu1 %4506, %v4638_v48   ;;  %v322_v11 = vpop.permute.xlu0 %321 }
 0x281   :  { %v316_v18 = vpop.permute.xlu1 %315 }
 0x282   :  { %4510 = vset.pattern.permute.xlu0 %v4789_v44  ;;  %v330_v14 = vsel %vm329_vm14, %v314_v47, %v316_v18 }
 0x283   :  { %1247 = vperm.xlu0 %4510, %v4640_v10   ;;  %4507 = vset.pattern.permute.xlu1 %v4790_v52  ;;  %v326_v44 = vpop.permute.xlu0 %325 }
 0x284   :  { %1388 = vperm.xlu1 %4507, %v4642_v6  }
 0x285   :  { %v320_v13 = vpop.permute.xlu1 %319 }
 0x286   :  { %v331_v36 = vsel %vm329_vm14, %v318_v50, %v320_v13 }
 0x287   :  { %4511 = vset.pattern.permute.xlu0 %v4790_v52 }
 0x288   :  { %1393 = vperm.xlu0 %4511, %v4644_v51  }
 0x289   :  { %v324_v4 = vpop.permute.xlu1 %323 }
 0x28a   :  { %v332_v42 = vsel %vm329_vm14, %v322_v11, %v324_v4 }
 0x28c   :  { %4512 = vset.pattern.permute.xlu0 %v4785_v46  ;;  %v4169_v46 = vadd.s32 4294967294, %v4925_v15 }
 0x28d   :  { %v328_v59 = vpop.permute.xlu1 %327 }
 0x28e   :  { %v333_v52 = vsel %vm329_vm14, %v326_v44, %v328_v59  ;;  %vm472_vm8 = vcmp.eq.s32.totalorder %v4951_v31, %v4169_v46  ;;  %v4168_v44 = vld [vmem:[%s6569_s4] ss:$0 sm:$0xff] }
 0x28f   :  { %4367 = vmatprep.subr.mxu1 %v333_v52  ;;  %4395 = vmatprep.subr.mxu0 %v333_v52  ;;  %vm480_vm12 = vmand %vm472_vm8, %vm476_vm9  ;;  %vm856_vm8 = vcmask 785408   ;;  %vm1526_vm9 = vcmask 516096  }
 0x290   :  { %4368 = vmatpush3.msra.mxu1 %v333_v52  ;;  %4396 = vmatpush3.msra.mxu0 %v333_v52  ;;  %v484_v5 = vsel %vm480_vm12, 1.0, %v4783_v38 }
 0x291   :  { %4369 = vmatprep.subr.mxu1 %v332_v42  ;;  %4397 = vmatprep.subr.mxu0 %v332_v42 }
 0x292   :  { %4370 = vmatpush3.msra.mxu1 %v332_v42  ;;  %4398 = vmatpush3.msra.mxu0 %v332_v42 }
 0x293   :  { %4371 = vmatprep.subr.mxu1 %v331_v36  ;;  %4399 = vmatprep.subr.mxu0 %v331_v36 }
 0x294   :  { %4372 = vmatpush3.msra.mxu1 %v331_v36  ;;  %4400 = vmatpush3.msra.mxu0 %v331_v36 }
 0x295   :  { %4373 = vmatprep.subr.mxu1 %v330_v14  ;;  %4401 = vmatprep.subr.mxu0 %v330_v14 }
 0x296   :  { %4374 = vmatpush3.msra.mxu1 %v330_v14  ;;  %4402 = vmatpush3.msra.mxu0 %v330_v14 }
 0x297   :  { %4376 = vmatmul.mubr.msk.f32.vlgmr.msra.gmra.mxu1 %vm64_vm0, %v302_v7  ;;  %4381 = vmatprep.subr.mxu1 %v333_v52 }
 0x298   :  { %4382 = vmatpush3.msra.mxu1 %v333_v52  ;;  %4404 = vmatmul.mubr.msk.f32.vlgmr.msra.gmra.mxu0 %vm64_vm0, %v635_v27 }
 0x299   :  { %4383 = vmatprep.subr.mxu1 %v332_v42  ;;  %4378 = vmatprep.mubr.msk.f32.mxu1 %vm64_vm0, %v303_v17  ;;  %v4177_v17 = vld [vmem:[%s6569_s4 + $0x1] ss:$0 sm:$0xff]  ;;  %s4791_s4 = smov 48  }
 0x29a   :  { %4384 = vmatpush3.msra.mxu1 %v332_v42  ;;  %4406 = vmatprep.mubr.msk.f32.mxu0 %vm64_vm0, %v636_v45 }
 0x29b   :  { %4385 = vmatprep.subr.mxu1 %v331_v36  ;;  %4379 = vmatmul.mubr.msk.f32.gmra.mxu1 %vm64_vm0, %v304_v32 }
 0x29c   :  { %4386 = vmatpush3.msra.mxu1 %v331_v36  ;;  %4407 = vmatmul.mubr.msk.f32.gmra.mxu0 %vm64_vm0, %v637_v56 }
 0x29d   :  { %4387 = vmatprep.subr.mxu1 %v330_v14  ;;  %4389 = vmatprep.mubr.msk.f32.mxu1 %vm64_vm0, %v484_v5 }
 0x29e   :  { %4388 = vmatpush3.msra.mxu1 %v330_v14 }
 0x29f   :  { %4390 = vmatmul.mubr.msk.f32.vlgmr.msra.gmra.mxu1 %vm64_vm0, %v485_v25 }
 0x2a0   :  { %4392 = vmatprep.mubr.msk.f32.mxu1 %vm64_vm0, %v486_v62 }
 0x2a3   :  { %4393 = vmatmul.mubr.msk.f32.gmra.mxu1 %vm64_vm0, %v487_v35 }
 0x2b4   :  { %v5295_v20 = vpop.permute.xlu1 %969 }
 0x2b8   :  { %v5297_v2 = vpop.permute.xlu0 %974 }
 0x2b9   :  { %v5299_v60 = vpop.permute.xlu1 %1115 }
 0x2bd   :  { %v5301_v16 = vpop.permute.xlu0 %1120 }
 0x2be   :  { %v5303_v22 = vpop.permute.xlu1 %1261 }
 0x2c2   :  { %v5305_v31 = vpop.permute.xlu0 %1266 }
 0x2c3   :  { %v5307_v23 = vpop.permute.xlu1 %1407 }
 0x2c7   :  { %v5309_v34 = vpop.permute.xlu0 %1412 }
 0x2c8   :  { %v5311_v8 = vpop.permute.xlu1 %979 }
 0x2cc   :  { %v5313_v38 = vpop.permute.xlu0 %984 }
 0x2cd   :  { %v5315_v53 = vpop.permute.xlu1 %1125 }
 0x2d1   :  { %v5317_v40 = vpop.permute.xlu0 %1130 }
 0x2d2   :  { %v5319_v61 = vpop.permute.xlu1 %1271 }
 0x2d6   :  { %v5321_v55 = vpop.permute.xlu0 %1276 }
 0x2d7   :  { %v5323_v12 = vpop.permute.xlu1 %1417 }
 0x2db   :  { %v5325_v41 = vpop.permute.xlu0 %1422 }
 0x2dc   :  { %v946_v26 = vpop.permute.xlu1 %945 }
 0x2dd   :  { %960 = vst.msk [vmem:[#allocation4 + $0x8] sm:$0xff] %vm958_vm4, %v946_v26 }
 0x2e0   :  { %v941_v19 = vpop.permute.xlu0 %940 }
 0x2e1   :  { %959 = vst.msk [vmem:[#allocation4] sm:$0xff] %vm958_vm4, %v941_v19  ;;  %v1092_v21 = vpop.permute.xlu1 %1091 }
 0x2e2   :  { %1106 = vst.msk [vmem:[#allocation4 + $0x8] sm:$0xff] %vm1104_vm5, %v1092_v21 }
 0x2e5   :  { %v1087_v47 = vpop.permute.xlu0 %1086 }
 0x2e6   :  { %1105 = vst.msk [vmem:[#allocation4] sm:$0xff] %vm1104_vm5, %v1087_v47  ;;  %v1238_v48 = vpop.permute.xlu1 %1237 }
 0x2e7   :  { %1252 = vst.msk [vmem:[#allocation4 + $0x8] sm:$0xff] %vm1250_vm6, %v1238_v48 }
 0x2ea   :  { %v1233_v18 = vpop.permute.xlu0 %1232 }
 0x2eb   :  { %1251 = vst.msk [vmem:[#allocation4] sm:$0xff] %vm1250_vm6, %v1233_v18  ;;  %v1384_v50 = vpop.permute.xlu1 %1383  ;;  %v4725_v18 = vld [vmem:[#allocation2 + $0x10] sm:$0xff] }
 0x2ec   :  { %1398 = vst.msk [vmem:[#allocation4 + $0x8] sm:$0xff] %vm1396_vm7, %v1384_v50  ;;  %v262_v50 = vmul.f32 %v4725_v18, %v5031_v24 }
 0x2ef   :  { %v1379_v10 = vpop.permute.xlu0 %1378 }
 0x2f0   :  { %1397 = vst.msk [vmem:[#allocation4] sm:$0xff] %vm1396_vm7, %v1379_v10  ;;  %v951_v6 = vpop.permute.xlu1 %950  ;;  %v4726_v10 = vld [vmem:[#allocation2 + $0x18] sm:$0xff] }
 0x2f1   :  { %961 = vst.msk [vmem:[#allocation4 + $0x10] sm:$0xff] %vm958_vm4, %v951_v6  ;;  %v263_v6 = vmul.f32 %v4726_v10, %v5031_v24 }
 0x2f4   :  { %v956_v13 = vpop.permute.xlu0 %955 }
 0x2f5   :  { %962 = vst.msk [vmem:[#allocation4 + $0x18] sm:$0xff] %vm958_vm4, %v956_v13  ;;  %v1097_v51 = vpop.permute.xlu1 %1096 }
 0x2f6   :  { %1107 = vst.msk [vmem:[#allocation4 + $0x10] sm:$0xff] %vm1104_vm5, %v1097_v51  ;;  %v4727_v51 = vld [vmem:[#allocation2] sm:$0xff] }
 0x2f9   :  { %v1102_v11 = vpop.permute.xlu0 %1101 }
 0x2fa   :  { %1108 = vst.msk [vmem:[#allocation4 + $0x18] sm:$0xff] %vm1104_vm5, %v1102_v11  ;;  %v1243_v54 = vpop.permute.xlu1 %1242  ;;  %v260_v11 = vmul.f32 %v4727_v51, %v5031_v24 }
 0x2fb   :  { %1253 = vst.msk [vmem:[#allocation4 + $0x10] sm:$0xff] %vm1250_vm6, %v1243_v54  ;;  %v4728_v54 = vld [vmem:[#allocation2 + $0x8] sm:$0xff] }
 0x2fe   :  { %v1248_v4 = vpop.permute.xlu0 %1247 }
 0x2ff   :  { %1254 = vst.msk [vmem:[#allocation4 + $0x18] sm:$0xff] %vm1250_vm6, %v1248_v4  ;;  %v1389_v43 = vpop.permute.xlu1 %1388  ;;  %v261_v4 = vmul.f32 %v4728_v54, %v5031_v24 }
 0x300   :  { %1399 = vst.msk [vmem:[#allocation4 + $0x10] sm:$0xff] %vm1396_vm7, %v1389_v43 }
 0x303   :  { %v1394_v58 = vpop.permute.xlu0 %1393 }
 0x304   :  { %1400 = vst.msk [vmem:[#allocation4 + $0x18] sm:$0xff] %vm1396_vm7, %v1394_v58  ;;  %v279_v58 = vadd.f32 %v4998_v63, %v262_v50 }
 0x357   :  { %v4377_v59 = vpop.f32.mrf.mxu1 }
 0x358   :  { %v441_v0 = vmul.f32 %v4377_v59, %v4168_v44  ;;  %v4405_v39 = vpop.f32.mrf.mxu0  ;;  %v4729_v59 = vld [vmem:[#allocation2 + $0x20] sm:$0xff] }
 0x359   :  { %v416_v52 = vpop.f32.mrf.mxu1  ;;  %v741_v42 = vmul.f32 %v4405_v39, %v4186_v28 }
 0x35a   :  { %v440_v33 = vmul.f32 %v4168_v44, %v416_v52  ;;  %450 = vrot.lane.b32.xlu1 %v441_v0, %s4780_s29  ;;  %v716_v46 = vpop.f32.mrf.mxu0  ;;  %v4730_v0 = vld [vmem:[#allocation2 + $0x30] sm:$0xff]  ;;  %v267_v52 = vmul.f32 %v5031_v24, %v5102_v57 }
 0x35b   :  { %v4380_v37 = vpop.f32.mrf.mxu1  ;;  %v740_v1 = vmul.f32 %v4186_v28, %v716_v46  ;;  %v266_v39 = vmul.f32 %v4730_v0, %v5031_v24  ;;  %v278_v46 = vadd.f32 %v4998_v63, %v261_v4 }
 0x35c   :  { %448 = vrot.lane.b32.xlu0 %v440_v33, %s4780_s29  ;;  %v443_v15 = vmul.f32 %v4380_v37, %v4168_v44  ;;  %v4408_v3 = vpop.f32.mrf.mxu0  ;;  %v284_v57 = vadd.f32 %v4998_v63, %v267_v52 }
 0x35d   :  { %v426_v36 = vpop.f32.mrf.mxu1  ;;  %v743_v27 = vmul.f32 %v4408_v3, %v4186_v28 }
 0x35e   :  { %750 = vrot.lane.b32.xlu1 %v741_v42, %s4780_s29  ;;  %v442_v7 = vmul.f32 %v4168_v44, %v426_v36  ;;  %v726_v9 = vpop.f32.mrf.mxu0  ;;  %v280_v44 = vadd.f32 %v4998_v63, %v263_v6  ;;  %v277_v42 = vadd.f32 %v4998_v63, %v260_v11 }
 0x35f   :  { %v4391_v14 = vpop.f32.mrf.mxu1  ;;  %v742_v56 = vmul.f32 %v4186_v28, %v726_v9  ;;  %v264_v28 = vmul.f32 %v4729_v59, %v5031_v24 }
 0x360   :  { %748 = vrot.lane.b32.xlu0 %v740_v1, %s4780_s29  ;;  %v591_v49 = vmul.f32 %v4391_v14, %v4177_v17  ;;  %v4731_v1 = vld [vmem:[#allocation2 + $0x28] sm:$0xff] }
 0x361   :  { %v566_v45 = vpop.f32.mrf.mxu1 }
 0x362   :  { %454 = vrot.lane.b32.xlu1 %v443_v15, %s4780_s29  ;;  %v590_v25 = vmul.f32 %v4177_v17, %v566_v45  ;;  %v265_v15 = vmul.f32 %v4731_v1, %v5031_v24  ;;  %v283_v45 = vadd.f32 %v4998_v63, %v266_v39 }
 0x363   :  { %v4394_v32 = vpop.f32.mrf.mxu1 }
 0x364   :  { %452 = vrot.lane.b32.xlu0 %v442_v7, %s4780_s29  ;;  %v593_v62 = vmul.f32 %v4394_v32, %v4177_v17  ;;  %v282_v24 = vadd.f32 %v4998_v63, %v265_v15 }
 0x365   :  { %v576_v5 = vpop.f32.mrf.mxu1 }
 0x366   :  { %754 = vrot.lane.b32.xlu1 %v743_v27, %s4780_s29  ;;  %v592_v35 = vmul.f32 %v4177_v17, %v576_v5  ;;  %v281_v17 = vadd.f32 %v4998_v63, %v264_v28 }
 0x368   :  { %752 = vrot.lane.b32.xlu0 %v742_v56, %s4780_s29 }
 0x36a   :  { %600 = vrot.lane.b32.xlu1 %v591_v49, %s4780_s29 }
 0x36c   :  { %598 = vrot.lane.b32.xlu0 %v590_v25, %s4780_s29 }
 0x36e   :  { %604 = vrot.lane.b32.xlu1 %v593_v62, %s4780_s29 }
 0x370   :  { %602 = vrot.lane.b32.xlu0 %v592_v35, %s4780_s29 }
 0x3cc   :  { %v451_v26 = vpop.permute.xlu1 %450 }
 0x3cd   :  { %v462_v37 = vadd.f32 %v451_v26, %v279_v58  ;;  %v463_v36 = vadd.f32 %v451_v26, %v280_v44 }
 0x3ce   :  { %v449_v19 = vpop.permute.xlu0 %448 }
 0x3cf   :  { %v460_v14 = vadd.f32 %v449_v19, %v277_v42  ;;  %v461_v7 = vadd.f32 %v449_v19, %v278_v46 }
 0x3d0   :  { %v751_v21 = vpop.permute.xlu1 %750 }
 0x3d2   :  { %v749_v47 = vpop.permute.xlu0 %748 }
 0x3d4   :  { %v455_v48 = vpop.permute.xlu1 %454 }
 0x3d5   :  { %v466_v62 = vadd.f32 %v455_v48, %v283_v45  ;;  %v467_v35 = vadd.f32 %v455_v48, %v284_v57 }
 0x3d6   :  { %v453_v13 = vpop.permute.xlu0 %452 }
 0x3d7   :  { %v464_v26 = vadd.f32 %v453_v13, %v281_v17  ;;  %v465_v51 = vadd.f32 %v453_v13, %v282_v24 }
 0x3d8   :  { %v755_v43 = vpop.permute.xlu1 %754 }
 0x3da   :  { %v753_v33 = vpop.permute.xlu0 %752 }
 0x3dc   :  { %v601_v3 = vpop.permute.xlu1 %600 }
 0x3dd   :  { %v612_v27 = vadd.f32 %v601_v3, %v462_v37  ;;  %v613_v9 = vadd.f32 %v601_v3, %v463_v36 }
 0x3de   :  { %v599_v32 = vpop.permute.xlu0 %598 }
 0x3df   :  { %v5380_v56 = vadd.f32 %v751_v21, %v612_v27  ;;  %v5382_v49 = vadd.f32 %v751_v21, %v613_v9  ;;  %v610_v5 = vadd.f32 %v599_v32, %v460_v14  ;;  %v611_v25 = vadd.f32 %v599_v32, %v461_v7 }
 0x3e0   :  { %v605_v19 = vpop.permute.xlu1 %604 }
 0x3e1   :  { %v4189_v18 = vmul.f32 -1.442695, %v5380_v56  ;;  %v4190_v50 = vmul.f32 -1.442695, %v5382_v49  ;;  %v760_v10 = vadd.f32 %v749_v47, %v610_v5  ;;  %v761_v6 = vadd.f32 %v749_v47, %v611_v25 }
 0x3e2   :  { %v616_v11 = vadd.f32 %v605_v19, %v466_v62  ;;  %v617_v54 = vadd.f32 %v605_v19, %v467_v35  ;;  %v603_v4 = vpop.permute.xlu0 %602 }
 0x3e3   :  { %4645 = vpow2.f32 %v4189_v18  ;;  %v4187_v21 = vmul.f32 -1.442695, %v760_v10  ;;  %v4188_v58 = vmul.f32 -1.442695, %v761_v6  ;;  %v614_v44 = vadd.f32 %v603_v4, %v464_v26 }
 0x3e4   :  { %4647 = vpow2.f32 %v4190_v50  ;;  %v766_v63 = vadd.f32 %v755_v43, %v616_v11  ;;  %v767_v59 = vadd.f32 %v755_v43, %v617_v54  ;;  %v615_v48 = vadd.f32 %v603_v4, %v465_v51 }
 0x3e5   :  { %4649 = vpow2.f32 %v4187_v21  ;;  %v764_v28 = vadd.f32 %v753_v33, %v614_v44 }
 0x3e6   :  { %4651 = vpow2.f32 %v4188_v58  ;;  %v4193_v0 = vmul.f32 -1.442695, %v766_v63  ;;  %v4194_v39 = vmul.f32 -1.442695, %v767_v59  ;;  %v765_v52 = vadd.f32 %v753_v33, %v615_v48 }
 0x3e7   :  { %v4191_v42 = vmul.f32 -1.442695, %v764_v28 }
 0x3e8   :  { %4653 = vpow2.f32 %v4193_v0  ;;  %v4192_v47 = vmul.f32 -1.442695, %v765_v52 }
 0x3e9   :  { %4655 = vpow2.f32 %v4194_v39 }
 0x3ea   :  { %4657 = vpow2.f32 %v4191_v42 }
 0x3eb   :  { %4659 = vpow2.f32 %v4192_v47  ;;  %v5408_v47 = vunpack.i.h.bf16 %v5043_v30 }
 0x3f0   :  { %v4646_v13 = vpop.eup %4645 }
 0x3f1   :  { %v4648_v46 = vpop.eup %4647  ;;  %v794_v37 = vadd.f32 1.0, %v4646_v13 }
 0x3f2   :  { %v4650_v36 = vpop.eup %4649  ;;  %v795_v1 = vadd.f32 1.0, %v4648_v46  ;;  %v5411_v46 = vunpack.i.h.bf16 %v5041_v29 }
 0x3f3   :  { %v4652_v15 = vpop.eup %4651  ;;  %4661 = vrcp.f32 %v794_v37  ;;  %v792_v43 = vadd.f32 1.0, %v4650_v36 }
 0x3f4   :  { %4663 = vrcp.f32 %v795_v1  ;;  %v793_v3 = vadd.f32 1.0, %v4652_v15 }
 0x3f5   :  { %v4654_v14 = vpop.eup %4653  ;;  %4665 = vrcp.f32 %v792_v43 }
 0x3f6   :  { %v4656_v7 = vpop.eup %4655  ;;  %4667 = vrcp.f32 %v793_v3  ;;  %v798_v33 = vadd.f32 1.0, %v4654_v14 }
 0x3f7   :  { %v4658_v27 = vpop.eup %4657  ;;  %v799_v9 = vadd.f32 1.0, %v4656_v7 }
 0x3f8   :  { %v4660_v17 = vpop.eup %4659  ;;  %4669 = vrcp.f32 %v798_v33  ;;  %v796_v45 = vadd.f32 1.0, %v4658_v27  ;;  %v5435_v27 = vunpack.i.l.bf16 %v5043_v30 }
 0x3f9   :  { %4671 = vrcp.f32 %v799_v9  ;;  %v797_v57 = vadd.f32 1.0, %v4660_v17 }
 0x3fa   :  { %4673 = vrcp.f32 %v796_v45 }
 0x3fb   :  { %4675 = vrcp.f32 %v797_v57 }
 0x400   :  { %v4662_v32 = vpop.eup %4661 }
 0x401   :  { %v4664_v5 = vpop.eup %4663  ;;  %v818_v25 = vmul.f32 %v4662_v32, %v5380_v56 }
 0x402   :  { %v4666_v24 = vpop.eup %4665  ;;  %v819_v62 = vmul.f32 %v4664_v5, %v5382_v49 }
 0x403   :  { %v4668_v35 = vpop.eup %4667  ;;  %836 = vrot.lane.b32.xlu0 %v818_v25, %s4780_s29  ;;  %v816_v26 = vmul.f32 %v4666_v24, %v760_v10 }
 0x404   :  { %838 = vrot.lane.b32.xlu1 %v819_v62, %s4780_s29  ;;  %v817_v18 = vmul.f32 %v4668_v35, %v761_v6 }
 0x405   :  { %v4670_v19 = vpop.eup %4669 }
 0x406   :  { %v4672_v50 = vpop.eup %4671  ;;  %v822_v51 = vmul.f32 %v4670_v19, %v766_v63 }
 0x407   :  { %832 = vrot.lane.b32.xlu0 %v816_v26, %s4780_s29  ;;  %v4674_v11 = vpop.eup %4673  ;;  %v823_v54 = vmul.f32 %v4672_v50, %v767_v59 }
 0x408   :  { %834 = vrot.lane.b32.xlu1 %v817_v18, %s4780_s29  ;;  %v4676_v56 = vpop.eup %4675  ;;  %v820_v49 = vmul.f32 %v4674_v11, %v764_v28 }
 0x409   :  { %v821_v4 = vmul.f32 %v4676_v56, %v765_v52 }
 0x40b   :  { %844 = vrot.lane.b32.xlu0 %v822_v51, %s4780_s29 }
 0x40c   :  { %846 = vrot.lane.b32.xlu1 %v823_v54, %s4780_s29 }
 0x40f   :  { %840 = vrot.lane.b32.xlu0 %v820_v49, %s4780_s29 }
 0x410   :  { %842 = vrot.lane.b32.xlu1 %v821_v4, %s4780_s29 }
 0x475   :  { %v837_v10 = vpop.permute.xlu0 %836 }
 0x476   :  { %v839_v6 = vpop.permute.xlu1 %838 }
 0x477   :  { %v849_v21 = vsel %vm329_vm14, %v837_v10, %v839_v6 }
 0x478   :  { %858 = vst.msk [vmem:[#allocation3 + $0x8] sm:$0xff] %vm856_vm8, %v849_v21 }
 0x479   :  { %v833_v58 = vpop.permute.xlu0 %832 }
 0x47a   :  { %v835_v44 = vpop.permute.xlu1 %834 }
 0x47b   :  { %v848_v63 = vsel %vm329_vm14, %v833_v58, %v835_v44 }
 0x47c   :  { %857 = vst.msk [vmem:[#allocation3] sm:$0xff] %vm856_vm8, %v848_v63 }
 0x47d   :  { %v845_v59 = vpop.permute.xlu0 %844 }
 0x47e   :  { %v847_v48 = vpop.permute.xlu1 %846 }
 0x47f   :  { %v964_v28 = vld [vmem:[#allocation3 + $0x8] sm:$0xff]  ;;  %v851_v0 = vsel %vm329_vm14, %v845_v59, %v847_v48 }
 0x480   :  { %v988_v39 = vmul.f32 %v5297_v2, %v964_v28  ;;  %v1134_v52 = vmul.f32 %v5301_v16, %v964_v28  ;;  %860 = vst.msk [vmem:[#allocation3 + $0x18] sm:$0xff] %vm856_vm8, %v851_v0  ;;  %v5405_v42 = vld [vmem:[#allocation3 + $0x8] ss:$0 sm:$0xff]  ;;  %v1280_v37 = vmul.f32 %v5305_v31, %v964_v28  ;;  %v5416_v2 = vunpack.i.l.bf16 %v5041_v29  ;;  %v4253_v6 = vld [vmem:[#allocation3 + $0x9] ss:$0 sm:$0xff] }
 0x481   :  { %v841_v13 = vpop.permute.xlu0 %840  ;;  %v1426_v16 = vmul.f32 %v5309_v34, %v964_v28  ;;  %v5423_v3 = vmul.f32 %v5408_v47, %v5405_v42  ;;  %v4259_v21 = vld [vmem:[#allocation3 + $0xa] ss:$0 sm:$0xff]  ;;  %v4265_v0 = vld [vmem:[#allocation3 + $0xb] ss:$0 sm:$0xff] }
 0x482   :  { %992 = vst.msk [vmem:[#allocation5 + $0x8] sm:$0xff] %vm958_vm4, %v988_v39  ;;  %v843_v36 = vpop.permute.xlu1 %842 }
 0x483   :  { %1138 = vst.msk [vmem:[#allocation5 + $0x8] sm:$0xff] %vm1104_vm5, %v1134_v52  ;;  %v963_v1 = vld [vmem:[#allocation3] sm:$0xff]  ;;  %v850_v15 = vsel %vm329_vm14, %v841_v13, %v843_v36 }
 0x484   :  { %v4199_v43 = vld [vmem:[#allocation3] ss:$0 sm:$0xff]  ;;  %1284 = vst.msk [vmem:[#allocation5 + $0x8] sm:$0xff] %vm1250_vm6, %v1280_v37  ;;  %v987_v31 = vmul.f32 %v5295_v20, %v963_v1  ;;  %v1133_v14 = vmul.f32 %v5299_v60, %v963_v1  ;;  %v1279_v7 = vmul.f32 %v5303_v22, %v963_v1  ;;  %v4205_v33 = vld [vmem:[#allocation3 + $0x1] ss:$0 sm:$0xff]  ;;  %v1425_v20 = vmul.f32 %v5307_v23, %v963_v1 }
 0x485   :  { %859 = vst.msk [vmem:[#allocation3 + $0x10] sm:$0xff] %vm856_vm8, %v850_v15  ;;  %v1463_v29 = vmul.f32 %v5411_v46, %v4199_v43  ;;  %v1462_v34 = vmul.f32 %v5416_v2, %v4199_v43  ;;  %v1597_v30 = vmul.f32 %v5416_v2, %v4205_v33  ;;  %v1484_v22 = vmul.f32 %v5435_v27, %v4199_v43  ;;  %v4211_v5 = vld [vmem:[#allocation3 + $0x2] ss:$0 sm:$0xff]  ;;  %v4235_v62 = vld [vmem:[#allocation3 + $0x6] ss:$0 sm:$0xff] }
 0x486   :  { %1430 = vst.msk [vmem:[#allocation5 + $0x8] sm:$0xff] %vm1396_vm7, %v1426_v16  ;;  %v1727_v24 = vmul.f32 %v5416_v2, %v4211_v5  ;;  %v5488_v50 = vmul.f32 %v5435_v27, %v4235_v62  ;;  %v5491_v51 = vmul.f32 %v5408_v47, %v4235_v62  ;;  %v1743_v11 = vmul.f32 %v5435_v27, %v4211_v5  ;;  %v4217_v4 = vld [vmem:[#allocation3 + $0x3] ss:$0 sm:$0xff]  ;;  %v4241_v10 = vld [vmem:[#allocation3 + $0x7] ss:$0 sm:$0xff] }
 0x487   :  { %991 = vst.msk [vmem:[#allocation5] sm:$0xff] %vm958_vm4, %v987_v31  ;;  %v966_v60 = vld [vmem:[#allocation3 + $0x18] sm:$0xff]  ;;  %1468 = vrot.lane.b32.xlu0 %v1463_v29, %s4780_s29  ;;  %1466 = vrot.lane.b32.xlu1 %v1462_v34, %s4780_s29  ;;  %v1614_v54 = vmul.f32 %v5408_v47, %v4205_v33  ;;  %v5503_v58 = vld [vmem:[#allocation3 + $0x4] ss:$0 sm:$0xff]  ;;  %v1857_v44 = vmul.f32 %v5416_v2, %v4217_v4 }
 0x488   :  { %1137 = vst.msk [vmem:[#allocation5] sm:$0xff] %vm1104_vm5, %v1133_v14  ;;  %v990_v9 = vmul.f32 %v5313_v38, %v966_v60  ;;  %v1136_v17 = vmul.f32 %v5317_v40, %v966_v60  ;;  %v1282_v23 = vmul.f32 %v5321_v55, %v966_v60  ;;  %v1428_v45 = vmul.f32 %v5325_v41, %v966_v60  ;;  %v4250_v28 = vld [vmem:[#allocation3 + $0x18] ss:$0 sm:$0xff]  ;;  %v4256_v52 = vld [vmem:[#allocation3 + $0x19] ss:$0 sm:$0xff] }
 0x489   :  { %1283 = vst.msk [vmem:[#allocation5] sm:$0xff] %vm1250_vm6, %v1279_v7  ;;  %v1613_v55 = vmul.f32 %v5435_v27, %v4205_v33  ;;  %v1485_v41 = vmul.f32 %v5408_v47, %v4199_v43  ;;  %v1728_v63 = vmul.f32 %v5411_v46, %v4211_v5  ;;  %v1873_v59 = vmul.f32 %v5435_v27, %v4217_v4  ;;  %v4262_v13 = vld [vmem:[#allocation3 + $0x1a] ss:$0 sm:$0xff]  ;;  %v4268_v37 = vld [vmem:[#allocation3 + $0x1b] ss:$0 sm:$0xff] }
 0x48a   :  { %1429 = vst.msk [vmem:[#allocation5] sm:$0xff] %vm1396_vm7, %v1425_v20  ;;  %v1744_v39 = vmul.f32 %v5408_v47, %v4211_v5  ;;  %v5510_v36 = vmul.f32 %v5408_v47, %v4241_v10  ;;  %v5513_v16 = vmul.f32 %v5408_v47, %v4253_v6  ;;  %v5516_v1 = vmul.f32 %v5408_v47, %v4259_v21  ;;  %v4271_v14 = vld [vmem:[#allocation3 + $0xc] ss:$0 sm:$0xff]  ;;  %v4274_v29 = vld [vmem:[#allocation3 + $0x1c] ss:$0 sm:$0xff] }
 0x48b   :  { %994 = vst.msk [vmem:[#allocation5 + $0x18] sm:$0xff] %vm958_vm4, %v990_v9  ;;  %1601 = vrot.lane.b32.xlu0 %v1597_v30, %s4780_s29  ;;  %1488 = vrot.lane.b32.xlu1 %v1484_v22, %s4791_s4  ;;  %v1987_v15 = vmul.f32 %v5416_v2, %v5503_v58  ;;  %v1858_v43 = vmul.f32 %v5411_v46, %v4217_v4  ;;  %v4277_v7 = vld [vmem:[#allocation3 + $0xd] ss:$0 sm:$0xff]  ;;  %v4286_v20 = vld [vmem:[#allocation3 + $0x1e] ss:$0 sm:$0xff] }
 0x48c   :  { %1140 = vst.msk [vmem:[#allocation5 + $0x18] sm:$0xff] %vm1104_vm5, %v1136_v17  ;;  %v965_v57 = vld [vmem:[#allocation3 + $0x10] sm:$0xff]  ;;  %v2003_v31 = vmul.f32 %v5435_v27, %v5503_v58  ;;  %v1874_v34 = vmul.f32 %v5408_v47, %v4217_v4  ;;  %v5530_v9 = vmul.f32 %v5408_v47, %v4250_v28  ;;  %v5533_v17 = vmul.f32 %v5411_v46, %v4253_v6  ;;  %v4283_v30 = vld [vmem:[#allocation3 + $0xe] ss:$0 sm:$0xff]  ;;  %v4292_v22 = vld [vmem:[#allocation3 + $0x1f] ss:$0 sm:$0xff] }
 0x48d   :  { %1286 = vst.msk [vmem:[#allocation5 + $0x18] sm:$0xff] %vm1250_vm6, %v1282_v23  ;;  %v989_v38 = vmul.f32 %v5311_v8, %v965_v57  ;;  %v1135_v40 = vmul.f32 %v5315_v53, %v965_v57  ;;  %v1281_v32 = vmul.f32 %v5319_v61, %v965_v57  ;;  %v1427_v25 = vmul.f32 %v5323_v12, %v965_v57  ;;  %v5465_v8 = vld [vmem:[#allocation3 + $0x5] ss:$0 sm:$0xff]  ;;  %v4232_v53 = vld [vmem:[#allocation3 + $0x15] ss:$0 sm:$0xff] }
 0x48e   :  { %1432 = vst.msk [vmem:[#allocation5 + $0x18] sm:$0xff] %vm1396_vm7, %v1428_v45  ;;  %v1598_v61 = vmul.f32 %v5411_v46, %v4205_v33  ;;  %v5473_v35 = vmul.f32 %v5435_v27, %v5465_v8  ;;  %v5477_v12 = vmul.f32 %v5408_v47, %v5465_v8  ;;  %v4238_v26 = vld [vmem:[#allocation3 + $0x16] ss:$0 sm:$0xff]  ;;  %v5482_v19 = vmul.f32 %v5435_v27, %v4232_v53  ;;  %v4244_v48 = vld [vmem:[#allocation3 + $0x17] ss:$0 sm:$0xff] }
 0x48f   :  { %993 = vst.msk [vmem:[#allocation5 + $0x10] sm:$0xff] %vm958_vm4, %v989_v38  ;;  %1617 = vrot.lane.b32.xlu0 %v1613_v55, %s4791_s4  ;;  %1490 = vrot.lane.b32.xlu1 %v1485_v41, %s4791_s4  ;;  %v5485_v18 = vmul.f32 %v5408_v47, %v4232_v53  ;;  %v5496_v56 = vmul.f32 %v5435_v27, %v4238_v26  ;;  %v4280_v33 = vld [vmem:[#allocation3 + $0x1d] ss:$0 sm:$0xff] }
 0x490   :  { %1139 = vst.msk [vmem:[#allocation5 + $0x10] sm:$0xff] %vm1104_vm5, %v1135_v40  ;;  %v5499_v49 = vmul.f32 %v5408_v47, %v4238_v26  ;;  %v5527_v60 = vmul.f32 %v5408_v47, %v4244_v48  ;;  %v5536_v23 = vmul.f32 %v5408_v47, %v4256_v52  ;;  %v5539_v45 = vmul.f32 %v5416_v2, %v4265_v0  ;;  %v4289_v40 = vld [vmem:[#allocation3 + $0xf] ss:$0 sm:$0xff] }
 0x491   :  { %1285 = vst.msk [vmem:[#allocation5 + $0x10] sm:$0xff] %vm1250_vm6, %v1281_v32  ;;  %v5542_v57 = vmul.f32 %v5408_v47, %v4262_v13  ;;  %v5545_v38 = vmul.f32 %v5416_v2, %v4268_v37  ;;  %v5548_v55 = vmul.f32 %v5408_v47, %v4268_v37  ;;  %v5551_v41 = vmul.f32 %v5416_v2, %v4271_v14 }
 0x492   :  { %1431 = vst.msk [vmem:[#allocation5 + $0x10] sm:$0xff] %vm1396_vm7, %v1427_v25  ;;  %v5554_v32 = vmul.f32 %v5408_v47, %v4274_v29  ;;  %v5557_v5 = vmul.f32 %v5416_v2, %v4274_v29  ;;  %v5562_v25 = vmul.f32 %v5408_v47, %v4280_v33  ;;  %v5565_v53 = vmul.f32 %v5416_v2, %v4277_v7 }
 0x493   :  { %1731 = vrot.lane.b32.xlu0 %v1727_v24, %s4780_s29  ;;  %1603 = vrot.lane.b32.xlu1 %v1598_v61, %s4780_s29  ;;  %v5568_v24 = vmul.f32 %v5408_v47, %v4286_v20  ;;  %v5571_v61 = vmul.f32 %v5416_v2, %v4280_v33  ;;  %v5574_v62 = vmul.f32 %v5408_v47, %v4292_v22 }
 0x494   :  { %v5577_v26 = vmul.f32 %v5416_v2, %v4283_v30  ;;  %v5586_v4 = vmul.f32 %v5416_v2, %v4292_v22 }
 0x497   :  { %1747 = vrot.lane.b32.xlu0 %v1743_v11, %s4791_s4  ;;  %1619 = vrot.lane.b32.xlu1 %v1614_v54, %s4791_s4  ;;  %v5580_v11 = vmul.f32 %v5416_v2, %v4286_v20  ;;  %v5583_v54 = vmul.f32 %v5416_v2, %v4289_v40 }
 0x499   :  { %6590 = vst [vmem:[#allocation11_spill] sm:$0xff] %v5580_v11  ;;  %6591 = vst [vmem:[#allocation12_spill] sm:$0xff] %v5583_v54  ;;  %v5602_v11 = vmul.f32 %v5435_v27, %v4265_v0  ;;  %v5605_v54 = vmul.f32 %v5435_v27, %v4271_v14  ;;  %v5622_v0 = vmul.f32 %v5435_v27, %v4250_v28 }
 0x49a   :  { %v5625_v14 = vmul.f32 %v5435_v27, %v4256_v52  ;;  %v5643_v28 = vmul.f32 %v5435_v27, %v4292_v22  ;;  %v2117_v52 = vmul.f32 %v5416_v2, %v5465_v8 }
 0x49b   :  { %1861 = vrot.lane.b32.xlu0 %v1857_v44, %s4780_s29  ;;  %1733 = vrot.lane.b32.xlu1 %v1728_v63, %s4780_s29  ;;  %v5589_v44 = vmul.f32 %v5435_v27, %v4241_v10  ;;  %v5593_v63 = vmul.f32 %v5435_v27, %v5405_v42  ;;  %6594 = vst [vmem:[#allocation15_spill] sm:$0xff] %v5602_v11  ;;  %6595 = vst [vmem:[#allocation16_spill] sm:$0xff] %v5605_v54 }
 0x49c   :  { %v5610_v10 = vmul.f32 %v5435_v27, %v4277_v7  ;;  %v5613_v42 = vmul.f32 %v5435_v27, %v4283_v30  ;;  %6600 = vst [vmem:[#allocation21_spill] sm:$0xff] %v5622_v0  ;;  %6601 = vst [vmem:[#allocation22_spill] sm:$0xff] %v5625_v14  ;;  %v5634_v7 = vmul.f32 %v5435_v27, %v4274_v29 }
 0x49d   :  { %v5637_v30 = vmul.f32 %v5435_v27, %v4280_v33  ;;  %6607 = vst [vmem:[#allocation28_spill] sm:$0xff] %v5643_v28  ;;  %v2004_v33 = vmul.f32 %v5408_v47, %v5503_v58 }
 0x49e   :  { %6596 = vst [vmem:[#allocation17_spill] sm:$0xff] %v5610_v10  ;;  %6597 = vst [vmem:[#allocation18_spill] sm:$0xff] %v5613_v42 }
 0x49f   :  { %1877 = vrot.lane.b32.xlu0 %v1873_v59, %s4791_s4  ;;  %1749 = vrot.lane.b32.xlu1 %v1744_v39, %s4791_s4  ;;  %v5596_v59 = vmul.f32 %v5435_v27, %v4253_v6  ;;  %v5599_v39 = vmul.f32 %v5435_v27, %v4259_v21  ;;  %v5616_v6 = vmul.f32 %v5435_v27, %v4289_v40 }
 0x4a0   :  { %v5619_v21 = vmul.f32 %v5435_v27, %v4244_v48  ;;  %6604 = vst [vmem:[#allocation25_spill] sm:$0xff] %v5634_v7  ;;  %6605 = vst [vmem:[#allocation26_spill] sm:$0xff] %v5637_v30  ;;  %v5640_v48 = vmul.f32 %v5435_v27, %v4286_v20  ;;  %v4208_v20 = vld [vmem:[#allocation3 + $0x11] ss:$0 sm:$0xff] }
 0x4a1   :  { %6592 = vst [vmem:[#allocation13_spill] sm:$0xff] %v5596_v59  ;;  %6593 = vst [vmem:[#allocation14_spill] sm:$0xff] %v5599_v39  ;;  %v1662_v22 = vmul.f32 %v5416_v2, %v4208_v20  ;;  %v4221_v39 = vld [vmem:[#allocation4 + $0x13] ss:$0 sm:$0xff] }
 0x4a2   :  { %6598 = vst [vmem:[#allocation19_spill] sm:$0xff] %v5616_v6  ;;  %6599 = vst [vmem:[#allocation20_spill] sm:$0xff] %v5619_v21  ;;  %v4213_v21 = vld [vmem:[#allocation5 + $0x2] ss:$0 sm:$0xff] }
 0x4a3   :  { %1991 = vrot.lane.b32.xlu0 %v1987_v15, %s4780_s29  ;;  %1863 = vrot.lane.b32.xlu1 %v1858_v43, %s4780_s29  ;;  %v5628_v15 = vmul.f32 %v5435_v27, %v4262_v13  ;;  %v5631_v43 = vmul.f32 %v5435_v27, %v4268_v37  ;;  %6606 = vst [vmem:[#allocation27_spill] sm:$0xff] %v5640_v48  ;;  %v4202_v37 = vld [vmem:[#allocation3 + $0x10] ss:$0 sm:$0xff] }
 0x4a4   :  { %v1988_v13 = vmul.f32 %v5411_v46, %v5503_v58  ;;  %v1533_v29 = vmul.f32 %v5416_v2, %v4202_v37  ;;  %v1534_v40 = vmul.f32 %v5411_v46, %v4202_v37  ;;  %v1678_v58 = vmul.f32 %v5435_v27, %v4208_v20 }
 0x4a5   :  { %6602 = vst [vmem:[#allocation23_spill] sm:$0xff] %v5628_v15  ;;  %6603 = vst [vmem:[#allocation24_spill] sm:$0xff] %v5631_v43 }
 0x4a7   :  { %2007 = vrot.lane.b32.xlu0 %v2003_v31, %s4791_s4  ;;  %1879 = vrot.lane.b32.xlu1 %v1874_v34, %s4791_s4  ;;  %v1549_v31 = vmul.f32 %v5435_v27, %v4202_v37  ;;  %v2118_v34 = vmul.f32 %v5411_v46, %v5465_v8 }
 0x4ab   :  { %2121 = vrot.lane.b32.xlu0 %v2117_v52, %s4780_s29  ;;  %1993 = vrot.lane.b32.xlu1 %v1988_v13, %s4780_s29  ;;  %v1550_v52 = vmul.f32 %v5408_v47, %v4202_v37  ;;  %v4214_v13 = vld [vmem:[#allocation3 + $0x12] ss:$0 sm:$0xff] }
 0x4ac   :  { %v1792_v8 = vmul.f32 %v5416_v2, %v4214_v13 }
 0x4af   :  { %1537 = vrot.lane.b32.xlu0 %v1533_v29, %s4780_s29  ;;  %2009 = vrot.lane.b32.xlu1 %v2004_v33, %s4791_s4  ;;  %v1663_v29 = vmul.f32 %v5411_v46, %v4208_v20  ;;  %v1808_v33 = vmul.f32 %v5435_v27, %v4214_v13 }
 0x4b3   :  { %1553 = vrot.lane.b32.xlu0 %v1549_v31, %s4791_s4  ;;  %2123 = vrot.lane.b32.xlu1 %v2118_v34, %s4780_s29  ;;  %v1679_v31 = vmul.f32 %v5408_v47, %v4208_v20  ;;  %v4220_v34 = vld [vmem:[#allocation3 + $0x13] ss:$0 sm:$0xff] }
 0x4b4   :  { %v1922_v37 = vmul.f32 %v5416_v2, %v4220_v34 }
 0x4b7   :  { %1666 = vrot.lane.b32.xlu0 %v1662_v22, %s4780_s29  ;;  %1539 = vrot.lane.b32.xlu1 %v1534_v40, %s4780_s29  ;;  %v1793_v22 = vmul.f32 %v5411_v46, %v4214_v13  ;;  %v1938_v40 = vmul.f32 %v5435_v27, %v4220_v34 }
 0x4bb   :  { %1682 = vrot.lane.b32.xlu0 %v1678_v58, %s4791_s4  ;;  %1555 = vrot.lane.b32.xlu1 %v1550_v52, %s4791_s4  ;;  %v1809_v58 = vmul.f32 %v5408_v47, %v4214_v13  ;;  %v4226_v52 = vld [vmem:[#allocation3 + $0x14] ss:$0 sm:$0xff] }
 0x4bc   :  { %v2052_v20 = vmul.f32 %v5416_v2, %v4226_v52  ;;  %v2053_v13 = vmul.f32 %v5411_v46, %v4226_v52 }
 0x4bf   :  { %1796 = vrot.lane.b32.xlu0 %v1792_v8, %s4780_s29  ;;  %1668 = vrot.lane.b32.xlu1 %v1663_v29, %s4780_s29  ;;  %v1923_v8 = vmul.f32 %v5411_v46, %v4220_v34  ;;  %v2068_v29 = vmul.f32 %v5435_v27, %v4226_v52 }
 0x4c3   :  { %1812 = vrot.lane.b32.xlu0 %v1808_v33, %s4791_s4  ;;  %1684 = vrot.lane.b32.xlu1 %v1679_v31, %s4791_s4  ;;  %v1939_v33 = vmul.f32 %v5408_v47, %v4220_v34  ;;  %v2069_v31 = vmul.f32 %v5408_v47, %v4226_v52 }
 0x4c7   :  { %1926 = vrot.lane.b32.xlu0 %v1922_v37, %s4780_s29  ;;  %1798 = vrot.lane.b32.xlu1 %v1793_v22, %s4780_s29 }
 0x4cb   :  { %1942 = vrot.lane.b32.xlu0 %v1938_v40, %s4791_s4  ;;  %1814 = vrot.lane.b32.xlu1 %v1809_v58, %s4791_s4 }
 0x4cf   :  { %2056 = vrot.lane.b32.xlu0 %v2052_v20, %s4780_s29  ;;  %1928 = vrot.lane.b32.xlu1 %v1923_v8, %s4780_s29 }
 0x4d3   :  { %2072 = vrot.lane.b32.xlu0 %v2068_v29, %s4791_s4  ;;  %1944 = vrot.lane.b32.xlu1 %v1939_v33, %s4791_s4 }
 0x4d7   :  { %2058 = vrot.lane.b32.xlu1 %v2053_v13, %s4780_s29 }
 0x4db   :  { %2074 = vrot.lane.b32.xlu1 %v2069_v31, %s4791_s4 }
 0x4f9   :  { %v1469_v37 = vpop.permute.xlu0 %1468  ;;  %v1467_v22 = vpop.permute.xlu1 %1466 }
 0x4fa   :  { %v1475_v40 = vsel %vm958_vm4, %v1469_v37, 0.0  ;;  %v1472_v34 = vsel %vm958_vm4, %v1467_v22, 0.0 }
 0x4fb   :  { %1476 = vadd.xlane.f32.xlu0 %v1475_v40 }
 0x4fd   :  { %v1602_v27 = vpop.permute.xlu0 %1601  ;;  %v1489_v58 = vpop.permute.xlu1 %1488 }
 0x4fe   :  { %v1494_v20 = vsel %vm958_vm4, %v1489_v58, 0.0  ;;  %v1607_v33 = vsel %vm958_vm4, %v1602_v27, 0.0 }
 0x4ff   :  { %1473 = vadd.xlane.f32.xlu1 %v1472_v34  ;;  %1495 = vadd.xlane.f32.xlu0 %v1494_v20 }
 0x501   :  { %v1618_v8 = vpop.permute.xlu0 %1617  ;;  %v1491_v29 = vpop.permute.xlu1 %1490 }
 0x502   :  { %v1497_v52 = vsel %vm958_vm4, %v1491_v29, 0.0  ;;  %v1623_v37 = vsel %vm958_vm4, %v1618_v8, 0.0 }
 0x503   :  { %1608 = vadd.xlane.f32.xlu0 %v1607_v33  ;;  %1498 = vadd.xlane.f32.xlu1 %v1497_v52 }
 0x505   :  { %v1732_v13 = vpop.permute.xlu0 %1731  ;;  %v1604_v31 = vpop.permute.xlu1 %1603 }
 0x506   :  { %v1610_v40 = vsel %vm958_vm4, %v1604_v31, 0.0  ;;  %v1737_v34 = vsel %vm958_vm4, %v1732_v13, 0.0 }
 0x507   :  { %1624 = vadd.xlane.f32.xlu0 %v1623_v37  ;;  %1611 = vadd.xlane.f32.xlu1 %v1610_v40 }
 0x509   :  { %v1748_v22 = vpop.permute.xlu0 %1747  ;;  %v1620_v58 = vpop.permute.xlu1 %1619 }
 0x50a   :  { %v1626_v20 = vsel %vm958_vm4, %v1620_v58, 0.0  ;;  %v1753_v33 = vsel %vm958_vm4, %v1748_v22, 0.0 }
 0x50b   :  { %1738 = vadd.xlane.f32.xlu0 %v1737_v34  ;;  %1627 = vadd.xlane.f32.xlu1 %v1626_v20 }
 0x50d   :  { %v1862_v27 = vpop.permute.xlu0 %1861  ;;  %v1734_v29 = vpop.permute.xlu1 %1733 }
 0x50e   :  { %v1740_v52 = vsel %vm958_vm4, %v1734_v29, 0.0  ;;  %v1867_v37 = vsel %vm958_vm4, %v1862_v27, 0.0 }
 0x50f   :  { %1754 = vadd.xlane.f32.xlu0 %v1753_v33  ;;  %1741 = vadd.xlane.f32.xlu1 %v1740_v52 }
 0x511   :  { %v1878_v8 = vpop.permute.xlu0 %1877  ;;  %v1750_v31 = vpop.permute.xlu1 %1749 }
 0x512   :  { %v1756_v40 = vsel %vm958_vm4, %v1750_v31, 0.0  ;;  %v1883_v34 = vsel %vm958_vm4, %v1878_v8, 0.0 }
 0x513   :  { %1868 = vadd.xlane.f32.xlu0 %v1867_v37  ;;  %1757 = vadd.xlane.f32.xlu1 %v1756_v40 }
 0x515   :  { %v1992_v13 = vpop.permute.xlu0 %1991  ;;  %v1864_v58 = vpop.permute.xlu1 %1863 }
 0x516   :  { %v1870_v20 = vsel %vm958_vm4, %v1864_v58, 0.0  ;;  %v1997_v33 = vsel %vm958_vm4, %v1992_v13, 0.0 }
 0x517   :  { %1884 = vadd.xlane.f32.xlu0 %v1883_v34  ;;  %1871 = vadd.xlane.f32.xlu1 %v1870_v20 }
 0x519   :  { %v2008_v22 = vpop.permute.xlu0 %2007  ;;  %v1880_v29 = vpop.permute.xlu1 %1879 }
 0x51a   :  { %v1886_v52 = vsel %vm958_vm4, %v1880_v29, 0.0  ;;  %v2013_v37 = vsel %vm958_vm4, %v2008_v22, 0.0 }
 0x51b   :  { %1998 = vadd.xlane.f32.xlu0 %v1997_v33  ;;  %1887 = vadd.xlane.f32.xlu1 %v1886_v52 }
 0x51d   :  { %v5716_v27 = vpop.permute.xlu0 %2121  ;;  %v1994_v31 = vpop.permute.xlu1 %1993 }
 0x51e   :  { %v2000_v40 = vsel %vm958_vm4, %v1994_v31, 0.0 }
 0x51f   :  { %2014 = vadd.xlane.f32.xlu0 %v2013_v37  ;;  %2001 = vadd.xlane.f32.xlu1 %v2000_v40 }
 0x521   :  { %v1538_v8 = vpop.permute.xlu0 %1537  ;;  %v2010_v58 = vpop.permute.xlu1 %2009 }
 0x522   :  { %v1543_v34 = vsel %vm958_vm4, %v1538_v8, 0.0  ;;  %v2016_v20 = vsel %vm958_vm4, %v2010_v58, 0.0 }
 0x523   :  { %1544 = vadd.xlane.f32.xlu0 %v1543_v34  ;;  %2017 = vadd.xlane.f32.xlu1 %v2016_v20 }
 0x525   :  { %v1554_v13 = vpop.permute.xlu0 %1553  ;;  %v2124_v29 = vpop.permute.xlu1 %2123 }
 0x526   :  { %v1559_v33 = vsel %vm958_vm4, %v1554_v13, 0.0 }
 0x527   :  { %1560 = vadd.xlane.f32.xlu0 %v1559_v33 }
 0x529   :  { %v1667_v52 = vpop.permute.xlu0 %1666  ;;  %v1540_v28 = vpop.permute.xlu1 %1539 }
 0x52a   :  { %v1672_v22 = vsel %vm958_vm4, %v1667_v52, 0.0  ;;  %v1546_v31 = vsel %vm958_vm4, %v1540_v28, 0.0 }
 0x52b   :  { %1673 = vadd.xlane.f32.xlu0 %v1672_v22  ;;  %1547 = vadd.xlane.f32.xlu1 %v1546_v31 }
 0x52d   :  { %v1683_v37 = vpop.permute.xlu0 %1682  ;;  %v1556_v40 = vpop.permute.xlu1 %1555 }
 0x52e   :  { %v1688_v8 = vsel %vm958_vm4, %v1683_v37, 0.0  ;;  %v1562_v58 = vsel %vm958_vm4, %v1556_v40, 0.0 }
 0x52f   :  { %1689 = vadd.xlane.f32.xlu0 %v1688_v8  ;;  %1563 = vadd.xlane.f32.xlu1 %v1562_v58 }
 0x531   :  { %v1797_v34 = vpop.permute.xlu0 %1796  ;;  %v1669_v20 = vpop.permute.xlu1 %1668 }
 0x532   :  { %v1802_v13 = vsel %vm958_vm4, %v1797_v34, 0.0  ;;  %v1675_v33 = vsel %vm958_vm4, %v1669_v20, 0.0 }
 0x533   :  { %1803 = vadd.xlane.f32.xlu0 %v1802_v13  ;;  %1676 = vadd.xlane.f32.xlu1 %v1675_v33 }
 0x535   :  { %v1813_v52 = vpop.permute.xlu0 %1812  ;;  %v1685_v28 = vpop.permute.xlu1 %1684 }
 0x536   :  { %v1818_v22 = vsel %vm958_vm4, %v1813_v52, 0.0  ;;  %v1691_v31 = vsel %vm958_vm4, %v1685_v28, 0.0 }
 0x537   :  { %1819 = vadd.xlane.f32.xlu0 %v1818_v22  ;;  %1692 = vadd.xlane.f32.xlu1 %v1691_v31 }
 0x539   :  { %v1927_v37 = vpop.permute.xlu0 %1926  ;;  %v1799_v40 = vpop.permute.xlu1 %1798 }
 0x53a   :  { %v1932_v8 = vsel %vm958_vm4, %v1927_v37, 0.0  ;;  %v1805_v58 = vsel %vm958_vm4, %v1799_v40, 0.0 }
 0x53b   :  { %1933 = vadd.xlane.f32.xlu0 %v1932_v8  ;;  %1806 = vadd.xlane.f32.xlu1 %v1805_v58 }
 0x53d   :  { %v1943_v34 = vpop.permute.xlu0 %1942  ;;  %v1815_v20 = vpop.permute.xlu1 %1814 }
 0x53e   :  { %v1948_v13 = vsel %vm958_vm4, %v1943_v34, 0.0  ;;  %v1821_v33 = vsel %vm958_vm4, %v1815_v20, 0.0  ;;  %v2127_v20 = vsel %vm958_vm4, %v5716_v27, 0.0  ;;  %v4200_v27 = vld [vmem:[#allocation4] ss:$0 sm:$0xff] }
 0x53f   :  { %1949 = vadd.xlane.f32.xlu0 %v1948_v13  ;;  %1822 = vadd.xlane.f32.xlu1 %v1821_v33 }
 0x541   :  { %v2057_v52 = vpop.permute.xlu0 %2056  ;;  %v1929_v28 = vpop.permute.xlu1 %1928 }
 0x542   :  { %v2062_v22 = vsel %vm958_vm4, %v2057_v52, 0.0  ;;  %v1935_v31 = vsel %vm958_vm4, %v1929_v28, 0.0  ;;  %v2130_v28 = vsel %vm958_vm4, %v2124_v29, 0.0 }
 0x543   :  { %2063 = vadd.xlane.f32.xlu0 %v2062_v22  ;;  %1936 = vadd.xlane.f32.xlu1 %v1935_v31  ;;  %v4201_v31 = vld [vmem:[#allocation5] ss:$0 sm:$0xff] }
 0x545   :  { %v2073_v37 = vpop.permute.xlu0 %2072  ;;  %v1945_v40 = vpop.permute.xlu1 %1944 }
 0x546   :  { %v2078_v8 = vsel %vm958_vm4, %v2073_v37, 0.0  ;;  %v1951_v58 = vsel %vm958_vm4, %v1945_v40, 0.0 }
 0x547   :  { %2079 = vadd.xlane.f32.xlu0 %v2078_v8  ;;  %1952 = vadd.xlane.f32.xlu1 %v1951_v58  ;;  %v1505_v58 = vmul.f32 0.0, %v4200_v27 }
 0x549   :  { %v2059_v34 = vpop.permute.xlu1 %2058 }
 0x54a   :  { %v2065_v13 = vsel %vm958_vm4, %v2059_v34, 0.0 }
 0x54b   :  { %2128 = vadd.xlane.f32.xlu0 %v2127_v20  ;;  %2066 = vadd.xlane.f32.xlu1 %v2065_v13 }
 0x54d   :  { %v2075_v33 = vpop.permute.xlu1 %2074 }
 0x54e   :  { %v2081_v52 = vsel %vm958_vm4, %v2075_v33, 0.0  ;;  %v4207_v33 = vld [vmem:[#allocation5 + $0x1] ss:$0 sm:$0xff] }
 0x54f   :  { %2082 = vadd.xlane.f32.xlu1 %v2081_v52 }
 0x553   :  { %2131 = vadd.xlane.f32.xlu1 %v2130_v28  ;;  %v4206_v28 = vld [vmem:[#allocation4 + $0x1] ss:$0 sm:$0xff] }
 0x561   :  { %2137 = vrot.lane.b32.xlu0 %v5473_v35, %s4791_s4 }
 0x564   :  { %2139 = vrot.lane.b32.xlu1 %v5477_v12, %s4791_s4 }
 0x584   :  { %v1477_v22 = vpop.xlane.xlu0 %1476 }
 0x585   :  { %v1512_v37 = vmul.f32 %v4201_v31, %v1477_v22 }
 0x587   :  { %v1514_v13 = vadd.f32 %v1512_v37, %v1505_v58 }
 0x588   :  { %v1496_v40 = vpop.xlane.xlu0 %1495  ;;  %v1474_v8 = vpop.xlane.xlu1 %1473 }
 0x589   :  { %v1511_v34 = vmul.f32 %v4201_v31, %v1474_v8  ;;  %v1635_v31 = vmul.f32 %v4206_v28, %v1514_v13 }
 0x58b   :  { %v1513_v20 = vadd.f32 %v1511_v34, %v1505_v58 }
 0x58c   :  { %v1609_v52 = vpop.xlane.xlu0 %1608  ;;  %v1499_v29 = vpop.xlane.xlu1 %1498 }
 0x58d   :  { %v1515_v48 = vmul.f32 %v1513_v20, %v1496_v40  ;;  %v1641_v30 = vmul.f32 %v4207_v33, %v1609_v52  ;;  %v1516_v35 = vmul.f32 %v1514_v13, %v1499_v29  ;;  %v1634_v7 = vmul.f32 %v4206_v28, %v1513_v20  ;;  %v4212_v52 = vld [vmem:[#allocation4 + $0x2] ss:$0 sm:$0xff] }
 0x58f   :  { %v1517_v12 = vsel %vm329_vm14, %v1515_v48, 0.0  ;;  %v1518_v43 = vsel %vm329_vm14, %v1516_v35, 0.0  ;;  %v1643_v15 = vadd.f32 %v1641_v30, %v1634_v7 }
 0x590   :  { %v1519_v22 = vadd.f32 %v1518_v43, %v1517_v12  ;;  %v1625_v14 = vpop.xlane.xlu0 %1624  ;;  %v1612_v0 = vpop.xlane.xlu1 %1611 }
 0x591   :  { %v1642_v27 = vmul.f32 %v4207_v33, %v1612_v0  ;;  %v1645_v37 = vmul.f32 %v1643_v15, %v1625_v14  ;;  %v1764_v42 = vmul.f32 %v4212_v52, %v1643_v15  ;;  %v4219_v15 = vld [vmem:[#allocation5 + $0x3] ss:$0 sm:$0xff] }
 0x592   :  { %v1520_v8 = vrot.slane %v1519_v22, 4 }
 0x593   :  { %v1644_v58 = vadd.f32 %v1642_v27, %v1635_v31  ;;  %v1647_v35 = vsel %vm329_vm14, %v1645_v37, 0.0  ;;  %v4218_v37 = vld [vmem:[#allocation4 + $0x3] ss:$0 sm:$0xff] }
 0x594   :  { %v1521_v34 = vadd.f32 %v1520_v8, %v1519_v22  ;;  %v1739_v6 = vpop.xlane.xlu0 %1738  ;;  %v1628_v40 = vpop.xlane.xlu1 %1627 }
 0x595   :  { %v1771_v29 = vmul.f32 %v4213_v21, %v1739_v6  ;;  %v1646_v20 = vmul.f32 %v1644_v58, %v1628_v40  ;;  %v1765_v28 = vmul.f32 %v4212_v52, %v1644_v58 }
 0x596   :  { %v1522_v48 = vrot.slane %v1521_v34, 2 }
 0x597   :  { %v1648_v43 = vsel %vm329_vm14, %v1646_v20, 0.0  ;;  %v1773_v7 = vadd.f32 %v1771_v29, %v1764_v42 }
 0x598   :  { %v1523_v30 = vadd.f32 %v1522_v48, %v1521_v34  ;;  %v1649_v0 = vadd.f32 %v1648_v43, %v1647_v35  ;;  %v1755_v13 = vpop.xlane.xlu0 %1754  ;;  %v1742_v33 = vpop.xlane.xlu1 %1741 }
 0x599   :  { %v1772_v14 = vmul.f32 %v4213_v21, %v1742_v33  ;;  %v1775_v27 = vmul.f32 %v1773_v7, %v1755_v13  ;;  %v1894_v42 = vmul.f32 %v4218_v37, %v1773_v7 }
 0x59a   :  { %v1524_v12 = vrot.slane %v1523_v30, 1  ;;  %v1650_v22 = vrot.slane %v1649_v0, 4 }
 0x59b   :  { %v1774_v31 = vadd.f32 %v1772_v14, %v1765_v28  ;;  %v1777_v21 = vsel %vm329_vm14, %v1775_v27, 0.0 }
 0x59c   :  { %v1525_v6 = vadd.f32 %v1524_v12, %v1523_v30  ;;  %v1651_v8 = vadd.f32 %v1650_v22, %v1649_v0  ;;  %v1869_v40 = vpop.xlane.xlu0 %1868  ;;  %v1758_v10 = vpop.xlane.xlu1 %1757  ;;  %v4225_v12 = vld [vmem:[#allocation5 + $0x4] ss:$0 sm:$0xff] }
 0x59d   :  { %v1901_v54 = vmul.f32 %v4219_v15, %v1869_v40  ;;  %v1776_v20 = vmul.f32 %v1774_v31, %v1758_v10  ;;  %v1895_v0 = vmul.f32 %v4218_v37, %v1774_v31  ;;  %v4224_v40 = vld [vmem:[#allocation4 + $0x4] ss:$0 sm:$0xff] }
 0x59e   :  { %1527 = vst.msk [vmem:[#allocation7] sm:$0x1] %vm1526_vm9, %v1525_v6  ;;  %v1652_v34 = vrot.slane %v1651_v8, 2 }
 0x59f   :  { %v1778_v58 = vsel %vm329_vm14, %v1776_v20, 0.0  ;;  %v1903_v52 = vadd.f32 %v1901_v54, %v1894_v42 }
 0x5a0   :  { %v1653_v29 = vadd.f32 %v1652_v34, %v1651_v8  ;;  %v1779_v48 = vadd.f32 %v1778_v58, %v1777_v21  ;;  %v1885_v35 = vpop.xlane.xlu0 %1884  ;;  %v1872_v43 = vpop.xlane.xlu1 %1871 }
 0x5a1   :  { %v1902_v30 = vmul.f32 %v4219_v15, %v1872_v43  ;;  %v1905_v14 = vmul.f32 %v1903_v52, %v1885_v35  ;;  %v2024_v20 = vmul.f32 %v4224_v40, %v1903_v52 }
 0x5a2   :  { %v1654_v13 = vrot.slane %v1653_v29, 1  ;;  %v1780_v33 = vrot.slane %v1779_v48, 4 }
 0x5a3   :  { %v1904_v28 = vadd.f32 %v1902_v30, %v1895_v0  ;;  %v1907_v8 = vsel %vm329_vm14, %v1905_v14, 0.0 }
 0x5a4   :  { %v1655_v10 = vadd.f32 %v1654_v13, %v1653_v29  ;;  %v1781_v7 = vadd.f32 %v1780_v33, %v1779_v48  ;;  %v1999_v22 = vpop.xlane.xlu0 %1998  ;;  %v1888_v6 = vpop.xlane.xlu1 %1887 }
 0x5a5   :  { %v2031_v27 = vmul.f32 %v4225_v12, %v1999_v22  ;;  %v1906_v11 = vmul.f32 %v1904_v28, %v1888_v6  ;;  %v2025_v29 = vmul.f32 %v4224_v40, %v1904_v28 }
 0x5a6   :  { %1656 = vst.msk [vmem:[#allocation7 + $0x1] sm:$0x1] %vm1526_vm9, %v1655_v10  ;;  %v1782_v54 = vrot.slane %v1781_v7, 2  ;;  %v4204_v10 = vld [vmem:[#allocation5 + $0x10] ss:$0 sm:$0xff] }
 0x5a7   :  { %v1908_v31 = vsel %vm329_vm14, %v1906_v11, 0.0  ;;  %v5758_v15 = vadd.f32 %v2031_v27, %v2024_v20 }
 0x5a8   :  { %v1783_v37 = vadd.f32 %v1782_v54, %v1781_v7  ;;  %v1909_v42 = vadd.f32 %v1908_v31, %v1907_v8  ;;  %v2015_v34 = vpop.xlane.xlu0 %2014  ;;  %v2002_v21 = vpop.xlane.xlu1 %2001  ;;  %v4203_v7 = vld [vmem:[#allocation4 + $0x10] ss:$0 sm:$0xff] }
 0x5a9   :  { %v2032_v58 = vmul.f32 %v4225_v12, %v2002_v21  ;;  %v2035_v43 = vmul.f32 %v5758_v15, %v2015_v34  ;;  %v1570_v20 = vmul.f32 0.0, %v4203_v7 }
 0x5aa   :  { %v1784_v48 = vrot.slane %v1783_v37, 1  ;;  %v1910_v35 = vrot.slane %v1909_v42, 4 }
 0x5ab   :  { %v5761_v52 = vadd.f32 %v2032_v58, %v2025_v29  ;;  %v2037_v12 = vsel %vm329_vm14, %v2035_v43, 0.0 }
 0x5ac   :  { %v1785_v30 = vadd.f32 %v1784_v48, %v1783_v37  ;;  %v1911_v0 = vadd.f32 %v1910_v35, %v1909_v42  ;;  %v1545_v13 = vpop.xlane.xlu0 %1544  ;;  %v2018_v33 = vpop.xlane.xlu1 %2017  ;;  %v4210_v48 = vld [vmem:[#allocation5 + $0x11] ss:$0 sm:$0xff] }
 0x5ad   :  { %v2036_v11 = vmul.f32 %v5761_v52, %v2018_v33  ;;  %v1576_v28 = vmul.f32 %v4204_v10, %v1545_v13 }
 0x5ae   :  { %1786 = vst.msk [vmem:[#allocation7 + $0x2] sm:$0x1] %vm1526_vm9, %v1785_v30  ;;  %v1912_v14 = vrot.slane %v1911_v0, 2 }
 0x5af   :  { %v2038_v22 = vsel %vm329_vm14, %v2036_v11, 0.0  ;;  %v1578_v31 = vadd.f32 %v1576_v28, %v1570_v20 }
 0x5b0   :  { %v1913_v6 = vadd.f32 %v1912_v14, %v1911_v0  ;;  %v2039_v40 = vadd.f32 %v2038_v22, %v2037_v12  ;;  %v1561_v27 = vpop.xlane.xlu0 %1560  ;;  %v4209_v0 = vld [vmem:[#allocation4 + $0x11] ss:$0 sm:$0xff] }
 0x5b1   :  { %v1580_v35 = vmul.f32 %v1578_v31, %v1561_v27  ;;  %v1699_v14 = vmul.f32 %v4209_v0, %v1578_v31 }
 0x5b2   :  { %v1914_v54 = vrot.slane %v1913_v6, 1  ;;  %v2040_v8 = vrot.slane %v2039_v40, 4 }
 0x5b3   :  { %v1582_v28 = vsel %vm329_vm14, %v1580_v35, 0.0 }
 0x5b4   :  { %v1915_v37 = vadd.f32 %v1914_v54, %v1913_v6  ;;  %v2041_v42 = vadd.f32 %v2040_v8, %v2039_v40  ;;  %v1674_v34 = vpop.xlane.xlu0 %1673  ;;  %v1548_v21 = vpop.xlane.xlu1 %1547 }
 0x5b5   :  { %v1577_v58 = vmul.f32 %v4204_v10, %v1548_v21  ;;  %v1706_v43 = vmul.f32 %v4210_v48, %v1674_v34 }
 0x5b6   :  { %1916 = vst.msk [vmem:[#allocation7 + $0x3] sm:$0x1] %vm1526_vm9, %v1915_v37  ;;  %v2042_v29 = vrot.slane %v2041_v42, 2 }
 0x5b7   :  { %v1579_v30 = vadd.f32 %v1577_v58, %v1570_v20  ;;  %v1708_v22 = vadd.f32 %v1706_v43, %v1699_v14 }
 0x5b8   :  { %v2043_v13 = vadd.f32 %v2042_v29, %v2041_v42  ;;  %v1690_v33 = vpop.xlane.xlu0 %1689  ;;  %v1564_v11 = vpop.xlane.xlu1 %1563  ;;  %v4216_v42 = vld [vmem:[#allocation5 + $0x12] ss:$0 sm:$0xff] }
 0x5b9   :  { %v1581_v7 = vmul.f32 %v1579_v30, %v1564_v11  ;;  %v1700_v27 = vmul.f32 %v4209_v0, %v1579_v30  ;;  %v1710_v34 = vmul.f32 %v1708_v22, %v1690_v33  ;;  %v4215_v29 = vld [vmem:[#allocation4 + $0x12] ss:$0 sm:$0xff] }
 0x5ba   :  { %v2044_v12 = vrot.slane %v2043_v13, 1  ;;  %v1829_v43 = vmul.f32 %v4215_v29, %v1708_v22 }
 0x5bb   :  { %v1583_v6 = vsel %vm329_vm14, %v1581_v7, 0.0 }
 0x5bc   :  { %v2045_v10 = vadd.f32 %v2044_v12, %v2043_v13  ;;  %v1584_v40 = vadd.f32 %v1583_v6, %v1582_v28  ;;  %v1804_v54 = vpop.xlane.xlu0 %1803  ;;  %v1677_v8 = vpop.xlane.xlu1 %1676  ;;  %v1712_v13 = vsel %vm329_vm14, %v1710_v34, 0.0 }
 0x5bd   :  { %v1707_v37 = vmul.f32 %v4210_v48, %v1677_v8  ;;  %v1836_v21 = vmul.f32 %v4216_v42, %v1804_v54 }
 0x5be   :  { %2046 = vst.msk [vmem:[#allocation7 + $0x4] sm:$0x1] %vm1526_vm9, %v2045_v10  ;;  %v1585_v20 = vrot.slane %v1584_v40, 4 }
 0x5bf   :  { %v1709_v31 = vadd.f32 %v1707_v37, %v1700_v27  ;;  %v1838_v12 = vadd.f32 %v1836_v21, %v1829_v43 }
 0x5c0   :  { %v1586_v58 = vadd.f32 %v1585_v20, %v1584_v40  ;;  %v1820_v11 = vpop.xlane.xlu0 %1819  ;;  %v1693_v35 = vpop.xlane.xlu1 %1692  ;;  %v4222_v40 = vld [vmem:[#allocation5 + $0x13] ss:$0 sm:$0xff] }
 0x5c1   :  { %v1711_v14 = vmul.f32 %v1709_v31, %v1693_v35  ;;  %v1830_v33 = vmul.f32 %v4215_v29, %v1709_v31  ;;  %v1840_v37 = vmul.f32 %v1838_v12, %v1820_v11  ;;  %v1959_v21 = vmul.f32 %v4221_v39, %v1838_v12 }
 0x5c2   :  { %v1587_v7 = vrot.slane %v1586_v58, 2 }
 0x5c3   :  { %v1713_v48 = vsel %vm329_vm14, %v1711_v14, 0.0  ;;  %v1842_v14 = vsel %vm329_vm14, %v1840_v37, 0.0 }
 0x5c4   :  { %v1588_v30 = vadd.f32 %v1587_v7, %v1586_v58  ;;  %v1714_v0 = vadd.f32 %v1713_v48, %v1712_v13  ;;  %v1934_v28 = vpop.xlane.xlu0 %1933  ;;  %v1807_v6 = vpop.xlane.xlu1 %1806 }
 0x5c5   :  { %v1837_v10 = vmul.f32 %v4216_v42, %v1807_v6  ;;  %v1966_v27 = vmul.f32 %v4222_v40, %v1934_v28  ;;  %v4228_v6 = vld [vmem:[#allocation5 + $0x14] ss:$0 sm:$0xff] }
 0x5c6   :  { %v1589_v54 = vrot.slane %v1588_v30, 1  ;;  %v1715_v8 = vrot.slane %v1714_v0, 4 }
 0x5c7   :  { %v1839_v20 = vadd.f32 %v1837_v10, %v1830_v33  ;;  %v1968_v42 = vadd.f32 %v1966_v27, %v1959_v21 }
 0x5c8   :  { %v1590_v22 = vadd.f32 %v1589_v54, %v1588_v30  ;;  %v1716_v35 = vadd.f32 %v1715_v8, %v1714_v0  ;;  %v1950_v59 = vpop.xlane.xlu0 %1949  ;;  %v1823_v34 = vpop.xlane.xlu1 %1822 }
 0x5c9   :  { %v1841_v43 = vmul.f32 %v1839_v20, %v1823_v34  ;;  %v1960_v30 = vmul.f32 %v4221_v39, %v1839_v20  ;;  %v1970_v10 = vmul.f32 %v1968_v42, %v1950_v59 }
 0x5ca   :  { %1591 = vst.msk [vmem:[#allocation7 + $0x10] sm:$0x1] %vm1526_vm9, %v1590_v22  ;;  %v1717_v58 = vrot.slane %v1716_v35, 2  ;;  %v4227_v22 = vld [vmem:[#allocation4 + $0x14] ss:$0 sm:$0xff] }
 0x5cb   :  { %v1843_v31 = vsel %vm329_vm14, %v1841_v43, 0.0  ;;  %v2089_v27 = vmul.f32 %v4227_v22, %v1968_v42  ;;  %v1972_v43 = vsel %vm329_vm14, %v1970_v10, 0.0 }
 0x5cc   :  { %v1718_v29 = vadd.f32 %v1717_v58, %v1716_v35  ;;  %v1844_v7 = vadd.f32 %v1843_v31, %v1842_v14  ;;  %v2064_v11 = vpop.xlane.xlu0 %2063  ;;  %v1937_v13 = vpop.xlane.xlu1 %1936 }
 0x5cd   :  { %v1967_v48 = vmul.f32 %v4222_v40, %v1937_v13  ;;  %v2096_v12 = vmul.f32 %v4228_v6, %v2064_v11 }
 0x5ce   :  { %v1719_v0 = vrot.slane %v1718_v29, 1  ;;  %v1845_v28 = vrot.slane %v1844_v7, 4 }
 0x5cf   :  { %v1969_v33 = vadd.f32 %v1967_v48, %v1960_v30  ;;  %v5778_v40 = vadd.f32 %v2096_v12, %v2089_v27 }
 0x5d0   :  { %v1720_v54 = vadd.f32 %v1719_v0, %v1718_v29  ;;  %v1846_v8 = vadd.f32 %v1845_v28, %v1844_v7  ;;  %v2080_v34 = vpop.xlane.xlu0 %2079  ;;  %v1953_v37 = vpop.xlane.xlu1 %1952 }
 0x5d1   :  { %v1971_v21 = vmul.f32 %v1969_v33, %v1953_v37  ;;  %v2090_v29 = vmul.f32 %v4227_v22, %v1969_v33  ;;  %v2100_v42 = vmul.f32 %v5778_v40, %v2080_v34 }
 0x5d2   :  { %1721 = vst.msk [vmem:[#allocation7 + $0x11] sm:$0x1] %vm1526_vm9, %v1720_v54  ;;  %v1847_v35 = vrot.slane %v1846_v8, 2 }
 0x5d3   :  { %v1973_v39 = vsel %vm329_vm14, %v1971_v21, 0.0 }
 0x5d4   :  { %v1848_v20 = vadd.f32 %v1847_v35, %v1846_v8  ;;  %v1974_v59 = vadd.f32 %v1973_v39, %v1972_v43  ;;  %v2129_v58 = vpop.xlane.xlu0 %2128  ;;  %v2067_v14 = vpop.xlane.xlu1 %2066 }
 0x5d5   :  { %v2097_v31 = vmul.f32 %v4228_v6, %v2067_v14  ;;  %v2102_v6 = vsel %vm329_vm14, %v2100_v42, 0.0  ;;  %v4231_v42 = vld [vmem:[#allocation5 + $0x5] ss:$0 sm:$0xff] }
 0x5d6   :  { %v1849_v7 = vrot.slane %v1848_v20, 1  ;;  %v1975_v11 = vrot.slane %v1974_v59, 4 }
 0x5d7   :  { %v5782_v13 = vadd.f32 %v2097_v31, %v2090_v29  ;;  %v4732_v29 = vld [vmem:[#allocation3 + $0x15] ss:$0 sm:$0xff] }
 0x5d8   :  { %v1850_v48 = vadd.f32 %v1849_v7, %v1848_v20  ;;  %v1976_v30 = vadd.f32 %v1975_v11, %v1974_v59  ;;  %v2138_v0 = vpop.permute.xlu0 %2137  ;;  %v2083_v28 = vpop.xlane.xlu1 %2082  ;;  %v2182_v7 = vmul.f32 %v4732_v29, %v5416_v2  ;;  %v2183_v11 = vmul.f32 %v4732_v29, %v5411_v46 }
 0x5d9   :  { %v2101_v10 = vmul.f32 %v5782_v13, %v2083_v28  ;;  %v2143_v12 = vsel %vm958_vm4, %v2138_v0, 0.0  ;;  %v4230_v0 = vld [vmem:[#allocation4 + $0x5] ss:$0 sm:$0xff] }
 0x5da   :  { %1851 = vst.msk [vmem:[#allocation7 + $0x12] sm:$0x1] %vm1526_vm9, %v1850_v48  ;;  %v1977_v54 = vrot.slane %v1976_v30, 2  ;;  %2144 = vadd.xlane.f32.xlu0 %v2143_v12 }
 0x5db   :  { %v2103_v33 = vsel %vm329_vm14, %v2101_v10, 0.0  ;;  %v2154_v10 = vmul.f32 %v4230_v0, %v5758_v15 }
 0x5dc   :  { %v1978_v8 = vadd.f32 %v1977_v54, %v1976_v30  ;;  %v2104_v22 = vadd.f32 %v2103_v33, %v2102_v6  ;;  %v2132_v34 = vpop.xlane.xlu1 %2131  ;;  %v2161_v30 = vmul.f32 %v4231_v42, %v2129_v58  ;;  %v2155_v33 = vmul.f32 %v4230_v0, %v5761_v52 }
 0x5dd   :  { %v2162_v28 = vmul.f32 %v4231_v42, %v2132_v34 }
 0x5de   :  { %v1979_v37 = vrot.slane %v1978_v8, 1  ;;  %v2105_v27 = vrot.slane %v2104_v22, 4  ;;  %v5797_v54 = vadd.f32 %v2161_v30, %v2154_v10  ;;  %v4733_v30 = vld [vmem:[#allocation3 + $0x6] ss:$0 sm:$0xff] }
 0x5df   :  { %v2247_v0 = vmul.f32 %v4733_v30, %v5416_v2 }
 0x5e0   :  { %v1980_v21 = vadd.f32 %v1979_v37, %v1978_v8  ;;  %v2106_v35 = vadd.f32 %v2105_v27, %v2104_v22  ;;  %v2140_v43 = vpop.permute.xlu1 %2139  ;;  %v5802_v22 = vadd.f32 %v2162_v28, %v2155_v33 }
 0x5e1   :  { %v2146_v39 = vsel %vm958_vm4, %v2140_v43, 0.0 }
 0x5e2   :  { %1981 = vst.msk [vmem:[#allocation7 + $0x13] sm:$0x1] %vm1526_vm9, %v1980_v21  ;;  %v2107_v20 = vrot.slane %v2106_v35, 2  ;;  %2147 = vadd.xlane.f32.xlu1 %v2146_v39 }
 0x5e4   :  { %v2108_v59 = vadd.f32 %v2107_v20, %v2106_v35 }
 0x5e6   :  { %v2109_v14 = vrot.slane %v2108_v59, 1 }
 0x5e8   :  { %v2110_v31 = vadd.f32 %v2109_v14, %v2108_v59 }
 0x5ea   :  { %2111 = vst.msk [vmem:[#allocation7 + $0x14] sm:$0x1] %vm1526_vm9, %v2110_v31 }
 0x5f0   :  { %2186 = vrot.lane.b32.xlu0 %v2182_v7, %s4780_s29 }
 0x5f3   :  { %2188 = vrot.lane.b32.xlu1 %v2183_v11, %s4780_s29 }
 0x663   :  { %v2145_v48 = vpop.xlane.xlu0 %2144 }
 0x664   :  { %v2165_v8 = vmul.f32 %v5797_v54, %v2145_v48 }
 0x666   :  { %v2167_v58 = vsel %vm329_vm14, %v2165_v8, 0.0 }
 0x667   :  { %v2187_v12 = vpop.permute.xlu0 %2186 }
 0x668   :  { %v2192_v6 = vsel %vm958_vm4, %v2187_v12, 0.0  ;;  %v4233_v12 = vld [vmem:[#allocation4 + $0x15] ss:$0 sm:$0xff] }
 0x669   :  { %2193 = vadd.xlane.f32.xlu0 %v2192_v6  ;;  %v2219_v33 = vmul.f32 %v4233_v12, %v5778_v40 }
 0x66b   :  { %v2148_v37 = vpop.xlane.xlu1 %2147 }
 0x66c   :  { %v2166_v27 = vmul.f32 %v5802_v22, %v2148_v37 }
 0x66e   :  { %v2168_v34 = vsel %vm329_vm14, %v2166_v27, 0.0 }
 0x66f   :  { %v2169_v15 = vadd.f32 %v2168_v34, %v2167_v58  ;;  %v2189_v21 = vpop.permute.xlu1 %2188  ;;  %v2220_v58 = vmul.f32 %v4233_v12, %v5782_v13 }
 0x670   :  { %v2195_v35 = vsel %vm958_vm4, %v2189_v21, 0.0 }
 0x671   :  { %v2170_v43 = vrot.slane %v2169_v15, 4  ;;  %2196 = vadd.xlane.f32.xlu1 %v2195_v35 }
 0x673   :  { %v2171_v39 = vadd.f32 %v2170_v43, %v2169_v15 }
 0x675   :  { %v2172_v52 = vrot.slane %v2171_v39, 2 }
 0x677   :  { %v2173_v20 = vadd.f32 %v2172_v52, %v2171_v39 }
 0x679   :  { %v2174_v59 = vrot.slane %v2173_v20, 1 }
 0x67b   :  { %v2175_v14 = vadd.f32 %v2174_v59, %v2173_v20 }
 0x67d   :  { %2176 = vst.msk [vmem:[#allocation7 + $0x5] sm:$0x1] %vm1526_vm9, %v2175_v14 }
 0x67f   :  { %2202 = vrot.lane.b32.xlu0 %v5482_v19, %s4791_s4  ;;  %v2248_v19 = vmul.f32 %v4733_v30, %v5411_v46 }
 0x682   :  { %2204 = vrot.lane.b32.xlu1 %v5485_v18, %s4791_s4  ;;  %v4234_v18 = vld [vmem:[#allocation5 + $0x15] ss:$0 sm:$0xff] }
 0x6f2   :  { %v2194_v31 = vpop.xlane.xlu0 %2193 }
 0x6f3   :  { %v2226_v10 = vmul.f32 %v4234_v18, %v2194_v31 }
 0x6f5   :  { %v5820_v37 = vadd.f32 %v2226_v10, %v2219_v33 }
 0x6f6   :  { %v2203_v29 = vpop.permute.xlu0 %2202 }
 0x6f7   :  { %v2208_v7 = vsel %vm958_vm4, %v2203_v29, 0.0 }
 0x6f8   :  { %2209 = vadd.xlane.f32.xlu0 %v2208_v7 }
 0x6fa   :  { %v2197_v11 = vpop.xlane.xlu1 %2196 }
 0x6fb   :  { %v2227_v6 = vmul.f32 %v4234_v18, %v2197_v11  ;;  %v4734_v18 = vld [vmem:[#allocation3 + $0x16] ss:$0 sm:$0xff] }
 0x6fd   :  { %v5825_v15 = vadd.f32 %v2227_v6, %v2220_v58  ;;  %v4236_v6 = vld [vmem:[#allocation4 + $0x6] ss:$0 sm:$0xff] }
 0x6fe   :  { %v2205_v42 = vpop.permute.xlu1 %2204 }
 0x6ff   :  { %v2211_v48 = vsel %vm958_vm4, %v2205_v42, 0.0 }
 0x700   :  { %2212 = vadd.xlane.f32.xlu1 %v2211_v48 }
 0x70e   :  { %2251 = vrot.lane.b32.xlu0 %v2247_v0, %s4780_s29 }
 0x711   :  { %2253 = vrot.lane.b32.xlu1 %v2248_v19, %s4780_s29 }
 0x781   :  { %v2210_v28 = vpop.xlane.xlu0 %2209 }
 0x782   :  { %v2230_v34 = vmul.f32 %v5820_v37, %v2210_v28  ;;  %v2312_v28 = vmul.f32 %v4734_v18, %v5416_v2 }
 0x784   :  { %v2232_v43 = vsel %vm329_vm14, %v2230_v34, 0.0 }
 0x785   :  { %v2252_v8 = vpop.permute.xlu0 %2251 }
 0x786   :  { %v2257_v27 = vsel %vm958_vm4, %v2252_v8, 0.0  ;;  %v2284_v8 = vmul.f32 %v4236_v6, %v5797_v54 }
 0x787   :  { %2258 = vadd.xlane.f32.xlu0 %v2257_v27 }
 0x789   :  { %v2213_v21 = vpop.xlane.xlu1 %2212 }
 0x78a   :  { %v2231_v35 = vmul.f32 %v5825_v15, %v2213_v21  ;;  %v2285_v21 = vmul.f32 %v4236_v6, %v5802_v22 }
 0x78c   :  { %v2233_v39 = vsel %vm329_vm14, %v2231_v35, 0.0 }
 0x78d   :  { %v2234_v40 = vadd.f32 %v2233_v39, %v2232_v43  ;;  %v2254_v52 = vpop.permute.xlu1 %2253 }
 0x78e   :  { %v2260_v20 = vsel %vm958_vm4, %v2254_v52, 0.0 }
 0x78f   :  { %v2235_v59 = vrot.slane %v2234_v40, 4  ;;  %2261 = vadd.xlane.f32.xlu1 %v2260_v20 }
 0x791   :  { %v2236_v14 = vadd.f32 %v2235_v59, %v2234_v40 }
 0x793   :  { %v2237_v13 = vrot.slane %v2236_v14, 2 }
 0x795   :  { %v2238_v31 = vadd.f32 %v2237_v13, %v2236_v14 }
 0x797   :  { %v2239_v29 = vrot.slane %v2238_v31, 1 }
 0x799   :  { %v2240_v7 = vadd.f32 %v2239_v29, %v2238_v31 }
 0x79b   :  { %2241 = vst.msk [vmem:[#allocation7 + $0x15] sm:$0x1] %vm1526_vm9, %v2240_v7 }
 0x79d   :  { %2267 = vrot.lane.b32.xlu0 %v5488_v50, %s4791_s4  ;;  %v2313_v50 = vmul.f32 %v4734_v18, %v5411_v46 }
 0x7a0   :  { %2269 = vrot.lane.b32.xlu1 %v5491_v51, %s4791_s4  ;;  %v4237_v51 = vld [vmem:[#allocation5 + $0x6] ss:$0 sm:$0xff] }
 0x810   :  { %v2259_v11 = vpop.xlane.xlu0 %2258 }
 0x811   :  { %v2291_v12 = vmul.f32 %v4237_v51, %v2259_v11 }
 0x813   :  { %v5843_v58 = vadd.f32 %v2291_v12, %v2284_v8  ;;  %v4737_v12 = vld [vmem:[#allocation3 + $0x8] ss:$0 sm:$0xff]  ;;  %v4738_v8 = vld [vmem:[#allocation3 + $0x18] ss:$0 sm:$0xff] }
 0x814   :  { %v2268_v42 = vpop.permute.xlu0 %2267  ;;  %v2507_v6 = vmul.f32 %v4737_v12, %v5416_v2 }
 0x815   :  { %v2273_v48 = vsel %vm958_vm4, %v2268_v42, 0.0 }
 0x816   :  { %2274 = vadd.xlane.f32.xlu0 %v2273_v48 }
 0x818   :  { %v2262_v30 = vpop.xlane.xlu1 %2261 }
 0x819   :  { %v2292_v33 = vmul.f32 %v4237_v51, %v2262_v30 }
 0x81b   :  { %v5848_v43 = vadd.f32 %v2292_v33, %v2285_v21  ;;  %v2508_v33 = vmul.f32 %v4737_v12, %v5411_v46  ;;  %v4739_v21 = vld [vmem:[#allocation3 + $0x9] ss:$0 sm:$0xff] }
 0x81c   :  { %v2270_v0 = vpop.permute.xlu1 %2269 }
 0x81d   :  { %v2276_v19 = vsel %vm958_vm4, %v2270_v0, 0.0 }
 0x81e   :  { %2277 = vadd.xlane.f32.xlu1 %v2276_v19 }
 0x82c   :  { %2316 = vrot.lane.b32.xlu0 %v2312_v28, %s4780_s29  ;;  %v4735_v28 = vld [vmem:[#allocation3 + $0x7] ss:$0 sm:$0xff] }
 0x82f   :  { %2318 = vrot.lane.b32.xlu1 %v2313_v50, %s4780_s29  ;;  %v2377_v50 = vmul.f32 %v4735_v28, %v5416_v2 }
 0x89f   :  { %v2275_v10 = vpop.xlane.xlu0 %2274 }
 0x8a0   :  { %v2295_v35 = vmul.f32 %v5843_v58, %v2275_v10 }
 0x8a2   :  { %v2297_v52 = vsel %vm329_vm14, %v2295_v35, 0.0  ;;  %v2637_v35 = vmul.f32 %v4739_v21, %v5416_v2  ;;  %v4240_v21 = vld [vmem:[#allocation5 + $0x16] ss:$0 sm:$0xff] }
 0x8a3   :  { %v2317_v27 = vpop.permute.xlu0 %2316 }
 0x8a4   :  { %v2322_v34 = vsel %vm958_vm4, %v2317_v27, 0.0  ;;  %v2572_v27 = vmul.f32 %v4738_v8, %v5416_v2 }
 0x8a5   :  { %2323 = vadd.xlane.f32.xlu0 %v2322_v34  ;;  %v2573_v34 = vmul.f32 %v4738_v8, %v5411_v46  ;;  %v4752_v8 = vld [vmem:[#allocation3 + $0x1f] ss:$0 sm:$0xff] }
 0x8a7   :  { %v2278_v39 = vpop.xlane.xlu1 %2277 }
 0x8a8   :  { %v2296_v40 = vmul.f32 %v5848_v43, %v2278_v39  ;;  %v4740_v39 = vld [vmem:[#allocation3 + $0x19] ss:$0 sm:$0xff] }
 0x8aa   :  { %v2298_v20 = vsel %vm329_vm14, %v2296_v40, 0.0  ;;  %v2702_v40 = vmul.f32 %v4740_v39, %v5416_v2 }
 0x8ab   :  { %v2299_v54 = vadd.f32 %v2298_v20, %v2297_v52  ;;  %v2319_v59 = vpop.permute.xlu1 %2318  ;;  %v2703_v52 = vmul.f32 %v4740_v39, %v5411_v46  ;;  %v4741_v20 = vld [vmem:[#allocation3 + $0xa] ss:$0 sm:$0xff]  ;;  %v4239_v39 = vld [vmem:[#allocation4 + $0x16] ss:$0 sm:$0xff] }
 0x8ac   :  { %v2325_v14 = vsel %vm958_vm4, %v2319_v59, 0.0  ;;  %v2768_v59 = vmul.f32 %v4741_v20, %v5411_v46 }
 0x8ad   :  { %v2300_v13 = vrot.slane %v2299_v54, 4  ;;  %2326 = vadd.xlane.f32.xlu1 %v2325_v14  ;;  %v4742_v14 = vld [vmem:[#allocation3 + $0x1a] ss:$0 sm:$0xff] }
 0x8af   :  { %v2301_v31 = vadd.f32 %v2300_v13, %v2299_v54  ;;  %v2767_v54 = vmul.f32 %v4741_v20, %v5416_v2  ;;  %v2832_v13 = vmul.f32 %v4742_v14, %v5416_v2  ;;  %v2350_v20 = vmul.f32 %v4239_v39, %v5825_v15 }
 0x8b1   :  { %v2302_v22 = vrot.slane %v2301_v31, 2 }
 0x8b3   :  { %v2303_v29 = vadd.f32 %v2302_v22, %v2301_v31  ;;  %v2833_v31 = vmul.f32 %v4742_v14, %v5411_v46  ;;  %v4743_v22 = vld [vmem:[#allocation3 + $0xb] ss:$0 sm:$0xff] }
 0x8b5   :  { %v2304_v7 = vrot.slane %v2303_v29, 1 }
 0x8b7   :  { %v2305_v11 = vadd.f32 %v2304_v7, %v2303_v29  ;;  %v2898_v29 = vmul.f32 %v4743_v22, %v5411_v46  ;;  %v4744_v7 = vld [vmem:[#allocation3 + $0x1b] ss:$0 sm:$0xff] }
 0x8b9   :  { %2306 = vst.msk [vmem:[#allocation7 + $0x6] sm:$0x1] %vm1526_vm9, %v2305_v11  ;;  %v2963_v11 = vmul.f32 %v4744_v7, %v5411_v46 }
 0x8bb   :  { %2332 = vrot.lane.b32.xlu0 %v5496_v56, %s4791_s4  ;;  %v2378_v56 = vmul.f32 %v4735_v28, %v5411_v46 }
 0x8be   :  { %2334 = vrot.lane.b32.xlu1 %v5499_v49, %s4791_s4  ;;  %v4736_v49 = vld [vmem:[#allocation3 + $0x17] ss:$0 sm:$0xff] }
 0x8bf   :  { %v2442_v51 = vmul.f32 %v4736_v49, %v5416_v2  ;;  %v2443_v10 = vmul.f32 %v4736_v49, %v5411_v46  ;;  %v4746_v2 = vld [vmem:[#allocation3 + $0x1c] ss:$0 sm:$0xff]  ;;  %v4749_v49 = vld [vmem:[#allocation3 + $0xe] ss:$0 sm:$0xff] }
 0x8c0   :  { %v3304_v14 = vmul.f32 %v4749_v49, %v5408_v47 }
 0x92e   :  { %v5859_v42 = vpop.xlane.xlu0 %2323 }
 0x932   :  { %v2333_v48 = vpop.permute.xlu0 %2332 }
 0x933   :  { %v2338_v30 = vsel %vm958_vm4, %v2333_v48, 0.0  ;;  %v4745_v48 = vld [vmem:[#allocation3 + $0xc] ss:$0 sm:$0xff] }
 0x934   :  { %2339 = vadd.xlane.f32.xlu0 %v2338_v30  ;;  %v3028_v30 = vmul.f32 %v4745_v48, %v5411_v46 }
 0x936   :  { %v5862_v0 = vpop.xlane.xlu1 %2326 }
 0x93a   :  { %v2335_v19 = vpop.permute.xlu1 %2334 }
 0x93b   :  { %v2341_v18 = vsel %vm958_vm4, %v2335_v19, 0.0  ;;  %v3093_v19 = vmul.f32 %v4746_v2, %v5411_v46 }
 0x93c   :  { %2342 = vadd.xlane.f32.xlu1 %v2341_v18  ;;  %v4747_v18 = vld [vmem:[#allocation3 + $0xd] ss:$0 sm:$0xff] }
 0x93d   :  { %v3158_v28 = vmul.f32 %v4747_v18, %v5411_v46 }
 0x94a   :  { %2381 = vrot.lane.b32.xlu0 %v2377_v50, %s4780_s29  ;;  %v4748_v50 = vld [vmem:[#allocation3 + $0x1d] ss:$0 sm:$0xff] }
 0x94d   :  { %2383 = vrot.lane.b32.xlu1 %v2378_v56, %s4780_s29  ;;  %v3223_v56 = vmul.f32 %v4748_v50, %v5411_v46  ;;  %v6615_v50 = vld [vmem:[#allocation18_spill] sm:$0xff] }
 0x951   :  { %2446 = vrot.lane.b32.xlu1 %v2442_v51, %s4780_s29  ;;  %v3288_v51 = vmul.f32 %v4749_v49, %v5411_v46  ;;  %v6616_v49 = vld [vmem:[#allocation19_spill] sm:$0xff] }
 0x955   :  { %2448 = vrot.lane.b32.xlu1 %v2443_v10, %s4780_s29  ;;  %v4750_v10 = vld [vmem:[#allocation3 + $0x1e] ss:$0 sm:$0xff] }
 0x956   :  { %v3353_v12 = vmul.f32 %v4750_v10, %v5411_v46 }
 0x959   :  { %2511 = vrot.lane.b32.xlu1 %v2507_v6, %s4780_s29  ;;  %v4751_v6 = vld [vmem:[#allocation3 + $0xf] ss:$0 sm:$0xff] }
 0x95d   :  { %2513 = vrot.lane.b32.xlu1 %v2508_v33, %s4780_s29  ;;  %v3418_v33 = vmul.f32 %v4751_v6, %v5411_v46 }
 0x961   :  { %2576 = vrot.lane.b32.xlu1 %v2572_v27, %s4780_s29  ;;  %v3483_v27 = vmul.f32 %v4752_v8, %v5411_v46  ;;  %v2356_v46 = vmul.f32 %v4240_v21, %v5859_v42  ;;  %v6620_v8 = vld [vmem:[#allocation23_spill] sm:$0xff] }
 0x965   :  { %2578 = vrot.lane.b32.xlu1 %v2573_v34, %s4780_s29  ;;  %v2914_v34 = vmul.f32 %v4743_v22, %v5408_v47 }
 0x969   :  { %2641 = vrot.lane.b32.xlu1 %v2637_v35, %s4780_s29 }
 0x96d   :  { %2706 = vrot.lane.b32.xlu1 %v2702_v40, %s4780_s29  ;;  %v2357_v40 = vmul.f32 %v4240_v21, %v5862_v0 }
 0x971   :  { %2708 = vrot.lane.b32.xlu1 %v2703_v52, %s4780_s29 }
 0x975   :  { %2771 = vrot.lane.b32.xlu1 %v2767_v54, %s4780_s29  ;;  %v3174_v54 = vmul.f32 %v4747_v18, %v5408_v47 }
 0x979   :  { %2773 = vrot.lane.b32.xlu1 %v2768_v59, %s4780_s29  ;;  %v5936_v59 = vadd.f32 %v2357_v40, %v2350_v20 }
 0x97d   :  { %2836 = vrot.lane.b32.xlu1 %v2832_v13, %s4780_s29 }
 0x981   :  { %2838 = vrot.lane.b32.xlu1 %v2833_v31, %s4780_s29 }
 0x985   :  { %2903 = vrot.lane.b32.xlu1 %v2898_v29, %s4780_s29  ;;  %v3434_v29 = vmul.f32 %v4751_v6, %v5408_v47 }
 0x989   :  { %2968 = vrot.lane.b32.xlu1 %v2963_v11, %s4780_s29 }
 0x98d   :  { %3033 = vrot.lane.b32.xlu1 %v3028_v30, %s4780_s29 }
 0x991   :  { %3098 = vrot.lane.b32.xlu1 %v3093_v19, %s4780_s29 }
 0x995   :  { %3163 = vrot.lane.b32.xlu1 %v3158_v28, %s4780_s29 }
 0x999   :  { %3228 = vrot.lane.b32.xlu1 %v3223_v56, %s4780_s29 }
 0x99d   :  { %3293 = vrot.lane.b32.xlu1 %v3288_v51, %s4780_s29  ;;  %v6617_v51 = vld [vmem:[#allocation20_spill] sm:$0xff] }
 0x9a1   :  { %3358 = vrot.lane.b32.xlu1 %v3353_v12, %s4780_s29  ;;  %v6618_v12 = vld [vmem:[#allocation21_spill] sm:$0xff] }
 0x9a5   :  { %3423 = vrot.lane.b32.xlu1 %v3418_v33, %s4780_s29  ;;  %v6619_v33 = vld [vmem:[#allocation22_spill] sm:$0xff] }
 0x9a9   :  { %3488 = vrot.lane.b32.xlu1 %v3483_v27, %s4780_s29 }
 0x9ad   :  { %2399 = vrot.lane.b32.xlu1 %v5510_v36, %s4791_s4  ;;  %v3044_v36 = vmul.f32 %v4745_v48, %v5408_v47 }
 0x9b1   :  { %2529 = vrot.lane.b32.xlu1 %v5423_v3, %s4791_s4  ;;  %v2349_v3 = vmul.f32 %v4239_v39, %v5820_v37 }
 0x9b5   :  { %2659 = vrot.lane.b32.xlu1 %v5513_v16, %s4791_s4  ;;  %v5930_v16 = vadd.f32 %v2356_v46, %v2349_v3  ;;  %v6623_v46 = vld [vmem:[#allocation26_spill] sm:$0xff]  ;;  %v6625_v3 = vld [vmem:[#allocation28_spill] sm:$0xff] }
 0x9b9   :  { %2789 = vrot.lane.b32.xlu1 %v5516_v1, %s4791_s4 }
 0x9bd   :  { %v2340_v35 = vpop.xlane.xlu0 %2339  ;;  %2919 = vrot.lane.b32.xlu1 %v2914_v34, %s4791_s4  ;;  %v6621_v34 = vld [vmem:[#allocation24_spill] sm:$0xff] }
 0x9be   :  { %v2360_v42 = vmul.f32 %v5930_v16, %v2340_v35  ;;  %v6622_v35 = vld [vmem:[#allocation25_spill] sm:$0xff] }
 0x9c0   :  { %v2362_v13 = vsel %vm329_vm14, %v2360_v42, 0.0 }
 0x9c1   :  { %v2382_v52 = vpop.permute.xlu0 %2381  ;;  %3049 = vrot.lane.b32.xlu1 %v3044_v36, %s4791_s4  ;;  %v6624_v36 = vld [vmem:[#allocation27_spill] sm:$0xff] }
 0x9c2   :  { %v2387_v1 = vsel %vm958_vm4, %v2382_v52, 0.0 }
 0x9c3   :  { %2388 = vadd.xlane.f32.xlu0 %v2387_v1 }
 0x9c5   :  { %3179 = vrot.lane.b32.xlu1 %v3174_v54, %s4791_s4  ;;  %v2343_v0 = vpop.xlane.xlu1 %2342 }
 0x9c6   :  { %v2361_v37 = vmul.f32 %v5936_v59, %v2343_v0 }
 0x9c8   :  { %v2363_v31 = vsel %vm329_vm14, %v2361_v37, 0.0 }
 0x9c9   :  { %v2364_v22 = vadd.f32 %v2363_v31, %v2362_v13  ;;  %3309 = vrot.lane.b32.xlu1 %v3304_v14, %s4791_s4  ;;  %v5946_v30 = vpop.permute.xlu1 %2383 }
 0x9cb   :  { %v2365_v15 = vrot.slane %v2364_v22, 4 }
 0x9cd   :  { %v2366_v7 = vadd.f32 %v2365_v15, %v2364_v22  ;;  %3439 = vrot.lane.b32.xlu1 %v3434_v29, %s4791_s4  ;;  %v2447_v18 = vpop.permute.xlu1 %2446 }
 0x9cf   :  { %v2367_v11 = vrot.slane %v2366_v7, 2 }
 0x9d1   :  { %v2368_v48 = vadd.f32 %v2367_v11, %v2366_v7  ;;  %2464 = vrot.lane.b32.xlu1 %v5527_v60, %s4791_s4  ;;  %v5957_v47 = vpop.permute.xlu1 %2448 }
 0x9d3   :  { %v2369_v2 = vrot.slane %v2368_v48, 1 }
 0x9d5   :  { %v2370_v19 = vadd.f32 %v2369_v2, %v2368_v48  ;;  %2594 = vrot.lane.b32.xlu1 %v5530_v9, %s4791_s4  ;;  %v5967_v60 = vpop.permute.xlu1 %2511 }
 0x9d7   :  { %2371 = vst.msk [vmem:[#allocation7 + $0x16] sm:$0x1] %vm1526_vm9, %v2370_v19 }
 0x9d9   :  { %2643 = vrot.lane.b32.xlu0 %v5533_v17, %s4780_s29  ;;  %2724 = vrot.lane.b32.xlu1 %v5536_v23, %s4791_s4  ;;  %v2514_v9 = vpop.permute.xlu1 %2513 }
 0x9dd   :  { %2901 = vrot.lane.b32.xlu0 %v5539_v45, %s4780_s29  ;;  %2854 = vrot.lane.b32.xlu1 %v5542_v57, %s4791_s4  ;;  %v5981_v17 = vpop.permute.xlu1 %2576  ;;  %v6608_v45 = vld [vmem:[#allocation11_spill] sm:$0xff] }
 0x9e1   :  { %2966 = vrot.lane.b32.xlu0 %v5545_v38, %s4780_s29  ;;  %2984 = vrot.lane.b32.xlu1 %v5548_v55, %s4791_s4  ;;  %v2579_v23 = vpop.permute.xlu1 %2578  ;;  %v6609_v38 = vld [vmem:[#allocation12_spill] sm:$0xff] }
 0x9e5   :  { %3031 = vrot.lane.b32.xlu0 %v5551_v41, %s4780_s29  ;;  %3114 = vrot.lane.b32.xlu1 %v5554_v32, %s4791_s4  ;;  %v5991_v57 = vpop.permute.xlu1 %2641 }
 0x9e9   :  { %3096 = vrot.lane.b32.xlu0 %v5557_v5, %s4780_s29  ;;  %3244 = vrot.lane.b32.xlu1 %v5562_v25, %s4791_s4  ;;  %v5995_v55 = vpop.permute.xlu1 %2706  ;;  %v6610_v5 = vld [vmem:[#allocation13_spill] sm:$0xff]  ;;  %v6611_v25 = vld [vmem:[#allocation14_spill] sm:$0xff] }
 0x9ed   :  { %3161 = vrot.lane.b32.xlu0 %v5565_v53, %s4780_s29  ;;  %3374 = vrot.lane.b32.xlu1 %v5568_v24, %s4791_s4  ;;  %v2709_v41 = vpop.permute.xlu1 %2708  ;;  %v2452_v24 = vsel %vm958_vm4, %v2447_v18, 0.0  ;;  %v2390_v18 = vsel %vm958_vm4, %v5946_v30, 0.0 }
 0x9ee   :  { %v2715_v37 = vsel %vm958_vm4, %v2709_v41, 0.0 }
 0x9f1   :  { %3226 = vrot.lane.b32.xlu0 %v5571_v61, %s4780_s29  ;;  %3504 = vrot.lane.b32.xlu1 %v5574_v62, %s4791_s4  ;;  %v6003_v32 = vpop.permute.xlu1 %2771  ;;  %v6612_v61 = vld [vmem:[#allocation15_spill] sm:$0xff]  ;;  %v2520_v62 = vsel %vm958_vm4, %v2514_v9, 0.0 }
 0x9f5   :  { %3291 = vrot.lane.b32.xlu0 %v5577_v26, %s4780_s29  ;;  %v2774_v53 = vpop.permute.xlu1 %2773 }
 0x9f6   :  { %v2780_v13 = vsel %vm958_vm4, %v2774_v53, 0.0 }
 0x9f9   :  { %3356 = vrot.lane.b32.xlu0 %v6608_v45, %s4780_s29  ;;  %v6013_v26 = vpop.permute.xlu1 %2836  ;;  %v2455_v45 = vsel %vm958_vm4, %v5957_v47, 0.0 }
 0x9fd   :  { %3421 = vrot.lane.b32.xlu0 %v6609_v38, %s4780_s29  ;;  %v2839_v28 = vpop.permute.xlu1 %2838 }
 0x9fe   :  { %v2845_v15 = vsel %vm958_vm4, %v2839_v28, 0.0 }
 0xa01   :  { %3486 = vrot.lane.b32.xlu0 %v5586_v4, %s4780_s29  ;;  %v6613_v4 = vld [vmem:[#allocation16_spill] sm:$0xff]  ;;  %v2904_v56 = vpop.permute.xlu1 %2903 }
 0xa02   :  { %v2910_v11 = vsel %vm958_vm4, %v2904_v56, 0.0 }
 0xa05   :  { %2397 = vrot.lane.b32.xlu0 %v5589_v44, %s4791_s4  ;;  %v2585_v44 = vsel %vm958_vm4, %v2579_v23, 0.0  ;;  %v2969_v10 = vpop.permute.xlu1 %2968 }
 0xa06   :  { %v2975_v2 = vsel %vm958_vm4, %v2969_v10, 0.0 }
 0xa09   :  { %2527 = vrot.lane.b32.xlu0 %v5593_v63, %s4791_s4  ;;  %v6614_v63 = vld [vmem:[#allocation17_spill] sm:$0xff]  ;;  %v3034_v6 = vpop.permute.xlu1 %3033 }
 0xa0a   :  { %v3040_v23 = vsel %vm958_vm4, %v3034_v6, 0.0 }
 0xa0d   :  { %2657 = vrot.lane.b32.xlu0 %v6610_v5, %s4791_s4  ;;  %v3099_v27 = vpop.permute.xlu1 %3098 }
 0xa0e   :  { %v3105_v41 = vsel %vm958_vm4, %v3099_v27, 0.0 }
 0xa11   :  { %2787 = vrot.lane.b32.xlu0 %v6611_v25, %s4791_s4  ;;  %v3164_v21 = vpop.permute.xlu1 %3163  ;;  %v2517_v25 = vsel %vm958_vm4, %v5967_v60, 0.0 }
 0xa12   :  { %v3170_v30 = vsel %vm958_vm4, %v3164_v21, 0.0 }
 0xa15   :  { %2917 = vrot.lane.b32.xlu0 %v6612_v61, %s4791_s4  ;;  %2453 = vadd.xlane.f32.xlu1 %v2452_v24  ;;  %v3229_v39 = vpop.permute.xlu1 %3228  ;;  %v2582_v24 = vsel %vm958_vm4, %v5981_v17, 0.0 }
 0xa16   :  { %v3235_v61 = vsel %vm958_vm4, %v3229_v39, 0.0 }
 0xa19   :  { %3047 = vrot.lane.b32.xlu0 %v6613_v4, %s4791_s4  ;;  %2521 = vadd.xlane.f32.xlu1 %v2520_v62  ;;  %v3294_v40 = vpop.permute.xlu1 %3293  ;;  %v2647_v62 = vsel %vm958_vm4, %v5991_v57, 0.0 }
 0xa1a   :  { %v3300_v60 = vsel %vm958_vm4, %v3294_v40, 0.0 }
 0xa1d   :  { %3177 = vrot.lane.b32.xlu0 %v6614_v63, %s4791_s4  ;;  %2586 = vadd.xlane.f32.xlu1 %v2585_v44  ;;  %v3359_v1 = vpop.permute.xlu1 %3358  ;;  %v2712_v63 = vsel %vm958_vm4, %v5995_v55, 0.0 }
 0xa1e   :  { %v3365_v17 = vsel %vm958_vm4, %v3359_v1, 0.0 }
 0xa21   :  { %3307 = vrot.lane.b32.xlu0 %v6615_v50, %s4791_s4  ;;  %v3424_v0 = vpop.permute.xlu1 %3423  ;;  %v2777_v50 = vsel %vm958_vm4, %v6003_v32, 0.0 }
 0xa22   :  { %v3430_v57 = vsel %vm958_vm4, %v3424_v0, 0.0 }
 0xa25   :  { %3437 = vrot.lane.b32.xlu0 %v6616_v49, %s4791_s4  ;;  %v3489_v31 = vpop.permute.xlu1 %3488  ;;  %v2842_v49 = vsel %vm958_vm4, %v6013_v26, 0.0 }
 0xa26   :  { %v3495_v55 = vsel %vm958_vm4, %v3489_v31, 0.0 }
 0xa29   :  { %2462 = vrot.lane.b32.xlu0 %v6617_v51, %s4791_s4  ;;  %v2400_v7 = vpop.permute.xlu1 %2399 }
 0xa2a   :  { %v2406_v6 = vsel %vm958_vm4, %v2400_v7, 0.0 }
 0xa2d   :  { %2592 = vrot.lane.b32.xlu0 %v6618_v12, %s4791_s4  ;;  %v2530_v19 = vpop.permute.xlu1 %2529 }
 0xa2e   :  { %v2536_v26 = vsel %vm958_vm4, %v2530_v19, 0.0 }
 0xa31   :  { %2722 = vrot.lane.b32.xlu0 %v6619_v33, %s4791_s4  ;;  %v2660_v38 = vpop.permute.xlu1 %2659 }
 0xa32   :  { %v2666_v21 = vsel %vm958_vm4, %v2660_v38, 0.0 }
 0xa35   :  { %2852 = vrot.lane.b32.xlu0 %v6620_v8, %s4791_s4  ;;  %v2790_v53 = vpop.permute.xlu1 %2789 }
 0xa36   :  { %v2796_v39 = vsel %vm958_vm4, %v2790_v53, 0.0 }
 0xa39   :  { %2982 = vrot.lane.b32.xlu0 %v6621_v34, %s4791_s4  ;;  %v2920_v4 = vpop.permute.xlu1 %2919 }
 0xa3a   :  { %v2926_v1 = vsel %vm958_vm4, %v2920_v4, 0.0 }
 0xa3d   :  { %3112 = vrot.lane.b32.xlu0 %v6622_v35, %s4791_s4  ;;  %v3050_v28 = vpop.permute.xlu1 %3049 }
 0xa41   :  { %3242 = vrot.lane.b32.xlu0 %v6623_v46, %s4791_s4  ;;  %v3180_v51 = vpop.permute.xlu1 %3179 }
 0xa45   :  { %3372 = vrot.lane.b32.xlu0 %v6624_v36, %s4791_s4  ;;  %v3310_v32 = vpop.permute.xlu1 %3309 }
 0xa49   :  { %3502 = vrot.lane.b32.xlu0 %v6625_v3, %s4791_s4  ;;  %v3440_v34 = vpop.permute.xlu1 %3439 }
 0xa4c   :  { %v6042_v52 = vpop.xlane.xlu0 %2388 }
 0xa4d   :  { %v2465_v36 = vpop.permute.xlu1 %2464 }
 0xa4e   :  { %v2471_v19 = vsel %vm958_vm4, %v2465_v36, 0.0 }
 0xa50   :  { %v2644_v20 = vpop.permute.xlu0 %2643 }
 0xa51   :  { %v2650_v54 = vsel %vm958_vm4, %v2644_v20, 0.0 }
 0xa52   :  { %2651 = vadd.xlane.f32.xlu1 %v2650_v54  ;;  %v2595_v54 = vpop.permute.xlu1 %2594 }
 0xa54   :  { %v2902_v42 = vpop.permute.xlu0 %2901 }
 0xa55   :  { %v2907_v12 = vsel %vm958_vm4, %v2902_v42, 0.0  ;;  %v3056_v42 = vsel %vm958_vm4, %v3050_v28, 0.0 }
 0xa56   :  { %2716 = vadd.xlane.f32.xlu1 %v2715_v37 }
 0xa58   :  { %v6046_v14 = vpop.permute.xlu0 %2966 }
 0xa59   :  { %v2972_v33 = vsel %vm958_vm4, %v6046_v14, 0.0  ;;  %v3186_v14 = vsel %vm958_vm4, %v3180_v51, 0.0 }
 0xa5a   :  { %2781 = vadd.xlane.f32.xlu1 %v2780_v13  ;;  %v2725_v13 = vpop.permute.xlu1 %2724 }
 0xa5c   :  { %v6049_v22 = vpop.permute.xlu0 %3031 }
 0xa5d   :  { %v3037_v27 = vsel %vm958_vm4, %v6049_v22, 0.0 }
 0xa5e   :  { %2846 = vadd.xlane.f32.xlu1 %v2845_v15  ;;  %v3316_v15 = vsel %vm958_vm4, %v3310_v32, 0.0  ;;  %v2855_v7 = vpop.permute.xlu1 %2854 }
 0xa5f   :  { %v2861_v53 = vsel %vm958_vm4, %v2855_v7, 0.0 }
 0xa60   :  { %v6052_v29 = vpop.permute.xlu0 %3096 }
 0xa61   :  { %v3102_v46 = vsel %vm958_vm4, %v6052_v29, 0.0 }
 0xa62   :  { %2911 = vadd.xlane.f32.xlu1 %v2910_v11  ;;  %v3446_v11 = vsel %vm958_vm4, %v3440_v34, 0.0 }
 0xa64   :  { %v6055_v48 = vpop.permute.xlu0 %3161 }
 0xa65   :  { %v3167_v40 = vsel %vm958_vm4, %v6055_v48, 0.0 }
 0xa66   :  { %2976 = vadd.xlane.f32.xlu1 %v2975_v2 }
 0xa68   :  { %2391 = vadd.xlane.f32.xlu0 %v2390_v18  ;;  %v6060_v9 = vpop.permute.xlu0 %3226  ;;  %v2985_v18 = vpop.permute.xlu1 %2984 }
 0xa69   :  { %v3232_v20 = vsel %vm958_vm4, %v6060_v9, 0.0 }
 0xa6a   :  { %3041 = vadd.xlane.f32.xlu1 %v3040_v23  ;;  %v2601_v23 = vsel %vm958_vm4, %v2595_v54, 0.0 }
 0xa6c   :  { %2456 = vadd.xlane.f32.xlu0 %v2455_v45  ;;  %v6066_v5 = vpop.permute.xlu0 %3291 }
 0xa6d   :  { %v3297_v37 = vsel %vm958_vm4, %v6066_v5, 0.0  ;;  %v3115_v5 = vpop.permute.xlu1 %3114 }
 0xa6e   :  { %3106 = vadd.xlane.f32.xlu1 %v3105_v41  ;;  %v2731_v41 = vsel %vm958_vm4, %v2725_v13, 0.0 }
 0xa70   :  { %2518 = vadd.xlane.f32.xlu0 %v2517_v25  ;;  %v3357_v47 = vpop.permute.xlu0 %3356 }
 0xa71   :  { %v3362_v31 = vsel %vm958_vm4, %v3357_v47, 0.0 }
 0xa72   :  { %3171 = vadd.xlane.f32.xlu1 %v3170_v30 }
 0xa74   :  { %2583 = vadd.xlane.f32.xlu0 %v2582_v24  ;;  %v3422_v44 = vpop.permute.xlu0 %3421  ;;  %v3245_v24 = vpop.permute.xlu1 %3244 }
 0xa75   :  { %v3427_v29 = vsel %vm958_vm4, %v3422_v44, 0.0  ;;  %v3251_v28 = vsel %vm958_vm4, %v3245_v24, 0.0 }
 0xa76   :  { %3236 = vadd.xlane.f32.xlu1 %v3235_v61  ;;  %v2991_v61 = vsel %vm958_vm4, %v2985_v18, 0.0  ;;  %v4246_v18 = vld [vmem:[#allocation5 + $0x17] ss:$0 sm:$0xff] }
 0xa78   :  { %2648 = vadd.xlane.f32.xlu0 %v2647_v62  ;;  %v3487_v56 = vpop.permute.xlu0 %3486  ;;  %v3375_v44 = vpop.permute.xlu1 %3374 }
 0xa79   :  { %v3492_v2 = vsel %vm958_vm4, %v3487_v56, 0.0 }
 0xa7a   :  { %3301 = vadd.xlane.f32.xlu1 %v3300_v60  ;;  %v3121_v60 = vsel %vm958_vm4, %v3115_v5, 0.0 }
 0xa7c   :  { %2713 = vadd.xlane.f32.xlu0 %v2712_v63  ;;  %v2398_v10 = vpop.permute.xlu0 %2397 }
 0xa7d   :  { %v2403_v9 = vsel %vm958_vm4, %v2398_v10, 0.0 }
 0xa7e   :  { %3366 = vadd.xlane.f32.xlu1 %v3365_v17 }
 0xa80   :  { %2778 = vadd.xlane.f32.xlu0 %v2777_v50  ;;  %v2528_v8 = vpop.permute.xlu0 %2527  ;;  %v3505_v50 = vpop.permute.xlu1 %3504 }
 0xa81   :  { %v2533_v38 = vsel %vm958_vm4, %v2528_v8, 0.0  ;;  %v3511_v10 = vsel %vm958_vm4, %v3505_v50, 0.0 }
 0xa82   :  { %3431 = vadd.xlane.f32.xlu1 %v3430_v57  ;;  %v3381_v57 = vsel %vm958_vm4, %v3375_v44, 0.0 }
 0xa84   :  { %2843 = vadd.xlane.f32.xlu0 %v2842_v49  ;;  %v2658_v35 = vpop.permute.xlu0 %2657 }
 0xa85   :  { %v2663_v30 = vsel %vm958_vm4, %v2658_v35, 0.0 }
 0xa86   :  { %3496 = vadd.xlane.f32.xlu1 %v3495_v55 }
 0xa88   :  { %2908 = vadd.xlane.f32.xlu0 %v2907_v12  ;;  %v2788_v3 = vpop.permute.xlu0 %2787 }
 0xa89   :  { %v2793_v47 = vsel %vm958_vm4, %v2788_v3, 0.0 }
 0xa8a   :  { %2407 = vadd.xlane.f32.xlu1 %v2406_v6 }
 0xa8c   :  { %2973 = vadd.xlane.f32.xlu0 %v2972_v33  ;;  %v2918_v0 = vpop.permute.xlu0 %2917 }
 0xa8d   :  { %v2923_v4 = vsel %vm958_vm4, %v2918_v0, 0.0 }
 0xa8e   :  { %2537 = vadd.xlane.f32.xlu1 %v2536_v26 }
 0xa90   :  { %3038 = vadd.xlane.f32.xlu0 %v3037_v27  ;;  %v3048_v22 = vpop.permute.xlu0 %3047 }
 0xa91   :  { %v3053_v17 = vsel %vm958_vm4, %v3048_v22, 0.0 }
 0xa92   :  { %2667 = vadd.xlane.f32.xlu1 %v2666_v21 }
 0xa94   :  { %3103 = vadd.xlane.f32.xlu0 %v3102_v46  ;;  %v3178_v48 = vpop.permute.xlu0 %3177 }
 0xa95   :  { %v3183_v56 = vsel %vm958_vm4, %v3178_v48, 0.0 }
 0xa96   :  { %2797 = vadd.xlane.f32.xlu1 %v2796_v39 }
 0xa98   :  { %3168 = vadd.xlane.f32.xlu0 %v3167_v40  ;;  %v3308_v45 = vpop.permute.xlu0 %3307 }
 0xa99   :  { %v3313_v55 = vsel %vm958_vm4, %v3308_v45, 0.0  ;;  %v6157_v45 = vld [vmem:[#allocation4 + $0x8] ss:$0 sm:$0xff] }
 0xa9a   :  { %2927 = vadd.xlane.f32.xlu1 %v2926_v1 }
 0xa9c   :  { %3233 = vadd.xlane.f32.xlu0 %v3232_v20  ;;  %v3438_v25 = vpop.permute.xlu0 %3437 }
 0xa9d   :  { %v3443_v6 = vsel %vm958_vm4, %v3438_v25, 0.0 }
 0xa9e   :  { %3057 = vadd.xlane.f32.xlu1 %v3056_v42  ;;  %v2454_v51 = vpop.xlane.xlu1 %2453 }
 0xaa0   :  { %3298 = vadd.xlane.f32.xlu0 %v3297_v37  ;;  %v2463_v62 = vpop.permute.xlu0 %2462 }
 0xaa1   :  { %v2468_v33 = vsel %vm958_vm4, %v2463_v62, 0.0 }
 0xaa2   :  { %3187 = vadd.xlane.f32.xlu1 %v3186_v14  ;;  %v2522_v32 = vpop.xlane.xlu1 %2521 }
 0xaa4   :  { %3363 = vadd.xlane.f32.xlu0 %v3362_v31  ;;  %v2593_v63 = vpop.permute.xlu0 %2592  ;;  %v6143_v31 = vld [vmem:[#allocation5 + $0x7] ss:$0 sm:$0xff] }
 0xaa5   :  { %v2598_v27 = vsel %vm958_vm4, %v2593_v63, 0.0 }
 0xaa6   :  { %3317 = vadd.xlane.f32.xlu1 %v3316_v15  ;;  %v2587_v26 = vpop.xlane.xlu1 %2586  ;;  %v6145_v15 = vld [vmem:[#allocation4 + $0x7] ss:$0 sm:$0xff] }
 0xaa7   :  { %v2415_v7 = vmul.f32 %v6145_v15, %v5848_v43 }
 0xaa8   :  { %3428 = vadd.xlane.f32.xlu0 %v3427_v29  ;;  %v2723_v49 = vpop.permute.xlu0 %2722 }
 0xaa9   :  { %v2728_v34 = vsel %vm958_vm4, %v2723_v49, 0.0 }
 0xaaa   :  { %3447 = vadd.xlane.f32.xlu1 %v3446_v11 }
 0xaac   :  { %3493 = vadd.xlane.f32.xlu0 %v3492_v2  ;;  %v2853_v12 = vpop.permute.xlu0 %2852 }
 0xaad   :  { %v2858_v46 = vsel %vm958_vm4, %v2853_v12, 0.0 }
 0xaae   :  { %2472 = vadd.xlane.f32.xlu1 %v2471_v19  ;;  %v4245_v19 = vld [vmem:[#allocation4 + $0x17] ss:$0 sm:$0xff] }
 0xab0   :  { %2404 = vadd.xlane.f32.xlu0 %v2403_v9  ;;  %v2983_v8 = vpop.permute.xlu0 %2982  ;;  %v6155_v9 = vld [vmem:[#allocation5 + $0x8] ss:$0 sm:$0xff] }
 0xab1   :  { %v2988_v40 = vsel %vm958_vm4, %v2983_v8, 0.0  ;;  %v2552_v5 = vmul.f32 %v6155_v9, %v2522_v32 }
 0xab2   :  { %2602 = vadd.xlane.f32.xlu1 %v2601_v23 }
 0xab4   :  { %2534 = vadd.xlane.f32.xlu0 %v2533_v38  ;;  %v3113_v21 = vpop.permute.xlu0 %3112  ;;  %v2480_v38 = vmul.f32 %v4245_v19, %v5936_v59 }
 0xab5   :  { %v3118_v1 = vsel %vm958_vm4, %v3113_v21, 0.0  ;;  %v4270_v21 = vld [vmem:[#allocation5 + $0x1b] ss:$0 sm:$0xff] }
 0xab6   :  { %2732 = vadd.xlane.f32.xlu1 %v2731_v41  ;;  %v2486_v41 = vmul.f32 %v4246_v18, %v2454_v51 }
 0xab8   :  { %2664 = vadd.xlane.f32.xlu0 %v2663_v30  ;;  %v3243_v36 = vpop.permute.xlu0 %3242 }
 0xab9   :  { %v3248_v42 = vsel %vm958_vm4, %v3243_v36, 0.0 }
 0xaba   :  { %2862 = vadd.xlane.f32.xlu1 %v2861_v53 }
 0xabc   :  { %2794 = vadd.xlane.f32.xlu0 %v2793_v47  ;;  %v3373_v20 = vpop.permute.xlu0 %3372  ;;  %v2479_v47 = vmul.f32 %v4245_v19, %v5930_v16 }
 0xabd   :  { %v3378_v14 = vsel %vm958_vm4, %v3373_v20, 0.0 }
 0xabe   :  { %2992 = vadd.xlane.f32.xlu1 %v2991_v61  ;;  %v4252_v61 = vld [vmem:[#allocation5 + $0x18] ss:$0 sm:$0xff]  ;;  %v6171_v44 = vadd.f32 %v2486_v41, %v2479_v47 }
 0xac0   :  { %2924 = vadd.xlane.f32.xlu0 %v2923_v4  ;;  %v3503_v37 = vpop.permute.xlu0 %3502  ;;  %v4251_v4 = vld [vmem:[#allocation4 + $0x18] ss:$0 sm:$0xff] }
 0xac1   :  { %v3508_v11 = vsel %vm958_vm4, %v3503_v37, 0.0  ;;  %v2609_v51 = vmul.f32 %v4251_v4, %v6171_v44 }
 0xac2   :  { %3122 = vadd.xlane.f32.xlu1 %v3121_v60  ;;  %v2617_v60 = vmul.f32 %v4252_v61, %v2587_v26 }
 0xac4   :  { %3054 = vadd.xlane.f32.xlu0 %v3053_v17 }
 0xac6   :  { %3252 = vadd.xlane.f32.xlu1 %v3251_v28  ;;  %v4258_v28 = vld [vmem:[#allocation5 + $0x19] ss:$0 sm:$0xff] }
 0xac8   :  { %3184 = vadd.xlane.f32.xlu0 %v3183_v56  ;;  %v4257_v56 = vld [vmem:[#allocation4 + $0x19] ss:$0 sm:$0xff] }
 0xaca   :  { %3382 = vadd.xlane.f32.xlu1 %v3381_v57 }
 0xacc   :  { %3314 = vadd.xlane.f32.xlu0 %v3313_v55 }
 0xace   :  { %3512 = vadd.xlane.f32.xlu1 %v3511_v10 }
 0xad0   :  { %3444 = vadd.xlane.f32.xlu0 %v3443_v6  ;;  %v4264_v6 = vld [vmem:[#allocation5 + $0x1a] ss:$0 sm:$0xff] }
 0xad4   :  { %2469 = vadd.xlane.f32.xlu0 %v2468_v33  ;;  %v4263_v33 = vld [vmem:[#allocation4 + $0x1a] ss:$0 sm:$0xff] }
 0xad8   :  { %2599 = vadd.xlane.f32.xlu0 %v2598_v27 }
 0xadb   :  { %v6132_v35 = vpop.xlane.xlu1 %2651 }
 0xadc   :  { %2729 = vadd.xlane.f32.xlu0 %v2728_v34 }
 0xadf   :  { %v2717_v39 = vpop.xlane.xlu1 %2716 }
 0xae0   :  { %2859 = vadd.xlane.f32.xlu0 %v2858_v46  ;;  %v2747_v57 = vmul.f32 %v4258_v28, %v2717_v39  ;;  %v4269_v39 = vld [vmem:[#allocation4 + $0x1b] ss:$0 sm:$0xff] }
 0xae3   :  { %v6136_v3 = vpop.xlane.xlu1 %2781 }
 0xae4   :  { %2989 = vadd.xlane.f32.xlu0 %v2988_v40 }
 0xae7   :  { %v2847_v54 = vpop.xlane.xlu1 %2846 }
 0xae8   :  { %3119 = vadd.xlane.f32.xlu0 %v3118_v1  ;;  %v2877_v8 = vmul.f32 %v4264_v6, %v2847_v54  ;;  %v4276_v54 = vld [vmem:[#allocation5 + $0x1c] ss:$0 sm:$0xff] }
 0xaeb   :  { %v6140_v0 = vpop.xlane.xlu1 %2911 }
 0xaec   :  { %3249 = vadd.xlane.f32.xlu0 %v3248_v42 }
 0xaef   :  { %v2977_v13 = vpop.xlane.xlu1 %2976 }
 0xaf0   :  { %3379 = vadd.xlane.f32.xlu0 %v3378_v14  ;;  %v3007_v36 = vmul.f32 %v4270_v21, %v2977_v13 }
 0xaf1   :  { %v2392_v22 = vpop.xlane.xlu0 %2391 }
 0xaf2   :  { %v2422_v29 = vmul.f32 %v6143_v31, %v2392_v22 }
 0xaf3   :  { %v6151_v48 = vpop.xlane.xlu1 %3041 }
 0xaf4   :  { %3509 = vadd.xlane.f32.xlu0 %v3508_v11  ;;  %v6153_v2 = vadd.f32 %v2422_v29, %v2415_v7  ;;  %v4275_v29 = vld [vmem:[#allocation4 + $0x1c] ss:$0 sm:$0xff] }
 0xaf5   :  { %v2457_v23 = vpop.xlane.xlu0 %2456 }
 0xaf6   :  { %v2487_v43 = vmul.f32 %v4246_v18, %v2457_v23  ;;  %v2545_v25 = vmul.f32 %v6157_v45, %v6153_v2  ;;  %v4282_v18 = vld [vmem:[#allocation5 + $0x1d] ss:$0 sm:$0xff] }
 0xaf7   :  { %v3107_v30 = vpop.xlane.xlu1 %3106 }
 0xaf8   :  { %v6163_v53 = vadd.f32 %v2552_v5, %v2545_v25  ;;  %v6165_v24 = vadd.f32 %v2487_v43, %v2480_v38  ;;  %v3137_v7 = vmul.f32 %v4276_v54, %v3107_v30  ;;  %v4281_v38 = vld [vmem:[#allocation4 + $0x1d] ss:$0 sm:$0xff]  ;;  %v4288_v30 = vld [vmem:[#allocation5 + $0x1e] ss:$0 sm:$0xff] }
 0xaf9   :  { %v6168_v62 = vpop.xlane.xlu0 %2518 }
 0xafa   :  { %v2610_v59 = vmul.f32 %v4251_v4, %v6165_v24 }
 0xafb   :  { %v6173_v63 = vpop.xlane.xlu1 %3171 }
 0xafc   :  { %v6175_v17 = vadd.f32 %v2617_v60, %v2610_v59  ;;  %v4287_v59 = vld [vmem:[#allocation4 + $0x1e] ss:$0 sm:$0xff] }
 0xafd   :  { %v2584_v50 = vpop.xlane.xlu0 %2583 }
 0xafe   :  { %v2616_v49 = vmul.f32 %v4252_v61, %v2584_v50  ;;  %v2740_v16 = vmul.f32 %v4257_v56, %v6175_v17 }
 0xaff   :  { %v3237_v55 = vpop.xlane.xlu1 %3236 }
 0xb00   :  { %v6179_v10 = vadd.f32 %v2747_v57, %v2740_v16  ;;  %v6181_v12 = vadd.f32 %v2616_v49, %v2609_v51  ;;  %v3267_v41 = vmul.f32 %v4282_v18, %v3237_v55  ;;  %v4294_v49 = vld [vmem:[#allocation5 + $0x1f] ss:$0 sm:$0xff] }
 0xb01   :  { %v6183_v32 = vpop.xlane.xlu0 %2648  ;;  %v4293_v51 = vld [vmem:[#allocation4 + $0x1f] ss:$0 sm:$0xff] }
 0xb02   :  { %v2870_v26 = vmul.f32 %v4263_v33, %v6179_v10  ;;  %v2739_v20 = vmul.f32 %v4257_v56, %v6181_v12 }
 0xb03   :  { %v6186_v27 = vpop.xlane.xlu1 %3301 }
 0xb04   :  { %v6188_v34 = vadd.f32 %v2877_v8, %v2870_v26 }
 0xb05   :  { %v2714_v46 = vpop.xlane.xlu0 %2713 }
 0xb06   :  { %v2746_v40 = vmul.f32 %v4258_v28, %v2714_v46  ;;  %v3000_v1 = vmul.f32 %v4269_v39, %v6188_v34 }
 0xb07   :  { %v3367_v42 = vpop.xlane.xlu1 %3366 }
 0xb08   :  { %v6192_v37 = vadd.f32 %v3007_v36, %v3000_v1  ;;  %v6194_v14 = vadd.f32 %v2746_v40, %v2739_v20  ;;  %v3397_v28 = vmul.f32 %v4288_v30, %v3367_v42 }
 0xb09   :  { %v6196_v22 = vpop.xlane.xlu0 %2778 }
 0xb0a   :  { %v3130_v11 = vmul.f32 %v4275_v29, %v6192_v37  ;;  %v2869_v25 = vmul.f32 %v4263_v33, %v6194_v14 }
 0xb0b   :  { %v6199_v19 = vpop.xlane.xlu1 %3431 }
 0xb0c   :  { %v6201_v13 = vadd.f32 %v3137_v7, %v3130_v11 }
 0xb0d   :  { %v2844_v23 = vpop.xlane.xlu0 %2843 }
 0xb0e   :  { %v2876_v5 = vmul.f32 %v4264_v6, %v2844_v23  ;;  %v3260_v43 = vmul.f32 %v4281_v38, %v6201_v13 }
 0xb0f   :  { %v3497_v47 = vpop.xlane.xlu1 %3496 }
 0xb10   :  { %v6205_v61 = vadd.f32 %v3267_v41, %v3260_v43  ;;  %v6207_v4 = vadd.f32 %v2876_v5, %v2869_v25  ;;  %v3527_v55 = vmul.f32 %v4294_v49, %v3497_v47  ;;  %v6234_v41 = vld [vmem:[#allocation2] sm:$0xff]  ;;  %v4255_v5 = vld [vmem:[#allocation5 + $0x9] ss:$0 sm:$0xff]  ;;  %v2421_v25 = vmul.f32 %v6143_v31, %v6042_v52 }
 0xb11   :  { %v6209_v60 = vpop.xlane.xlu0 %2908  ;;  %v2682_v43 = vmul.f32 %v4255_v5, %v6132_v35  ;;  %v4296_v47 = vmul.f32 -1.442695, %v6234_v41  ;;  %v2551_v52 = vmul.f32 %v6155_v9, %v6168_v62  ;;  %v4266_v9 = vld [vmem:[#allocation4 + $0xb] ss:$0 sm:$0xff] }
 0xb12   :  { %v3390_v50 = vmul.f32 %v4287_v59, %v6205_v61  ;;  %v2999_v8 = vmul.f32 %v4269_v39, %v6207_v4 }
 0xb13   :  { %v6212_v56 = vpop.xlane.xlu1 %2407  ;;  %4677 = vpow2.f32 %v4296_v47 }
 0xb14   :  { %v6214_v57 = vadd.f32 %v3397_v28, %v3390_v50 }
 0xb15   :  { %v2974_v16 = vpop.xlane.xlu0 %2973 }
 0xb16   :  { %v3006_v6 = vmul.f32 %v4270_v21, %v2974_v16  ;;  %v3520_v33 = vmul.f32 %v4293_v51, %v6214_v57  ;;  %v4254_v21 = vld [vmem:[#allocation4 + $0x9] ss:$0 sm:$0xff]  ;;  %v2414_v16 = vmul.f32 %v6145_v15, %v5843_v58 }
 0xb17   :  { %v6222_v36 = vpop.xlane.xlu1 %2537  ;;  %v2675_v39 = vmul.f32 %v4254_v21, %v6163_v53 }
 0xb18   :  { %v6218_v26 = vadd.f32 %v3527_v55, %v3520_v33  ;;  %v6220_v46 = vadd.f32 %v3006_v6, %v2999_v8  ;;  %v2423_v6 = vadd.f32 %v2421_v25, %v2414_v16  ;;  %v4260_v8 = vld [vmem:[#allocation4 + $0xa] ss:$0 sm:$0xff]  ;;  %v2681_v25 = vmul.f32 %v4255_v5, %v6183_v32 }
 0xb19   :  { %v6224_v40 = vpop.xlane.xlu0 %3038  ;;  %v2684_v28 = vadd.f32 %v2682_v43, %v2675_v39 }
 0xb1a   :  { %v3129_v42 = vmul.f32 %v4275_v29, %v6220_v46  ;;  %v2544_v58 = vmul.f32 %v6157_v45, %v2423_v6  ;;  %v4267_v45 = vld [vmem:[#allocation5 + $0xb] ss:$0 sm:$0xff] }
 0xb1b   :  { %v6227_v7 = vpop.xlane.xlu1 %2667  ;;  %v2805_v31 = vmul.f32 %v4260_v8, %v2684_v28  ;;  %v2942_v16 = vmul.f32 %v4267_v45, %v6140_v0 }
 0xb1c   :  { %v2553_v39 = vadd.f32 %v2551_v52, %v2544_v58  ;;  %v2426_v58 = vmul.f32 %v6153_v2, %v6212_v56  ;;  %v2556_v2 = vmul.f32 %v6163_v53, %v6222_v36  ;;  %v6291_v53 = vld [vmem:[#allocation2 + $0x10] sm:$0xff]  ;;  %v4278_v36 = vld [vmem:[#allocation4 + $0xd] ss:$0 sm:$0xff] }
 0xb1d   :  { %v3104_v1 = vpop.xlane.xlu0 %3103 }
 0xb1e   :  { %v3136_v20 = vmul.f32 %v4276_v54, %v3104_v1  ;;  %v4261_v1 = vld [vmem:[#allocation5 + $0xa] ss:$0 sm:$0xff] }
 0xb1f   :  { %v6239_v54 = vpop.xlane.xlu1 %2797  ;;  %v2811_v52 = vmul.f32 %v4261_v1, %v6196_v22 }
 0xb20   :  { %v6229_v11 = vadd.f32 %v3136_v20, %v3129_v42 }
 0xb21   :  { %v6231_v23 = vpop.xlane.xlu0 %3168 }
 0xb22   :  { %v3259_v55 = vmul.f32 %v4281_v38, %v6229_v11 }
 0xb23   :  { %v6251_v20 = vpop.xlane.xlu1 %2927 }
 0xb25   :  { %v3234_v29 = vpop.xlane.xlu0 %3233 }
 0xb26   :  { %v3266_v50 = vmul.f32 %v4282_v18, %v3234_v29  ;;  %v2812_v18 = vmul.f32 %v4261_v1, %v6136_v3 }
 0xb27   :  { %v6261_v62 = vpop.xlane.xlu1 %3057 }
 0xb28   :  { %v6245_v33 = vadd.f32 %v3266_v50, %v3259_v55  ;;  %v6255_v38 = vadd.f32 %v2812_v18, %v2805_v31  ;;  %v2674_v50 = vmul.f32 %v4254_v21, %v2553_v39  ;;  %v4678_v31 = vpop.eup %4677 }
 0xb29   :  { %v6247_v35 = vpop.xlane.xlu0 %3298 }
 0xb2a   :  { %v3389_v43 = vmul.f32 %v4287_v59, %v6245_v33  ;;  %v2935_v3 = vmul.f32 %v4266_v9, %v6255_v38  ;;  %v2683_v55 = vadd.f32 %v2681_v25, %v2674_v50  ;;  %v2428_v50 = vsel %vm329_vm14, %v2426_v58, 0.0 }
 0xb2b   :  { %v6271_v18 = vpop.xlane.xlu1 %3187 }
 0xb2c   :  { %v6268_v59 = vadd.f32 %v2942_v16, %v2935_v3  ;;  %v3581_v3 = vadd.f32 1.0, %v4678_v31 }
 0xb2d   :  { %v3364_v15 = vpop.xlane.xlu0 %3363 }
 0xb2e   :  { %v3396_v42 = vmul.f32 %v4288_v30, %v3364_v15  ;;  %v2804_v15 = vmul.f32 %v4260_v8, %v2683_v55  ;;  %4679 = vrcp.f32 %v3581_v3 }
 0xb2f   :  { %v6284_v8 = vpop.xlane.xlu1 %3317 }
 0xb30   :  { %v6259_v29 = vadd.f32 %v3396_v42, %v3389_v43  ;;  %v4272_v42 = vld [vmem:[#allocation4 + $0xc] ss:$0 sm:$0xff]  ;;  %v2813_v1 = vadd.f32 %v2811_v52, %v2804_v15 }
 0xb31   :  { %v6263_v47 = vpop.xlane.xlu0 %3428  ;;  %v4273_v43 = vld [vmem:[#allocation5 + $0xc] ss:$0 sm:$0xff]  ;;  %v3065_v25 = vmul.f32 %v4272_v42, %v6268_v59 }
 0xb32   :  { %v3519_v5 = vmul.f32 %v4293_v51, %v6259_v29  ;;  %v2941_v51 = vmul.f32 %v4267_v45, %v6209_v60  ;;  %v2934_v52 = vmul.f32 %v4266_v9, %v2813_v1  ;;  %v2686_v60 = vmul.f32 %v2684_v28, %v6227_v7 }
 0xb34   :  { %v2943_v31 = vadd.f32 %v2941_v51, %v2934_v52  ;;  %v4297_v51 = vmul.f32 -1.442695, %v6291_v53 }
 0xb35   :  { %v3494_v30 = vpop.xlane.xlu0 %3493 }
 0xb36   :  { %v3526_v32 = vmul.f32 %v4294_v49, %v3494_v30  ;;  %v3072_v49 = vmul.f32 %v4273_v43, %v6151_v48  ;;  %v2558_v48 = vsel %vm329_vm14, %v2556_v2, 0.0  ;;  %v2688_v2 = vsel %vm329_vm14, %v2686_v60, 0.0 }
 0xb37   :  { %4681 = vpow2.f32 %v4297_v51 }
 0xb38   :  { %v6275_v21 = vadd.f32 %v3526_v32, %v3519_v5  ;;  %v6286_v32 = vadd.f32 %v3072_v49, %v3065_v25  ;;  %v3071_v25 = vmul.f32 %v4273_v43, %v6224_v40  ;;  %v6296_v49 = vpop.xlane.xlu1 %3447  ;;  %v3064_v43 = vmul.f32 %v4272_v42, %v2943_v31 }
 0xb39   :  { %v2405_v0 = vpop.xlane.xlu0 %2404 }
 0xb3a   :  { %6626 = vst [vmem:[#allocation11_spill] sm:$0xff] %v6275_v21  ;;  %v2425_v22 = vmul.f32 %v2423_v6, %v2405_v0 }
 0xb3c   :  { %v2427_v56 = vsel %vm329_vm14, %v2425_v22, 0.0  ;;  %v4279_v22 = vld [vmem:[#allocation5 + $0xd] ss:$0 sm:$0xff] }
 0xb3d   :  { %v2429_v16 = vadd.f32 %v2428_v50, %v2427_v56  ;;  %v2535_v30 = vpop.xlane.xlu0 %2534  ;;  %v3202_v3 = vmul.f32 %v4279_v22, %v6173_v63  ;;  %v6299_v50 = vld [vmem:[#allocation2 + $0x20] sm:$0xff]  ;;  %v2816_v56 = vmul.f32 %v6255_v38, %v6239_v54  ;;  %v3201_v54 = vmul.f32 %v4279_v22, %v6231_v23 }
 0xb3e   :  { %v2555_v6 = vmul.f32 %v2553_v39, %v2535_v30  ;;  %v3195_v39 = vmul.f32 %v4278_v36, %v6286_v32  ;;  %v2946_v38 = vmul.f32 %v6268_v59, %v6251_v20 }
 0xb3f   :  { %v2430_v5 = vrot.slane %v2429_v16, 4  ;;  %v2818_v60 = vsel %vm329_vm14, %v2816_v56, 0.0  ;;  %v4680_v56 = vpop.eup %4679 }
 0xb40   :  { %v2557_v45 = vsel %vm329_vm14, %v2555_v6, 0.0  ;;  %v3204_v6 = vadd.f32 %v3202_v3, %v3195_v39 }
 0xb41   :  { %v2431_v58 = vadd.f32 %v2430_v5, %v2429_v16  ;;  %v2559_v15 = vadd.f32 %v2558_v48, %v2557_v45  ;;  %v2665_v0 = vpop.xlane.xlu0 %2664  ;;  %v3073_v5 = vadd.f32 %v3071_v25, %v3064_v43  ;;  %v4298_v48 = vmul.f32 -1.442695, %v6299_v50 }
 0xb42   :  { %v2685_v9 = vmul.f32 %v2683_v55, %v2665_v0 }
 0xb43   :  { %v2432_v7 = vrot.slane %v2431_v58, 2  ;;  %v2560_v28 = vrot.slane %v2559_v15, 4  ;;  %4683 = vpow2.f32 %v4298_v48 }
 0xb44   :  { %v2687_v40 = vsel %vm329_vm14, %v2685_v9, 0.0 }
 0xb45   :  { %v2433_v16 = vadd.f32 %v2432_v7, %v2431_v58  ;;  %v2561_v55 = vadd.f32 %v2560_v28, %v2559_v15  ;;  %v2689_v30 = vadd.f32 %v2688_v2, %v2687_v40  ;;  %v2795_v63 = vpop.xlane.xlu0 %2794  ;;  %v4284_v58 = vld [vmem:[#allocation4 + $0xe] ss:$0 sm:$0xff]  ;;  %v6311_v15 = vpop.xlane.xlu1 %2472  ;;  %v3194_v2 = vmul.f32 %v4278_v36, %v3073_v5 }
 0xb46   :  { %v2815_v52 = vmul.f32 %v2813_v1, %v2795_v63  ;;  %v4285_v7 = vld [vmem:[#allocation5 + $0xe] ss:$0 sm:$0xff]  ;;  %v3325_v28 = vmul.f32 %v4284_v58, %v3204_v6  ;;  %v2948_v40 = vsel %vm329_vm14, %v2946_v38, 0.0 }
 0xb47   :  { %v2434_v45 = vrot.slane %v2433_v16, 1  ;;  %v2562_v0 = vrot.slane %v2561_v55, 2  ;;  %v2690_v21 = vrot.slane %v2689_v30, 4  ;;  %v3332_v23 = vmul.f32 %v4285_v7, %v6186_v27 }
 0xb48   :  { %v2817_v42 = vsel %vm329_vm14, %v2815_v52, 0.0  ;;  %v3331_v27 = vmul.f32 %v4285_v7, %v6247_v35 }
 0xb49   :  { %v2435_v1 = vadd.f32 %v2434_v45, %v2433_v16  ;;  %v2563_v25 = vadd.f32 %v2562_v0, %v2561_v55  ;;  %v2691_v39 = vadd.f32 %v2690_v21, %v2689_v30  ;;  %v2819_v9 = vadd.f32 %v2818_v60, %v2817_v42  ;;  %v2925_v3 = vpop.xlane.xlu0 %2924  ;;  %v3546_v55 = vld [vmem:[#allocation3] sm:$0xff]  ;;  %v6323_v38 = vpop.xlane.xlu1 %2602 }
 0xb4a   :  { %v2945_v51 = vmul.f32 %v2943_v31, %v2925_v3  ;;  %v3076_v21 = vmul.f32 %v6286_v32, %v6261_v62  ;;  %v3203_v16 = vadd.f32 %v3201_v54, %v3194_v2  ;;  %v3334_v48 = vadd.f32 %v3332_v23, %v3325_v28  ;;  %v6320_v0 = vld [vmem:[#allocation6] ss:$0 sm:$0xff] }
 0xb4b   :  { %2436 = vst.msk [vmem:[#allocation7 + $0x7] sm:$0x1] %vm1526_vm9, %v2435_v1  ;;  %v2564_v20 = vrot.slane %v2563_v25, 1  ;;  %v2692_v59 = vrot.slane %v2691_v39, 2  ;;  %v2820_v22 = vrot.slane %v2819_v9, 4  ;;  %v3593_v60 = vmul.f32 %v4680_v56, %v6234_v41 }
 0xb4c   :  { %v2947_v43 = vsel %vm329_vm14, %v2945_v51, 0.0  ;;  %v3557_v42 = vmul.f32 %v6320_v0, %v3546_v55  ;;  %v3078_v1 = vsel %vm329_vm14, %v3076_v21, 0.0  ;;  %v3336_v51 = vmul.f32 %v3334_v48, %v6284_v8 }
 0xb4d   :  { %v2565_v31 = vadd.f32 %v2564_v20, %v2563_v25  ;;  %v2693_v36 = vadd.f32 %v2692_v59, %v2691_v39  ;;  %v2821_v30 = vadd.f32 %v2820_v22, %v2819_v9  ;;  %v2949_v63 = vadd.f32 %v2948_v40, %v2947_v43  ;;  %v3055_v52 = vpop.xlane.xlu0 %3054  ;;  %v4290_v39 = vld [vmem:[#allocation4 + $0xf] ss:$0 sm:$0xff] }
 0xb4e   :  { %v3075_v45 = vmul.f32 %v3073_v5, %v3055_v52  ;;  %v3206_v25 = vmul.f32 %v3204_v6, %v6271_v18  ;;  %v3324_v5 = vmul.f32 %v4284_v58, %v3203_v16  ;;  %v3455_v2 = vmul.f32 %v4290_v39, %v3334_v48  ;;  %v4291_v59 = vld [vmem:[#allocation5 + $0xf] ss:$0 sm:$0xff]  ;;  %v4682_v58 = vpop.eup %4681 }
 0xb4f   :  { %2566 = vst.msk [vmem:[#allocation7 + $0x8] sm:$0x1] %vm1526_vm9, %v2565_v31  ;;  %v2694_v62 = vrot.slane %v2693_v36, 1  ;;  %v2822_v32 = vrot.slane %v2821_v30, 2  ;;  %v2950_v54 = vrot.slane %v2949_v63, 4  ;;  %v3462_v21 = vmul.f32 %v4291_v59, %v6199_v19  ;;  %v6336_v31 = vpop.xlane.xlu1 %2732 }
 0xb50   :  { %v3077_v35 = vsel %vm329_vm14, %v3075_v45, 0.0  ;;  %v3333_v23 = vadd.f32 %v3331_v27, %v3324_v5  ;;  %v3208_v43 = vsel %vm329_vm14, %v3206_v25, 0.0  ;;  %v3461_v55 = vmul.f32 %v4291_v59, %v6263_v47 }
 0xb51   :  { %v2695_v9 = vadd.f32 %v2694_v62, %v2693_v36  ;;  %v2823_v3 = vadd.f32 %v2822_v32, %v2821_v30  ;;  %v2951_v41 = vadd.f32 %v2950_v54, %v2949_v63  ;;  %v3079_v7 = vadd.f32 %v3078_v1, %v3077_v35  ;;  %v3185_v28 = vpop.xlane.xlu0 %3184  ;;  %v4684_v32 = vpop.eup %4683 }
 0xb52   :  { %v3205_v56 = vmul.f32 %v3203_v16, %v3185_v28  ;;  %v3542_v20 = vld [vmem:[#allocation7] sm:$0xff]  ;;  %v3464_v27 = vadd.f32 %v3462_v21, %v3455_v2  ;;  %v3454_v45 = vmul.f32 %v4290_v39, %v3333_v23  ;;  %v3338_v19 = vsel %vm329_vm14, %v3336_v51, 0.0 }
 0xb53   :  { %2696 = vst.msk [vmem:[#allocation7 + $0x9] sm:$0x1] %vm1526_vm9, %v2695_v9  ;;  %v2824_v22 = vrot.slane %v2823_v3, 1  ;;  %v2952_v18 = vrot.slane %v2951_v41, 2  ;;  %v3080_v6 = vrot.slane %v3079_v7, 4  ;;  %v3561_v40 = vadd.f32 %v3557_v42, %v3542_v20  ;;  %v2863_v51 = vpop.xlane.xlu1 %2862 }
 0xb54   :  { %v3207_v8 = vsel %vm329_vm14, %v3205_v56, 0.0  ;;  %v3466_v1 = vmul.f32 %v3464_v27, %v6296_v49  ;;  %v3463_v35 = vadd.f32 %v3461_v55, %v3454_v45  ;;  %v2491_v20 = vmul.f32 %v6165_v24, %v6311_v15 }
 0xb55   :  { %v2825_v16 = vadd.f32 %v2824_v22, %v2823_v3  ;;  %v2953_v36 = vadd.f32 %v2952_v18, %v2951_v41  ;;  %v3081_v30 = vadd.f32 %v3080_v6, %v3079_v7  ;;  %v3209_v63 = vadd.f32 %v3208_v43, %v3207_v8  ;;  %v3315_v52 = vpop.xlane.xlu0 %3314 }
 0xb56   :  { %v3335_v48 = vmul.f32 %v3333_v23, %v3315_v52  ;;  %v6338_v62 = vmul.f32 %v3593_v60, %v3561_v40  ;;  %v3468_v23 = vsel %vm329_vm14, %v3466_v1, 0.0  ;;  %v3582_v55 = vadd.f32 1.0, %v4682_v58 }
 0xb57   :  { %2826 = vst.msk [vmem:[#allocation7 + $0xa] sm:$0x1] %vm1526_vm9, %v2825_v16  ;;  %v2954_v47 = vrot.slane %v2953_v36, 1  ;;  %v3082_v54 = vrot.slane %v3081_v30, 2  ;;  %v3210_v42 = vrot.slane %v3209_v63, 4  ;;  %v2621_v24 = vmul.f32 %v6175_v17, %v6323_v38 }
 0xb58   :  { %v3337_v25 = vsel %vm329_vm14, %v3335_v48, 0.0  ;;  %v3601_v5 = vmul.f32 %v6338_v62, %v6338_v62  ;;  %4685 = vrcp.f32 %v3582_v55  ;;  %v3583_v58 = vadd.f32 1.0, %v4684_v32 }
 0xb59   :  { %v2955_v9 = vadd.f32 %v2954_v47, %v2953_v36  ;;  %v3083_v39 = vadd.f32 %v3082_v54, %v3081_v30  ;;  %v3211_v60 = vadd.f32 %v3210_v42, %v3209_v63  ;;  %v3339_v3 = vadd.f32 %v3338_v19, %v3337_v25  ;;  %v3445_v41 = vpop.xlane.xlu0 %3444  ;;  %v2993_v63 = vpop.xlane.xlu1 %2992 }
 0xb5a   :  { %v3465_v7 = vmul.f32 %v3463_v35, %v3445_v41  ;;  %v3605_v28 = vsel %vm329_vm14, %v3601_v5, 0.0  ;;  %v2493_v30 = vsel %vm329_vm14, %v2491_v20, 0.0  ;;  %v2623_v1 = vsel %vm329_vm14, %v2621_v24, 0.0 }
 0xb5b   :  { %2956 = vst.msk [vmem:[#allocation7 + $0xb] sm:$0x1] %vm1526_vm9, %v2955_v9  ;;  %v3084_v2 = vrot.slane %v3083_v39, 1  ;;  %v3212_v56 = vrot.slane %v3211_v60, 2  ;;  %v3340_v49 = vrot.slane %v3339_v3, 4  ;;  %3606 = vadd.xlane.f32.xlu0 %v3605_v28  ;;  %v2751_v17 = vmul.f32 %v6179_v10, %v6336_v31 }
 0xb5c   :  { %v3467_v59 = vsel %vm329_vm14, %v3465_v7, 0.0  ;;  %4687 = vrcp.f32 %v3583_v58  ;;  %v2881_v10 = vmul.f32 %v6188_v34, %v2863_v51  ;;  %v3011_v34 = vmul.f32 %v6192_v37, %v2993_v63 }
 0xb5d   :  { %v3085_v22 = vadd.f32 %v3084_v2, %v3083_v39  ;;  %v3213_v18 = vadd.f32 %v3212_v56, %v3211_v60  ;;  %v3341_v6 = vadd.f32 %v3340_v49, %v3339_v3  ;;  %v3469_v40 = vadd.f32 %v3468_v23, %v3467_v59  ;;  %v2470_v21 = vpop.xlane.xlu0 %2469  ;;  %v3123_v32 = vpop.xlane.xlu1 %3122 }
 0xb5e   :  { %v2490_v43 = vmul.f32 %v6171_v44, %v2470_v21  ;;  %v2753_v7 = vsel %vm329_vm14, %v2751_v17, 0.0  ;;  %v3013_v37 = vsel %vm329_vm14, %v3011_v34, 0.0  ;;  %v3141_v63 = vmul.f32 %v6201_v13, %v3123_v32 }
 0xb5f   :  { %3086 = vst.msk [vmem:[#allocation7 + $0xc] sm:$0x1] %vm1526_vm9, %v3085_v22  ;;  %v3214_v8 = vrot.slane %v3213_v18, 1  ;;  %v3342_v16 = vrot.slane %v3341_v6, 2  ;;  %v3470_v36 = vrot.slane %v3469_v40, 4 }
 0xb60   :  { %v2492_v15 = vsel %vm329_vm14, %v2490_v43, 0.0 }
 0xb61   :  { %v3215_v52 = vadd.f32 %v3214_v8, %v3213_v18  ;;  %v3343_v27 = vadd.f32 %v3342_v16, %v3341_v6  ;;  %v3471_v48 = vadd.f32 %v3470_v36, %v3469_v40  ;;  %v2494_v45 = vadd.f32 %v2493_v30, %v2492_v15  ;;  %v2600_v19 = vpop.xlane.xlu0 %2599  ;;  %v6371_v18 = vld [vmem:[#allocation2 + $0x30] sm:$0xff]  ;;  %v3253_v40 = vpop.xlane.xlu1 %3252 }
 0xb62   :  { %v2620_v44 = vmul.f32 %v6181_v12, %v2600_v19  ;;  %v2883_v6 = vsel %vm329_vm14, %v2881_v10, 0.0  ;;  %v4299_v30 = vmul.f32 -1.442695, %v6371_v18 }
 0xb63   :  { %3216 = vst.msk [vmem:[#allocation7 + $0xd] sm:$0x1] %vm1526_vm9, %v3215_v52  ;;  %v3344_v47 = vrot.slane %v3343_v27, 1  ;;  %v3472_v54 = vrot.slane %v3471_v48, 2  ;;  %v2495_v42 = vrot.slane %v2494_v45, 4 }
 0xb64   :  { %v2622_v38 = vsel %vm329_vm14, %v2620_v44, 0.0  ;;  %4689 = vpow2.f32 %v4299_v30 }
 0xb65   :  { %v3345_v25 = vadd.f32 %v3344_v47, %v3343_v27  ;;  %v3473_v35 = vadd.f32 %v3472_v54, %v3471_v48  ;;  %v2496_v5 = vadd.f32 %v2495_v42, %v2494_v45  ;;  %v2624_v9 = vadd.f32 %v2623_v1, %v2622_v38  ;;  %v2730_v39 = vpop.xlane.xlu0 %2729  ;;  %v4686_v24 = vpop.eup %4685  ;;  %v3548_v54 = vld [vmem:[#allocation3 + $0x10] sm:$0xff] }
 0xb66   :  { %v2750_v12 = vmul.f32 %v6194_v14, %v2730_v39  ;;  %v3594_v17 = vmul.f32 %v4686_v24, %v6291_v53  ;;  %v3143_v39 = vsel %vm329_vm14, %v3141_v63, 0.0  ;;  %v6627_v63 = vld [vmem:[#allocation11_spill] sm:$0xff] }
 0xb67   :  { %3346 = vst.msk [vmem:[#allocation7 + $0xe] sm:$0x1] %vm1526_vm9, %v3345_v25  ;;  %v3474_v60 = vrot.slane %v3473_v35, 1  ;;  %v2497_v3 = vrot.slane %v2496_v5, 2  ;;  %v2625_v41 = vrot.slane %v2624_v9, 4  ;;  %v3383_v25 = vpop.xlane.xlu1 %3382 }
 0xb68   :  { %v2752_v31 = vsel %vm329_vm14, %v2750_v12, 0.0  ;;  %v3271_v12 = vmul.f32 %v6205_v61, %v3253_v40 }
 0xb69   :  { %v3475_v28 = vadd.f32 %v3474_v60, %v3473_v35  ;;  %v2498_v2 = vadd.f32 %v2497_v3, %v2496_v5  ;;  %v2626_v56 = vadd.f32 %v2625_v41, %v2624_v9  ;;  %v2754_v49 = vadd.f32 %v2753_v7, %v2752_v31  ;;  %v2860_v23 = vpop.xlane.xlu0 %2859  ;;  %v4688_v38 = vpop.eup %4687 }
 0xb6a   :  { %v2880_v14 = vmul.f32 %v6207_v4, %v2860_v23  ;;  %v3547_v4 = vld [vmem:[#allocation3 + $0x8] sm:$0xff] }
 0xb6b   :  { %3476 = vst.msk [vmem:[#allocation7 + $0xf] sm:$0x1] %vm1526_vm9, %v3475_v28  ;;  %v2499_v20 = vrot.slane %v2498_v2, 1  ;;  %v2627_v59 = vrot.slane %v2626_v56, 2  ;;  %v2755_v22 = vrot.slane %v2754_v49, 4  ;;  %v3558_v45 = vmul.f32 %v6320_v0, %v3547_v4 }
 0xb6c   :  { %v2882_v51 = vsel %vm329_vm14, %v2880_v14, 0.0  ;;  %v3273_v14 = vsel %vm329_vm14, %v3271_v12, 0.0 }
 0xb6d   :  { %v2500_v21 = vadd.f32 %v2499_v20, %v2498_v2  ;;  %v2628_v43 = vadd.f32 %v2627_v59, %v2626_v56  ;;  %v2756_v55 = vadd.f32 %v2755_v22, %v2754_v49  ;;  %v2884_v8 = vadd.f32 %v2883_v6, %v2882_v51  ;;  %v2990_v16 = vpop.xlane.xlu0 %2989  ;;  %v3513_v22 = vpop.xlane.xlu1 %3512 }
 0xb6e   :  { %v3010_v36 = vmul.f32 %v6220_v46, %v2990_v16  ;;  %v3595_v2 = vmul.f32 %v4688_v38, %v6299_v50  ;;  %v3401_v20 = vmul.f32 %v6214_v57, %v3383_v25 }
 0xb6f   :  { %2501 = vst.msk [vmem:[#allocation7 + $0x17] sm:$0x1] %vm1526_vm9, %v2500_v21  ;;  %v2629_v15 = vrot.slane %v2628_v43, 1  ;;  %v2757_v52 = vrot.slane %v2756_v55, 2  ;;  %v2885_v27 = vrot.slane %v2884_v8, 4 }
 0xb70   :  { %v3012_v48 = vsel %vm329_vm14, %v3010_v36, 0.0  ;;  %v3403_v4 = vsel %vm329_vm14, %v3401_v20, 0.0  ;;  %v3531_v36 = vmul.f32 %v6218_v26, %v3513_v22  ;;  %v4520_v20 = vld [vmem:[%s6575_s10 + $0x10] sm:$0xff]  }
 0xb71   :  { %v2630_v19 = vadd.f32 %v2629_v15, %v2628_v43  ;;  %v2758_v44 = vadd.f32 %v2757_v52, %v2756_v55  ;;  %v2886_v58 = vadd.f32 %v2885_v27, %v2884_v8  ;;  %v3014_v46 = vadd.f32 %v3013_v37, %v3012_v48  ;;  %v3120_v47 = vpop.xlane.xlu0 %3119 }
 0xb72   :  { %v3140_v42 = vmul.f32 %v6229_v11, %v3120_v47  ;;  %v3543_v1 = vld [vmem:[#allocation7 + $0x8] sm:$0xff]  ;;  %v3559_v11 = vmul.f32 %v6320_v0, %v3548_v54 }
 0xb73   :  { %2631 = vst.msk [vmem:[#allocation7 + $0x18] sm:$0x1] %vm1526_vm9, %v2630_v19  ;;  %v2759_v13 = vrot.slane %v2758_v44, 1  ;;  %v2887_v35 = vrot.slane %v2886_v58, 2  ;;  %v3015_v5 = vrot.slane %v3014_v46, 4  ;;  %v3562_v9 = vadd.f32 %v3558_v45, %v3543_v1  ;;  %v4690_v19 = vpop.eup %4689 }
 0xb74   :  { %v3142_v32 = vsel %vm329_vm14, %v3140_v42, 0.0 }
 0xb75   :  { %v2760_v60 = vadd.f32 %v2759_v13, %v2758_v44  ;;  %v2888_v3 = vadd.f32 %v2887_v35, %v2886_v58  ;;  %v3016_v53 = vadd.f32 %v3015_v5, %v3014_v46  ;;  %v3144_v41 = vadd.f32 %v3143_v39, %v3142_v32  ;;  %v3250_v7 = vpop.xlane.xlu0 %3249 }
 0xb76   :  { %v3270_v10 = vmul.f32 %v6245_v33, %v3250_v7  ;;  %v6391_v31 = vmul.f32 %v3594_v17, %v3562_v9  ;;  %v3544_v28 = vld [vmem:[#allocation7 + $0x10] sm:$0xff]  ;;  %v3533_v46 = vsel %vm329_vm14, %v3531_v36, 0.0  ;;  %v3584_v35 = vadd.f32 1.0, %v4690_v19 }
 0xb77   :  { %2761 = vst.msk [vmem:[#allocation7 + $0x19] sm:$0x1] %vm1526_vm9, %v2760_v60  ;;  %v2889_v56 = vrot.slane %v2888_v3, 1  ;;  %v3017_v61 = vrot.slane %v3016_v53, 2  ;;  %v3145_v49 = vrot.slane %v3144_v41, 4  ;;  %v3563_v23 = vadd.f32 %v3559_v11, %v3544_v28 }
 0xb78   :  { %v3272_v59 = vsel %vm329_vm14, %v3270_v10, 0.0  ;;  %v3602_v33 = vmul.f32 %v6391_v31, %v6391_v31  ;;  %4691 = vrcp.f32 %v3584_v35 }
 0xb79   :  { %v2890_v6 = vadd.f32 %v2889_v56, %v2888_v3  ;;  %v3018_v34 = vadd.f32 %v3017_v61, %v3016_v53  ;;  %v3146_v51 = vadd.f32 %v3145_v49, %v3144_v41  ;;  %v3274_v50 = vadd.f32 %v3273_v14, %v3272_v59  ;;  %v3380_v40 = vpop.xlane.xlu0 %3379  ;;  %v3549_v41 = vld [vmem:[#allocation3 + $0x18] sm:$0xff] }
 0xb7a   :  { %v3400_v21 = vmul.f32 %v6259_v29, %v3380_v40  ;;  %v3608_v43 = vsel %vm329_vm14, %v3602_v33, 0.0  ;;  %v6402_v55 = vmul.f32 %v3595_v2, %v3563_v23  ;;  %v3560_v10 = vmul.f32 %v6320_v0, %v3549_v41  ;;  %v4519_v14 = vld [vmem:[%s6575_s10 + $0x18] sm:$0xff]   ;;  %v4521_v0 = vld [vmem:[%s6575_s10 + $0x8] sm:$0xff]  }
 0xb7b   :  { %2891 = vst.msk [vmem:[#allocation7 + $0x1a] sm:$0x1] %vm1526_vm9, %v2890_v6  ;;  %v3019_v57 = vrot.slane %v3018_v34, 1  ;;  %v3147_v8 = vrot.slane %v3146_v51, 2  ;;  %v3275_v16 = vrot.slane %v3274_v50, 4  ;;  %3609 = vadd.xlane.f32.xlu1 %v3608_v43  ;;  %4409 = vmatprep.subr.bf16.mxu1 %v4519_v14 }
 0xb7c   :  { %v3402_v30 = vsel %vm329_vm14, %v3400_v21, 0.0  ;;  %v3603_v24 = vmul.f32 %v6402_v55, %v6402_v55  ;;  %4410 = vmatpush3.bf16.msra.mxu1 %v4519_v14  ;;  %v4300_v43 = vld [vmem:[%s6574_s9] ss:$0 sm:$0xff] }
 0xb7d   :  { %v3020_v29 = vadd.f32 %v3019_v57, %v3018_v34  ;;  %v3148_v15 = vadd.f32 %v3147_v8, %v3146_v51  ;;  %v3276_v52 = vadd.f32 %v3275_v16, %v3274_v50  ;;  %v3404_v27 = vadd.f32 %v3403_v4, %v3402_v30  ;;  %v3510_v37 = vpop.xlane.xlu0 %3509  ;;  %4411 = vmatprep.subr.bf16.mxu1 %v4520_v20 }
 0xb7e   :  { %v3530_v48 = vmul.f32 %v6627_v63, %v3510_v37  ;;  %v3611_v45 = vsel %vm329_vm14, %v3603_v24, 0.0 }
 0xb7f   :  { %3021 = vst.msk [vmem:[#allocation7 + $0x1b] sm:$0x1] %vm1526_vm9, %v3020_v29  ;;  %v3149_v44 = vrot.slane %v3148_v15, 1  ;;  %v3277_v58 = vrot.slane %v3276_v52, 2  ;;  %v3405_v26 = vrot.slane %v3404_v27, 4  ;;  %3612 = vadd.xlane.f32.xlu0 %v3611_v45 }
 0xb80   :  { %v3532_v47 = vsel %vm329_vm14, %v3530_v48, 0.0  ;;  %4412 = vmatpush3.bf16.msra.mxu1 %v4520_v20 }
 0xb81   :  { %v3150_v54 = vadd.f32 %v3149_v44, %v3148_v15  ;;  %v3278_v42 = vadd.f32 %v3277_v58, %v3276_v52  ;;  %v3406_v1 = vadd.f32 %v3405_v26, %v3404_v27  ;;  %v3534_v17 = vadd.f32 %v3533_v46, %v3532_v47  ;;  %4413 = vmatprep.subr.bf16.mxu1 %v4521_v0  ;;  %v4753_v58 = vld [vmem:[%s6586_s26] sm:$0xff] }
 0xb83   :  { %3151 = vst.msk [vmem:[#allocation7 + $0x1c] sm:$0x1] %vm1526_vm9, %v3150_v54  ;;  %v3279_v38 = vrot.slane %v3278_v42, 1  ;;  %v3407_v25 = vrot.slane %v3406_v1, 2  ;;  %v3535_v13 = vrot.slane %v3534_v17, 4 }
 0xb84   :  { %4414 = vmatpush3.bf16.msra.mxu1 %v4521_v0 }
 0xb85   :  { %v3280_v5 = vadd.f32 %v3279_v38, %v3278_v42  ;;  %v3408_v9 = vadd.f32 %v3407_v25, %v3406_v1  ;;  %v3536_v39 = vadd.f32 %v3535_v13, %v3534_v17  ;;  %v4692_v7 = vpop.eup %4691  ;;  %v4755_v1 = vld [vmem:[%s6586_s26 + $0x8] sm:$0xff]  ;;  %v4756_v38 = vld [vmem:[%s6586_s26 + $0x18] sm:$0xff] }
 0xb86   :  { %v3596_v56 = vmul.f32 %v4692_v7, %v6371_v18  ;;  %v4522_v18 = vld [vmem:[%s6575_s10] sm:$0xff]  }
 0xb87   :  { %3281 = vst.msk [vmem:[#allocation7 + $0x1d] sm:$0x1] %vm1526_vm9, %v3280_v5  ;;  %v3409_v12 = vrot.slane %v3408_v9, 1  ;;  %v3537_v32 = vrot.slane %v3536_v39, 2  ;;  %4415 = vmatprep.subr.bf16.mxu1 %v4522_v18 }
 0xb88   :  { %4416 = vmatpush3.bf16.msra.mxu1 %v4522_v18  ;;  %v4523_v18 = vld [vmem:[%s6578_s13 + $0x8] sm:$0xff]  }
 0xb89   :  { %v3410_v11 = vadd.f32 %v3409_v12, %v3408_v9  ;;  %v3538_v60 = vadd.f32 %v3537_v32, %v3536_v39  ;;  %4421 = vmatprep.subr.bf16.mxu0 %v4523_v18 }
 0xb8a   :  { %4422 = vmatpush3.bf16.msra.mxu0 %v4523_v18 }
 0xb8b   :  { %3411 = vst.msk [vmem:[#allocation7 + $0x1e] sm:$0x1] %vm1526_vm9, %v3410_v11  ;;  %v3539_v3 = vrot.slane %v3538_v60, 1 }
 0xb8d   :  { %v3540_v53 = vadd.f32 %v3539_v3, %v3538_v60 }
 0xb8f   :  { %3541 = vst.msk [vmem:[#allocation7 + $0x1f] sm:$0x1] %vm1526_vm9, %v3540_v53 }
 0xb96   :  { %v3545_v28 = vld [vmem:[#allocation7 + $0x18] sm:$0xff] }
 0xb97   :  { %v3564_v2 = vadd.f32 %v3560_v10, %v3545_v28 }
 0xb99   :  { %v3600_v61 = vmul.f32 %v3596_v56, %v3564_v2 }
 0xb9b   :  { %v3604_v49 = vmul.f32 %v3600_v61, %v3600_v61 }
 0xb9d   :  { %v3614_v23 = vsel %vm329_vm14, %v3604_v49, 0.0 }
 0xb9e   :  { %3615 = vadd.xlane.f32.xlu1 %v3614_v23 }
 0xbe4   :  { %v3607_v59 = vpop.xlane.xlu0 %3606 }
 0xbe5   :  { %v3618_v33 = vmul.f32 0.015625, %v3607_v59  ;;  %v4524_v59 = vld [vmem:[%s6578_s13] sm:$0xff]  }
 0xbe6   :  { %4423 = vmatprep.subr.bf16.mxu0 %v4524_v59 }
 0xbe7   :  { %v3622_v22 = vadd.f32 1e-05, %v3618_v33  ;;  %4424 = vmatpush3.bf16.msra.mxu0 %v4524_v59 }
 0xbe9   :  { %4693 = vrsqrt.f32 %v3622_v22 }
 0xbf6   :  { %v4694_v50 = vpop.eup %4693 }
 0xbf7   :  { %v3630_v40 = vmul.f32 %v4694_v50, %v6338_v62 }
 0xbf9   :  { %v3641_v8 = vmul.f32 %v4300_v43, %v3630_v40 }
 0xc04   :  { %v3610_v6 = vpop.xlane.xlu1 %3609 }
 0xc05   :  { %v3619_v34 = vmul.f32 0.015625, %v3610_v6 }
 0xc07   :  { %v3623_v51 = vadd.f32 1e-05, %v3619_v34 }
 0xc08   :  { %v3613_v36 = vpop.xlane.xlu0 %3612 }
 0xc09   :  { %4695 = vrsqrt.f32 %v3623_v51  ;;  %v3620_v30 = vmul.f32 0.015625, %v3613_v36 }
 0xc0b   :  { %v3624_v24 = vadd.f32 1e-05, %v3620_v30  ;;  %v4307_v30 = vld [vmem:[%s6576_s11] ss:$0 sm:$0xff] }
 0xc0d   :  { %4697 = vrsqrt.f32 %v3624_v24 }
 0xc16   :  { %v4696_v21 = vpop.eup %4695 }
 0xc17   :  { %v3631_v57 = vmul.f32 %v4696_v21, %v6391_v31 }
 0xc19   :  { %v3642_v16 = vmul.f32 %v4300_v43, %v3631_v57 }
 0xc1a   :  { %v4698_v62 = vpop.eup %4697 }
 0xc1b   :  { %v3653_v4 = vpack.c.bf16 %v3642_v16, %v3641_v8  ;;  %v3632_v27 = vmul.f32 %v4698_v62, %v6402_v55  ;;  %v4754_v55 = vld [vmem:[%s6586_s26 + $0x10] sm:$0xff]  ;;  %s4139_s26 = sshll.u32 %s4793_s8, 4  ;;  %s4140_s26 = int_to_ptr.vmem [resolvable:$true] %s4139_s26 }
 0xc1c   :  { %p4762_p1 = scmp.lt.s32.totalorder %s4140_s26, %s4140_s26 }
 0xc1d   :  { %4417 = vmatprep.mubr.msk.bf16.mxu1 %vm329_vm14, %v3653_v4  ;;  %v3643_v48 = vmul.f32 %v4300_v43, %v3632_v27  ;;  %v4308_v27 = vld [vmem:[%s6577_s12] ss:$0 sm:$0xff] }
 0xc27   :  { %v3616_v29 = vpop.xlane.xlu1 %3615 }
 0xc28   :  { %v3621_v15 = vmul.f32 0.015625, %v3616_v29 }
 0xc2a   :  { %v3625_v52 = vadd.f32 1e-05, %v3621_v15 }
 0xc2c   :  { %4699 = vrsqrt.f32 %v3625_v52 }
 0xc39   :  { %v4700_v37 = vpop.eup %4699 }
 0xc3a   :  { %v3633_v63 = vmul.f32 %v4700_v37, %v3600_v61 }
 0xc3c   :  { %v3644_v31 = vmul.f32 %v4300_v43, %v3633_v63 }
 0xc3e   :  { %v3654_v45 = vpack.c.bf16 %v3644_v31, %v3643_v48 }
 0xc40   :  { %4418 = vmatmul.mubr.msk.bf16.vlgmr.msra.gmra.mxu1 %vm329_vm14, %v3654_v45 }
 0xd00   :  { %v4419_v19 = vpop.f32.mrf.mxu1 }
 0xd01   :  { %v6450_v47 = vadd.f32 %v4754_v55, %v4419_v19 }
 0xd02   :  { %v3719_v44 = vpop.f32.mrf.mxu1 }
 0xd03   :  { %v6445_v26 = vadd.f32 %v4753_v58, %v3719_v44  ;;  %v3746_v13 = vsel %vm64_vm0, %v6450_v47, 0.0 }
 0xd04   :  { %v4420_v46 = vpop.f32.mrf.mxu1 }
 0xd05   :  { %v3740_v54 = vsel %vm64_vm0, %v6445_v26, 0.0  ;;  %v6462_v25 = vadd.f32 %v4756_v38, %v4420_v46  ;;  %v4527_v38 = vld [vmem:[%s6580_s15 + $0x28] sm:$0xff]  }
 0xd06   :  { %3741 = vadd.xlane.f32.xlu0 %v3740_v54  ;;  %v3722_v42 = vpop.f32.mrf.mxu1 }
 0xd07   :  { %v6457_v17 = vadd.f32 %v4755_v1, %v3722_v42  ;;  %v3749_v5 = vsel %vm64_vm0, %v6462_v25, 0.0  ;;  %v4525_v42 = vld [vmem:[%s6580_s15 + $0x38] sm:$0xff]   ;;  %v4526_v1 = vld [vmem:[%s6580_s15 + $0x30] sm:$0xff]  }
 0xd08   :  { %4429 = vmatprep.subr.bf16.mxu0 %v4525_v42 }
 0xd09   :  { %v3743_v35 = vsel %vm64_vm0, %v6457_v17, 0.0 }
 0xd0a   :  { %3747 = vadd.xlane.f32.xlu0 %v3746_v13  ;;  %3744 = vadd.xlane.f32.xlu1 %v3743_v35  ;;  %v4528_v13 = vld [vmem:[%s6580_s15 + $0x20] sm:$0xff]   ;;  %v4529_v35 = vld [vmem:[%s6580_s15 + $0x18] sm:$0xff]  }
 0xd0e   :  { %3750 = vadd.xlane.f32.xlu1 %v3749_v5  ;;  %v4530_v5 = vld [vmem:[%s6580_s15 + $0x10] sm:$0xff]  }
 0xd8f   :  { %v3742_v9 = vpop.xlane.xlu0 %3741 }
 0xd90   :  { %v3752_v39 = vmul.f32 0.03125, %v3742_v9  ;;  %v4531_v9 = vld [vmem:[%s6580_s15 + $0x8] sm:$0xff]  }
 0xd92   :  { %v3756_v12 = vsub.f32 %v6445_v26, %v3752_v39  ;;  %v4532_v39 = vld [vmem:[%s6580_s15] sm:$0xff]  }
 0xd93   :  { %v3748_v32 = vpop.xlane.xlu0 %3747  ;;  %v3745_v11 = vpop.xlane.xlu1 %3744 }
 0xd94   :  { %v3754_v60 = vmul.f32 0.03125, %v3748_v32  ;;  %v3753_v3 = vmul.f32 0.03125, %v3745_v11  ;;  %v3760_v53 = vmul.f32 %v3756_v12, %v3756_v12 }
 0xd96   :  { %v3758_v41 = vsub.f32 %v6450_v47, %v3754_v60  ;;  %v3757_v7 = vsub.f32 %v6457_v17, %v3753_v3  ;;  %v3764_v10 = vsel %vm64_vm0, %v3760_v53, 0.0 }
 0xd97   :  { %3765 = vadd.xlane.f32.xlu0 %v3764_v10  ;;  %v3751_v28 = vpop.xlane.xlu1 %3750 }
 0xd98   :  { %v3755_v2 = vmul.f32 0.03125, %v3751_v28  ;;  %v3762_v56 = vmul.f32 %v3758_v41, %v3758_v41  ;;  %v3761_v61 = vmul.f32 %v3757_v7, %v3757_v7 }
 0xd9a   :  { %v3759_v49 = vsub.f32 %v6462_v25, %v3755_v2  ;;  %v3770_v23 = vsel %vm64_vm0, %v3762_v56, 0.0  ;;  %v3767_v14 = vsel %vm64_vm0, %v3761_v61, 0.0 }
 0xd9b   :  { %3771 = vadd.xlane.f32.xlu0 %v3770_v23  ;;  %3768 = vadd.xlane.f32.xlu1 %v3767_v14 }
 0xd9c   :  { %v3763_v20 = vmul.f32 %v3759_v49, %v3759_v49 }
 0xd9e   :  { %v3773_v0 = vsel %vm64_vm0, %v3763_v20, 0.0 }
 0xd9f   :  { %3774 = vadd.xlane.f32.xlu1 %v3773_v0 }
 0xe20   :  { %v3766_v33 = vpop.xlane.xlu0 %3765 }
 0xe21   :  { %v3776_v22 = vmul.f32 0.03125, %v3766_v33 }
 0xe23   :  { %v3780_v6 = vadd.f32 1e-05, %v3776_v22 }
 0xe24   :  { %v3772_v34 = vpop.xlane.xlu0 %3771  ;;  %v3769_v51 = vpop.xlane.xlu1 %3768 }
 0xe25   :  { %4701 = vrsqrt.f32 %v3780_v6  ;;  %v3778_v50 = vmul.f32 0.03125, %v3772_v34  ;;  %v3777_v40 = vmul.f32 0.03125, %v3769_v51 }
 0xe27   :  { %v3782_v21 = vadd.f32 1e-05, %v3778_v50  ;;  %v3781_v43 = vadd.f32 1e-05, %v3777_v40 }
 0xe28   :  { %v3775_v57 = vpop.xlane.xlu1 %3774 }
 0xe29   :  { %4703 = vrsqrt.f32 %v3782_v21  ;;  %v3779_v8 = vmul.f32 0.03125, %v3775_v57 }
 0xe2a   :  { %4705 = vrsqrt.f32 %v3781_v43 }
 0xe2b   :  { %v3783_v16 = vadd.f32 1e-05, %v3779_v8 }
 0xe2d   :  { %4707 = vrsqrt.f32 %v3783_v16 }
 0xe32   :  { %v4702_v4 = vpop.eup %4701 }
 0xe33   :  { %v3788_v36 = vmul.f32 %v4702_v4, %v3756_v12  ;;  %v4309_v12 = vld [vmem:[%s6579_s14] ss:$0 sm:$0xff] }
 0xe35   :  { %v3798_v62 = vmul.f32 %v4307_v30, %v3788_v36 }
 0xe36   :  { %v4704_v24 = vpop.eup %4703 }
 0xe37   :  { %v4706_v29 = vpop.eup %4705  ;;  %v3790_v15 = vmul.f32 %v4704_v24, %v3758_v41  ;;  %v3808_v45 = vadd.f32 %v4308_v27, %v3798_v62 }
 0xe38   :  { %v3789_v52 = vmul.f32 %v4706_v29, %v3757_v7 }
 0xe39   :  { %v3800_v31 = vmul.f32 %v4307_v30, %v3790_v15 }
 0xe3a   :  { %v4708_v37 = vpop.eup %4707  ;;  %v3799_v63 = vmul.f32 %v4307_v30, %v3789_v52 }
 0xe3b   :  { %v3791_v48 = vmul.f32 %v4708_v37, %v3759_v49  ;;  %v3810_v46 = vadd.f32 %v4308_v27, %v3800_v31 }
 0xe3c   :  { %v3809_v19 = vadd.f32 %v4308_v27, %v3799_v63 }
 0xe3d   :  { %v3801_v44 = vmul.f32 %v4307_v30, %v3791_v48 }
 0xe3e   :  { %v3816_v58 = vpack.c.bf16 %v3809_v19, %v3808_v45 }
 0xe3f   :  { %v3811_v55 = vadd.f32 %v4308_v27, %v3801_v44 }
 0xe40   :  { %4425 = vmatprep.mubr.msk.bf16.mxu0 %vm64_vm0, %v3816_v58 }
 0xe41   :  { %v3817_v54 = vpack.c.bf16 %v3811_v55, %v3810_v46 }
 0xe43   :  { %4426 = vmatmul.mubr.msk.bf16.vlgmr.msra.gmra.mxu0 %vm64_vm0, %v3817_v54 }
 0xe44   :  { %4430 = vmatpush3.bf16.msra.mxu0 %v4525_v42 }
 0xe45   :  { %4431 = vmatprep.subr.bf16.mxu0 %v4526_v1 }
 0xe48   :  { %4432 = vmatpush3.bf16.msra.mxu0 %v4526_v1 }
 0xe49   :  { %4433 = vmatprep.subr.bf16.mxu0 %v4527_v38 }
 0xe4c   :  { %4434 = vmatpush3.bf16.msra.mxu0 %v4527_v38 }
 0xe4d   :  { %4435 = vmatprep.subr.bf16.mxu0 %v4528_v13 }
 0xe50   :  { %4436 = vmatpush3.bf16.msra.mxu0 %v4528_v13 }
 0xe51   :  { %4437 = vmatprep.subr.bf16.mxu0 %v4529_v35 }
 0xe54   :  { %4438 = vmatpush3.bf16.msra.mxu0 %v4529_v35 }
 0xe55   :  { %4439 = vmatprep.subr.bf16.mxu0 %v4530_v5 }
 0xe58   :  { %4440 = vmatpush3.bf16.msra.mxu0 %v4530_v5 }
 0xe59   :  { %4441 = vmatprep.subr.bf16.mxu0 %v4531_v9 }
 0xe5c   :  { %4442 = vmatpush3.bf16.msra.mxu0 %v4531_v9 }
 0xe5d   :  { %4443 = vmatprep.subr.bf16.mxu0 %v4532_v39 }
 0xe60   :  { %4444 = vmatpush3.bf16.msra.mxu0 %v4532_v39 }
 0xf03   :  { %v4427_v32 = vpop.f32.mrf.mxu0 }
 0xf04   :  { %v6519_v11 = vadd.f32 %v4427_v32, %v4309_v12 }
 0xf05   :  { %v3877_v60 = vpop.f32.mrf.mxu0 }
 0xf06   :  { %v6522_v3 = vmul.f32 0.70710677, %v6519_v11  ;;  %v6524_v53 = vadd.f32 %v4309_v12, %v3877_v60 }
 0xf07   :  { %v4428_v41 = vpop.f32.mrf.mxu0 }
 0xf08   :  { %v3910_v7 = vand.u32 2147483647, %v6522_v3  ;;  %v6528_v10 = vmul.f32 0.70710677, %v6524_v53  ;;  %v6530_v28 = vadd.f32 %v4428_v41, %v4309_v12  ;;  %vm3902_vm14 = vcmp.ge.f32.partialorder %v6522_v3, 0.0 }
 0xf09   :  { %v3880_v2 = vpop.f32.mrf.mxu0 }
 0xf0a   :  { %v3914_v56 = vmul.f32 0.3275911, %v3910_v7  ;;  %v3908_v61 = vand.u32 2147483647, %v6528_v10  ;;  %v6534_v49 = vmul.f32 0.70710677, %v6530_v28  ;;  %v6536_v23 = vadd.f32 %v4309_v12, %v3880_v2 }
 0xf0b   :  { %v3966_v50 = vsub.f32 0.0, %v3910_v7  ;;  %vm3900_vm10 = vcmp.ge.f32.partialorder %v6528_v10, 0.0 }
 0xf0c   :  { %v3918_v14 = vadd.f32 1.0, %v3914_v56  ;;  %v3912_v20 = vmul.f32 0.3275911, %v3908_v61  ;;  %v3911_v0 = vand.u32 2147483647, %v6534_v49  ;;  %v3964_v40 = vsub.f32 0.0, %v3908_v61 }
 0xf0d   :  { %v6540_v18 = vmul.f32 0.70710677, %v6536_v23  ;;  %v3970_v21 = vmul.f32 %v3966_v50, %v3910_v7  ;;  %vm3903_vm11 = vcmp.ge.f32.partialorder %v6534_v49, 0.0 }
 0xf0e   :  { %4709 = vrcp.f32 %v3918_v14  ;;  %v3916_v59 = vadd.f32 1.0, %v3912_v20  ;;  %v3915_v33 = vmul.f32 0.3275911, %v3911_v0  ;;  %v3967_v43 = vsub.f32 0.0, %v3911_v0 }
 0xf0f   :  { %v3909_v22 = vand.u32 2147483647, %v6540_v18  ;;  %v3968_v8 = vmul.f32 %v3964_v40, %v3908_v61  ;;  %v3976_v36 = vmul.f32 1.442695, %v3970_v21  ;;  %vm3901_vm12 = vcmp.ge.f32.partialorder %v6540_v18, 0.0 }
 0xf10   :  { %4711 = vrcp.f32 %v3916_v59  ;;  %v3919_v6 = vadd.f32 1.0, %v3915_v33  ;;  %v3971_v30 = vmul.f32 %v3967_v43, %v3911_v0 }
 0xf11   :  { %v3913_v34 = vmul.f32 0.3275911, %v3909_v22  ;;  %v3965_v4 = vsub.f32 0.0, %v3909_v22  ;;  %v3972_v52 = vmul.f32 1.442695, %v3968_v8 }
 0xf12   :  { %4713 = vrcp.f32 %v3919_v6  ;;  %v3978_v31 = vmul.f32 1.442695, %v3971_v30  ;;  %v4792_v30 = vmov -1.0  }
 0xf13   :  { %v3917_v51 = vadd.f32 1.0, %v3913_v34  ;;  %v3969_v37 = vmul.f32 %v3965_v4, %v3909_v22 }
 0xf15   :  { %4715 = vrcp.f32 %v3917_v51  ;;  %v3974_v54 = vmul.f32 1.442695, %v3969_v37 }
 0xf16   :  { %4717 = vpow2.f32 %v3976_v36 }
 0xf17   :  { %4719 = vpow2.f32 %v3972_v52 }
 0xf18   :  { %4721 = vpow2.f32 %v3978_v31 }
 0xf19   :  { %4723 = vpow2.f32 %v3974_v54 }
 0xf1b   :  { %v4710_v57 = vpop.eup %4709 }
 0xf1c   :  { %v3930_v16 = vmul.f32 1.0614054, %v4710_v57 }
 0xf1d   :  { %v4712_v24 = vpop.eup %4711 }
 0xf1e   :  { %v3934_v29 = vadd.f32 -1.4531521, %v3930_v16  ;;  %v3928_v15 = vmul.f32 1.0614054, %v4712_v24 }
 0xf1f   :  { %v4714_v62 = vpop.eup %4713 }
 0xf20   :  { %v3938_v27 = vmul.f32 %v4710_v57, %v3934_v29  ;;  %v3932_v63 = vadd.f32 -1.4531521, %v3928_v15  ;;  %v3931_v48 = vmul.f32 1.0614054, %v4714_v62  ;;  %v3904_v29 = vsel %vm3900_vm10, 1.0, %v4792_v30 }
 0xf22   :  { %v3942_v45 = vadd.f32 1.4214138, %v3938_v27  ;;  %v4716_v19 = vpop.eup %4715  ;;  %v3936_v44 = vmul.f32 %v4712_v24, %v3932_v63  ;;  %v3935_v58 = vadd.f32 -1.4531521, %v3931_v48  ;;  %v3907_v27 = vsel %vm3903_vm11, 1.0, %v4792_v30 }
 0xf23   :  { %v3929_v55 = vmul.f32 1.0614054, %v4716_v19  ;;  %v4718_v0 = vpop.eup %4717  ;;  %v3905_v48 = vsel %vm3901_vm12, 1.0, %v4792_v30 }
 0xf24   :  { %v3946_v46 = vmul.f32 %v4710_v57, %v3942_v45  ;;  %v3940_v42 = vadd.f32 1.4214138, %v3936_v44  ;;  %v3939_v1 = vmul.f32 %v4714_v62, %v3935_v58  ;;  %v4720_v34 = vpop.eup %4719  ;;  %v3892_v44 = vmul.f32 0.5, %v6524_v53 }
 0xf25   :  { %v3933_v13 = vadd.f32 -1.4531521, %v3929_v55  ;;  %v4722_v21 = vpop.eup %4721  ;;  %v3893_v58 = vmul.f32 0.5, %v6536_v23  ;;  %v3894_v55 = vmul.f32 0.5, %v6519_v11 }
 0xf26   :  { %v3950_v38 = vadd.f32 -0.28449672, %v3946_v46  ;;  %v3944_v35 = vmul.f32 %v4712_v24, %v3940_v42  ;;  %v3943_v5 = vadd.f32 1.4214138, %v3939_v1  ;;  %v4724_v36 = vpop.eup %4723 }
 0xf27   :  { %v3937_v39 = vmul.f32 %v4716_v19, %v3933_v13 }
 0xf28   :  { %v3954_v9 = vmul.f32 %v4710_v57, %v3950_v38  ;;  %v3948_v12 = vadd.f32 -0.28449672, %v3944_v35  ;;  %v3947_v32 = vmul.f32 %v4714_v62, %v3943_v5 }
 0xf29   :  { %v3941_v41 = vadd.f32 1.4214138, %v3937_v39 }
 0xf2a   :  { %v3958_v60 = vadd.f32 0.2548296, %v3954_v9  ;;  %v3952_v7 = vmul.f32 %v4712_v24, %v3948_v12  ;;  %v3951_v2 = vadd.f32 -0.28449672, %v3947_v32 }
 0xf2b   :  { %v3945_v61 = vmul.f32 %v4716_v19, %v3941_v41 }
 0xf2c   :  { %v3962_v56 = vmul.f32 %v4710_v57, %v3958_v60  ;;  %v3956_v14 = vadd.f32 0.2548296, %v3952_v7  ;;  %v3955_v20 = vmul.f32 %v4714_v62, %v3951_v2 }
 0xf2d   :  { %v3949_v59 = vadd.f32 -0.28449672, %v3945_v61 }
 0xf2e   :  { %v3982_v33 = vmul.f32 %v4718_v0, %v3962_v56  ;;  %v3960_v22 = vmul.f32 %v4712_v24, %v3956_v14  ;;  %v3959_v6 = vadd.f32 0.2548296, %v3955_v20  ;;  %v3906_v24 = vsel %vm3902_vm14, 1.0, %v4792_v30 }
 0xf2f   :  { %v3953_v51 = vmul.f32 %v4716_v19, %v3949_v59 }
 0xf30   :  { %v3980_v50 = vmul.f32 %v4720_v34, %v3960_v22  ;;  %v3963_v40 = vmul.f32 %v4714_v62, %v3959_v6  ;;  %v3986_v8 = vsub.f32 1.0, %v3982_v33 }
 0xf31   :  { %v3957_v43 = vadd.f32 0.2548296, %v3953_v51 }
 0xf32   :  { %v3984_v57 = vsub.f32 1.0, %v3980_v50  ;;  %v3983_v16 = vmul.f32 %v4722_v21, %v3963_v40  ;;  %v3990_v3 = vmul.f32 %v3986_v8, %v3906_v24 }
 0xf33   :  { %v3961_v4 = vmul.f32 %v4716_v19, %v3957_v43  ;;  %v3895_v19 = vmul.f32 0.5, %v6530_v28  ;;  %v4322_v28 = vld [vmem:[%s6581_s16] ss:$0 sm:$0xff]  ;;  %s4757_s16 = scalar_lea.vmem %s4140_s26, 512 }
 0xf34   :  { %v3987_v15 = vsub.f32 1.0, %v3983_v16  ;;  %v3988_v52 = vmul.f32 %v3984_v57, %v3904_v29  ;;  %v3994_v49 = vadd.f32 1.0, %v3990_v3  ;;  %p4758_p0 = scmp.ne.s32.totalorder %s4140_s26, %s4757_s16  ;;  %p4763_p2 = scmp.lt.s32.totalorder %s4757_s16, %s4757_s16 }
 0xf35   :  { %v3981_v62 = vmul.f32 %v4724_v36, %v3961_v4 }
 0xf36   :  { %v3991_v37 = vmul.f32 %v3987_v15, %v3907_v27  ;;  %v3992_v31 = vadd.f32 1.0, %v3988_v52  ;;  %v3998_v1 = vmul.f32 %v3994_v49, %v3894_v55  ;;  %p4764_p3 = por %p4763_p2, %p4762_p1 }
 0xf37   :  { %v3985_v10 = vsub.f32 1.0, %v3981_v62 }
 0xf38   :  { %v3995_v63 = vadd.f32 1.0, %v3991_v37  ;;  %v3996_v18 = vmul.f32 %v3992_v31, %v3892_v44  ;;  %p4765_p4 = pnand %p4764_p3, %p4758_p0 }
 0xf39   :  { %v3989_v45 = vmul.f32 %v3985_v10, %v3905_v48 }
 0xf3a   :  { %v3999_v54 = vmul.f32 %v3995_v63, %v3895_v19 }
 0xf3b   :  { %v3993_v46 = vadd.f32 1.0, %v3989_v45 }
 0xf3c   :  { %v4017_v13 = vpack.c.bf16 %v3999_v54, %v3998_v1 }
 0xf3d   :  { %v3997_v42 = vmul.f32 %v3993_v46, %v3893_v58 }
 0xf3f   :  { %v4016_v38 = vpack.c.bf16 %v3997_v42, %v3996_v18 }
 0xf41   :  { %4445 = vmatprep.mubr.bf16.mxu0 %v4016_v38 }
 0xf42   :  { %4446 = vmatmul.mubr.bf16.vlgmr.msra.gmra.mxu0 %v4017_v13 }
0x1002   :  { %v4447_v35 = vpop.f32.mrf.mxu0 }
0x1003   :  { %v4117_v53 = vadd.f32 %v4447_v35, %v6450_v47 }
0x1004   :  { %v4100_v5 = vpop.f32.mrf.mxu0 }
0x1005   :  { %v4128_v23 = vadd.f32 %v4322_v28, %v4117_v53  ;;  %v4115_v9 = vadd.f32 %v4100_v5, %v6445_v26 }
0x1006   :  { %v4448_v11 = vpop.f32.mrf.mxu0 }
0x1007   :  { %4132 = vst.msk [vmem:[#allocation8 + $0x10] sm:$0xff] %vm64_vm0, %v4128_v23  ;;  %v4126_v39 = vadd.f32 %v4322_v28, %v4115_v9  ;;  %v4118_v12 = vadd.f32 %v4448_v11, %v6462_v25 }
0x1008   :  { %v4103_v32 = vpop.f32.mrf.mxu0 }
0x1009   :  { %4130 = vst.msk [vmem:[#allocation8] sm:$0xff] %vm64_vm0, %v4126_v39  ;;  %v4129_v60 = vadd.f32 %v4322_v28, %v4118_v12  ;;  %v4116_v41 = vadd.f32 %v4103_v32, %v6457_v17 }
0x100b   :  { %4133 = vst.msk [vmem:[#allocation8 + $0x18] sm:$0xff] %vm64_vm0, %v4129_v60  ;;  %v4127_v47 = vadd.f32 %v4322_v28, %v4116_v41 }
0x100d   :  { %4131 = vst.msk [vmem:[#allocation8 + $0x8] sm:$0xff] %vm64_vm0, %v4127_v47 }
0x100e   :  { %4768 = shalt.err (!%p4765_p4)
}
0x100f   :  { %s4794_s22 = smov 128   ;;  %s4795_s23 = smov 8  }
0x1010   :  { %4145 = dma.vmem_to_hbm [thread:$0]  %s4140_s26, 512, %s6582_s17, [#allocation9], %s4794_s22, %s4794_s22, %s4795_s23  }
0x1011   :  { %4777 = dma.done.wait [#allocation9], 512  }
0x1012   :  { %4778 = vsyncadd [#allocation9], 4294966784 }
0x1013   :  { %4149 = vsyncpa [#allocation9], 1 }

</bundles_post_ra>
